<compile_context>
chip_gen: v5e
topology: v5e:2x2
jax: 0.10.0
libtpu: 0.0.40
codegen_flags: <defaults>
</compile_context>

<pallas_src>
import jax
import jax.numpy as jnp
import numpy as np
from jax.experimental import pallas as pl
from jax.experimental.pallas import tpu as pltpu


_CONST_ORDER = ("wlt", "bl", "w1cm", "b1cm", "m1", "r1",
                "w2s", "b2s", "g2", "w3s", "b3s", "g3",
                "w4s", "b4s", "gx4")

_LQ2, _LQ3, _LQ4 = 22, 78, 286     # im2col widths for h = 4, 8, 16 (lq = (h-1)*(h+2)+h)


# ---------------------------------------------------------------------------
# In-kernel helpers (traced inline).
# ---------------------------------------------------------------------------
def _fill_patches(p_ref, xb, b, cin, h):
    """Write the 9 shifted 3x3-window views of ONE image's padded channel-major
    activation into its lane-block of the batched im2col scratch.

    xb:    (cin, (h+2)*(h+2)) value; spatial flattened row-major, row stride h+2.
    p_ref: (9*cin, bb*lq) scratch with lq = (h-1)*(h+2)+h.  Window columns keep the
           padded row stride, so the trailing 2 columns of every spatial row are
           junk; they are zeroed later by the 0/1 scatter matmuls.
    """
    wp = h + 2
    lq = (h - 1) * wp + h
    for ty in range(3):
        for tx in range(3):
            t = ty * 3 + tx
            s = ty * wp + tx
            p_ref[t * cin:(t + 1) * cin, b * lq:(b + 1) * lq] = xb[:, s:s + lq]


def _phase_scatter(o_ref, g_ref, b, cout, lq):
    """Per-image 2x2 phase interleave + zero-pad: slice image b out of the batched
    (4*cout, bb*lq) phase output and scatter to the next layer's padded layout."""
    f32 = jnp.float32
    c0 = b * lq
    out = jnp.dot(o_ref[0:cout, c0:c0 + lq], g_ref[0], preferred_element_type=f32)
    for ph in range(1, 4):
        out = out + jnp.dot(o_ref[ph * cout:(ph + 1) * cout, c0:c0 + lq], g_ref[ph],
                            preferred_element_type=f32)
    return out


def _decoder_kernel(z_ref, wlt_ref, bl_ref, w1_ref, b1_ref, m1_ref, r1_ref,
                    w2_ref, b2_ref, g2_ref, w3_ref, b3_ref, g3_ref,
                    w4_ref, b4_ref, gx_ref, o_ref,
                    p2_ref, p3_ref, o2_ref, o3_ref):
    f32 = jnp.float32
    bb = z_ref.shape[0]

    # ---- head (batched over the bb images of this grid step):
    #      linear -> relu -> conv1 (ConvT on a 1x1 input == matmul) -> relu
    h = jnp.dot(z_ref[...], wlt_ref[...], preferred_element_type=f32) + bl_ref[...]
    h = jnp.maximum(h, 0.0)                                        # (bb, 128)
    a1 = jnp.dot(h, w1_ref[...], preferred_element_type=f32) + b1_ref[...]
    a1 = jnp.maximum(a1, 0.0)                 # (bb, 1024); col = co*16 + qy*4 + qx

    # per image: lane row -> channel-major zero-padded 6x6 (64, 36) via exact 0/1
    # constant matmuls, written straight into conv2's batched im2col scratch.
    for b in range(bb):
        x2_b = jnp.dot(m1_ref[...] * a1[b:b + 1, :], r1_ref[...],
                       preferred_element_type=f32)                 # (64, 36)
        _fill_patches(p2_ref, x2_b, b, cin=64, h=4)

    # ---- conv2: ONE batched weight matmul (N = bb*22), relu, then per-image
    #      phase scatter feeding conv3's batched im2col scratch.
    o2 = jnp.dot(w2_ref[...], p2_ref[...], preferred_element_type=f32) + b2_ref[...]
    o2_ref[...] = jnp.maximum(o2, 0.0)                             # (256, bb*22)
    for b in range(bb):
        x3_b = _phase_scatter(o2_ref, g2_ref, b, cout=64, lq=_LQ2)  # (64, 100)
        _fill_patches(p3_ref, x3_b, b, cin=64, h=8)

    # ---- conv3: ONE batched weight matmul (N = bb*78), relu.
    o3 = jnp.dot(w3_ref[...], p3_ref[...], preferred_element_type=f32) + b3_ref[...]
    o3_ref[...] = jnp.maximum(o3, 0.0)                             # (128, bb*78)

    # ---- conv4 per image: phase scatter of conv3, then 9 direct tap dots (no
    #      im2col scratch), no relu, and ONE lane-dense (3, 1024) output store via
    #      the folded gx scatter matrices (row placement oy = 2*qy + py is inside gx).
    w4 = w4_ref[...]                                               # (12, 288)
    b4 = b4_ref[...]                                               # (12, 1)
    for b in range(bb):
        x4_b = _phase_scatter(o3_ref, g3_ref, b, cout=32, lq=_LQ3)  # (32, 324)
        wp = 18
        acc = None
        for ty in range(3):
            for tx in range(3):
                t = ty * 3 + tx
                s = ty * wp + tx
                d = jnp.dot(w4[:, t * 32:(t + 1) * 32], x4_b[:, s:s + _LQ4],
                            preferred_element_type=f32)
                acc = d if acc is None else acc + d
        o4_b = acc + b4                                            # (12, 286)
        img = jnp.dot(o4_b[0:3, :], gx_ref[0], preferred_element_type=f32)
        for ph in range(1, 4):
            img = img + jnp.dot(o4_b[ph * 3:(ph + 1) * 3, :], gx_ref[ph],
                                preferred_element_type=f32)
        o_ref[b, :, :] = img                                       # lane-dense (3, 1024)


# ---------------------------------------------------------------------------
# One-time parameter preprocessing (hoisted out of the forward path).
# ---------------------------------------------------------------------------
def preprocess_params(params):
    f32 = np.float32

    wlt = np.asarray(params["linear_w"], f32).T                    # (class_dim, 128)
    bl = np.asarray(params["linear_b"], f32).reshape(1, 128)

    w1 = np.asarray(params["conv1_w"], f32)                        # (128, 64, 4, 4)
    w1cm = w1.reshape(128, 64 * 16)                                # [ci, co*16 + ky*4 + kx]
    b1cm = np.repeat(np.asarray(params["conv1_b"], f32), 16).reshape(1, 1024)

    # (1, 1024) lane row -> channel-major (64, 16) -> zero-padded 6x6 (64, 36)
    m1 = np.kron(np.eye(64, dtype=f32), np.ones((1, 16), f32))     # (64, 1024)
    r1 = np.zeros((1024, 36), f32)
    for j in range(1024):
        q = j % 16
        r1[j, (q // 4 + 1) * 6 + (q % 4 + 1)] = 1.0

    def deconv_consts(w, b, h, final=False):
        # w: torch ConvTranspose2d weight (Cin, Cout, 4, 4); input spatial h x h.
        w = np.asarray(w, f32)
        cin, cout = w.shape[0], w.shape[1]
        wp = h + 2
        lq = (h - 1) * wp + h
        wstack = np.zeros((4 * cout, 9 * cin), f32)
        for py in range(2):
            for px in range(2):
                ph = py * 2 + px
                for dy in range(2):
                    for dx in range(2):
                        ty, tx = py + dy, px + dx
                        t = ty * 3 + tx
                        ky, kx = 3 - py - 2 * dy, 3 - px - 2 * dx
                        wstack[ph * cout:(ph + 1) * cout,
                               t * cin:(t + 1) * cin] = w[:, :, ky, kx].T
        bstack = np.tile(np.asarray(b, f32), 4).reshape(4 * cout, 1)
        if final:
            n = 2 * h                                              # 32
            gx = np.zeros((4, lq, n * n), f32)                     # (4, 286, 1024)
            for py in range(2):
                for px in range(2):
                    ph = py * 2 + px
                    for q in range(lq):
                        qy, qx = q // wp, q % wp
                        if qx < h:                                  # junk columns masked
                            gx[ph, q, (2 * qy + py) * n + (2 * qx + px)] = 1.0
            return wstack, bstack, gx
        wpn = 2 * h + 2
        g = np.zeros((4, lq, wpn * wpn), f32)
        for py in range(2):
            for px in range(2):
                ph = py * 2 + px
                for q in range(lq):
                    qy, qx = q // wp, q % wp
                    if qx < h:                                      # junk columns masked
                        g[ph, q, (1 + 2 * qy + py) * wpn + (1 + 2 * qx + px)] = 1.0
        return wstack, bstack, g

    w2s, b2s, g2 = deconv_consts(params["conv2_w"], params["conv2_b"], 4)
    w3s, b3s, g3 = deconv_consts(params["conv3_w"], params["conv3_b"], 8)
    w4s, b4s, gx4 = deconv_consts(params["conv4_w"], params["conv4_b"], 16, final=True)

    consts = dict(wlt=wlt, bl=bl, w1cm=w1cm, b1cm=b1cm, m1=m1, r1=r1,
                  w2s=w2s, b2s=b2s, g2=g2, w3s=w3s, b3s=b3s, g3=g3,
                  w4s=w4s, b4s=b4s, gx4=gx4)
    return {k: jnp.asarray(v) for k, v in consts.items()}


# ---------------------------------------------------------------------------
# Forward wrapper.
# ---------------------------------------------------------------------------
def _pick_bb(batch, bb_max=4):
    if batch <= 1:
        return 1
    # keep >= 2 grid steps so v7x's two TensorCores both get work
    return max(1, min(bb_max, -(-batch // 2)))


def decoder_svhn_forward(prep, class_latent_space, *, bb_max=4):
    z = class_latent_space.astype(jnp.float32)
    B, D = z.shape
    bb = _pick_bb(B, bb_max)
    n_steps = -(-B // bb)
    b_pad = n_steps * bb
    if b_pad != B:
        z = jnp.concatenate([z, jnp.zeros((b_pad - B, D), jnp.float32)], axis=0)
    z3 = z.reshape(n_steps, bb, D)

    consts = [prep[k] for k in _CONST_ORDER]

    def _full(a):
        zeros = (0,) * a.ndim
        return pl.BlockSpec(a.shape, lambda i, _z=zeros: _z)

    out = pl.pallas_call(
        _decoder_kernel,
        grid=(n_steps,),
        in_specs=[pl.BlockSpec((None, bb, D), lambda i: (i, 0, 0))]
                 + [_full(a) for a in consts],
        out_specs=pl.BlockSpec((bb, 3, 1024), lambda i: (i, 0, 0)),
        out_shape=jax.ShapeDtypeStruct((b_pad, 3, 1024), jnp.float32),
        scratch_shapes=[
            pltpu.VMEM((9 * 64, bb * _LQ2), jnp.float32),   # conv2 batched im2col
            pltpu.VMEM((9 * 64, bb * _LQ3), jnp.float32),   # conv3 batched im2col
            pltpu.VMEM((4 * 64, bb * _LQ2), jnp.float32),   # conv2 batched phase output
            pltpu.VMEM((4 * 32, bb * _LQ3), jnp.float32),   # conv3 batched phase output
        ],
        compiler_params=pltpu.CompilerParams(
            dimension_semantics=("parallel",),
            vmem_limit_bytes=32 * 1024 * 1024),
    )(z3, *consts)

    x_hat = out[:B].reshape(B, 3, 32, 32)   # metadata-only reshape, already NCHW
    return x_hat, jnp.float32(0.75)


# ---------------------------------------------------------------------------
# Pure-JAX reference (direct scatter-add from the ConvTranspose2d definition)
# ---------------------------------------------------------------------------
def _conv_transpose_ref(x, w, b, stride, padding):
    B, Cin, H, W = x.shape
    Cout, K = w.shape[1], w.shape[2]
    Ho = (H - 1) * stride - 2 * padding + K
    full = (H - 1) * stride + K
    contrib = jnp.einsum('bchw,cokl->bohwkl', x, w)
    out = jnp.zeros((B, Cout, full, full), jnp.float32)
    for ky in range(K):
        for kx in range(K):
            out = out.at[:, :,
                         ky:ky + (H - 1) * stride + 1:stride,
                         kx:kx + (W - 1) * stride + 1:stride].add(contrib[..., ky, kx])
    out = out[:, :, padding:padding + Ho, padding:padding + Ho]
    return out + b[None, :, None, None]


def decoder_svhn_ref(params, z):
    h = z @ params["linear_w"].T + params["linear_b"]
    h = h.reshape(h.shape[0], 128, 1, 1)
    h = jnp.maximum(h, 0.0)
    h = _conv_transpose_ref(h, params["conv1_w"], params["conv1_b"], 1, 0)
    h = jnp.maximum(h, 0.0)
    h = _conv_transpose_ref(h, params["conv2_w"], params["conv2_b"], 2, 1)
    h = jnp.maximum(h, 0.0)
    h = _conv_transpose_ref(h, params["conv3_w"], params["conv3_b"], 2, 1)
    h = jnp.maximum(h, 0.0)
    h = _conv_transpose_ref(h, params["conv4_w"], params["conv4_b"], 2, 1)
    return h


# ---------------------------------------------------------------------------
# Parameter init (deterministic, synthetic, torch layouts)
# ---------------------------------------------------------------------------
def init_params(key, class_dim):
    ks = jax.random.split(key, 10)

    def rnd(k, shape, scale=0.1):
        return jax.random.normal(k, shape, jnp.float32) * scale

    return {
        "linear_w": rnd(ks[0], (128, class_dim)),     # nn.Linear weight (out, in)
        "linear_b": rnd(ks[1], (128,)),
        "conv1_w": rnd(ks[2], (128, 64, 4, 4)),       # ConvTranspose2d: (Cin, Cout, K, K)
        "conv1_b": rnd(ks[3], (64,)),
        "conv2_w": rnd(ks[4], (64, 64, 4, 4)),
        "conv2_b": rnd(ks[5], (64,)),
        "conv3_w": rnd(ks[6], (64, 32, 4, 4)),
        "conv3_b": rnd(ks[7], (32,)),
        "conv4_w": rnd(ks[8], (32, 3, 4, 4)),
        "conv4_b": rnd(ks[9], (3,)),
    }


if __name__ == "__main__":
    CLASS_DIM = 20
    key = jax.random.PRNGKey(0)
    pkey, zkey = jax.random.split(key)
    params = init_params(pkey, CLASS_DIM)
    prep = preprocess_params(params)          # one-time, outside the forward path
    fwd = jax.jit(decoder_svhn_forward)

    # B=2 exercises bb=1 with a 2-step grid (v7x: both TensorCores busy);
    # B=5 exercises lane-axis batching (bb=3, 2 grid steps) plus batch padding.
    for B in (2, 5):
        z = jax.random.normal(jax.random.fold_in(zkey, B), (B, CLASS_DIM), jnp.float32)
        x_hat, scale = fwd(prep, z)
        x_hat = jax.block_until_ready(x_hat)
        scale = jax.block_until_ready(scale)
        assert x_hat.shape == (B, 3, 32, 32)
        assert float(scale) == 0.75
        x_ref = jax.block_until_ready(decoder_svhn_ref(params, z))
        np.testing.assert_allclose(np.asarray(x_hat), np.asarray(x_ref),
                                   rtol=2e-3, atol=2e-3)
    print("KERNEL_OK")
</pallas_src>

<mosaic_0001>
module attributes {stable_mosaic.version = 11 : i64} {
  func.func @_decoder_kernel(%arg0: i32, %arg1: memref<1x1x20xf32, #tpu.memory_space<vmem>>, %arg2: memref<20x128xf32, #tpu.memory_space<vmem>>, %arg3: memref<1x128xf32, #tpu.memory_space<vmem>>, %arg4: memref<128x1024xf32, #tpu.memory_space<vmem>>, %arg5: memref<1x1024xf32, #tpu.memory_space<vmem>>, %arg6: memref<64x1024xf32, #tpu.memory_space<vmem>>, %arg7: memref<1024x36xf32, #tpu.memory_space<vmem>>, %arg8: memref<256x576xf32, #tpu.memory_space<vmem>>, %arg9: memref<256x1xf32, #tpu.memory_space<vmem>>, %arg10: memref<4x22x100xf32, #tpu.memory_space<vmem>>, %arg11: memref<128x576xf32, #tpu.memory_space<vmem>>, %arg12: memref<128x1xf32, #tpu.memory_space<vmem>>, %arg13: memref<4x78x324xf32, #tpu.memory_space<vmem>>, %arg14: memref<12x288xf32, #tpu.memory_space<vmem>>, %arg15: memref<12x1xf32, #tpu.memory_space<vmem>>, %arg16: memref<4x286x1024xf32, #tpu.memory_space<vmem>>, %arg17: memref<1x3x1024xf32, #tpu.memory_space<vmem>>, %arg18: memref<576x22xf32, #tpu.memory_space<vmem>>, %arg19: memref<576x78xf32, #tpu.memory_space<vmem>>, %arg20: memref<256x22xf32, #tpu.memory_space<vmem>>, %arg21: memref<128x78xf32, #tpu.memory_space<vmem>>) attributes {dimension_semantics = [#tpu.dimension_semantics<parallel>], iteration_bounds = array<i64: 2>, scalar_prefetch = 0 : i64, scratch_operands = 4 : i64, tpu.core_type = #tpu.core_type<tc>, window_params = [{transform_indices = @transform_0, window_bounds = array<i64: 1, 1, 20>}, {pipeline_mode = #tpu.pipeline_mode<synchronous>, transform_indices = @transform_1, window_bounds = array<i64: 20, 128>}, {pipeline_mode = #tpu.pipeline_mode<synchronous>, transform_indices = @transform_2, window_bounds = array<i64: 1, 128>}, {pipeline_mode = #tpu.pipeline_mode<synchronous>, transform_indices = @transform_3, window_bounds = array<i64: 128, 1024>}, {pipeline_mode = #tpu.pipeline_mode<synchronous>, transform_indices = @transform_4, window_bounds = array<i64: 1, 1024>}, {pipeline_mode = #tpu.pipeline_mode<synchronous>, transform_indices = @transform_5, window_bounds = array<i64: 64, 1024>}, {pipeline_mode = #tpu.pipeline_mode<synchronous>, transform_indices = @transform_6, window_bounds = array<i64: 1024, 36>}, {pipeline_mode = #tpu.pipeline_mode<synchronous>, transform_indices = @transform_7, window_bounds = array<i64: 256, 576>}, {pipeline_mode = #tpu.pipeline_mode<synchronous>, transform_indices = @transform_8, window_bounds = array<i64: 256, 1>}, {pipeline_mode = #tpu.pipeline_mode<synchronous>, transform_indices = @transform_9, window_bounds = array<i64: 4, 22, 100>}, {pipeline_mode = #tpu.pipeline_mode<synchronous>, transform_indices = @transform_10, window_bounds = array<i64: 128, 576>}, {pipeline_mode = #tpu.pipeline_mode<synchronous>, transform_indices = @transform_11, window_bounds = array<i64: 128, 1>}, {pipeline_mode = #tpu.pipeline_mode<synchronous>, transform_indices = @transform_12, window_bounds = array<i64: 4, 78, 324>}, {pipeline_mode = #tpu.pipeline_mode<synchronous>, transform_indices = @transform_13, window_bounds = array<i64: 12, 288>}, {pipeline_mode = #tpu.pipeline_mode<synchronous>, transform_indices = @transform_14, window_bounds = array<i64: 12, 1>}, {pipeline_mode = #tpu.pipeline_mode<synchronous>, transform_indices = @transform_15, window_bounds = array<i64: 4, 286, 1024>}, {transform_indices = @transform_16, window_bounds = array<i64: 1, 3, 1024>}]} {
    %c0 = arith.constant 0 : index
    %c0_0 = arith.constant 0 : index
    %c0_1 = arith.constant 0 : index
    %0 = vector.load %arg1[%c0, %c0_0, %c0_1] : memref<1x1x20xf32, #tpu.memory_space<vmem>>, vector<1x1x20xf32>
    %1 = vector.shape_cast %0 : vector<1x1x20xf32> to vector<1x20xf32>
    %c0_2 = arith.constant 0 : index
    %c0_3 = arith.constant 0 : index
    %2 = vector.load %arg2[%c0_2, %c0_3] : memref<20x128xf32, #tpu.memory_space<vmem>>, vector<20x128xf32>
    %cst = arith.constant dense<0.000000e+00> : vector<1x128xf32>
    %3 = tpu.matmul %1, %2, %cst {dimension_numbers = #tpu.dot_dimension_numbers<[1], [0], [0], [1], [0, 0, 1, 1], [], []>} : vector<1x20xf32>, vector<20x128xf32>, vector<1x128xf32> -> vector<1x128xf32>
    %c0_4 = arith.constant 0 : index
    %c0_5 = arith.constant 0 : index
    %4 = vector.load %arg3[%c0_4, %c0_5] : memref<1x128xf32, #tpu.memory_space<vmem>>, vector<1x128xf32>
    %5 = arith.addf %3, %4 : vector<1x128xf32>
    %cst_6 = arith.constant 0.000000e+00 : f32
    %6 = vector.broadcast %cst_6 : f32 to vector<1x128xf32>
    %7 = arith.maximumf %5, %6 : vector<1x128xf32>
    %c0_7 = arith.constant 0 : index
    %c0_8 = arith.constant 0 : index
    %8 = vector.load %arg4[%c0_7, %c0_8] : memref<128x1024xf32, #tpu.memory_space<vmem>>, vector<128x1024xf32>
    %cst_9 = arith.constant dense<0.000000e+00> : vector<1x1024xf32>
    %9 = tpu.matmul %7, %8, %cst_9 {dimension_numbers = #tpu.dot_dimension_numbers<[1], [0], [0], [1], [0, 0, 1, 1], [], []>} : vector<1x128xf32>, vector<128x1024xf32>, vector<1x1024xf32> -> vector<1x1024xf32>
    %c0_10 = arith.constant 0 : index
    %c0_11 = arith.constant 0 : index
    %10 = vector.load %arg5[%c0_10, %c0_11] : memref<1x1024xf32, #tpu.memory_space<vmem>>, vector<1x1024xf32>
    %11 = arith.addf %9, %10 : vector<1x1024xf32>
    %cst_12 = arith.constant 0.000000e+00 : f32
    %12 = vector.broadcast %cst_12 : f32 to vector<1x1024xf32>
    %13 = arith.maximumf %11, %12 : vector<1x1024xf32>
    %c0_13 = arith.constant 0 : index
    %c0_14 = arith.constant 0 : index
    %14 = vector.load %arg6[%c0_13, %c0_14] : memref<64x1024xf32, #tpu.memory_space<vmem>>, vector<64x1024xf32>
    %15 = vector.broadcast %13 : vector<1x1024xf32> to vector<64x1024xf32>
    %16 = arith.mulf %14, %15 : vector<64x1024xf32>
    %c0_15 = arith.constant 0 : index
    %c0_16 = arith.constant 0 : index
    %17 = vector.load %arg7[%c0_15, %c0_16] : memref<1024x36xf32, #tpu.memory_space<vmem>>, vector<1024x36xf32>
    %cst_17 = arith.constant dense<0.000000e+00> : vector<64x36xf32>
    %18 = tpu.matmul %16, %17, %cst_17 {dimension_numbers = #tpu.dot_dimension_numbers<[1], [0], [0], [1], [0, 0, 1, 1], [], []>} : vector<64x1024xf32>, vector<1024x36xf32>, vector<64x36xf32> -> vector<64x36xf32>
    %19 = vector.extract_strided_slice %18 {offsets = [0, 0], sizes = [64, 22], strides = [1, 1]} : vector<64x36xf32> to vector<64x22xf32>
    %c0_18 = arith.constant 0 : index
    %c0_19 = arith.constant 0 : index
    %20 = vector.load %arg18[%c0_18, %c0_19] : memref<576x22xf32, #tpu.memory_space<vmem>>, vector<64x22xf32>
    tpu.vector_store %arg18[%c0_18, %c0_19], %19 {strides = array<i32>} : memref<576x22xf32, #tpu.memory_space<vmem>>, vector<64x22xf32>,
    %21 = vector.extract_strided_slice %18 {offsets = [0, 1], sizes = [64, 22], strides = [1, 1]} : vector<64x36xf32> to vector<64x22xf32>
    %c64 = arith.constant 64 : index
    %c0_20 = arith.constant 0 : index
    %22 = vector.load %arg18[%c64, %c0_20] : memref<576x22xf32, #tpu.memory_space<vmem>>, vector<64x22xf32>
    tpu.vector_store %arg18[%c64, %c0_20], %21 {strides = array<i32>} : memref<576x22xf32, #tpu.memory_space<vmem>>, vector<64x22xf32>,
    %23 = vector.extract_strided_slice %18 {offsets = [0, 2], sizes = [64, 22], strides = [1, 1]} : vector<64x36xf32> to vector<64x22xf32>
    %c128 = arith.constant 128 : index
    %c0_21 = arith.constant 0 : index
    %24 = vector.load %arg18[%c128, %c0_21] : memref<576x22xf32, #tpu.memory_space<vmem>>, vector<64x22xf32>
    tpu.vector_store %arg18[%c128, %c0_21], %23 {strides = array<i32>} : memref<576x22xf32, #tpu.memory_space<vmem>>, vector<64x22xf32>,
    %25 = vector.extract_strided_slice %18 {offsets = [0, 6], sizes = [64, 22], strides = [1, 1]} : vector<64x36xf32> to vector<64x22xf32>
    %c192 = arith.constant 192 : index
    %c0_22 = arith.constant 0 : index
    %26 = vector.load %arg18[%c192, %c0_22] : memref<576x22xf32, #tpu.memory_space<vmem>>, vector<64x22xf32>
    tpu.vector_store %arg18[%c192, %c0_22], %25 {strides = array<i32>} : memref<576x22xf32, #tpu.memory_space<vmem>>, vector<64x22xf32>,
    %27 = vector.extract_strided_slice %18 {offsets = [0, 7], sizes = [64, 22], strides = [1, 1]} : vector<64x36xf32> to vector<64x22xf32>
    %c256 = arith.constant 256 : index
    %c0_23 = arith.constant 0 : index
    %28 = vector.load %arg18[%c256, %c0_23] : memref<576x22xf32, #tpu.memory_space<vmem>>, vector<64x22xf32>
    tpu.vector_store %arg18[%c256, %c0_23], %27 {strides = array<i32>} : memref<576x22xf32, #tpu.memory_space<vmem>>, vector<64x22xf32>,
    %29 = vector.extract_strided_slice %18 {offsets = [0, 8], sizes = [64, 22], strides = [1, 1]} : vector<64x36xf32> to vector<64x22xf32>
    %c320 = arith.constant 320 : index
    %c0_24 = arith.constant 0 : index
    %30 = vector.load %arg18[%c320, %c0_24] : memref<576x22xf32, #tpu.memory_space<vmem>>, vector<64x22xf32>
    tpu.vector_store %arg18[%c320, %c0_24], %29 {strides = array<i32>} : memref<576x22xf32, #tpu.memory_space<vmem>>, vector<64x22xf32>,
    %31 = vector.extract_strided_slice %18 {offsets = [0, 12], sizes = [64, 22], strides = [1, 1]} : vector<64x36xf32> to vector<64x22xf32>
    %c384 = arith.constant 384 : index
    %c0_25 = arith.constant 0 : index
    %32 = vector.load %arg18[%c384, %c0_25] : memref<576x22xf32, #tpu.memory_space<vmem>>, vector<64x22xf32>
    tpu.vector_store %arg18[%c384, %c0_25], %31 {strides = array<i32>} : memref<576x22xf32, #tpu.memory_space<vmem>>, vector<64x22xf32>,
    %33 = vector.extract_strided_slice %18 {offsets = [0, 13], sizes = [64, 22], strides = [1, 1]} : vector<64x36xf32> to vector<64x22xf32>
    %c448 = arith.constant 448 : index
    %c0_26 = arith.constant 0 : index
    %34 = vector.load %arg18[%c448, %c0_26] : memref<576x22xf32, #tpu.memory_space<vmem>>, vector<64x22xf32>
    tpu.vector_store %arg18[%c448, %c0_26], %33 {strides = array<i32>} : memref<576x22xf32, #tpu.memory_space<vmem>>, vector<64x22xf32>,
    %35 = vector.extract_strided_slice %18 {offsets = [0, 14], sizes = [64, 22], strides = [1, 1]} : vector<64x36xf32> to vector<64x22xf32>
    %c512 = arith.constant 512 : index
    %c0_27 = arith.constant 0 : index
    %36 = vector.load %arg18[%c512, %c0_27] : memref<576x22xf32, #tpu.memory_space<vmem>>, vector<64x22xf32>
    tpu.vector_store %arg18[%c512, %c0_27], %35 {strides = array<i32>} : memref<576x22xf32, #tpu.memory_space<vmem>>, vector<64x22xf32>,
    %c0_28 = arith.constant 0 : index
    %c0_29 = arith.constant 0 : index
    %37 = vector.load %arg8[%c0_28, %c0_29] : memref<256x576xf32, #tpu.memory_space<vmem>>, vector<256x576xf32>
    %c0_30 = arith.constant 0 : index
    %c0_31 = arith.constant 0 : index
    %38 = vector.load %arg18[%c0_30, %c0_31] : memref<576x22xf32, #tpu.memory_space<vmem>>, vector<576x22xf32>
    %cst_32 = arith.constant dense<0.000000e+00> : vector<256x22xf32>
    %39 = tpu.matmul %37, %38, %cst_32 {dimension_numbers = #tpu.dot_dimension_numbers<[1], [0], [0], [1], [0, 0, 1, 1], [], []>} : vector<256x576xf32>, vector<576x22xf32>, vector<256x22xf32> -> vector<256x22xf32>
    %c0_33 = arith.constant 0 : index
    %c0_34 = arith.constant 0 : index
    %40 = vector.load %arg9[%c0_33, %c0_34] : memref<256x1xf32, #tpu.memory_space<vmem>>, vector<256x1xf32>
    %41 = vector.broadcast %40 : vector<256x1xf32> to vector<256x22xf32>
    %42 = arith.addf %39, %41 : vector<256x22xf32>
    %cst_35 = arith.constant 0.000000e+00 : f32
    %43 = vector.broadcast %cst_35 : f32 to vector<256x22xf32>
    %44 = arith.maximumf %42, %43 : vector<256x22xf32>
    %c0_36 = arith.constant 0 : index
    %c0_37 = arith.constant 0 : index
    %45 = vector.load %arg20[%c0_36, %c0_37] : memref<256x22xf32, #tpu.memory_space<vmem>>, vector<256x22xf32>
    tpu.vector_store %arg20[%c0_36, %c0_37], %44 {strides = array<i32>} : memref<256x22xf32, #tpu.memory_space<vmem>>, vector<256x22xf32>,
    %c0_38 = arith.constant 0 : index
    %c0_39 = arith.constant 0 : index
    %46 = vector.load %arg20[%c0_38, %c0_39] : memref<256x22xf32, #tpu.memory_space<vmem>>, vector<64x22xf32>
    %c0_40 = arith.constant 0 : index
    %c0_41 = arith.constant 0 : index
    %c0_42 = arith.constant 0 : index
    %47 = vector.load %arg10[%c0_40, %c0_41, %c0_42] : memref<4x22x100xf32, #tpu.memory_space<vmem>>, vector<1x22x100xf32>
    %48 = vector.shape_cast %47 : vector<1x22x100xf32> to vector<22x100xf32>
    %cst_43 = arith.constant dense<0.000000e+00> : vector<64x100xf32>
    %49 = tpu.matmul %46, %48, %cst_43 {dimension_numbers = #tpu.dot_dimension_numbers<[1], [0], [0], [1], [0, 0, 1, 1], [], []>} : vector<64x22xf32>, vector<22x100xf32>, vector<64x100xf32> -> vector<64x100xf32>
    %c64_44 = arith.constant 64 : index
    %c0_45 = arith.constant 0 : index
    %50 = vector.load %arg20[%c64_44, %c0_45] : memref<256x22xf32, #tpu.memory_space<vmem>>, vector<64x22xf32>
    %c1 = arith.constant 1 : index
    %c0_46 = arith.constant 0 : index
    %c0_47 = arith.constant 0 : index
    %51 = vector.load %arg10[%c1, %c0_46, %c0_47] : memref<4x22x100xf32, #tpu.memory_space<vmem>>, vector<1x22x100xf32>
    %52 = vector.shape_cast %51 : vector<1x22x100xf32> to vector<22x100xf32>
    %cst_48 = arith.constant dense<0.000000e+00> : vector<64x100xf32>
    %53 = tpu.matmul %50, %52, %cst_48 {dimension_numbers = #tpu.dot_dimension_numbers<[1], [0], [0], [1], [0, 0, 1, 1], [], []>} : vector<64x22xf32>, vector<22x100xf32>, vector<64x100xf32> -> vector<64x100xf32>
    %54 = arith.addf %49, %53 : vector<64x100xf32>
    %c128_49 = arith.constant 128 : index
    %c0_50 = arith.constant 0 : index
    %55 = vector.load %arg20[%c128_49, %c0_50] : memref<256x22xf32, #tpu.memory_space<vmem>>, vector<64x22xf32>
    %c2 = arith.constant 2 : index
    %c0_51 = arith.constant 0 : index
    %c0_52 = arith.constant 0 : index
    %56 = vector.load %arg10[%c2, %c0_51, %c0_52] : memref<4x22x100xf32, #tpu.memory_space<vmem>>, vector<1x22x100xf32>
    %57 = vector.shape_cast %56 : vector<1x22x100xf32> to vector<22x100xf32>
    %cst_53 = arith.constant dense<0.000000e+00> : vector<64x100xf32>
    %58 = tpu.matmul %55, %57, %cst_53 {dimension_numbers = #tpu.dot_dimension_numbers<[1], [0], [0], [1], [0, 0, 1, 1], [], []>} : vector<64x22xf32>, vector<22x100xf32>, vector<64x100xf32> -> vector<64x100xf32>
    %59 = arith.addf %54, %58 : vector<64x100xf32>
    %c192_54 = arith.constant 192 : index
    %c0_55 = arith.constant 0 : index
    %60 = vector.load %arg20[%c192_54, %c0_55] : memref<256x22xf32, #tpu.memory_space<vmem>>, vector<64x22xf32>
    %c3 = arith.constant 3 : index
    %c0_56 = arith.constant 0 : index
    %c0_57 = arith.constant 0 : index
    %61 = vector.load %arg10[%c3, %c0_56, %c0_57] : memref<4x22x100xf32, #tpu.memory_space<vmem>>, vector<1x22x100xf32>
    %62 = vector.shape_cast %61 : vector<1x22x100xf32> to vector<22x100xf32>
    %cst_58 = arith.constant dense<0.000000e+00> : vector<64x100xf32>
    %63 = tpu.matmul %60, %62, %cst_58 {dimension_numbers = #tpu.dot_dimension_numbers<[1], [0], [0], [1], [0, 0, 1, 1], [], []>} : vector<64x22xf32>, vector<22x100xf32>, vector<64x100xf32> -> vector<64x100xf32>
    %64 = arith.addf %59, %63 : vector<64x100xf32>
    %65 = vector.extract_strided_slice %64 {offsets = [0, 0], sizes = [64, 78], strides = [1, 1]} : vector<64x100xf32> to vector<64x78xf32>
    %c0_59 = arith.constant 0 : index
    %c0_60 = arith.constant 0 : index
    %66 = vector.load %arg19[%c0_59, %c0_60] : memref<576x78xf32, #tpu.memory_space<vmem>>, vector<64x78xf32>
    tpu.vector_store %arg19[%c0_59, %c0_60], %65 {strides = array<i32>} : memref<576x78xf32, #tpu.memory_space<vmem>>, vector<64x78xf32>,
    %67 = vector.extract_strided_slice %64 {offsets = [0, 1], sizes = [64, 78], strides = [1, 1]} : vector<64x100xf32> to vector<64x78xf32>
    %c64_61 = arith.constant 64 : index
    %c0_62 = arith.constant 0 : index
    %68 = vector.load %arg19[%c64_61, %c0_62] : memref<576x78xf32, #tpu.memory_space<vmem>>, vector<64x78xf32>
    tpu.vector_store %arg19[%c64_61, %c0_62], %67 {strides = array<i32>} : memref<576x78xf32, #tpu.memory_space<vmem>>, vector<64x78xf32>,
    %69 = vector.extract_strided_slice %64 {offsets = [0, 2], sizes = [64, 78], strides = [1, 1]} : vector<64x100xf32> to vector<64x78xf32>
    %c128_63 = arith.constant 128 : index
    %c0_64 = arith.constant 0 : index
    %70 = vector.load %arg19[%c128_63, %c0_64] : memref<576x78xf32, #tpu.memory_space<vmem>>, vector<64x78xf32>
    tpu.vector_store %arg19[%c128_63, %c0_64], %69 {strides = array<i32>} : memref<576x78xf32, #tpu.memory_space<vmem>>, vector<64x78xf32>,
    %71 = vector.extract_strided_slice %64 {offsets = [0, 10], sizes = [64, 78], strides = [1, 1]} : vector<64x100xf32> to vector<64x78xf32>
    %c192_65 = arith.constant 192 : index
    %c0_66 = arith.constant 0 : index
    %72 = vector.load %arg19[%c192_65, %c0_66] : memref<576x78xf32, #tpu.memory_space<vmem>>, vector<64x78xf32>
    tpu.vector_store %arg19[%c192_65, %c0_66], %71 {strides = array<i32>} : memref<576x78xf32, #tpu.memory_space<vmem>>, vector<64x78xf32>,
    %73 = vector.extract_strided_slice %64 {offsets = [0, 11], sizes = [64, 78], strides = [1, 1]} : vector<64x100xf32> to vector<64x78xf32>
    %c256_67 = arith.constant 256 : index
    %c0_68 = arith.constant 0 : index
    %74 = vector.load %arg19[%c256_67, %c0_68] : memref<576x78xf32, #tpu.memory_space<vmem>>, vector<64x78xf32>
    tpu.vector_store %arg19[%c256_67, %c0_68], %73 {strides = array<i32>} : memref<576x78xf32, #tpu.memory_space<vmem>>, vector<64x78xf32>,
    %75 = vector.extract_strided_slice %64 {offsets = [0, 12], sizes = [64, 78], strides = [1, 1]} : vector<64x100xf32> to vector<64x78xf32>
    %c320_69 = arith.constant 320 : index
    %c0_70 = arith.constant 0 : index
    %76 = vector.load %arg19[%c320_69, %c0_70] : memref<576x78xf32, #tpu.memory_space<vmem>>, vector<64x78xf32>
    tpu.vector_store %arg19[%c320_69, %c0_70], %75 {strides = array<i32>} : memref<576x78xf32, #tpu.memory_space<vmem>>, vector<64x78xf32>,
    %77 = vector.extract_strided_slice %64 {offsets = [0, 20], sizes = [64, 78], strides = [1, 1]} : vector<64x100xf32> to vector<64x78xf32>
    %c384_71 = arith.constant 384 : index
    %c0_72 = arith.constant 0 : index
    %78 = vector.load %arg19[%c384_71, %c0_72] : memref<576x78xf32, #tpu.memory_space<vmem>>, vector<64x78xf32>
    tpu.vector_store %arg19[%c384_71, %c0_72], %77 {strides = array<i32>} : memref<576x78xf32, #tpu.memory_space<vmem>>, vector<64x78xf32>,
    %79 = vector.extract_strided_slice %64 {offsets = [0, 21], sizes = [64, 78], strides = [1, 1]} : vector<64x100xf32> to vector<64x78xf32>
    %c448_73 = arith.constant 448 : index
    %c0_74 = arith.constant 0 : index
    %80 = vector.load %arg19[%c448_73, %c0_74] : memref<576x78xf32, #tpu.memory_space<vmem>>, vector<64x78xf32>
    tpu.vector_store %arg19[%c448_73, %c0_74], %79 {strides = array<i32>} : memref<576x78xf32, #tpu.memory_space<vmem>>, vector<64x78xf32>,
    %81 = vector.extract_strided_slice %64 {offsets = [0, 22], sizes = [64, 78], strides = [1, 1]} : vector<64x100xf32> to vector<64x78xf32>
    %c512_75 = arith.constant 512 : index
    %c0_76 = arith.constant 0 : index
    %82 = vector.load %arg19[%c512_75, %c0_76] : memref<576x78xf32, #tpu.memory_space<vmem>>, vector<64x78xf32>
    tpu.vector_store %arg19[%c512_75, %c0_76], %81 {strides = array<i32>} : memref<576x78xf32, #tpu.memory_space<vmem>>, vector<64x78xf32>,
    %c0_77 = arith.constant 0 : index
    %c0_78 = arith.constant 0 : index
    %83 = vector.load %arg11[%c0_77, %c0_78] : memref<128x576xf32, #tpu.memory_space<vmem>>, vector<128x576xf32>
    %c0_79 = arith.constant 0 : index
    %c0_80 = arith.constant 0 : index
    %84 = vector.load %arg19[%c0_79, %c0_80] : memref<576x78xf32, #tpu.memory_space<vmem>>, vector<576x78xf32>
    %cst_81 = arith.constant dense<0.000000e+00> : vector<128x78xf32>
    %85 = tpu.matmul %83, %84, %cst_81 {dimension_numbers = #tpu.dot_dimension_numbers<[1], [0], [0], [1], [0, 0, 1, 1], [], []>} : vector<128x576xf32>, vector<576x78xf32>, vector<128x78xf32> -> vector<128x78xf32>
    %c0_82 = arith.constant 0 : index
    %c0_83 = arith.constant 0 : index
    %86 = vector.load %arg12[%c0_82, %c0_83] : memref<128x1xf32, #tpu.memory_space<vmem>>, vector<128x1xf32>
    %87 = vector.broadcast %86 : vector<128x1xf32> to vector<128x78xf32>
    %88 = arith.addf %85, %87 : vector<128x78xf32>
    %cst_84 = arith.constant 0.000000e+00 : f32
    %89 = vector.broadcast %cst_84 : f32 to vector<128x78xf32>
    %90 = arith.maximumf %88, %89 : vector<128x78xf32>
    %c0_85 = arith.constant 0 : index
    %c0_86 = arith.constant 0 : index
    %91 = vector.load %arg21[%c0_85, %c0_86] : memref<128x78xf32, #tpu.memory_space<vmem>>, vector<128x78xf32>
    tpu.vector_store %arg21[%c0_85, %c0_86], %90 {strides = array<i32>} : memref<128x78xf32, #tpu.memory_space<vmem>>, vector<128x78xf32>,
    %c0_87 = arith.constant 0 : index
    %c0_88 = arith.constant 0 : index
    %92 = vector.load %arg14[%c0_87, %c0_88] : memref<12x288xf32, #tpu.memory_space<vmem>>, vector<12x288xf32>
    %c0_89 = arith.constant 0 : index
    %c0_90 = arith.constant 0 : index
    %93 = vector.load %arg15[%c0_89, %c0_90] : memref<12x1xf32, #tpu.memory_space<vmem>>, vector<12x1xf32>
    %c0_91 = arith.constant 0 : index
    %c0_92 = arith.constant 0 : index
    %94 = vector.load %arg21[%c0_91, %c0_92] : memref<128x78xf32, #tpu.memory_space<vmem>>, vector<32x78xf32>
    %c0_93 = arith.constant 0 : index
    %c0_94 = arith.constant 0 : index
    %c0_95 = arith.constant 0 : index
    %95 = vector.load %arg13[%c0_93, %c0_94, %c0_95] : memref<4x78x324xf32, #tpu.memory_space<vmem>>, vector<1x78x324xf32>
    %96 = vector.shape_cast %95 : vector<1x78x324xf32> to vector<78x324xf32>
    %cst_96 = arith.constant dense<0.000000e+00> : vector<32x324xf32>
    %97 = tpu.matmul %94, %96, %cst_96 {dimension_numbers = #tpu.dot_dimension_numbers<[1], [0], [0], [1], [0, 0, 1, 1], [], []>} : vector<32x78xf32>, vector<78x324xf32>, vector<32x324xf32> -> vector<32x324xf32>
    %c32 = arith.constant 32 : index
    %c0_97 = arith.constant 0 : index
    %98 = vector.load %arg21[%c32, %c0_97] : memref<128x78xf32, #tpu.memory_space<vmem>>, vector<32x78xf32>
    %c1_98 = arith.constant 1 : index
    %c0_99 = arith.constant 0 : index
    %c0_100 = arith.constant 0 : index
    %99 = vector.load %arg13[%c1_98, %c0_99, %c0_100] : memref<4x78x324xf32, #tpu.memory_space<vmem>>, vector<1x78x324xf32>
    %100 = vector.shape_cast %99 : vector<1x78x324xf32> to vector<78x324xf32>
    %cst_101 = arith.constant dense<0.000000e+00> : vector<32x324xf32>
    %101 = tpu.matmul %98, %100, %cst_101 {dimension_numbers = #tpu.dot_dimension_numbers<[1], [0], [0], [1], [0, 0, 1, 1], [], []>} : vector<32x78xf32>, vector<78x324xf32>, vector<32x324xf32> -> vector<32x324xf32>
    %102 = arith.addf %97, %101 : vector<32x324xf32>
    %c64_102 = arith.constant 64 : index
    %c0_103 = arith.constant 0 : index
    %103 = vector.load %arg21[%c64_102, %c0_103] : memref<128x78xf32, #tpu.memory_space<vmem>>, vector<32x78xf32>
    %c2_104 = arith.constant 2 : index
    %c0_105 = arith.constant 0 : index
    %c0_106 = arith.constant 0 : index
    %104 = vector.load %arg13[%c2_104, %c0_105, %c0_106] : memref<4x78x324xf32, #tpu.memory_space<vmem>>, vector<1x78x324xf32>
    %105 = vector.shape_cast %104 : vector<1x78x324xf32> to vector<78x324xf32>
    %cst_107 = arith.constant dense<0.000000e+00> : vector<32x324xf32>
    %106 = tpu.matmul %103, %105, %cst_107 {dimension_numbers = #tpu.dot_dimension_numbers<[1], [0], [0], [1], [0, 0, 1, 1], [], []>} : vector<32x78xf32>, vector<78x324xf32>, vector<32x324xf32> -> vector<32x324xf32>
    %107 = arith.addf %102, %106 : vector<32x324xf32>
    %c96 = arith.constant 96 : index
    %c0_108 = arith.constant 0 : index
    %108 = vector.load %arg21[%c96, %c0_108] : memref<128x78xf32, #tpu.memory_space<vmem>>, vector<32x78xf32>
    %c3_109 = arith.constant 3 : index
    %c0_110 = arith.constant 0 : index
    %c0_111 = arith.constant 0 : index
    %109 = vector.load %arg13[%c3_109, %c0_110, %c0_111] : memref<4x78x324xf32, #tpu.memory_space<vmem>>, vector<1x78x324xf32>
    %110 = vector.shape_cast %109 : vector<1x78x324xf32> to vector<78x324xf32>
    %cst_112 = arith.constant dense<0.000000e+00> : vector<32x324xf32>
    %111 = tpu.matmul %108, %110, %cst_112 {dimension_numbers = #tpu.dot_dimension_numbers<[1], [0], [0], [1], [0, 0, 1, 1], [], []>} : vector<32x78xf32>, vector<78x324xf32>, vector<32x324xf32> -> vector<32x324xf32>
    %112 = arith.addf %107, %111 : vector<32x324xf32>
    %113 = vector.extract_strided_slice %92 {offsets = [0, 0], sizes = [12, 32], strides = [1, 1]} : vector<12x288xf32> to vector<12x32xf32>
    %114 = vector.extract_strided_slice %112 {offsets = [0, 0], sizes = [32, 286], strides = [1, 1]} : vector<32x324xf32> to vector<32x286xf32>
    %cst_113 = arith.constant dense<0.000000e+00> : vector<12x286xf32>
    %115 = tpu.matmul %113, %114, %cst_113 {dimension_numbers = #tpu.dot_dimension_numbers<[1], [0], [0], [1], [0, 0, 1, 1], [], []>} : vector<12x32xf32>, vector<32x286xf32>, vector<12x286xf32> -> vector<12x286xf32>
    %116 = vector.extract_strided_slice %92 {offsets = [0, 32], sizes = [12, 32], strides = [1, 1]} : vector<12x288xf32> to vector<12x32xf32>
    %117 = vector.extract_strided_slice %112 {offsets = [0, 1], sizes = [32, 286], strides = [1, 1]} : vector<32x324xf32> to vector<32x286xf32>
    %cst_114 = arith.constant dense<0.000000e+00> : vector<12x286xf32>
    %118 = tpu.matmul %116, %117, %cst_114 {dimension_numbers = #tpu.dot_dimension_numbers<[1], [0], [0], [1], [0, 0, 1, 1], [], []>} : vector<12x32xf32>, vector<32x286xf32>, vector<12x286xf32> -> vector<12x286xf32>
    %119 = arith.addf %115, %118 : vector<12x286xf32>
    %120 = vector.extract_strided_slice %92 {offsets = [0, 64], sizes = [12, 32], strides = [1, 1]} : vector<12x288xf32> to vector<12x32xf32>
    %121 = vector.extract_strided_slice %112 {offsets = [0, 2], sizes = [32, 286], strides = [1, 1]} : vector<32x324xf32> to vector<32x286xf32>
    %cst_115 = arith.constant dense<0.000000e+00> : vector<12x286xf32>
    %122 = tpu.matmul %120, %121, %cst_115 {dimension_numbers = #tpu.dot_dimension_numbers<[1], [0], [0], [1], [0, 0, 1, 1], [], []>} : vector<12x32xf32>, vector<32x286xf32>, vector<12x286xf32> -> vector<12x286xf32>
    %123 = arith.addf %119, %122 : vector<12x286xf32>
    %124 = vector.extract_strided_slice %92 {offsets = [0, 96], sizes = [12, 32], strides = [1, 1]} : vector<12x288xf32> to vector<12x32xf32>
    %125 = vector.extract_strided_slice %112 {offsets = [0, 18], sizes = [32, 286], strides = [1, 1]} : vector<32x324xf32> to vector<32x286xf32>
    %cst_116 = arith.constant dense<0.000000e+00> : vector<12x286xf32>
    %126 = tpu.matmul %124, %125, %cst_116 {dimension_numbers = #tpu.dot_dimension_numbers<[1], [0], [0], [1], [0, 0, 1, 1], [], []>} : vector<12x32xf32>, vector<32x286xf32>, vector<12x286xf32> -> vector<12x286xf32>
    %127 = arith.addf %123, %126 : vector<12x286xf32>
    %128 = vector.extract_strided_slice %92 {offsets = [0, 128], sizes = [12, 32], strides = [1, 1]} : vector<12x288xf32> to vector<12x32xf32>
    %129 = vector.extract_strided_slice %112 {offsets = [0, 19], sizes = [32, 286], strides = [1, 1]} : vector<32x324xf32> to vector<32x286xf32>
    %cst_117 = arith.constant dense<0.000000e+00> : vector<12x286xf32>
    %130 = tpu.matmul %128, %129, %cst_117 {dimension_numbers = #tpu.dot_dimension_numbers<[1], [0], [0], [1], [0, 0, 1, 1], [], []>} : vector<12x32xf32>, vector<32x286xf32>, vector<12x286xf32> -> vector<12x286xf32>
    %131 = arith.addf %127, %130 : vector<12x286xf32>
    %132 = vector.extract_strided_slice %92 {offsets = [0, 160], sizes = [12, 32], strides = [1, 1]} : vector<12x288xf32> to vector<12x32xf32>
    %133 = vector.extract_strided_slice %112 {offsets = [0, 20], sizes = [32, 286], strides = [1, 1]} : vector<32x324xf32> to vector<32x286xf32>
    %cst_118 = arith.constant dense<0.000000e+00> : vector<12x286xf32>
    %134 = tpu.matmul %132, %133, %cst_118 {dimension_numbers = #tpu.dot_dimension_numbers<[1], [0], [0], [1], [0, 0, 1, 1], [], []>} : vector<12x32xf32>, vector<32x286xf32>, vector<12x286xf32> -> vector<12x286xf32>
    %135 = arith.addf %131, %134 : vector<12x286xf32>
    %136 = vector.extract_strided_slice %92 {offsets = [0, 192], sizes = [12, 32], strides = [1, 1]} : vector<12x288xf32> to vector<12x32xf32>
    %137 = vector.extract_strided_slice %112 {offsets = [0, 36], sizes = [32, 286], strides = [1, 1]} : vector<32x324xf32> to vector<32x286xf32>
    %cst_119 = arith.constant dense<0.000000e+00> : vector<12x286xf32>
    %138 = tpu.matmul %136, %137, %cst_119 {dimension_numbers = #tpu.dot_dimension_numbers<[1], [0], [0], [1], [0, 0, 1, 1], [], []>} : vector<12x32xf32>, vector<32x286xf32>, vector<12x286xf32> -> vector<12x286xf32>
    %139 = arith.addf %135, %138 : vector<12x286xf32>
    %140 = vector.extract_strided_slice %92 {offsets = [0, 224], sizes = [12, 32], strides = [1, 1]} : vector<12x288xf32> to vector<12x32xf32>
    %141 = vector.extract_strided_slice %112 {offsets = [0, 37], sizes = [32, 286], strides = [1, 1]} : vector<32x324xf32> to vector<32x286xf32>
    %cst_120 = arith.constant dense<0.000000e+00> : vector<12x286xf32>
    %142 = tpu.matmul %140, %141, %cst_120 {dimension_numbers = #tpu.dot_dimension_numbers<[1], [0], [0], [1], [0, 0, 1, 1], [], []>} : vector<12x32xf32>, vector<32x286xf32>, vector<12x286xf32> -> vector<12x286xf32>
    %143 = arith.addf %139, %142 : vector<12x286xf32>
    %144 = vector.extract_strided_slice %92 {offsets = [0, 256], sizes = [12, 32], strides = [1, 1]} : vector<12x288xf32> to vector<12x32xf32>
    %145 = vector.extract_strided_slice %112 {offsets = [0, 38], sizes = [32, 286], strides = [1, 1]} : vector<32x324xf32> to vector<32x286xf32>
    %cst_121 = arith.constant dense<0.000000e+00> : vector<12x286xf32>
    %146 = tpu.matmul %144, %145, %cst_121 {dimension_numbers = #tpu.dot_dimension_numbers<[1], [0], [0], [1], [0, 0, 1, 1], [], []>} : vector<12x32xf32>, vector<32x286xf32>, vector<12x286xf32> -> vector<12x286xf32>
    %147 = arith.addf %143, %146 : vector<12x286xf32>
    %148 = vector.broadcast %93 : vector<12x1xf32> to vector<12x286xf32>
    %149 = arith.addf %147, %148 : vector<12x286xf32>
    %150 = vector.extract_strided_slice %149 {offsets = [0, 0], sizes = [3, 286], strides = [1, 1]} : vector<12x286xf32> to vector<3x286xf32>
    %c0_122 = arith.constant 0 : index
    %c0_123 = arith.constant 0 : index
    %c0_124 = arith.constant 0 : index
    %151 = vector.load %arg16[%c0_122, %c0_123, %c0_124] : memref<4x286x1024xf32, #tpu.memory_space<vmem>>, vector<1x286x1024xf32>
    %152 = vector.shape_cast %151 : vector<1x286x1024xf32> to vector<286x1024xf32>
    %cst_125 = arith.constant dense<0.000000e+00> : vector<3x1024xf32>
    %153 = tpu.matmul %150, %152, %cst_125 {dimension_numbers = #tpu.dot_dimension_numbers<[1], [0], [0], [1], [0, 0, 1, 1], [], []>} : vector<3x286xf32>, vector<286x1024xf32>, vector<3x1024xf32> -> vector<3x1024xf32>
    %154 = vector.extract_strided_slice %149 {offsets = [3, 0], sizes = [3, 286], strides = [1, 1]} : vector<12x286xf32> to vector<3x286xf32>
    %c1_126 = arith.constant 1 : index
    %c0_127 = arith.constant 0 : index
    %c0_128 = arith.constant 0 : index
    %155 = vector.load %arg16[%c1_126, %c0_127, %c0_128] : memref<4x286x1024xf32, #tpu.memory_space<vmem>>, vector<1x286x1024xf32>
    %156 = vector.shape_cast %155 : vector<1x286x1024xf32> to vector<286x1024xf32>
    %cst_129 = arith.constant dense<0.000000e+00> : vector<3x1024xf32>
    %157 = tpu.matmul %154, %156, %cst_129 {dimension_numbers = #tpu.dot_dimension_numbers<[1], [0], [0], [1], [0, 0, 1, 1], [], []>} : vector<3x286xf32>, vector<286x1024xf32>, vector<3x1024xf32> -> vector<3x1024xf32>
    %158 = arith.addf %153, %157 : vector<3x1024xf32>
    %159 = vector.extract_strided_slice %149 {offsets = [6, 0], sizes = [3, 286], strides = [1, 1]} : vector<12x286xf32> to vector<3x286xf32>
    %c2_130 = arith.constant 2 : index
    %c0_131 = arith.constant 0 : index
    %c0_132 = arith.constant 0 : index
    %160 = vector.load %arg16[%c2_130, %c0_131, %c0_132] : memref<4x286x1024xf32, #tpu.memory_space<vmem>>, vector<1x286x1024xf32>
    %161 = vector.shape_cast %160 : vector<1x286x1024xf32> to vector<286x1024xf32>
    %cst_133 = arith.constant dense<0.000000e+00> : vector<3x1024xf32>
    %162 = tpu.matmul %159, %161, %cst_133 {dimension_numbers = #tpu.dot_dimension_numbers<[1], [0], [0], [1], [0, 0, 1, 1], [], []>} : vector<3x286xf32>, vector<286x1024xf32>, vector<3x1024xf32> -> vector<3x1024xf32>
    %163 = arith.addf %158, %162 : vector<3x1024xf32>
    %164 = vector.extract_strided_slice %149 {offsets = [9, 0], sizes = [3, 286], strides = [1, 1]} : vector<12x286xf32> to vector<3x286xf32>
    %c3_134 = arith.constant 3 : index
    %c0_135 = arith.constant 0 : index
    %c0_136 = arith.constant 0 : index
    %165 = vector.load %arg16[%c3_134, %c0_135, %c0_136] : memref<4x286x1024xf32, #tpu.memory_space<vmem>>, vector<1x286x1024xf32>
    %166 = vector.shape_cast %165 : vector<1x286x1024xf32> to vector<286x1024xf32>
    %cst_137 = arith.constant dense<0.000000e+00> : vector<3x1024xf32>
    %167 = tpu.matmul %164, %166, %cst_137 {dimension_numbers = #tpu.dot_dimension_numbers<[1], [0], [0], [1], [0, 0, 1, 1], [], []>} : vector<3x286xf32>, vector<286x1024xf32>, vector<3x1024xf32> -> vector<3x1024xf32>
    %168 = arith.addf %163, %167 : vector<3x1024xf32>
    %c0_138 = arith.constant 0 : index
    %c0_139 = arith.constant 0 : index
    %c0_140 = arith.constant 0 : index
    %169 = vector.load %arg17[%c0_138, %c0_139, %c0_140] : memref<1x3x1024xf32, #tpu.memory_space<vmem>>, vector<1x3x1024xf32>
    %170 = vector.shape_cast %169 : vector<1x3x1024xf32> to vector<3x1024xf32>
    %171 = vector.shape_cast %168 : vector<3x1024xf32> to vector<1x3x1024xf32>
    tpu.vector_store %arg17[%c0_138, %c0_139, %c0_140], %171 {strides = array<i32>} : memref<1x3x1024xf32, #tpu.memory_space<vmem>>, vector<1x3x1024xf32>,
    return
  }
  func.func @transform_0(%arg0: i32) -> (i32, i32, i32) {
    %c0_i32 = arith.constant 0 : i32
    %c0_i32_0 = arith.constant 0 : i32
    %c0_i32_1 = arith.constant 0 : i32
    return %arg0, %c0_i32, %c0_i32_0 : i32, i32, i32
  }
  func.func @transform_1(%arg0: i32) -> (i32, i32) {
    %c0_i32 = arith.constant 0 : i32
    %c0_i32_0 = arith.constant 0 : i32
    %c0_i32_1 = arith.constant 0 : i32
    return %c0_i32, %c0_i32_0 : i32, i32
  }
  func.func @transform_2(%arg0: i32) -> (i32, i32) {
    %c0_i32 = arith.constant 0 : i32
    %c0_i32_0 = arith.constant 0 : i32
    %c0_i32_1 = arith.constant 0 : i32
    return %c0_i32, %c0_i32_0 : i32, i32
  }
  func.func @transform_3(%arg0: i32) -> (i32, i32) {
    %c0_i32 = arith.constant 0 : i32
    %c0_i32_0 = arith.constant 0 : i32
    %c0_i32_1 = arith.constant 0 : i32
    return %c0_i32, %c0_i32_0 : i32, i32
  }
  func.func @transform_4(%arg0: i32) -> (i32, i32) {
    %c0_i32 = arith.constant 0 : i32
    %c0_i32_0 = arith.constant 0 : i32
    %c0_i32_1 = arith.constant 0 : i32
    return %c0_i32, %c0_i32_0 : i32, i32
  }
  func.func @transform_5(%arg0: i32) -> (i32, i32) {
    %c0_i32 = arith.constant 0 : i32
    %c0_i32_0 = arith.constant 0 : i32
    %c0_i32_1 = arith.constant 0 : i32
    return %c0_i32, %c0_i32_0 : i32, i32
  }
  func.func @transform_6(%arg0: i32) -> (i32, i32) {
    %c0_i32 = arith.constant 0 : i32
    %c0_i32_0 = arith.constant 0 : i32
    %c0_i32_1 = arith.constant 0 : i32
    return %c0_i32, %c0_i32_0 : i32, i32
  }
  func.func @transform_7(%arg0: i32) -> (i32, i32) {
    %c0_i32 = arith.constant 0 : i32
    %c0_i32_0 = arith.constant 0 : i32
    %c0_i32_1 = arith.constant 0 : i32
    return %c0_i32, %c0_i32_0 : i32, i32
  }
  func.func @transform_8(%arg0: i32) -> (i32, i32) {
    %c0_i32 = arith.constant 0 : i32
    %c0_i32_0 = arith.constant 0 : i32
    %c0_i32_1 = arith.constant 0 : i32
    return %c0_i32, %c0_i32_0 : i32, i32
  }
  func.func @transform_9(%arg0: i32) -> (i32, i32, i32) {
    %c0_i32 = arith.constant 0 : i32
    %c0_i32_0 = arith.constant 0 : i32
    %c0_i32_1 = arith.constant 0 : i32
    %c0_i32_2 = arith.constant 0 : i32
    return %c0_i32, %c0_i32_0, %c0_i32_1 : i32, i32, i32
  }
  func.func @transform_10(%arg0: i32) -> (i32, i32) {
    %c0_i32 = arith.constant 0 : i32
    %c0_i32_0 = arith.constant 0 : i32
    %c0_i32_1 = arith.constant 0 : i32
    return %c0_i32, %c0_i32_0 : i32, i32
  }
  func.func @transform_11(%arg0: i32) -> (i32, i32) {
    %c0_i32 = arith.constant 0 : i32
    %c0_i32_0 = arith.constant 0 : i32
    %c0_i32_1 = arith.constant 0 : i32
    return %c0_i32, %c0_i32_0 : i32, i32
  }
  func.func @transform_12(%arg0: i32) -> (i32, i32, i32) {
    %c0_i32 = arith.constant 0 : i32
    %c0_i32_0 = arith.constant 0 : i32
    %c0_i32_1 = arith.constant 0 : i32
    %c0_i32_2 = arith.constant 0 : i32
    return %c0_i32, %c0_i32_0, %c0_i32_1 : i32, i32, i32
  }
  func.func @transform_13(%arg0: i32) -> (i32, i32) {
    %c0_i32 = arith.constant 0 : i32
    %c0_i32_0 = arith.constant 0 : i32
    %c0_i32_1 = arith.constant 0 : i32
    return %c0_i32, %c0_i32_0 : i32, i32
  }
  func.func @transform_14(%arg0: i32) -> (i32, i32) {
    %c0_i32 = arith.constant 0 : i32
    %c0_i32_0 = arith.constant 0 : i32
    %c0_i32_1 = arith.constant 0 : i32
    return %c0_i32, %c0_i32_0 : i32, i32
  }
  func.func @transform_15(%arg0: i32) -> (i32, i32, i32) {
    %c0_i32 = arith.constant 0 : i32
    %c0_i32_0 = arith.constant 0 : i32
    %c0_i32_1 = arith.constant 0 : i32
    %c0_i32_2 = arith.constant 0 : i32
    return %c0_i32, %c0_i32_0, %c0_i32_1 : i32, i32, i32
  }
  func.func @transform_16(%arg0: i32) -> (i32, i32, i32) {
    %c0_i32 = arith.constant 0 : i32
    %c0_i32_0 = arith.constant 0 : i32
    %c0_i32_1 = arith.constant 0 : i32
    return %arg0, %c0_i32, %c0_i32_0 : i32, i32, i32
  }
}

</mosaic_0001>

<bundles_post_ra>
// kernel: decoder_svhn_forward.1
= control target key start
LH: loop header
LB: loop body
LE: loop exit
PB: predicated region body
PF: predicated region fallthrough
CT: control target
= control target key end

     0   :  { %s10797_s21 = smov 0   ;;  %s18767_s0 = inlined_call_operand.vmem [shape: f32[2,1,20], index: 0, kind: input, shape index: {}]   ;;  %s18768_s1 = inlined_call_operand.vmem [shape: f32[20,128], index: 1, kind: input, shape index: {}]   ;;  %s18769_s2 = inlined_call_operand.vmem [shape: f32[1,128], index: 2, kind: input, shape index: {}]   ;;  %s18770_s3 = inlined_call_operand.vmem [shape: f32[128,1024], index: 3, kind: input, shape index: {}]   ;;  %s18771_s4 = inlined_call_operand.vmem [shape: f32[1,1024], index: 4, kind: input, shape index: {}]   ;;  %s18772_s5 = inlined_call_operand.vmem [shape: f32[64,1024], index: 5, kind: input, shape index: {}]   ;;  %s18773_s6 = inlined_call_operand.vmem [shape: f32[1024,36], index: 6, kind: input, shape index: {}]   ;;  %s18774_s7 = inlined_call_operand.vmem [shape: f32[256,576], index: 7, kind: input, shape index: {}]   ;;  %s18775_s8 = inlined_call_operand.vmem [shape: f32[256,1], index: 8, kind: input, shape index: {}]   ;;  %s18776_s9 = inlined_call_operand.vmem [shape: f32[4,22,100], index: 9, kind: input, shape index: {}]   ;;  %s18777_s10 = inlined_call_operand.vmem [shape: f32[128,576], index: 10, kind: input, shape index: {}]   ;;  %s18778_s11 = inlined_call_operand.vmem [shape: f32[128,1], index: 11, kind: input, shape index: {}]   ;;  %s18779_s12 = inlined_call_operand.vmem [shape: f32[4,78,324], index: 12, kind: input, shape index: {}]   ;;  %s18780_s13 = inlined_call_operand.vmem [shape: f32[12,288], index: 13, kind: input, shape index: {}]   ;;  %s18781_s14 = inlined_call_operand.vmem [shape: f32[12,1], index: 14, kind: input, shape index: {}]   ;;  %s18782_s15 = inlined_call_operand.vmem [shape: f32[4,286,1024], index: 15, kind: input, shape index: {}]   ;;  %s18783_s16 = inlined_call_operand.vmem [shape: f32[2,3,1024], index: 16, kind: output, shape index: {}]  }
   0x1   :  { %18784 = sst [smem:[#allocation6_spill]] %s18767_s0 }
   0x2 LB: > { %s9162_s22 = sadd.s32 4294967295, %s10688_s21   ;;  %p9166_p0 = scmp.ge.s32.totalorder %s10688_s21, 1  ;;  %s10688_s21 = sphi %s10797_s21, %s26_s21  }
   0x3   : > { %p460_p1 = scmp.lt.s32.totalorder %s10688_s21, 3 }
   0x5   : > { %p461_p2 = pnand %p9166_p0, %p460_p1 }
   0x6   : > { %p508_p3 = scmp.lt.s32.totalorder (!%p461_p2), %s9162_s22, 1  ;;  %s18785_s17 = sld [smem:[#allocation6_spill]] (!%p461_p2) }
   0x7   : > { %464 = sbr.rel (%p461_p2) target bundleno = 3298 (0xce2), region = 84  ;;  %s10690_s27 = smov (!%p461_p2), 127  }
   0x8   : > { %s10691_s28 = smov (!%p461_p2), 122   ;;  %s10692_s29 = smov (!%p461_p2), 120  }
   0x9   : > { %s10693_s30 = smov (!%p461_p2), 126   ;;  %s10694_s0 = smov (!%p461_p2), 115  }
   0xa   : > { %s10697_s19 = smov (!%p461_p2), 114   ;;  %s10700_s20 = smov (!%p461_p2), 107  }
   0xb   : > { %s10701_s23 = smov (!%p461_p2), 117   ;;  %s10702_s24 = smov (!%p461_p2), 108  }
   0xc   : > { %v519_v0 = vld [vmem:[%s18768_s1 + $0x10] sm:$0xf]  ;;  %vm525_vm0 = vcmask 1043456   ;;  %v518_v1 = vld [vmem:[%s18768_s1 + $0x8] sm:$0xff]  ;;  %v670_v2 = vld [vmem:[%s18770_s3 + $0x3c0] sm:$0xff]  ;;  %s18787_s22 = smov (!%p508_p3, %s9162_s22), 1 }
   0xd   : > { %9169 = vmatpush.msk.msra.mxu0 %vm525_vm0, %v519_v0  ;;  %v671_v3 = vld [vmem:[%s18770_s3 + $0x3c8] sm:$0xff]  ;;  %v672_v4 = vld [vmem:[%s18770_s3 + $0x3d0] sm:$0xff]  ;;  %v517_v5 = vld [vmem:[%s18768_s1] sm:$0xff]  ;;  %696 = vmatpush.msra.mxu1 %v670_v2  ;;  %vm521_vm1 = vcmask 162816   ;;  %s510_s18 = scalar_lea.vmem %s18785_s17, %s18787_s22  ;;  %vm1456_vm2 = vcmask 179200   ;;  %s10695_s17 = smov 116  }
   0xe   : > { %716 = vmatpush.msra.mxu2 %v671_v3  ;;  %v662_v6 = vld [vmem:[%s18770_s3 + $0x380] sm:$0xff]  ;;  %v663_v7 = vld [vmem:[%s18770_s3 + $0x388] sm:$0xff]  ;;  %736 = vmatpush.msra.mxu3 %v672_v4  ;;  %v664_v8 = vld [vmem:[%s18770_s3 + $0x390] sm:$0xff]  ;;  %vm2153_vm3 = vcmask 523264   ;;  %vm2926_vm4 = vcmask 1045504   ;;  %vm3215_vm5 = vcmask 637952  }
   0xf   : > { %543 = vmatpush.msra.mxu0 %v518_v1  ;;  %v654_v9 = vld [vmem:[%s18770_s3 + $0x340] sm:$0xff]  ;;  %v673_v10 = vld [vmem:[%s18770_s3 + $0x3d8] sm:$0xff]  ;;  %697 = vmatpush.msra.mxu1 %v662_v6  ;;  %v655_v11 = vld [vmem:[%s18770_s3 + $0x348] sm:$0xff]  ;;  %s10703_s25 = smov 106   ;;  %s10709_s26 = smov 92   ;;  %vm4807_vm6 = vcmask 261120  }
  0x10   : > { %717 = vmatpush.msra.mxu2 %v663_v7  ;;  %v516_v12 = vld [vmem:[%s510_s18] sm:$0x1]  ;;  %737 = vmatpush.msra.mxu3 %v664_v8  ;;  %v656_v13 = vld [vmem:[%s18770_s3 + $0x350] sm:$0xff]  ;;  %v665_v15 = vld [vmem:[%s18770_s3 + $0x398] sm:$0xff]  ;;  %s10696_s18 = smov 121   ;;  %vm4786_vm7 = vcmask 1039360  }
  0x11   : > { %544 = vmatpush.msra.mxu0 %v517_v5  ;;  %v646_v14 = vld [vmem:[%s18770_s3 + $0x300] sm:$0xff]  ;;  %698 = vmatpush.msra.mxu1 %v654_v9  ;;  %v647_v16 = vld [vmem:[%s18770_s3 + $0x308] sm:$0xff]  ;;  %v648_v17 = vld [vmem:[%s18770_s3 + $0x310] sm:$0xff]  ;;  %vm4982_vm8 = vcmask 1031168   ;;  %vm5110_vm9 = vcmask 900096   ;;  %vm5364_vm10 = vcmask 883712  }
  0x12   : > { %9170 = vmatmul.msk.f32.vlgmr.msra.gmra.mxu0 %vm521_vm1, %v516_v12  ;;  %718 = vmatpush.msra.mxu2 %v655_v11  ;;  %v638_v18 = vld [vmem:[%s18770_s3 + $0x2c0] sm:$0xff]  ;;  %v657_v19 = vld [vmem:[%s18770_s3 + $0x358] sm:$0xff]  ;;  %v639_v20 = vld [vmem:[%s18770_s3 + $0x2c8] sm:$0xff]  ;;  %vm5234_vm11 = vcmask 891904   ;;  %vm5492_vm12 = vcmask 752640   ;;  %vm5620_vm13 = vcmask 744448  }
  0x13   : > { %756 = vmatpush.msrb.mxu0 %v673_v10  ;;  %738 = vmatpush.msra.mxu3 %v656_v13  ;;  %v640_v21 = vld [vmem:[%s18770_s3 + $0x2d0] sm:$0xff]  ;;  %v630_v22 = vld [vmem:[%s18770_s3 + $0x280] sm:$0xff]  ;;  %v649_v23 = vld [vmem:[%s18770_s3 + $0x318] sm:$0xff]  ;;  %vm5744_vm14 = vcmask 736256   ;;  %vm6447_vm15 = vcmask 244736   ;;  %vm7752_vm1 = vcmask 1041408  }
  0x14   : > { %699 = vmatpush.msra.mxu1 %v646_v14  ;;  %719 = vmatpush.msra.mxu2 %v647_v16  ;;  %v631_v24 = vld [vmem:[%s18770_s3 + $0x288] sm:$0xff]  ;;  %v632_v25 = vld [vmem:[%s18770_s3 + $0x290] sm:$0xff]  ;;  %v622_v26 = vld [vmem:[%s18770_s3 + $0x240] sm:$0xff] }
  0x15   : > { %757 = vmatpush.msrb.mxu0 %v665_v15  ;;  %739 = vmatpush.msra.mxu3 %v648_v17  ;;  %v641_v27 = vld [vmem:[%s18770_s3 + $0x2d8] sm:$0xff]  ;;  %v623_v28 = vld [vmem:[%s18770_s3 + $0x248] sm:$0xff]  ;;  %v624_v29 = vld [vmem:[%s18770_s3 + $0x250] sm:$0xff] }
  0x16   : > { %700 = vmatpush.msra.mxu1 %v638_v18  ;;  %720 = vmatpush.msra.mxu2 %v639_v20  ;;  %v614_v30 = vld [vmem:[%s18770_s3 + $0x200] sm:$0xff]  ;;  %v633_v31 = vld [vmem:[%s18770_s3 + $0x298] sm:$0xff]  ;;  %v615_v32 = vld [vmem:[%s18770_s3 + $0x208] sm:$0xff] }
  0x17   : > { %758 = vmatpush.msrb.mxu0 %v657_v19  ;;  %740 = vmatpush.msra.mxu3 %v640_v21  ;;  %v616_v33 = vld [vmem:[%s18770_s3 + $0x210] sm:$0xff]  ;;  %v606_v34 = vld [vmem:[%s18770_s3 + $0x1c0] sm:$0xff]  ;;  %v625_v35 = vld [vmem:[%s18770_s3 + $0x258] sm:$0xff] }
  0x18   : > { %701 = vmatpush.msra.mxu1 %v630_v22  ;;  %721 = vmatpush.msra.mxu2 %v631_v24  ;;  %v607_v36 = vld [vmem:[%s18770_s3 + $0x1c8] sm:$0xff]  ;;  %v608_v37 = vld [vmem:[%s18770_s3 + $0x1d0] sm:$0xff]  ;;  %v598_v38 = vld [vmem:[%s18770_s3 + $0x180] sm:$0xff] }
  0x19   : > { %759 = vmatpush.msrb.mxu0 %v649_v23  ;;  %741 = vmatpush.msra.mxu3 %v632_v25  ;;  %v617_v39 = vld [vmem:[%s18770_s3 + $0x218] sm:$0xff]  ;;  %v599_v40 = vld [vmem:[%s18770_s3 + $0x188] sm:$0xff]  ;;  %v600_v41 = vld [vmem:[%s18770_s3 + $0x190] sm:$0xff] }
  0x1a   : > { %702 = vmatpush.msra.mxu1 %v622_v26  ;;  %722 = vmatpush.msra.mxu2 %v623_v28  ;;  %v590_v42 = vld [vmem:[%s18770_s3 + $0x140] sm:$0xff]  ;;  %v609_v43 = vld [vmem:[%s18770_s3 + $0x1d8] sm:$0xff]  ;;  %v591_v44 = vld [vmem:[%s18770_s3 + $0x148] sm:$0xff] }
  0x1b   : > { %760 = vmatpush.msrb.mxu0 %v641_v27  ;;  %742 = vmatpush.msra.mxu3 %v624_v29  ;;  %v592_v45 = vld [vmem:[%s18770_s3 + $0x150] sm:$0xff]  ;;  %v582_v46 = vld [vmem:[%s18770_s3 + $0x100] sm:$0xff]  ;;  %v601_v47 = vld [vmem:[%s18770_s3 + $0x198] sm:$0xff] }
  0x1c   : > { %703 = vmatpush.msra.mxu1 %v614_v30  ;;  %723 = vmatpush.msra.mxu2 %v615_v32  ;;  %v583_v48 = vld [vmem:[%s18770_s3 + $0x108] sm:$0xff]  ;;  %v584_v49 = vld [vmem:[%s18770_s3 + $0x110] sm:$0xff]  ;;  %v574_v50 = vld [vmem:[%s18770_s3 + $0xc0] sm:$0xff] }
  0x1d   : > { %761 = vmatpush.msrb.mxu0 %v633_v31  ;;  %743 = vmatpush.msra.mxu3 %v616_v33  ;;  %v593_v51 = vld [vmem:[%s18770_s3 + $0x158] sm:$0xff]  ;;  %v575_v52 = vld [vmem:[%s18770_s3 + $0xc8] sm:$0xff]  ;;  %v576_v53 = vld [vmem:[%s18770_s3 + $0xd0] sm:$0xff] }
  0x1e   : > { %704 = vmatpush.msra.mxu1 %v606_v34  ;;  %724 = vmatpush.msra.mxu2 %v607_v36  ;;  %v566_v54 = vld [vmem:[%s18770_s3 + $0x80] sm:$0xff]  ;;  %v585_v55 = vld [vmem:[%s18770_s3 + $0x118] sm:$0xff]  ;;  %v567_v56 = vld [vmem:[%s18770_s3 + $0x88] sm:$0xff] }
  0x1f   : > { %762 = vmatpush.msrb.mxu0 %v625_v35  ;;  %744 = vmatpush.msra.mxu3 %v608_v37  ;;  %v568_v57 = vld [vmem:[%s18770_s3 + $0x90] sm:$0xff]  ;;  %v558_v58 = vld [vmem:[%s18770_s3 + $0x40] sm:$0xff]  ;;  %v577_v59 = vld [vmem:[%s18770_s3 + $0xd8] sm:$0xff] }
  0x20   : > { %705 = vmatpush.msra.mxu1 %v598_v38  ;;  %725 = vmatpush.msra.mxu2 %v599_v40  ;;  %v559_v60 = vld [vmem:[%s18770_s3 + $0x48] sm:$0xff]  ;;  %v560_v61 = vld [vmem:[%s18770_s3 + $0x50] sm:$0xff]  ;;  %v550_v62 = vld [vmem:[%s18770_s3] sm:$0xff] }
  0x21   : > { %763 = vmatpush.msrb.mxu0 %v617_v39  ;;  %745 = vmatpush.msra.mxu3 %v600_v41  ;;  %v569_v63 = vld [vmem:[%s18770_s3 + $0x98] sm:$0xff]  ;;  %v551_v0 = vld [vmem:[%s18770_s3 + $0x8] sm:$0xff]  ;;  %v552_v1 = vld [vmem:[%s18770_s3 + $0x10] sm:$0xff] }
  0x22   : > { %706 = vmatpush.msra.mxu1 %v590_v42  ;;  %726 = vmatpush.msra.mxu2 %v591_v44  ;;  %v674_v2 = vld [vmem:[%s18770_s3 + $0x3e0] sm:$0xff]  ;;  %v561_v3 = vld [vmem:[%s18770_s3 + $0x58] sm:$0xff]  ;;  %v675_v4 = vld [vmem:[%s18770_s3 + $0x3e8] sm:$0xff] }
  0x23   : > { %764 = vmatpush.msrb.mxu0 %v609_v43  ;;  %746 = vmatpush.msra.mxu3 %v592_v45  ;;  %v676_v5 = vld [vmem:[%s18770_s3 + $0x3f0] sm:$0xff]  ;;  %v666_v6 = vld [vmem:[%s18770_s3 + $0x3a0] sm:$0xff]  ;;  %v553_v7 = vld [vmem:[%s18770_s3 + $0x18] sm:$0xff] }
  0x24   : > { %707 = vmatpush.msra.mxu1 %v582_v46  ;;  %727 = vmatpush.msra.mxu2 %v583_v48  ;;  %v667_v8 = vld [vmem:[%s18770_s3 + $0x3a8] sm:$0xff]  ;;  %v677_v9 = vld [vmem:[%s18770_s3 + $0x3f8] sm:$0xff]  ;;  %v668_v10 = vld [vmem:[%s18770_s3 + $0x3b0] sm:$0xff] }
  0x25   : > { %765 = vmatpush.msrb.mxu0 %v601_v47  ;;  %747 = vmatpush.msra.mxu3 %v584_v49  ;;  %v658_v11 = vld [vmem:[%s18770_s3 + $0x360] sm:$0xff]  ;;  %v659_v12 = vld [vmem:[%s18770_s3 + $0x368] sm:$0xff]  ;;  %v669_v13 = vld [vmem:[%s18770_s3 + $0x3b8] sm:$0xff] }
  0x26   : > { %708 = vmatpush.msra.mxu1 %v574_v50  ;;  %728 = vmatpush.msra.mxu2 %v575_v52  ;;  %v660_v14 = vld [vmem:[%s18770_s3 + $0x370] sm:$0xff]  ;;  %v650_v15 = vld [vmem:[%s18770_s3 + $0x320] sm:$0xff]  ;;  %v651_v16 = vld [vmem:[%s18770_s3 + $0x328] sm:$0xff] }
  0x27   : > { %766 = vmatpush.msrb.mxu0 %v593_v51  ;;  %748 = vmatpush.msra.mxu3 %v576_v53  ;;  %v661_v17 = vld [vmem:[%s18770_s3 + $0x378] sm:$0xff]  ;;  %v652_v18 = vld [vmem:[%s18770_s3 + $0x330] sm:$0xff]  ;;  %v642_v19 = vld [vmem:[%s18770_s3 + $0x2e0] sm:$0xff] }
  0x28   : > { %709 = vmatpush.msra.mxu1 %v566_v54  ;;  %729 = vmatpush.msra.mxu2 %v567_v56  ;;  %v643_v20 = vld [vmem:[%s18770_s3 + $0x2e8] sm:$0xff]  ;;  %v653_v21 = vld [vmem:[%s18770_s3 + $0x338] sm:$0xff]  ;;  %v644_v22 = vld [vmem:[%s18770_s3 + $0x2f0] sm:$0xff] }
  0x29   : > { %767 = vmatpush.msrb.mxu0 %v585_v55  ;;  %749 = vmatpush.msra.mxu3 %v568_v57  ;;  %v634_v23 = vld [vmem:[%s18770_s3 + $0x2a0] sm:$0xff]  ;;  %v635_v24 = vld [vmem:[%s18770_s3 + $0x2a8] sm:$0xff]  ;;  %v645_v25 = vld [vmem:[%s18770_s3 + $0x2f8] sm:$0xff] }
  0x2a   : > { %710 = vmatpush.msra.mxu1 %v558_v58  ;;  %730 = vmatpush.msra.mxu2 %v559_v60  ;;  %v636_v26 = vld [vmem:[%s18770_s3 + $0x2b0] sm:$0xff]  ;;  %v626_v27 = vld [vmem:[%s18770_s3 + $0x260] sm:$0xff]  ;;  %v627_v28 = vld [vmem:[%s18770_s3 + $0x268] sm:$0xff] }
  0x2b   : > { %768 = vmatpush.msrb.mxu0 %v577_v59  ;;  %750 = vmatpush.msra.mxu3 %v560_v61  ;;  %v637_v29 = vld [vmem:[%s18770_s3 + $0x2b8] sm:$0xff]  ;;  %v628_v30 = vld [vmem:[%s18770_s3 + $0x270] sm:$0xff]  ;;  %v618_v31 = vld [vmem:[%s18770_s3 + $0x220] sm:$0xff] }
  0x2c   : > { %711 = vmatpush.msra.mxu1 %v550_v62  ;;  %731 = vmatpush.msra.mxu2 %v551_v0  ;;  %v619_v32 = vld [vmem:[%s18770_s3 + $0x228] sm:$0xff]  ;;  %v629_v33 = vld [vmem:[%s18770_s3 + $0x278] sm:$0xff]  ;;  %v620_v34 = vld [vmem:[%s18770_s3 + $0x230] sm:$0xff] }
  0x2d   : > { %769 = vmatpush.msrb.mxu0 %v569_v63  ;;  %751 = vmatpush.msra.mxu3 %v552_v1  ;;  %v610_v35 = vld [vmem:[%s18770_s3 + $0x1e0] sm:$0xff]  ;;  %v611_v36 = vld [vmem:[%s18770_s3 + $0x1e8] sm:$0xff]  ;;  %v621_v37 = vld [vmem:[%s18770_s3 + $0x238] sm:$0xff] }
  0x2e   : > { %776 = vmatpush.msrb.mxu1 %v674_v2  ;;  %796 = vmatpush.msrb.mxu2 %v675_v4  ;;  %v612_v38 = vld [vmem:[%s18770_s3 + $0x1f0] sm:$0xff]  ;;  %v613_v39 = vld [vmem:[%s18770_s3 + $0x1f8] sm:$0xff]  ;;  %v602_v40 = vld [vmem:[%s18770_s3 + $0x1a0] sm:$0xff] }
  0x2f   : > { %770 = vmatpush.msrb.mxu0 %v561_v3  ;;  %816 = vmatpush.msrb.mxu3 %v676_v5  ;;  %v603_v41 = vld [vmem:[%s18770_s3 + $0x1a8] sm:$0xff]  ;;  %v604_v42 = vld [vmem:[%s18770_s3 + $0x1b0] sm:$0xff]  ;;  %v605_v43 = vld [vmem:[%s18770_s3 + $0x1b8] sm:$0xff] }
  0x30   : > { %777 = vmatpush.msrb.mxu1 %v666_v6  ;;  %797 = vmatpush.msrb.mxu2 %v667_v8  ;;  %v594_v44 = vld [vmem:[%s18770_s3 + $0x160] sm:$0xff]  ;;  %v595_v45 = vld [vmem:[%s18770_s3 + $0x168] sm:$0xff]  ;;  %v596_v46 = vld [vmem:[%s18770_s3 + $0x170] sm:$0xff] }
  0x31   : > { %771 = vmatpush.msrb.mxu0 %v553_v7  ;;  %817 = vmatpush.msrb.mxu3 %v668_v10  ;;  %v597_v47 = vld [vmem:[%s18770_s3 + $0x178] sm:$0xff]  ;;  %v586_v48 = vld [vmem:[%s18770_s3 + $0x120] sm:$0xff]  ;;  %v587_v49 = vld [vmem:[%s18770_s3 + $0x128] sm:$0xff] }
  0x32   : > { %778 = vmatpush.msrb.mxu1 %v658_v11  ;;  %798 = vmatpush.msrb.mxu2 %v659_v12  ;;  %v588_v50 = vld [vmem:[%s18770_s3 + $0x130] sm:$0xff]  ;;  %v589_v51 = vld [vmem:[%s18770_s3 + $0x138] sm:$0xff]  ;;  %v578_v52 = vld [vmem:[%s18770_s3 + $0xe0] sm:$0xff] }
  0x33   : > { %836 = vmatpush.msra.mxu0 %v677_v9  ;;  %818 = vmatpush.msrb.mxu3 %v660_v14  ;;  %v579_v53 = vld [vmem:[%s18770_s3 + $0xe8] sm:$0xff]  ;;  %v580_v54 = vld [vmem:[%s18770_s3 + $0xf0] sm:$0xff]  ;;  %v581_v55 = vld [vmem:[%s18770_s3 + $0xf8] sm:$0xff] }
  0x34   : > { %779 = vmatpush.msrb.mxu1 %v650_v15  ;;  %799 = vmatpush.msrb.mxu2 %v651_v16  ;;  %v570_v56 = vld [vmem:[%s18770_s3 + $0xa0] sm:$0xff]  ;;  %v571_v57 = vld [vmem:[%s18770_s3 + $0xa8] sm:$0xff]  ;;  %v572_v58 = vld [vmem:[%s18770_s3 + $0xb0] sm:$0xff] }
  0x35   : > { %837 = vmatpush.msra.mxu0 %v669_v13  ;;  %819 = vmatpush.msrb.mxu3 %v652_v18  ;;  %v573_v59 = vld [vmem:[%s18770_s3 + $0xb8] sm:$0xff]  ;;  %v562_v60 = vld [vmem:[%s18770_s3 + $0x60] sm:$0xff]  ;;  %v563_v61 = vld [vmem:[%s18770_s3 + $0x68] sm:$0xff] }
  0x36   : > { %780 = vmatpush.msrb.mxu1 %v642_v19  ;;  %800 = vmatpush.msrb.mxu2 %v643_v20  ;;  %v564_v62 = vld [vmem:[%s18770_s3 + $0x70] sm:$0xff]  ;;  %v565_v63 = vld [vmem:[%s18770_s3 + $0x78] sm:$0xff]  ;;  %v554_v0 = vld [vmem:[%s18770_s3 + $0x20] sm:$0xff] }
  0x37   : > { %838 = vmatpush.msra.mxu0 %v661_v17  ;;  %820 = vmatpush.msrb.mxu3 %v644_v22  ;;  %v555_v1 = vld [vmem:[%s18770_s3 + $0x28] sm:$0xff]  ;;  %v556_v2 = vld [vmem:[%s18770_s3 + $0x30] sm:$0xff]  ;;  %v557_v3 = vld [vmem:[%s18770_s3 + $0x38] sm:$0xff] }
  0x38   : > { %781 = vmatpush.msrb.mxu1 %v634_v23  ;;  %801 = vmatpush.msrb.mxu2 %v635_v24  ;;  %v520_v4 = vld [vmem:[%s18769_s2] sm:$0x1]  ;;  %v1015_v8 = vld [vmem:[%s18773_s6 + $0x78] sm:$0xff]  ;;  %v1014_v12 = vld [vmem:[%s18773_s6 + $0x70] sm:$0xff] }
  0x39   : > { %839 = vmatpush.msra.mxu0 %v653_v21  ;;  %821 = vmatpush.msrb.mxu3 %v636_v26  ;;  %v1063_v9 = vld [vmem:[%s18773_s6 + $0x1f8] sm:$0xff]  ;;  %v1062_v13 = vld [vmem:[%s18773_s6 + $0x1f0] sm:$0xff]  ;;  %v1013_v16 = vld [vmem:[%s18773_s6 + $0x68] sm:$0xff] }
  0x3a   : > { %782 = vmatpush.msrb.mxu1 %v626_v27  ;;  %802 = vmatpush.msrb.mxu2 %v627_v28  ;;  %v1031_v10 = vld [vmem:[%s18773_s6 + $0xf8] sm:$0xff]  ;;  %v1030_v14 = vld [vmem:[%s18773_s6 + $0xf0] sm:$0xff]  ;;  %v1061_v17 = vld [vmem:[%s18773_s6 + $0x1e8] sm:$0xff] }
  0x3b   : > { %840 = vmatpush.msra.mxu0 %v645_v25  ;;  %822 = vmatpush.msrb.mxu3 %v628_v30  ;;  %v1047_v11 = vld [vmem:[%s18773_s6 + $0x178] sm:$0xff]  ;;  %v1046_v15 = vld [vmem:[%s18773_s6 + $0x170] sm:$0xff]  ;;  %v1029_v18 = vld [vmem:[%s18773_s6 + $0xe8] sm:$0xff] }
  0x3c   : > { %783 = vmatpush.msrb.mxu1 %v618_v31  ;;  %803 = vmatpush.msrb.mxu2 %v619_v32  ;;  %v1045_v19 = vld [vmem:[%s18773_s6 + $0x168] sm:$0xff]  ;;  %v1012_v20 = vld [vmem:[%s18773_s6 + $0x60] sm:$0xff]  ;;  %v1011_v24 = vld [vmem:[%s18773_s6 + $0x58] sm:$0xff] }
  0x3d   : > { %841 = vmatpush.msra.mxu0 %v637_v29  ;;  %823 = vmatpush.msrb.mxu3 %v620_v34  ;;  %v1060_v21 = vld [vmem:[%s18773_s6 + $0x1e0] sm:$0xff]  ;;  %v1059_v25 = vld [vmem:[%s18773_s6 + $0x1d8] sm:$0xff]  ;;  %v1010_v28 = vld [vmem:[%s18773_s6 + $0x50] sm:$0xff] }
  0x3e   : > { %784 = vmatpush.msrb.mxu1 %v610_v35  ;;  %804 = vmatpush.msrb.mxu2 %v611_v36  ;;  %v1028_v22 = vld [vmem:[%s18773_s6 + $0xe0] sm:$0xff]  ;;  %v1027_v26 = vld [vmem:[%s18773_s6 + $0xd8] sm:$0xff]  ;;  %v1058_v29 = vld [vmem:[%s18773_s6 + $0x1d0] sm:$0xff] }
  0x3f   : > { %842 = vmatpush.msra.mxu0 %v629_v33  ;;  %824 = vmatpush.msrb.mxu3 %v612_v38  ;;  %v1044_v23 = vld [vmem:[%s18773_s6 + $0x160] sm:$0xff]  ;;  %v1043_v27 = vld [vmem:[%s18773_s6 + $0x158] sm:$0xff]  ;;  %v1026_v30 = vld [vmem:[%s18773_s6 + $0xd0] sm:$0xff] }
  0x40   : > { %785 = vmatpush.msrb.mxu1 %v602_v40  ;;  %805 = vmatpush.msrb.mxu2 %v603_v41  ;;  %v1042_v31 = vld [vmem:[%s18773_s6 + $0x150] sm:$0xff]  ;;  %v1009_v32 = vld [vmem:[%s18773_s6 + $0x48] sm:$0xff]  ;;  %v1008_v36 = vld [vmem:[%s18773_s6 + $0x40] sm:$0xff] }
  0x41   : > { %843 = vmatpush.msra.mxu0 %v621_v37  ;;  %825 = vmatpush.msrb.mxu3 %v604_v42  ;;  %v1057_v33 = vld [vmem:[%s18773_s6 + $0x1c8] sm:$0xff]  ;;  %v1056_v37 = vld [vmem:[%s18773_s6 + $0x1c0] sm:$0xff]  ;;  %v1007_v40 = vld [vmem:[%s18773_s6 + $0x38] sm:$0xff] }
  0x42   : > { %786 = vmatpush.msrb.mxu1 %v594_v44  ;;  %806 = vmatpush.msrb.mxu2 %v595_v45  ;;  %v1025_v34 = vld [vmem:[%s18773_s6 + $0xc8] sm:$0xff]  ;;  %v1024_v38 = vld [vmem:[%s18773_s6 + $0xc0] sm:$0xff]  ;;  %v1055_v41 = vld [vmem:[%s18773_s6 + $0x1b8] sm:$0xff] }
  0x43   : > { %844 = vmatpush.msra.mxu0 %v613_v39  ;;  %826 = vmatpush.msrb.mxu3 %v596_v46  ;;  %v1041_v35 = vld [vmem:[%s18773_s6 + $0x148] sm:$0xff]  ;;  %v1040_v39 = vld [vmem:[%s18773_s6 + $0x140] sm:$0xff]  ;;  %v1006_v42 = vld [vmem:[%s18773_s6 + $0x30] sm:$0xff] }
  0x44   : > { %787 = vmatpush.msrb.mxu1 %v586_v48  ;;  %807 = vmatpush.msrb.mxu2 %v587_v49  ;;  %v1005_v44 = vld [vmem:[%s18773_s6 + $0x28] sm:$0xff]  ;;  %v1004_v46 = vld [vmem:[%s18773_s6 + $0x20] sm:$0xff]  ;;  %v1039_v48 = vld [vmem:[%s18773_s6 + $0x138] sm:$0xff] }
  0x45   : > { %845 = vmatpush.msra.mxu0 %v605_v43  ;;  %827 = vmatpush.msrb.mxu3 %v588_v50  ;;  %v1054_v43 = vld [vmem:[%s18773_s6 + $0x1b0] sm:$0xff]  ;;  %v1053_v45 = vld [vmem:[%s18773_s6 + $0x1a8] sm:$0xff]  ;;  %v1052_v49 = vld [vmem:[%s18773_s6 + $0x1a0] sm:$0xff] }
  0x46   : > { %788 = vmatpush.msrb.mxu1 %v578_v52  ;;  %808 = vmatpush.msrb.mxu2 %v579_v53  ;;  %v1003_v50 = vld [vmem:[%s18773_s6 + $0x18] sm:$0xff]  ;;  %v1038_v52 = vld [vmem:[%s18773_s6 + $0x130] sm:$0xff] }
  0x47   : > { %846 = vmatpush.msra.mxu0 %v597_v47  ;;  %828 = vmatpush.msrb.mxu3 %v580_v54  ;;  %v1023_v47 = vld [vmem:[%s18773_s6 + $0xb8] sm:$0xff]  ;;  %v1002_v54 = vld [vmem:[%s18773_s6 + $0x10] sm:$0xff] }
  0x48   : > { %789 = vmatpush.msrb.mxu1 %v570_v56  ;;  %809 = vmatpush.msrb.mxu2 %v571_v57  ;;  %v1051_v53 = vld [vmem:[%s18773_s6 + $0x198] sm:$0xff]  ;;  %v1037_v56 = vld [vmem:[%s18773_s6 + $0x128] sm:$0xff]  ;;  %v1050_v57 = vld [vmem:[%s18773_s6 + $0x190] sm:$0xff] }
  0x49   : > { %847 = vmatpush.msra.mxu0 %v589_v51  ;;  %829 = vmatpush.msrb.mxu3 %v572_v58  ;;  %v1022_v51 = vld [vmem:[%s18773_s6 + $0xb0] sm:$0xff]  ;;  %v1001_v58 = vld [vmem:[%s18773_s6 + $0x8] sm:$0xff] }
  0x4a   : > { %790 = vmatpush.msrb.mxu1 %v562_v60  ;;  %810 = vmatpush.msrb.mxu2 %v563_v61  ;;  %v1036_v60 = vld [vmem:[%s18773_s6 + $0x120] sm:$0xff]  ;;  %v1049_v61 = vld [vmem:[%s18773_s6 + $0x188] sm:$0xff] }
  0x4b   : > { %848 = vmatpush.msra.mxu0 %v581_v55  ;;  %830 = vmatpush.msrb.mxu3 %v564_v62  ;;  %v1021_v55 = vld [vmem:[%s18773_s6 + $0xa8] sm:$0xff]  ;;  %v1000_v62 = vld [vmem:[%s18773_s6] sm:$0xff] }
  0x4c   : > { %791 = vmatpush.msrb.mxu1 %v554_v0  ;;  %811 = vmatpush.msrb.mxu2 %v555_v1  ;;  %v1035_v0 = vld [vmem:[%s18773_s6 + $0x118] sm:$0xff]  ;;  %v1048_v1 = vld [vmem:[%s18773_s6 + $0x180] sm:$0xff] }
  0x4d   : > { %849 = vmatpush.msra.mxu0 %v573_v59  ;;  %831 = vmatpush.msrb.mxu3 %v556_v2  ;;  %v1020_v59 = vld [vmem:[%s18773_s6 + $0xa0] sm:$0xff]  ;;  %v1018_v2 = vld [vmem:[%s18773_s6 + $0x90] sm:$0xff] }
  0x4f   : > { %850 = vmatpush.msra.mxu0 %v565_v63  ;;  %v1019_v63 = vld [vmem:[%s18773_s6 + $0x98] sm:$0xff] }
  0x51   : > { %851 = vmatpush.msra.mxu0 %v557_v3  ;;  %v1034_v3 = vld [vmem:[%s18773_s6 + $0x110] sm:$0xff] }
  0x8f   : > { %v546_v5 = vpop.f32.mrf.mxu0 }
  0x90   : > { %v547_v6 = vadd.f32 %v546_v5, %v520_v4  ;;  %v1017_v4 = vld [vmem:[%s18773_s6 + $0x88] sm:$0xff] }
  0x91   : > { %v1033_v5 = vld [vmem:[%s18773_s6 + $0x108] sm:$0xff] }
  0x92   : > { %v549_v7 = vmax.f32 %v547_v6, 0.0  ;;  %v1016_v6 = vld [vmem:[%s18773_s6 + $0x80] sm:$0xff] }
  0x94   : > { %712 = vmatmul.f32.vlgmr.msra.gmra.mxu1 %v549_v7  ;;  %732 = vmatmul.f32.vlgmr.msra.gmra.mxu2 %v549_v7 }
  0x95   : > { %752 = vmatmul.f32.vlgmr.msra.gmra.mxu3 %v549_v7  ;;  %772 = vmatmul.f32.vlgmr.msrb.gmra.mxu0 %v549_v7 }
  0x96   : > { %1128 = vmatpush.msra.mxu1 %v1015_v8  ;;  %1251 = vmatpush.msrb.mxu0 %v1063_v9  ;;  %v11403_v8 = vld [vmem:[%s18771_s4] sm:$0xff] }
  0x97   : > { %1169 = vmatpush.msra.mxu2 %v1031_v10  ;;  %1210 = vmatpush.msra.mxu3 %v1047_v11  ;;  %v680_v9 = vperm.slane %v11403_v8, 0  ;;  %v683_v10 = vperm.slane %v11403_v8, 3 }
  0x98   : > { %1129 = vmatpush.msra.mxu1 %v1014_v12  ;;  %1252 = vmatpush.msrb.mxu0 %v1062_v13 }
  0x99   : > { %1170 = vmatpush.msra.mxu2 %v1030_v14  ;;  %1211 = vmatpush.msra.mxu3 %v1046_v15 }
  0x9a   : > { %1130 = vmatpush.msra.mxu1 %v1013_v16  ;;  %1253 = vmatpush.msrb.mxu0 %v1061_v17  ;;  %v681_v16 = vperm.slane %v11403_v8, 1 }
  0x9b   : > { %1171 = vmatpush.msra.mxu2 %v1029_v18  ;;  %1212 = vmatpush.msra.mxu3 %v1045_v19  ;;  %v682_v18 = vperm.slane %v11403_v8, 2  ;;  %v864_v19 = vld [vmem:[%s18772_s5] sm:$0xff] }
  0x9c   : > { %792 = vmatmul.f32.vlgmr.msrb.gmra.mxu1 %v549_v7  ;;  %812 = vmatmul.f32.vlgmr.msrb.gmra.mxu2 %v549_v7 }
  0x9d   : > { %832 = vmatmul.f32.vlgmr.msrb.gmra.mxu3 %v549_v7  ;;  %852 = vmatmul.f32.vlgmr.msra.gmra.mxu0 %v549_v7  ;;  %v1032_v7 = vld [vmem:[%s18773_s6 + $0x100] sm:$0xff] }
  0x9e   : > { %1131 = vmatpush.msra.mxu1 %v1012_v20  ;;  %1254 = vmatpush.msrb.mxu0 %v1060_v21  ;;  %v867_v21 = vld [vmem:[%s18772_s5 + $0x18] sm:$0xff] }
  0x9f   : > { %1172 = vmatpush.msra.mxu2 %v1028_v22  ;;  %1213 = vmatpush.msra.mxu3 %v1044_v23 }
  0xa0   : > { %1132 = vmatpush.msra.mxu1 %v1011_v24  ;;  %1255 = vmatpush.msrb.mxu0 %v1059_v25 }
  0xa1   : > { %1173 = vmatpush.msra.mxu2 %v1027_v26  ;;  %1214 = vmatpush.msra.mxu3 %v1043_v27 }
  0xa2   : > { %1133 = vmatpush.msra.mxu1 %v1010_v28  ;;  %1256 = vmatpush.msrb.mxu0 %v1058_v29 }
  0xa3   : > { %1174 = vmatpush.msra.mxu2 %v1026_v30  ;;  %1215 = vmatpush.msra.mxu3 %v1042_v31  ;;  %v865_v30 = vld [vmem:[%s18772_s5 + $0x8] sm:$0xff] }
  0xa4   : > { %1134 = vmatpush.msra.mxu1 %v1009_v32  ;;  %1257 = vmatpush.msrb.mxu0 %v1057_v33  ;;  %v1079_v32 = vld [vmem:[%s18773_s6 + $0x278] sm:$0xff] }
  0xa5   : > { %1175 = vmatpush.msra.mxu2 %v1025_v34  ;;  %1216 = vmatpush.msra.mxu3 %v1041_v35  ;;  %v1127_v33 = vld [vmem:[%s18773_s6 + $0x3f8] sm:$0xff]  ;;  %v1078_v34 = vld [vmem:[%s18773_s6 + $0x270] sm:$0xff] }
  0xa6   : > { %1135 = vmatpush.msra.mxu1 %v1008_v36  ;;  %1258 = vmatpush.msrb.mxu0 %v1056_v37  ;;  %v866_v36 = vld [vmem:[%s18772_s5 + $0x10] sm:$0xff] }
  0xa7   : > { %1176 = vmatpush.msra.mxu2 %v1024_v38  ;;  %1217 = vmatpush.msra.mxu3 %v1040_v39  ;;  %v1126_v37 = vld [vmem:[%s18773_s6 + $0x3f0] sm:$0xff]  ;;  %v872_v39 = vld [vmem:[%s18772_s5 + $0x40] sm:$0xff] }
  0xa8   : > { %1136 = vmatpush.msra.mxu1 %v1007_v40  ;;  %1259 = vmatpush.msrb.mxu0 %v1055_v41  ;;  %v1077_v40 = vld [vmem:[%s18773_s6 + $0x268] sm:$0xff] }
  0xa9   : > { %1177 = vmatpush.msra.mxu2 %v1023_v47  ;;  %1218 = vmatpush.msra.mxu3 %v1039_v48  ;;  %v1076_v47 = vld [vmem:[%s18773_s6 + $0x260] sm:$0xff]  ;;  %v1095_v48 = vld [vmem:[%s18773_s6 + $0x2f8] sm:$0xff] }
  0xaa   : > { %1137 = vmatpush.msra.mxu1 %v1006_v42  ;;  %1260 = vmatpush.msrb.mxu0 %v1054_v43  ;;  %v875_v42 = vld [vmem:[%s18772_s5 + $0x58] sm:$0xff]  ;;  %v1125_v43 = vld [vmem:[%s18773_s6 + $0x3e8] sm:$0xff] }
  0xab   : > { %1178 = vmatpush.msra.mxu2 %v1022_v51  ;;  %1219 = vmatpush.msra.mxu3 %v1038_v52  ;;  %v874_v51 = vld [vmem:[%s18772_s5 + $0x50] sm:$0xff]  ;;  %v1124_v52 = vld [vmem:[%s18773_s6 + $0x3e0] sm:$0xff] }
  0xac   : > { %1138 = vmatpush.msra.mxu1 %v1005_v44  ;;  %1261 = vmatpush.msrb.mxu0 %v1053_v45 }
  0xad   : > { %1179 = vmatpush.msra.mxu2 %v1021_v55  ;;  %1220 = vmatpush.msra.mxu3 %v1037_v56  ;;  %v1110_v55 = vld [vmem:[%s18773_s6 + $0x370] sm:$0xff]  ;;  %v1123_v56 = vld [vmem:[%s18773_s6 + $0x3d8] sm:$0xff] }
  0xae   : > { %1139 = vmatpush.msra.mxu1 %v1004_v46  ;;  %1262 = vmatpush.msrb.mxu0 %v1052_v49  ;;  %v1111_v49 = vld [vmem:[%s18773_s6 + $0x378] sm:$0xff] }
  0xaf   : > { %1180 = vmatpush.msra.mxu2 %v1020_v59  ;;  %1221 = vmatpush.msra.mxu3 %v1036_v60  ;;  %v880_v59 = vld [vmem:[%s18772_s5 + $0x80] sm:$0xff]  ;;  %v1109_v60 = vld [vmem:[%s18773_s6 + $0x368] sm:$0xff] }
  0xb0   : > { %1140 = vmatpush.msra.mxu1 %v1003_v50  ;;  %1263 = vmatpush.msrb.mxu0 %v1051_v53  ;;  %v873_v50 = vld [vmem:[%s18772_s5 + $0x48] sm:$0xff]  ;;  %v1075_v53 = vld [vmem:[%s18773_s6 + $0x258] sm:$0xff] }
  0xb1   : > { %1181 = vmatpush.msra.mxu2 %v1019_v63  ;;  %1222 = vmatpush.msra.mxu3 %v1035_v0  ;;  %v1122_v63 = vld [vmem:[%s18773_s6 + $0x3d0] sm:$0xff] }
  0xb2   : > { %1141 = vmatpush.msra.mxu1 %v1002_v54  ;;  %1264 = vmatpush.msrb.mxu0 %v1050_v57  ;;  %v1094_v54 = vld [vmem:[%s18773_s6 + $0x2f0] sm:$0xff] }
  0xb3   : > { %1182 = vmatpush.msra.mxu2 %v1018_v2  ;;  %1223 = vmatpush.msra.mxu3 %v1034_v3  ;;  %v1074_v57 = vld [vmem:[%s18773_s6 + $0x250] sm:$0xff]  ;;  %v1073_v3 = vld [vmem:[%s18773_s6 + $0x248] sm:$0xff] }
  0xb4   : > { %1142 = vmatpush.msra.mxu1 %v1001_v58  ;;  %1265 = vmatpush.msrb.mxu0 %v1049_v61  ;;  %v1093_v58 = vld [vmem:[%s18773_s6 + $0x2e8] sm:$0xff] }
  0xb5   : > { %1183 = vmatpush.msra.mxu2 %v1017_v4  ;;  %1224 = vmatpush.msra.mxu3 %v1033_v5  ;;  %v1108_v5 = vld [vmem:[%s18773_s6 + $0x360] sm:$0xff] }
  0xb6   : > { %1143 = vmatpush.msra.mxu1 %v1000_v62  ;;  %1266 = vmatpush.msrb.mxu0 %v1048_v1  ;;  %v883_v62 = vld [vmem:[%s18772_s5 + $0x98] sm:$0xff]  ;;  %v1092_v1 = vld [vmem:[%s18773_s6 + $0x2e0] sm:$0xff] }
  0xb7   : > { %1184 = vmatpush.msra.mxu2 %v1016_v6  ;;  %1225 = vmatpush.msra.mxu3 %v1032_v7  ;;  %v1121_v6 = vld [vmem:[%s18773_s6 + $0x3c8] sm:$0xff]  ;;  %v1072_v7 = vld [vmem:[%s18773_s6 + $0x240] sm:$0xff] }
  0xb8   : > { %1292 = vmatpush.msrb.mxu1 %v1079_v32  ;;  %1415 = vmatpush.msra.mxu0 %v1127_v33  ;;  %v889_v32 = vld [vmem:[%s18772_s5 + $0xc8] sm:$0xff]  ;;  %v1104_v33 = vld [vmem:[%s18773_s6 + $0x340] sm:$0xff] }
  0xb9   : > { %1333 = vmatpush.msrb.mxu2 %v1095_v48  ;;  %1374 = vmatpush.msrb.mxu3 %v1111_v49  ;;  %v1067_v48 = vld [vmem:[%s18773_s6 + $0x218] sm:$0xff] }
  0xba   : > { %1293 = vmatpush.msrb.mxu1 %v1078_v34  ;;  %1416 = vmatpush.msra.mxu0 %v1126_v37  ;;  %v1117_v34 = vld [vmem:[%s18773_s6 + $0x3a8] sm:$0xff]  ;;  %v1068_v37 = vld [vmem:[%s18773_s6 + $0x220] sm:$0xff] }
  0xbb   : > { %1334 = vmatpush.msrb.mxu2 %v1094_v54  ;;  %1375 = vmatpush.msrb.mxu3 %v1110_v55  ;;  %v897_v54 = vld [vmem:[%s18772_s5 + $0x108] sm:$0xff] }
  0xbc   : > { %1294 = vmatpush.msrb.mxu1 %v1077_v40  ;;  %1417 = vmatpush.msra.mxu0 %v1125_v43  ;;  %v896_v40 = vld [vmem:[%s18772_s5 + $0x100] sm:$0xff]  ;;  %v899_v43 = vld [vmem:[%s18772_s5 + $0x118] sm:$0xff]  ;;  %v1101_v55 = vld [vmem:[%s18773_s6 + $0x328] sm:$0xff] }
  0xbd   : > { %1335 = vmatpush.msrb.mxu2 %v1093_v58  ;;  %1376 = vmatpush.msrb.mxu3 %v1109_v60  ;;  %v1065_v58 = vld [vmem:[%s18773_s6 + $0x208] sm:$0xff]  ;;  %v904_v60 = vld [vmem:[%s18772_s5 + $0x140] sm:$0xff] }
  0xbe   : > { %1295 = vmatpush.msrb.mxu1 %v1076_v47  ;;  %1418 = vmatpush.msra.mxu0 %v1124_v52  ;;  %v1066_v52 = vld [vmem:[%s18773_s6 + $0x210] sm:$0xff] }
  0xbf   : > { %1336 = vmatpush.msrb.mxu2 %v1092_v1  ;;  %1377 = vmatpush.msrb.mxu3 %v1108_v5 }
  0xc0   : > { %1296 = vmatpush.msrb.mxu1 %v1075_v53  ;;  %1419 = vmatpush.msra.mxu0 %v1123_v56  ;;  %v1085_v53 = vld [vmem:[%s18773_s6 + $0x2a8] sm:$0xff]  ;;  %v1114_v56 = vld [vmem:[%s18773_s6 + $0x390] sm:$0xff] }
  0xc2   : > { %1297 = vmatpush.msrb.mxu1 %v1074_v57  ;;  %1420 = vmatpush.msra.mxu0 %v1122_v63  ;;  %v898_v57 = vld [vmem:[%s18772_s5 + $0x110] sm:$0xff]  ;;  %v907_v63 = vld [vmem:[%s18772_s5 + $0x158] sm:$0xff] }
  0xc4   : > { %1298 = vmatpush.msrb.mxu1 %v1073_v3  ;;  %1421 = vmatpush.msra.mxu0 %v1121_v6  ;;  %v1099_v6 = vld [vmem:[%s18773_s6 + $0x318] sm:$0xff] }
  0xc6   : > { %1299 = vmatpush.msrb.mxu1 %v1072_v7  ;;  %v1112_v7 = vld [vmem:[%s18773_s6 + $0x380] sm:$0xff] }
 0x111   : > { %v713_v11 = vpop.f32.mrf.mxu1 }
 0x112   : > { %v714_v12 = vadd.f32 %v713_v11, %v680_v9  ;;  %v773_v13 = vpop.f32.mrf.mxu0  ;;  %v1091_v9 = vld [vmem:[%s18773_s6 + $0x2d8] sm:$0xff] }
 0x113   : > { %v774_v14 = vadd.f32 %v773_v13, %v683_v10  ;;  %v881_v10 = vld [vmem:[%s18772_s5 + $0x88] sm:$0xff]  ;;  %v1107_v11 = vld [vmem:[%s18773_s6 + $0x358] sm:$0xff]  ;;  %v882_v13 = vld [vmem:[%s18772_s5 + $0x90] sm:$0xff]  ;;  %1337 = vmatpush.msrb.mxu2 %v1091_v9 }
 0x114   : > { %v856_v15 = vmax.f32 %v714_v12, 0.0  ;;  %v1120_v12 = vld [vmem:[%s18773_s6 + $0x3c0] sm:$0xff]  ;;  %1378 = vmatpush.msrb.mxu3 %v1107_v11  ;;  %v1082_v9 = vld [vmem:[%s18773_s6 + $0x290] sm:$0xff] }
 0x115   : > { %v859_v17 = vmax.f32 %v774_v14, 0.0  ;;  %v1071_v14 = vld [vmem:[%s18773_s6 + $0x238] sm:$0xff]  ;;  %1422 = vmatpush.msra.mxu0 %v1120_v12  ;;  %v1098_v11 = vld [vmem:[%s18773_s6 + $0x310] sm:$0xff] }
 0x116   : > { %v11412_v20 = vperm.slane %v856_v15, 0  ;;  %v1090_v15 = vld [vmem:[%s18773_s6 + $0x2d0] sm:$0xff]  ;;  %1300 = vmatpush.msrb.mxu1 %v1071_v14  ;;  %v912_v14 = vld [vmem:[%s18772_s5 + $0x180] sm:$0xff] }
 0x117   : > { %v11417_v22 = vperm.slane %v859_v17, 0  ;;  %v733_v23 = vpop.f32.mrf.mxu2  ;;  %v1106_v17 = vld [vmem:[%s18773_s6 + $0x350] sm:$0xff]  ;;  %1338 = vmatpush.msrb.mxu2 %v1090_v15  ;;  %v1097_v15 = vld [vmem:[%s18773_s6 + $0x308] sm:$0xff] }
 0x118   : > { %v734_v24 = vadd.f32 %v733_v23, %v681_v16  ;;  %v753_v25 = vpop.f32.mrf.mxu3  ;;  %v936_v26 = vmul.f32 %v11412_v20, %v864_v19  ;;  %v944_v45 = vmul.f32 %v11412_v20, %v872_v39  ;;  %v952_v2 = vmul.f32 %v11412_v20, %v880_v59  ;;  %v888_v16 = vld [vmem:[%s18772_s5 + $0xc0] sm:$0xff]  ;;  %v891_v19 = vld [vmem:[%s18772_s5 + $0xd8] sm:$0xff]  ;;  %1379 = vmatpush.msrb.mxu3 %v1106_v17  ;;  %v906_v12 = vld [vmem:[%s18772_s5 + $0x150] sm:$0xff] }
 0x119   : > { %v754_v27 = vadd.f32 %v753_v25, %v682_v18  ;;  %v939_v28 = vmul.f32 %v11417_v22, %v867_v21  ;;  %v947_v46 = vmul.f32 %v11417_v22, %v875_v42  ;;  %v955_v4 = vmul.f32 %v11417_v22, %v883_v62  ;;  %v1119_v21 = vld [vmem:[%s18773_s6 + $0x3b8] sm:$0xff]  ;;  %v1084_v59 = vld [vmem:[%s18773_s6 + $0x2a0] sm:$0xff] }
 0x11a   : > { %v857_v29 = vmax.f32 %v734_v24, 0.0  ;;  %1144 = vmatmul.f32.vlgmr.msra.gmra.mxu1 %v936_v26  ;;  %v1089_v24 = vld [vmem:[%s18773_s6 + $0x2c8] sm:$0xff]  ;;  %v960_v25 = vmul.f32 %v11412_v20, %v888_v16  ;;  %v1070_v26 = vld [vmem:[%s18773_s6 + $0x230] sm:$0xff]  ;;  %1423 = vmatpush.msra.mxu0 %v1119_v21  ;;  %v1087_v39 = vld [vmem:[%s18773_s6 + $0x2b8] sm:$0xff]  ;;  %v968_v47 = vmul.f32 %v11412_v20, %v896_v40  ;;  %v971_v49 = vmul.f32 %v11417_v22, %v899_v43 }
 0x11b   : > { %v858_v31 = vmax.f32 %v754_v27, 0.0  ;;  %1267 = vmatmul.f32.vlgmr.msrb.gmra.mxu0 %v939_v28  ;;  %v963_v27 = vmul.f32 %v11417_v22, %v891_v19  ;;  %v1105_v28 = vld [vmem:[%s18773_s6 + $0x348] sm:$0xff]  ;;  %1339 = vmatpush.msrb.mxu2 %v1089_v24  ;;  %v976_v3 = vmul.f32 %v11412_v20, %v904_v60  ;;  %v979_v5 = vmul.f32 %v11417_v22, %v907_v63  ;;  %v915_v17 = vld [vmem:[%s18772_s5 + $0x198] sm:$0xff]  ;;  %v1096_v21 = vld [vmem:[%s18773_s6 + $0x300] sm:$0xff] }
 0x11c   : > { %v11433_v35 = vperm.slane %v857_v29, 0  ;;  %v1118_v29 = vld [vmem:[%s18773_s6 + $0x3b0] sm:$0xff]  ;;  %1301 = vmatpush.msrb.mxu1 %v1070_v26  ;;  %1380 = vmatpush.msrb.mxu3 %v1105_v28  ;;  %v984_v24 = vmul.f32 %v11412_v20, %v912_v14  ;;  %v687_v26 = vperm.slane %v11403_v8, 7  ;;  %v853_v28 = vpop.f32.mrf.mxu0  ;;  %v686_v40 = vperm.slane %v11403_v8, 6  ;;  %v876_v60 = vld [vmem:[%s18772_s5 + $0x60] sm:$0xff] }
 0x11d   : > { %v11441_v38 = vperm.slane %v858_v31, 0  ;;  %v1088_v31 = vld [vmem:[%s18773_s6 + $0x2c0] sm:$0xff]  ;;  %1424 = vmatpush.msra.mxu0 %v1118_v29  ;;  %v913_v29 = vld [vmem:[%s18772_s5 + $0x188] sm:$0xff] }
 0x11e   : > { %v937_v41 = vmul.f32 %v11433_v35, %v865_v30  ;;  %v945_v61 = vmul.f32 %v11433_v35, %v873_v50  ;;  %v953_v18 = vmul.f32 %v11433_v35, %v881_v10  ;;  %v1069_v30 = vld [vmem:[%s18773_s6 + $0x228] sm:$0xff]  ;;  %1340 = vmatpush.msrb.mxu2 %v1088_v31  ;;  %v961_v42 = vmul.f32 %v11433_v35, %v889_v32  ;;  %v1102_v50 = vld [vmem:[%s18773_s6 + $0x330] sm:$0xff] }
 0x11f   : > { %v938_v44 = vmul.f32 %v11441_v38, %v866_v36  ;;  %v946_v0 = vmul.f32 %v11441_v38, %v874_v51  ;;  %v954_v23 = vmul.f32 %v11441_v38, %v882_v13  ;;  %v890_v36 = vld [vmem:[%s18772_s5 + $0xd0] sm:$0xff]  ;;  %1302 = vmatpush.msrb.mxu1 %v1069_v30  ;;  %1381 = vmatpush.msrb.mxu3 %v1104_v33  ;;  %v1115_v51 = vld [vmem:[%s18773_s6 + $0x398] sm:$0xff]  ;;  %v905_v10 = vld [vmem:[%s18772_s5 + $0x148] sm:$0xff] }
 0x120   : > { %1185 = vmatmul.f32.vlgmr.msra.gmra.mxu2 %v937_v41  ;;  %v1103_v41 = vld [vmem:[%s18773_s6 + $0x338] sm:$0xff]  ;;  %1425 = vmatpush.msra.mxu0 %v1117_v34  ;;  %v969_v62 = vmul.f32 %v11433_v35, %v897_v54  ;;  %v970_v1 = vmul.f32 %v11441_v38, %v898_v57  ;;  %v1081_v13 = vld [vmem:[%s18773_s6 + $0x288] sm:$0xff]  ;;  %v977_v16 = vmul.f32 %v11433_v35, %v905_v10  ;;  %v914_v31 = vld [vmem:[%s18772_s5 + $0x190] sm:$0xff]  ;;  %v685_v34 = vperm.slane %v11403_v8, 5  ;;  %v833_v43 = vpop.f32.mrf.mxu3 }
 0x121   : > { %1226 = vmatmul.f32.vlgmr.msra.gmra.mxu3 %v938_v44  ;;  %v1116_v44 = vld [vmem:[%s18773_s6 + $0x3a0] sm:$0xff]  ;;  %1303 = vmatpush.msrb.mxu1 %v1068_v37  ;;  %v978_v19 = vmul.f32 %v11441_v38, %v906_v12  ;;  %v854_v32 = vadd.f32 %v853_v28, %v687_v26  ;;  %v923_v37 = vld [vmem:[%s18772_s5 + $0x1d8] sm:$0xff]  ;;  %v886_v12 = vld [vmem:[%s18772_s5 + $0xb0] sm:$0xff] }
 0x122   : > { %1147 = vmatmul.f32.gmra.mxu1 %v944_v45  ;;  %v962_v45 = vmul.f32 %v11441_v38, %v890_v36  ;;  %1341 = vmatpush.msrb.mxu2 %v1087_v39  ;;  %v920_v33 = vld [vmem:[%s18772_s5 + $0x1c0] sm:$0xff]  ;;  %v985_v36 = vmul.f32 %v11433_v35, %v913_v29  ;;  %v813_v39 = vpop.f32.mrf.mxu2  ;;  %v901_v29 = vld [vmem:[%s18772_s5 + $0x128] sm:$0xff] }
 0x123   : > { %1270 = vmatmul.f32.gmra.mxu0 %v947_v46  ;;  %v1086_v46 = vld [vmem:[%s18773_s6 + $0x2b0] sm:$0xff]  ;;  %1382 = vmatpush.msrb.mxu3 %v1103_v41  ;;  %v986_v41 = vmul.f32 %v11441_v38, %v914_v31  ;;  %v908_v31 = vld [vmem:[%s18772_s5 + $0x160] sm:$0xff] }
 0x124   : > { %1426 = vmatpush.msra.mxu0 %v1116_v44  ;;  %1342 = vmatpush.msrb.mxu2 %v1086_v46  ;;  %v992_v44 = vmul.f32 %v11412_v20, %v920_v33  ;;  %v995_v46 = vmul.f32 %v11417_v22, %v923_v37  ;;  %v868_v20 = vld [vmem:[%s18772_s5 + $0x20] sm:$0xff]  ;;  %v911_v33 = vld [vmem:[%s18772_s5 + $0x178] sm:$0xff] }
 0x125   : > { %1304 = vmatpush.msrb.mxu1 %v1067_v48  ;;  %1383 = vmatpush.msrb.mxu3 %v1102_v50  ;;  %v834_v48 = vadd.f32 %v833_v43, %v686_v40  ;;  %v922_v50 = vld [vmem:[%s18772_s5 + $0x1d0] sm:$0xff]  ;;  %v919_v43 = vld [vmem:[%s18772_s5 + $0x1b8] sm:$0xff] }
 0x126   : > { %1427 = vmatpush.msra.mxu0 %v1115_v51  ;;  %1343 = vmatpush.msrb.mxu2 %v1085_v53  ;;  %v871_v53 = vld [vmem:[%s18772_s5 + $0x38] sm:$0xff]  ;;  %v910_v40 = vld [vmem:[%s18772_s5 + $0x170] sm:$0xff] }
 0x127   : > { %1305 = vmatpush.msrb.mxu1 %v1066_v52  ;;  %1384 = vmatpush.msrb.mxu3 %v1101_v55  ;;  %v862_v54 = vmax.f32 %v834_v48, 0.0  ;;  %v994_v55 = vmul.f32 %v11441_v38, %v922_v50  ;;  %v870_v38 = vld [vmem:[%s18772_s5 + $0x30] sm:$0xff] }
 0x128   : > { %1188 = vmatmul.f32.gmra.mxu2 %v945_v61  ;;  %v1100_v61 = vld [vmem:[%s18773_s6 + $0x320] sm:$0xff]  ;;  %1428 = vmatpush.msra.mxu0 %v1114_v56  ;;  %v918_v48 = vld [vmem:[%s18772_s5 + $0x1b0] sm:$0xff] }
 0x129   : > { %1229 = vmatmul.f32.gmra.mxu3 %v946_v0  ;;  %v1113_v0 = vld [vmem:[%s18773_s6 + $0x388] sm:$0xff]  ;;  %1306 = vmatpush.msrb.mxu1 %v1065_v58 }
 0x12a   : > { %1150 = vmatmul.f32.gmra.mxu1 %v952_v2  ;;  %1344 = vmatpush.msrb.mxu2 %v1084_v59  ;;  %v1083_v2 = vld [vmem:[%s18773_s6 + $0x298] sm:$0xff]  ;;  %v11755_v59 = vperm.slane %v862_v54, 0  ;;  %v925_v54 = vld [vmem:[%s18772_s5 + $0x1e8] sm:$0xff] }
 0x12b   : > { %1273 = vmatmul.f32.gmra.mxu0 %v955_v4  ;;  %1385 = vmatpush.msrb.mxu3 %v1100_v61  ;;  %v1064_v4 = vld [vmem:[%s18773_s6 + $0x200] sm:$0xff] }
 0x12c   : > { %1429 = vmatpush.msra.mxu0 %v1113_v0  ;;  %1345 = vmatpush.msrb.mxu2 %v1083_v2  ;;  %v942_v63 = vmul.f32 %v11755_v59, %v870_v38  ;;  %v877_v2 = vld [vmem:[%s18772_s5 + $0x68] sm:$0xff] }
 0x12d   : > { %1307 = vmatpush.msrb.mxu1 %v1064_v4  ;;  %1386 = vmatpush.msrb.mxu3 %v1099_v6  ;;  %v884_v4 = vld [vmem:[%s18772_s5 + $0xa0] sm:$0xff]  ;;  %v887_v6 = vld [vmem:[%s18772_s5 + $0xb8] sm:$0xff] }
 0x12e   : > { %1430 = vmatpush.msra.mxu0 %v1112_v7  ;;  %1346 = vmatpush.msrb.mxu2 %v1082_v9 }
 0x12f   : > { %1387 = vmatpush.msrb.mxu3 %v1098_v11  ;;  %v885_v11 = vld [vmem:[%s18772_s5 + $0xa8] sm:$0xff] }
 0x130   : > { %1191 = vmatmul.f32.gmra.mxu2 %v953_v18  ;;  %v1080_v18 = vld [vmem:[%s18773_s6 + $0x280] sm:$0xff] }
 0x131   : > { %1232 = vmatmul.f32.gmra.mxu3 %v954_v23  ;;  %1347 = vmatpush.msrb.mxu2 %v1081_v13  ;;  %v684_v23 = vperm.slane %v11403_v8, 4  ;;  %v892_v13 = vld [vmem:[%s18772_s5 + $0xe0] sm:$0xff] }
 0x132   : > { %1153 = vmatmul.f32.gmra.mxu1 %v960_v25  ;;  %1388 = vmatpush.msrb.mxu3 %v1097_v15  ;;  %v793_v25 = vpop.f32.mrf.mxu1  ;;  %v895_v15 = vld [vmem:[%s18772_s5 + $0xf8] sm:$0xff] }
 0x133   : > { %1276 = vmatmul.f32.gmra.mxu0 %v963_v27  ;;  %v987_v27 = vmul.f32 %v11417_v22, %v915_v17  ;;  %1348 = vmatpush.msrb.mxu2 %v1080_v18  ;;  %v794_v30 = vadd.f32 %v793_v25, %v684_v23  ;;  %v900_v23 = vld [vmem:[%s18772_s5 + $0x120] sm:$0xff]  ;;  %v903_v25 = vld [vmem:[%s18772_s5 + $0x138] sm:$0xff] }
 0x134   : > { %1389 = vmatpush.msrb.mxu3 %v1096_v21  ;;  %v894_v21 = vld [vmem:[%s18772_s5 + $0xf0] sm:$0xff] }
 0x135   : > { %v966_v26 = vmul.f32 %v11755_v59, %v894_v21 }
 0x138   : > { %1194 = vmatmul.f32.gmra.mxu2 %v961_v42  ;;  %v860_v42 = vmax.f32 %v794_v30, 0.0  ;;  %v902_v30 = vld [vmem:[%s18772_s5 + $0x130] sm:$0xff] }
 0x139   : > { %1235 = vmatmul.f32.gmra.mxu3 %v962_v45  ;;  %v863_v45 = vmax.f32 %v854_v32, 0.0 }
 0x13a   : > { %1156 = vmatmul.f32.gmra.mxu1 %v968_v47  ;;  %v814_v47 = vadd.f32 %v813_v39, %v685_v34  ;;  %v11736_v8 = vperm.slane %v860_v42, 0  ;;  %v974_v34 = vmul.f32 %v11755_v59, %v902_v30  ;;  %v909_v39 = vld [vmem:[%s18772_s5 + $0x168] sm:$0xff] }
 0x13b   : > { %1279 = vmatmul.f32.gmra.mxu0 %v971_v49  ;;  %v921_v49 = vld [vmem:[%s18772_s5 + $0x1c8] sm:$0xff]  ;;  %v11741_v51 = vperm.slane %v863_v45, 0 }
 0x13c   : > { %v861_v22 = vmax.f32 %v814_v47, 0.0  ;;  %v993_v52 = vmul.f32 %v11433_v35, %v921_v49  ;;  %v940_v56 = vmul.f32 %v11736_v8, %v868_v20  ;;  %v869_v35 = vld [vmem:[%s18772_s5 + $0x28] sm:$0xff]  ;;  %v948_v0 = vmul.f32 %v11736_v8, %v876_v60  ;;  %v924_v49 = vld [vmem:[%s18772_s5 + $0x1e0] sm:$0xff]  ;;  %v927_v20 = vld [vmem:[%s18772_s5 + $0x1f8] sm:$0xff] }
 0x13d   : > { %v943_v57 = vmul.f32 %v11741_v51, %v871_v53  ;;  %v956_v9 = vmul.f32 %v11736_v8, %v884_v4  ;;  %v959_v10 = vmul.f32 %v11741_v51, %v887_v6  ;;  %v964_v17 = vmul.f32 %v11736_v8, %v892_v13  ;;  %v917_v47 = vld [vmem:[%s18772_s5 + $0x1a8] sm:$0xff] }
 0x13e   : > { %v11753_v58 = vperm.slane %v861_v22, 0  ;;  %v967_v18 = vmul.f32 %v11741_v51, %v895_v15  ;;  %v975_v28 = vmul.f32 %v11741_v51, %v903_v25  ;;  %v983_v37 = vmul.f32 %v11741_v51, %v911_v33 }
 0x13f   : > { %v990_v22 = vmul.f32 %v11755_v59, %v918_v48  ;;  %v999_v53 = vmul.f32 %v11741_v51, %v927_v20 }
 0x140   : > { %1197 = vmatmul.f32.gmra.mxu2 %v969_v62  ;;  %v941_v61 = vmul.f32 %v11753_v58, %v869_v35  ;;  %v879_v62 = vld [vmem:[%s18772_s5 + $0x78] sm:$0xff]  ;;  %v957_v14 = vmul.f32 %v11753_v58, %v885_v11  ;;  %v973_v32 = vmul.f32 %v11753_v58, %v901_v29  ;;  %v981_v42 = vmul.f32 %v11753_v58, %v909_v39 }
 0x141   : > { %1238 = vmatmul.f32.gmra.mxu3 %v970_v1  ;;  %v951_v1 = vmul.f32 %v11741_v51, %v879_v62  ;;  %v989_v50 = vmul.f32 %v11753_v58, %v917_v47 }
 0x142   : > { %1159 = vmatmul.f32.gmra.mxu1 %v976_v3  ;;  %v878_v3 = vld [vmem:[%s18772_s5 + $0x70] sm:$0xff] }
 0x143   : > { %1282 = vmatmul.f32.gmra.mxu0 %v979_v5  ;;  %v949_v5 = vmul.f32 %v11753_v58, %v877_v2  ;;  %v950_v7 = vmul.f32 %v11755_v59, %v878_v3 }
 0x148   : > { %1200 = vmatmul.f32.gmra.mxu2 %v977_v16  ;;  %v958_v16 = vmul.f32 %v11755_v59, %v886_v12 }
 0x149   : > { %1241 = vmatmul.f32.gmra.mxu3 %v978_v19  ;;  %v893_v19 = vld [vmem:[%s18772_s5 + $0xe8] sm:$0xff] }
 0x14a   : > { %1162 = vmatmul.f32.gmra.mxu1 %v984_v24  ;;  %v965_v24 = vmul.f32 %v11753_v58, %v893_v19 }
 0x14b   : > { %1285 = vmatmul.f32.gmra.mxu0 %v987_v27  ;;  %v972_v27 = vmul.f32 %v11736_v8, %v900_v23 }
 0x150   : > { %1203 = vmatmul.f32.gmra.mxu2 %v985_v36  ;;  %v980_v36 = vmul.f32 %v11736_v8, %v908_v31 }
 0x151   : > { %1244 = vmatmul.f32.gmra.mxu3 %v986_v41  ;;  %v916_v41 = vld [vmem:[%s18772_s5 + $0x1a0] sm:$0xff] }
 0x152   : > { %1165 = vmatmul.f32.gmra.mxu1 %v992_v44  ;;  %v982_v44 = vmul.f32 %v11755_v59, %v910_v40  ;;  %v988_v45 = vmul.f32 %v11736_v8, %v916_v41 }
 0x153   : > { %1288 = vmatmul.f32.gmra.mxu0 %v995_v46  ;;  %v991_v46 = vmul.f32 %v11741_v51, %v919_v43 }
 0x158   : > { %1206 = vmatmul.f32.gmra.mxu2 %v993_v52  ;;  %v996_v52 = vmul.f32 %v11736_v8, %v924_v49 }
 0x159   : > { %1247 = vmatmul.f32.gmra.mxu3 %v994_v55  ;;  %v926_v55 = vld [vmem:[%s18772_s5 + $0x1f0] sm:$0xff] }
 0x15a   : > { %1308 = vmatmul.f32.vlgmr.msrb.gmra.mxu1 %v940_v56  ;;  %v997_v56 = vmul.f32 %v11753_v58, %v925_v54  ;;  %v998_v35 = vmul.f32 %v11755_v59, %v926_v55 }
 0x15b   : > { %1431 = vmatmul.f32.vlgmr.msra.gmra.mxu0 %v943_v57 }
 0x160   : > { %1349 = vmatmul.f32.vlgmr.msrb.gmra.mxu2 %v941_v61 }
 0x161   : > { %1390 = vmatmul.f32.vlgmr.msrb.gmra.mxu3 %v942_v63 }
 0x162   : > { %1311 = vmatmul.f32.gmra.mxu1 %v948_v0 }
 0x163   : > { %1434 = vmatmul.f32.gmra.mxu0 %v951_v1 }
 0x168   : > { %1352 = vmatmul.f32.gmra.mxu2 %v949_v5 }
 0x169   : > { %1393 = vmatmul.f32.gmra.mxu3 %v950_v7 }
 0x16a   : > { %1314 = vmatmul.f32.gmra.mxu1 %v956_v9 }
 0x16b   : > { %1437 = vmatmul.f32.gmra.mxu0 %v959_v10 }
 0x170   : > { %1355 = vmatmul.f32.gmra.mxu2 %v957_v14 }
 0x171   : > { %1396 = vmatmul.f32.gmra.mxu3 %v958_v16 }
 0x172   : > { %1317 = vmatmul.f32.gmra.mxu1 %v964_v17 }
 0x173   : > { %1440 = vmatmul.f32.gmra.mxu0 %v967_v18 }
 0x178   : > { %1358 = vmatmul.f32.gmra.mxu2 %v965_v24 }
 0x179   : > { %1399 = vmatmul.f32.gmra.mxu3 %v966_v26 }
 0x17a   : > { %1320 = vmatmul.f32.gmra.mxu1 %v972_v27 }
 0x17b   : > { %1443 = vmatmul.f32.gmra.mxu0 %v975_v28 }
 0x180   : > { %1361 = vmatmul.f32.gmra.mxu2 %v973_v32 }
 0x181   : > { %1402 = vmatmul.f32.gmra.mxu3 %v974_v34 }
 0x182   : > { %1323 = vmatmul.f32.gmra.mxu1 %v980_v36 }
 0x183   : > { %1446 = vmatmul.f32.gmra.mxu0 %v983_v37 }
 0x188   : > { %1364 = vmatmul.f32.gmra.mxu2 %v981_v42 }
 0x189   : > { %1405 = vmatmul.f32.gmra.mxu3 %v982_v44 }
 0x18a   : > { %1326 = vmatmul.f32.gmra.mxu1 %v988_v45 }
 0x18b   : > { %1449 = vmatmul.f32.gmra.mxu0 %v991_v46 }
 0x190   : > { %1367 = vmatmul.f32.gmra.mxu2 %v989_v50 }
 0x191   : > { %1408 = vmatmul.f32.gmra.mxu3 %v990_v22 }
 0x192   : > { %1329 = vmatmul.f32.gmra.mxu1 %v996_v52 }
 0x193   : > { %1452 = vmatmul.f32.gmra.mxu0 %v999_v53 }
 0x197   : > { %v1145_v57 = vpop.f32.mrf.mxu1 }
 0x198   : > { %v1268_v38 = vpop.f32.mrf.mxu0  ;;  %1370 = vmatmul.f32.gmra.mxu2 %v997_v56 }
 0x199   : > { %1411 = vmatmul.f32.gmra.mxu3 %v998_v35 }
 0x19f   : > { %v1148_v8 = vpop.f32.mrf.mxu1 }
 0x1a0   : > { %v1271_v51 = vpop.f32.mrf.mxu0 }
 0x1a3   : > { %v1186_v60 = vpop.f32.mrf.mxu2 }
 0x1a4   : > { %v1227_v61 = vpop.f32.mrf.mxu3  ;;  %v1187_v24 = vadd.f32 %v1186_v60, %v1145_v57 }
 0x1a6   : > { %v1228_v27 = vadd.f32 %v1227_v61, %v1187_v24 }
 0x1a7   : > { %v1151_v62 = vpop.f32.mrf.mxu1 }
 0x1a8   : > { %v1274_v63 = vpop.f32.mrf.mxu0  ;;  %v1269_v31 = vadd.f32 %v1268_v38, %v1228_v27 }
 0x1ab   : > { %v1189_v0 = vpop.f32.mrf.mxu2 }
 0x1ac   : > { %v1230_v1 = vpop.f32.mrf.mxu3  ;;  %v1190_v30 = vadd.f32 %v1189_v0, %v1148_v8 }
 0x1ae   : > { %v1231_v36 = vadd.f32 %v1230_v1, %v1190_v30 }
 0x1af   : > { %v1154_v2 = vpop.f32.mrf.mxu1 }
 0x1b0   : > { %v1277_v3 = vpop.f32.mrf.mxu0  ;;  %v1272_v43 = vadd.f32 %v1271_v51, %v1231_v36 }
 0x1b3   : > { %v1192_v4 = vpop.f32.mrf.mxu2 }
 0x1b4   : > { %v1233_v5 = vpop.f32.mrf.mxu3  ;;  %v1193_v42 = vadd.f32 %v1192_v4, %v1151_v62 }
 0x1b6   : > { %v1234_v47 = vadd.f32 %v1233_v5, %v1193_v42 }
 0x1b7   : > { %v1157_v6 = vpop.f32.mrf.mxu1 }
 0x1b8   : > { %v11877_v58 = vpop.f32.mrf.mxu0  ;;  %v1275_v53 = vadd.f32 %v1274_v63, %v1234_v47 }
 0x1bb   : > { %v1195_v7 = vpop.f32.mrf.mxu2 }
 0x1bc   : > { %v1236_v59 = vpop.f32.mrf.mxu3  ;;  %v1196_v52 = vadd.f32 %v1195_v7, %v1154_v2 }
 0x1be   : > { %v1237_v57 = vadd.f32 %v1236_v59, %v1196_v52 }
 0x1bf   : > { %v11879_v9 = vpop.f32.mrf.mxu1 }
 0x1c0   : > { %v11881_v10 = vpop.f32.mrf.mxu0  ;;  %v1278_v61 = vadd.f32 %v1277_v3, %v1237_v57 }
 0x1c3   : > { %v1198_v11 = vpop.f32.mrf.mxu2 }
 0x1c4   : > { %v1239_v12 = vpop.f32.mrf.mxu3  ;;  %v1199_v60 = vadd.f32 %v1198_v11, %v1157_v6 }
 0x1c6   : > { %v1240_v2 = vadd.f32 %v1239_v12, %v1199_v60 }
 0x1c7   : > { %v11883_v13 = vpop.f32.mrf.mxu1 }
 0x1c8   : > { %v11885_v14 = vpop.f32.mrf.mxu0 }
 0x1cb   : > { %v1201_v15 = vpop.f32.mrf.mxu2 }
 0x1cc   : > { %v11887_v16 = vpop.f32.mrf.mxu3  ;;  %v1202_v59 = vadd.f32 %v1201_v15, %v11879_v9 }
 0x1cf   : > { %v11889_v17 = vpop.f32.mrf.mxu1 }
 0x1d0   : > { %v11891_v18 = vpop.f32.mrf.mxu0 }
 0x1d3   : > { %v11893_v19 = vpop.f32.mrf.mxu2 }
 0x1d4   : > { %v11895_v21 = vpop.f32.mrf.mxu3 }
 0x1d7   : > { %v1309_v23 = vpop.f32.mrf.mxu1 }
 0x1d8   : > { %v1432_v25 = vpop.f32.mrf.mxu0  ;;  %v1310_v32 = vadd.f32 %v1309_v23, %v1269_v31  ;;  %v1281_v23 = vadd.f32 %v11877_v58, %v1240_v2  ;;  %v1205_v58 = vadd.f32 %v11893_v19, %v11883_v13 }
 0x1db   : > { %v11897_v26 = vpop.f32.mrf.mxu2 }
 0x1dc   : > { %v11899_v28 = vpop.f32.mrf.mxu3 }
 0x1df   : > { %v1312_v29 = vpop.f32.mrf.mxu1 }
 0x1e0   : > { %v1435_v33 = vpop.f32.mrf.mxu0  ;;  %v1313_v45 = vadd.f32 %v1312_v29, %v1272_v43 }
 0x1e3   : > { %v1350_v34 = vpop.f32.mrf.mxu2 }
 0x1e4   : > { %v1351_v37 = vadd.f32 %v1350_v34, %v1310_v32  ;;  %v1391_v39 = vpop.f32.mrf.mxu3 }
 0x1e6   : > { %v1392_v40 = vadd.f32 %v1391_v39, %v1351_v37 }
 0x1e7   : > { %v1315_v41 = vpop.f32.mrf.mxu1 }
 0x1e8   : > { %v11901_v44 = vadd.f32 %v1432_v25, %v1392_v40  ;;  %v1438_v50 = vpop.f32.mrf.mxu0  ;;  %v1316_v55 = vadd.f32 %v1315_v41, %v1275_v53  ;;  %v1243_v25 = vadd.f32 %v11887_v16, %v1202_v59  ;;  %v1246_v16 = vadd.f32 %v11895_v21, %v1205_v58 }
 0x1ea   : > { %1457 = vst.msk [vmem:[#allocation2] sm:$0xff] %vm1456_vm2, %v11901_v44  ;;  %v1284_v15 = vadd.f32 %v11881_v10, %v1243_v25  ;;  %v1208_v10 = vadd.f32 %v11897_v26, %v11889_v17  ;;  %v1287_v13 = vadd.f32 %v11885_v14, %v1246_v16 }
 0x1eb   : > { %v1353_v46 = vpop.f32.mrf.mxu2 }
 0x1ec   : > { %v1354_v48 = vadd.f32 %v1353_v46, %v1313_v45  ;;  %v1394_v49 = vpop.f32.mrf.mxu3  ;;  %v1249_v41 = vadd.f32 %v11899_v28, %v1208_v10 }
 0x1ee   : > { %v1395_v20 = vadd.f32 %v1394_v49, %v1354_v48  ;;  %v1290_v45 = vadd.f32 %v11891_v18, %v1249_v41 }
 0x1ef   : > { %v1318_v22 = vpop.f32.mrf.mxu1 }
 0x1f0   : > { %v11905_v54 = vadd.f32 %v1435_v33, %v1395_v20  ;;  %v1441_v51 = vpop.f32.mrf.mxu0  ;;  %v1319_v1 = vadd.f32 %v1318_v22, %v1278_v61 }
 0x1f2   : > { %1458 = vst.msk [vmem:[#allocation2 + $0x8] sm:$0xff] %vm1456_vm2, %v11905_v54 }
 0x1f3   : > { %v1356_v56 = vpop.f32.mrf.mxu2 }
 0x1f4   : > { %v1357_v35 = vadd.f32 %v1356_v56, %v1316_v55  ;;  %v1397_v38 = vpop.f32.mrf.mxu3 }
 0x1f6   : > { %v1398_v8 = vadd.f32 %v1397_v38, %v1357_v35 }
 0x1f7   : > { %v1321_v0 = vpop.f32.mrf.mxu1 }
 0x1f8   : > { %v11909_v62 = vadd.f32 %v1438_v50, %v1398_v8  ;;  %v1444_v6 = vpop.f32.mrf.mxu0  ;;  %v1322_v3 = vadd.f32 %v1321_v0, %v1281_v23  ;;  %v10698_v0 = vmov 0  }
 0x1f9   : > { %10439 = vset.pattern.permute.xlu1 %v10698_v0  ;;  %10441 = vset.pattern.permute.xlu0 %v10698_v0 }
 0x1fa   : > { %1459 = vst.msk [vmem:[#allocation2 + $0x10] sm:$0xff] %vm1456_vm2, %v11909_v62  ;;  %10440 = vset.pattern.permute.xlu2 %v10698_v0 }
 0x1fb   : > { %v1359_v63 = vpop.f32.mrf.mxu2 }
 0x1fc   : > { %v1360_v4 = vadd.f32 %v1359_v63, %v1319_v1  ;;  %v1400_v5 = vpop.f32.mrf.mxu3 }
 0x1fe   : > { %v1401_v7 = vadd.f32 %v1400_v5, %v1360_v4 }
 0x1ff   : > { %v1324_v11 = vpop.f32.mrf.mxu1 }
 0x200   : > { %v11915_v24 = vadd.f32 %v1441_v51, %v1401_v7  ;;  %v1325_v31 = vadd.f32 %v1324_v11, %v1284_v15  ;;  %v1447_v32 = vpop.f32.mrf.mxu0 }
 0x201   : > { %v1891_v10 = vld [vmem:[#allocation2 + $0x10] sm:$0xff] }
 0x202   : > { %1479 = vrot.lane.b32.xlu2 %v11915_v24, %s10690_s27  ;;  %1460 = vst.msk [vmem:[#allocation2 + $0x18] sm:$0xff] %vm1456_vm2, %v11915_v24 }
 0x203   : > { %v1362_v12 = vpop.f32.mrf.mxu2 }
 0x204   : > { %v1363_v27 = vadd.f32 %v1362_v12, %v1322_v3  ;;  %v1403_v29 = vpop.f32.mrf.mxu3 }
 0x206   : > { %v1404_v9 = vadd.f32 %v1403_v29, %v1363_v27 }
 0x207   : > { %v1327_v37 = vpop.f32.mrf.mxu1 }
 0x208   : > { %v11925_v30 = vadd.f32 %v1444_v6, %v1404_v9  ;;  %v1328_v40 = vadd.f32 %v1327_v37, %v1287_v13  ;;  %v1450_v26 = vpop.f32.mrf.mxu0  ;;  %v1972_v13 = vld [vmem:[%s18775_s8 + $0x58] sm:$0xff] }
 0x20a   : > { %1477 = vrot.lane.b32.xlu2 %v11909_v62, %s10690_s27  ;;  %1461 = vst.msk [vmem:[#allocation2 + $0x20] sm:$0xff] %vm1456_vm2, %v11925_v30 }
 0x20b   : > { %v1365_v33 = vpop.f32.mrf.mxu2 }
 0x20c   : > { %v1366_v34 = vadd.f32 %v1365_v33, %v1325_v31  ;;  %v1406_v36 = vpop.f32.mrf.mxu3 }
 0x20e   : > { %v1407_v39 = vadd.f32 %v1406_v36, %v1366_v34  ;;  %v1892_v34 = vld [vmem:[#allocation2 + $0x18] sm:$0xff] }
 0x20f   : > { %v1330_v43 = vpop.f32.mrf.mxu1 }
 0x210   : > { %v11935_v19 = vadd.f32 %v1447_v32, %v1407_v39  ;;  %v1331_v47 = vadd.f32 %v1330_v43, %v1290_v45  ;;  %v1453_v20 = vpop.f32.mrf.mxu0  ;;  %v1969_v32 = vld [vmem:[%s18775_s8 + $0x40] sm:$0xff] }
 0x211   : > { %v1893_v16 = vld [vmem:[#allocation2 + $0x20] sm:$0xff] }
 0x212   : > { %1483 = vrot.lane.b32.xlu1 %v11935_v19, %s10690_s27  ;;  %1547 = vrot.lane.b32.xlu2 %v11935_v19, %s10691_s28  ;;  %1462 = vst.msk [vmem:[#allocation2 + $0x28] sm:$0xff] %vm1456_vm2, %v11935_v19 }
 0x213   : > { %v1368_v21 = vpop.f32.mrf.mxu2 }
 0x214   : > { %v1369_v42 = vadd.f32 %v1368_v21, %v1328_v40  ;;  %v1409_v17 = vpop.f32.mrf.mxu3  ;;  %v1729_v40 = vld [vmem:[%s18774_s7] sm:$0xff] }
 0x215   : > { %v1889_v21 = vld [vmem:[#allocation2] sm:$0xff] }
 0x216   : > { %v1410_v14 = vadd.f32 %v1409_v17, %v1369_v42 }
 0x218   : > { %v11945_v46 = vadd.f32 %v1450_v26, %v1410_v14  ;;  %v1974_v26 = vld [vmem:[%s18775_s8 + $0x68] sm:$0xff] }
 0x219   : > { %v1894_v33 = vld [vmem:[#allocation2 + $0x28] sm:$0xff] }
 0x21a   : > { %1481 = vrot.lane.b32.xlu1 %v11925_v30, %s10690_s27  ;;  %1611 = vrot.lane.b32.xlu2 %v11935_v19, %s10692_s29  ;;  %1463 = vst.msk [vmem:[#allocation2 + $0x30] sm:$0xff] %vm1456_vm2, %v11945_v46  ;;  %v1734_v14 = vld [vmem:[%s18774_s7 + $0x28] sm:$0xff] }
 0x21b   : > { %v1371_v28 = vpop.f32.mrf.mxu2 }
 0x21c   : > { %v1372_v48 = vadd.f32 %v1371_v28, %v1331_v47  ;;  %v1412_v49 = vpop.f32.mrf.mxu3  ;;  %v1971_v47 = vld [vmem:[%s18775_s8 + $0x50] sm:$0xff] }
 0x21e   : > { %v1413_v50 = vadd.f32 %v1412_v49, %v1372_v48 }
 0x220   : > { %v11953_v22 = vadd.f32 %v1453_v20, %v1413_v50  ;;  %v1976_v50 = vld [vmem:[%s18775_s8 + $0x78] sm:$0xff] }
 0x221   : > { %v1895_v31 = vld [vmem:[#allocation2 + $0x30] sm:$0xff]  ;;  %v1744_v20 = vld [vmem:[%s18774_s7 + $0x78] sm:$0xff] }
 0x222   : > { %1541 = vrot.lane.b32.xlu2 %v11909_v62, %s10691_s28  ;;  %1473 = vrot.lane.b32.xlu1 %v11901_v44, %s10690_s27  ;;  %1464 = vst.msk [vmem:[#allocation2 + $0x38] sm:$0xff] %vm1456_vm2, %v11953_v22 }
 0x223   : > { %1487 = vrot.lane.b32.xlu0 %v11953_v22, %s10690_s27 }
 0x229   : > { %v1896_v9 = vld [vmem:[#allocation2 + $0x38] sm:$0xff] }
 0x22a   : > { %1539 = vrot.lane.b32.xlu2 %v11905_v54, %s10691_s28  ;;  %1545 = vrot.lane.b32.xlu1 %v11925_v30, %s10691_s28 }
 0x22b   : > { %1485 = vrot.lane.b32.xlu0 %v11945_v46, %s10690_s27 }
 0x232   : > { %1537 = vrot.lane.b32.xlu2 %v11901_v44, %s10691_s28  ;;  %1609 = vrot.lane.b32.xlu1 %v11925_v30, %s10692_s29 }
 0x233   : > { %1475 = vrot.lane.b32.xlu0 %v11905_v54, %s10690_s27 }
 0x23a   : > { %1517 = vrot.lane.b32.xlu2 %v11945_v46, %s10693_s30  ;;  %1677 = vrot.lane.b32.xlu1 %v11945_v46, %s10694_s0 }
 0x23b   : > { %1549 = vrot.lane.b32.xlu0 %v11945_v46, %s10691_s28 }
 0x242   : > { %1515 = vrot.lane.b32.xlu2 %v11935_v19, %s10693_s30  ;;  %1675 = vrot.lane.b32.xlu1 %v11935_v19, %s10694_s0 }
 0x243   : > { %1613 = vrot.lane.b32.xlu0 %v11945_v46, %s10692_s29 }
 0x24a   : > { %1513 = vrot.lane.b32.xlu2 %v11925_v30, %s10693_s30  ;;  %1673 = vrot.lane.b32.xlu1 %v11925_v30, %s10694_s0 }
 0x24b   : > { %1543 = vrot.lane.b32.xlu0 %v11915_v24, %s10691_s28 }
 0x252   : > { %1511 = vrot.lane.b32.xlu2 %v11915_v24, %s10693_s30  ;;  %1671 = vrot.lane.b32.xlu1 %v11915_v24, %s10694_s0 }
 0x253   : > { %1607 = vrot.lane.b32.xlu0 %v11915_v24, %s10692_s29 }
 0x25a   : > { %1509 = vrot.lane.b32.xlu2 %v11909_v62, %s10693_s30  ;;  %1669 = vrot.lane.b32.xlu1 %v11909_v62, %s10694_s0 }
 0x25b   : > { %1605 = vrot.lane.b32.xlu0 %v11909_v62, %s10692_s29 }
 0x25c   : > { %v1480_v18 = vpop.permute.xlu2 %1479 }
 0x25d   : > { %1500 = vst.msk [vmem:[#allocation2 + $0x58] sm:$0xff] %vm1456_vm2, %v1480_v18 }
 0x262   : > { %1507 = vrot.lane.b32.xlu2 %v11905_v54, %s10693_s30  ;;  %1667 = vrot.lane.b32.xlu1 %v11905_v54, %s10694_s0 }
 0x263   : > { %1603 = vrot.lane.b32.xlu0 %v11905_v54, %s10692_s29 }
 0x264   : > { %v1478_v52 = vpop.permute.xlu2 %1477 }
 0x265   : > { %1499 = vst.msk [vmem:[#allocation2 + $0x50] sm:$0xff] %vm1456_vm2, %v1478_v52 }
 0x26a   : > { %1643 = vrot.lane.b32.xlu2 %v11935_v19, %s10695_s17  ;;  %1665 = vrot.lane.b32.xlu1 %v11901_v44, %s10694_s0 }
 0x26b   : > { %1601 = vrot.lane.b32.xlu0 %v11901_v44, %s10692_s29 }
 0x26c   : > { %v1548_v53 = vpop.permute.xlu2 %1547  ;;  %v1899_v27 = vld [vmem:[#allocation2 + $0x50] sm:$0xff] }
 0x26d   : > { %1566 = vst.msk [vmem:[#allocation2 + $0xe8] sm:$0xff] %vm1456_vm2, %v1548_v53 }
 0x272   : > { %1641 = vrot.lane.b32.xlu2 %v11925_v30, %s10695_s17  ;;  %1645 = vrot.lane.b32.xlu1 %v11945_v46, %s10695_s17 }
 0x273   : > { %1581 = vrot.lane.b32.xlu0 %v11945_v46, %s10696_s18 }
 0x274   : > { %v1612_v55 = vpop.permute.xlu2 %1611 }
 0x275   : > { %1630 = vst.msk [vmem:[#allocation2 + $0x168] sm:$0xff] %vm1456_vm2, %v1612_v55 }
 0x27a   : > { %1571 = vrot.lane.b32.xlu1 %v11905_v54, %s10696_s18  ;;  %1551 = vrot.lane.b32.xlu2 %v11953_v22, %s10691_s28 }
 0x27b   : > { %1579 = vrot.lane.b32.xlu0 %v11935_v19, %s10696_s18 }
 0x27c   : > { %v1542_v56 = vpop.permute.xlu2 %1541 }
 0x27d   : > { %1563 = vst.msk [vmem:[#allocation2 + $0xd0] sm:$0xff] %vm1456_vm2, %v1542_v56  ;;  %v1962_v56 = vld [vmem:[%s18775_s8 + $0x8] sm:$0xff] }
 0x282   : > { %1569 = vrot.lane.b32.xlu1 %v11901_v44, %s10696_s18  ;;  %1705 = vrot.lane.b32.xlu2 %v11925_v30, %s10697_s19 }
 0x283   : > { %1577 = vrot.lane.b32.xlu0 %v11925_v30, %s10696_s18 }
 0x284   : > { %v1484_v57 = vpop.permute.xlu1 %1483  ;;  %v1540_v35 = vpop.permute.xlu2 %1539  ;;  %v1915_v0 = vld [vmem:[#allocation2 + $0xd0] sm:$0xff] }
 0x285   : > { %1502 = vst.msk [vmem:[#allocation2 + $0x68] sm:$0xff] %vm1456_vm2, %v1484_v57  ;;  %v1918_v57 = vld [vmem:[#allocation2 + $0xe8] sm:$0xff] }
 0x286   : > { %1562 = vst.msk [vmem:[#allocation2 + $0xc8] sm:$0xff] %vm1456_vm2, %v1540_v35  ;;  %v1749_v35 = vld [vmem:[%s18774_s7 + $0xa0] sm:$0xff] }
 0x28a   : > { %1615 = vrot.lane.b32.xlu1 %v11953_v22, %s10692_s29  ;;  %1519 = vrot.lane.b32.xlu2 %v11953_v22, %s10693_s30  ;;  %s10704_s29 = smov 96  }
 0x28b   : > { %1575 = vrot.lane.b32.xlu0 %v11915_v24, %s10696_s18 }
 0x28c   : > { %v1482_v38 = vpop.permute.xlu1 %1481  ;;  %v1538_v8 = vpop.permute.xlu2 %1537  ;;  %v1902_v6 = vld [vmem:[#allocation2 + $0x68] sm:$0xff] }
 0x28d   : > { %1501 = vst.msk [vmem:[#allocation2 + $0x60] sm:$0xff] %vm1456_vm2, %v1482_v38 }
 0x28e   : > { %1561 = vst.msk [vmem:[#allocation2 + $0xc0] sm:$0xff] %vm1456_vm2, %v1538_v8 }
 0x292   : > { %1679 = vrot.lane.b32.xlu1 %v11953_v22, %s10694_s0  ;;  %1711 = vrot.lane.b32.xlu2 %v11953_v22, %s10697_s19  ;;  %s10705_s0 = smov 32  }
 0x293   : > { %1573 = vrot.lane.b32.xlu0 %v11909_v62, %s10696_s18 }
 0x294   : > { %v1518_v51 = vpop.permute.xlu2 %1517  ;;  %v1474_v60 = vpop.permute.xlu1 %1473  ;;  %v1901_v3 = vld [vmem:[#allocation2 + $0x60] sm:$0xff] }
 0x295   : > { %1535 = vst.msk [vmem:[#allocation2 + $0xb0] sm:$0xff] %vm1456_vm2, %v1518_v51  ;;  %v1488_v61 = vpop.permute.xlu0 %1487 }
 0x296   : > { %1497 = vst.msk [vmem:[#allocation2 + $0x40] sm:$0xff] %vm1456_vm2, %v1474_v60 }
 0x297   : > { %1504 = vst.msk [vmem:[#allocation2 + $0x78] sm:$0xff] %vm1456_vm2, %v1488_v61 }
 0x29a   : > { %1639 = vrot.lane.b32.xlu1 %v11915_v24, %s10695_s17  ;;  %1635 = vrot.lane.b32.xlu2 %v11905_v54, %s10695_s17 }
 0x29b   : > { %1505 = vrot.lane.b32.xlu0 %v11901_v44, %s10693_s30 }
 0x29c   : > { %v1516_v1 = vpop.permute.xlu2 %1515  ;;  %v1546_v63 = vpop.permute.xlu1 %1545 }
 0x29d   : > { %1534 = vst.msk [vmem:[#allocation2 + $0xa8] sm:$0xff] %vm1456_vm2, %v1516_v1  ;;  %v1486_v2 = vpop.permute.xlu0 %1485  ;;  %v1963_v1 = vld [vmem:[%s18775_s8 + $0x10] sm:$0xff] }
 0x29e   : > { %1565 = vst.msk [vmem:[#allocation2 + $0xe0] sm:$0xff] %vm1456_vm2, %v1546_v63  ;;  %v1904_v4 = vld [vmem:[#allocation2 + $0x78] sm:$0xff]  ;;  %v1914_v63 = vld [vmem:[#allocation2 + $0xc8] sm:$0xff] }
 0x29f   : > { %1503 = vst.msk [vmem:[#allocation2 + $0x70] sm:$0xff] %vm1456_vm2, %v1486_v2  ;;  %2250 = vmatpush.msra.mxu1 %v1904_v4  ;;  %v1754_v2 = vld [vmem:[%s18774_s7 + $0xc8] sm:$0xff]  ;;  %v1913_v4 = vld [vmem:[#allocation2 + $0xc0] sm:$0xff] }
 0x2a2   : > { %1647 = vrot.lane.b32.xlu1 %v11953_v22, %s10695_s17  ;;  %1699 = vrot.lane.b32.xlu2 %v11905_v54, %s10697_s19  ;;  %v1900_v54 = vld [vmem:[#allocation2 + $0x58] sm:$0xff] }
 0x2a3   : > { %1709 = vrot.lane.b32.xlu0 %v11945_v46, %s10697_s19  ;;  %v1961_v46 = vld [vmem:[%s18775_s8] sm:$0xff] }
 0x2a4   : > { %v1514_v5 = vpop.permute.xlu2 %1513  ;;  %v1610_v7 = vpop.permute.xlu1 %1609 }
 0x2a5   : > { %1533 = vst.msk [vmem:[#allocation2 + $0xa0] sm:$0xff] %vm1456_vm2, %v1514_v5  ;;  %v1476_v59 = vpop.permute.xlu0 %1475  ;;  %v1917_v38 = vld [vmem:[#allocation2 + $0xe0] sm:$0xff] }
 0x2a6   : > { %1629 = vst.msk [vmem:[#allocation2 + $0x160] sm:$0xff] %vm1456_vm2, %v1610_v7  ;;  %v1903_v23 = vld [vmem:[#allocation2 + $0x70] sm:$0xff] }
 0x2a7   : > { %1498 = vst.msk [vmem:[#allocation2 + $0x48] sm:$0xff] %vm1456_vm2, %v1476_v59  ;;  %2251 = vmatpush.msra.mxu1 %v1903_v23 }
 0x2a9   : > { %2252 = vmatpush.msra.mxu1 %v1902_v6  ;;  %v1911_v6 = vld [vmem:[#allocation2 + $0xb0] sm:$0xff] }
 0x2aa   : > { %1703 = vrot.lane.b32.xlu1 %v11915_v24, %s10697_s19  ;;  %v1897_v24 = vld [vmem:[#allocation2 + $0x40] sm:$0xff] }
 0x2ab   : > { %2253 = vmatpush.msra.mxu1 %v1901_v3  ;;  %1707 = vrot.lane.b32.xlu0 %v11935_v19, %s10697_s19  ;;  %v1890_v19 = vld [vmem:[#allocation2 + $0x8] sm:$0xff]  ;;  %v1964_v3 = vld [vmem:[%s18775_s8 + $0x18] sm:$0xff] }
 0x2ac   : > { %v1512_v11 = vpop.permute.xlu2 %1511  ;;  %v1678_v12 = vpop.permute.xlu1 %1677 }
 0x2ad   : > { %2254 = vmatpush.msra.mxu1 %v1900_v54  ;;  %1532 = vst.msk [vmem:[#allocation2 + $0x98] sm:$0xff] %vm1456_vm2, %v1512_v11  ;;  %v1550_v25 = vpop.permute.xlu0 %1549  ;;  %v1910_v54 = vld [vmem:[#allocation2 + $0xa8] sm:$0xff]  ;;  %v1759_v11 = vld [vmem:[%s18774_s7 + $0xf0] sm:$0xff] }
 0x2ae   : > { %1695 = vst.msk [vmem:[#allocation2 + $0x1f0] sm:$0xff] %vm1456_vm2, %v1678_v12  ;;  %v1898_v29 = vld [vmem:[#allocation2 + $0x48] sm:$0xff]  ;;  %v1909_v12 = vld [vmem:[#allocation2 + $0xa0] sm:$0xff] }
 0x2af   : > { %1567 = vst.msk [vmem:[#allocation2 + $0xf0] sm:$0xff] %vm1456_vm2, %v1550_v25  ;;  %2255 = vmatpush.msra.mxu1 %v1899_v27 }
 0x2b1   : > { %2256 = vmatpush.msra.mxu1 %v1898_v29 }
 0x2b2   : > { %1633 = vrot.lane.b32.xlu1 %v11901_v44, %s10695_s17 }
 0x2b3   : > { %2257 = vmatpush.msra.mxu1 %v1897_v24  ;;  %1583 = vrot.lane.b32.xlu0 %v11953_v22, %s10696_s18  ;;  %s10699_s18 = smov 118  }
 0x2b4   : > { %v1510_v58 = vpop.permute.xlu2 %1509  ;;  %v1676_v15 = vpop.permute.xlu1 %1675  ;;  %v1908_v24 = vld [vmem:[#allocation2 + $0x98] sm:$0xff] }
 0x2b5   : > { %2258 = vmatpush.msra.mxu1 %v1896_v9  ;;  %1531 = vst.msk [vmem:[#allocation2 + $0x90] sm:$0xff] %vm1456_vm2, %v1510_v58  ;;  %v1614_v30 = vpop.permute.xlu0 %1613 }
 0x2b6   : > { %1694 = vst.msk [vmem:[#allocation2 + $0x1e8] sm:$0xff] %vm1456_vm2, %v1676_v15  ;;  %v1919_v55 = vld [vmem:[#allocation2 + $0xf0] sm:$0xff]  ;;  %v1965_v15 = vld [vmem:[%s18775_s8 + $0x20] sm:$0xff] }
 0x2b7   : > { %1631 = vst.msk [vmem:[#allocation2 + $0x170] sm:$0xff] %vm1456_vm2, %v1614_v30  ;;  %2259 = vmatpush.msra.mxu1 %v1895_v31  ;;  %v1764_v31 = vld [vmem:[%s18774_s7 + $0x118] sm:$0xff] }
 0x2b9   : > { %2260 = vmatpush.msra.mxu1 %v1894_v33 }
 0x2ba   : > { %2035 = vperm.xlu1 %10439, %v1969_v32  }
 0x2bb   : > { %2261 = vmatpush.msra.mxu1 %v1893_v16  ;;  %1637 = vrot.lane.b32.xlu0 %v11909_v62, %s10695_s17 }
 0x2bc   : > { %v1508_v36 = vpop.permute.xlu2 %1507  ;;  %v1674_v37 = vpop.permute.xlu1 %1673  ;;  %v1907_v58 = vld [vmem:[#allocation2 + $0x90] sm:$0xff] }
 0x2bd   : > { %2262 = vmatpush.msra.mxu1 %v1892_v34  ;;  %1530 = vst.msk [vmem:[#allocation2 + $0x88] sm:$0xff] %vm1456_vm2, %v1508_v36  ;;  %v1544_v39 = vpop.permute.xlu0 %1543  ;;  %v1966_v34 = vld [vmem:[%s18775_s8 + $0x28] sm:$0xff]  ;;  %v1769_v36 = vld [vmem:[%s18774_s7 + $0x140] sm:$0xff] }
 0x2be   : > { %1693 = vst.msk [vmem:[#allocation2 + $0x1e0] sm:$0xff] %vm1456_vm2, %v1674_v37 }
 0x2bf   : > { %1564 = vst.msk [vmem:[#allocation2 + $0xd8] sm:$0xff] %vm1456_vm2, %v1544_v39  ;;  %2263 = vmatpush.msra.mxu1 %v1891_v10 }
 0x2c1   : > { %2264 = vmatpush.msra.mxu1 %v1890_v19  ;;  %v1934_v19 = vld [vmem:[#allocation2 + $0x168] sm:$0xff] }
 0x2c2   : > { %2050 = vperm.xlu1 %10439, %v1972_v13   ;;  %v1935_v13 = vld [vmem:[#allocation2 + $0x170] sm:$0xff] }
 0x2c3   : > { %2265 = vmatpush.msra.mxu1 %v1889_v21  ;;  %1701 = vrot.lane.b32.xlu0 %v11909_v62, %s10697_s19  ;;  %v1774_v21 = vld [vmem:[%s18774_s7 + $0x168] sm:$0xff] }
 0x2c4   : > { %2266 = vmatmul.f32.vlgmr.msra.gmra.mxu1 %v1729_v40  ;;  %v1644_v41 = vpop.permute.xlu2 %1643  ;;  %v1672_v42 = vpop.permute.xlu1 %1671  ;;  %v1906_v30 = vld [vmem:[#allocation2 + $0x88] sm:$0xff]  ;;  %v1967_v40 = vld [vmem:[%s18775_s8 + $0x30] sm:$0xff] }
 0x2c5   : > { %1662 = vst.msk [vmem:[#allocation2 + $0x1a8] sm:$0xff] %vm1456_vm2, %v1644_v41  ;;  %v1608_v17 = vpop.permute.xlu0 %1607  ;;  %v1933_v41 = vld [vmem:[#allocation2 + $0x160] sm:$0xff] }
 0x2c6   : > { %1692 = vst.msk [vmem:[#allocation2 + $0x1d8] sm:$0xff] %vm1456_vm2, %v1672_v42  ;;  %v1916_v61 = vld [vmem:[#allocation2 + $0xd8] sm:$0xff] }
 0x2c7   : > { %1628 = vst.msk [vmem:[#allocation2 + $0x158] sm:$0xff] %vm1456_vm2, %v1608_v17 }
 0x2ca   : > { %2060 = vperm.xlu1 %10439, %v1974_v26  }
 0x2cb   : > { %1697 = vrot.lane.b32.xlu0 %v11901_v44, %s10697_s19  ;;  %v1739_v44 = vld [vmem:[%s18774_s7 + $0x50] sm:$0xff] }
 0x2cc   : > { %2269 = vmatmul.f32.gmra.mxu1 %v1734_v14  ;;  %v1642_v62 = vpop.permute.xlu2 %1641  ;;  %v1670_v43 = vpop.permute.xlu1 %1669 }
 0x2cd   : > { %1661 = vst.msk [vmem:[#allocation2 + $0x1a0] sm:$0xff] %vm1456_vm2, %v1642_v62  ;;  %v1606_v45 = vpop.permute.xlu0 %1605 }
 0x2ce   : > { %1691 = vst.msk [vmem:[#allocation2 + $0x1d0] sm:$0xff] %vm1456_vm2, %v1670_v43  ;;  %v1932_v17 = vld [vmem:[#allocation2 + $0x158] sm:$0xff]  ;;  %v1951_v43 = vld [vmem:[#allocation2 + $0x1f0] sm:$0xff] }
 0x2cf   : > { %1627 = vst.msk [vmem:[#allocation2 + $0x150] sm:$0xff] %vm1456_vm2, %v1606_v45  ;;  %v1970_v45 = vld [vmem:[%s18775_s8 + $0x48] sm:$0xff] }
 0x2d0   : > { %2040 = vperm.xlu2 %10440, %v1970_v45   ;;  %v1736_v45 = vld [vmem:[%s18774_s7 + $0x38] sm:$0xff] }
 0x2d2   : > { %1995 = vperm.xlu1 %10439, %v1961_v46  }
 0x2d3   : > { %2045 = vperm.xlu0 %10441, %v1971_v47   ;;  %v1950_v47 = vld [vmem:[#allocation2 + $0x1e8] sm:$0xff] }
 0x2d4   : > { %2272 = vmatmul.f32.gmra.mxu1 %v1739_v44  ;;  %v1668_v28 = vpop.permute.xlu1 %1667  ;;  %v1552_v48 = vpop.permute.xlu2 %1551  ;;  %v1968_v44 = vld [vmem:[%s18775_s8 + $0x38] sm:$0xff] }
 0x2d5   : > { %1690 = vst.msk [vmem:[#allocation2 + $0x1c8] sm:$0xff] %vm1456_vm2, %v1668_v28  ;;  %v1604_v49 = vpop.permute.xlu0 %1603  ;;  %v1779_v28 = vld [vmem:[%s18774_s7 + $0x190] sm:$0xff] }
 0x2d6   : > { %1568 = vst.msk [vmem:[#allocation2 + $0xf8] sm:$0xff] %vm1456_vm2, %v1552_v48  ;;  %v1931_v62 = vld [vmem:[#allocation2 + $0x150] sm:$0xff] }
 0x2d7   : > { %1626 = vst.msk [vmem:[#allocation2 + $0x148] sm:$0xff] %vm1456_vm2, %v1604_v49  ;;  %v1949_v49 = vld [vmem:[#allocation2 + $0x1e0] sm:$0xff] }
 0x2db   : > { %2070 = vperm.xlu0 %10441, %v1976_v50  }
 0x2dc   : > { %2275 = vmatmul.f32.gmra.mxu1 %v1744_v20  ;;  %v1666_v22 = vpop.permute.xlu1 %1665  ;;  %v1706_v18 = vpop.permute.xlu2 %1705  ;;  %v1730_v20 = vld [vmem:[%s18774_s7 + $0x8] sm:$0xff] }
 0x2dd   : > { %1689 = vst.msk [vmem:[#allocation2 + $0x1c0] sm:$0xff] %vm1456_vm2, %v1666_v22  ;;  %v1602_v52 = vpop.permute.xlu0 %1601  ;;  %v1920_v53 = vld [vmem:[#allocation2 + $0xf8] sm:$0xff] }
 0x2de   : > { %1725 = vst.msk [vmem:[#allocation2 + $0x220] sm:$0xff] %vm1456_vm2, %v1706_v18  ;;  %2363 = vmatpush.msra.mxu2 %v1920_v53  ;;  %v1930_v46 = vld [vmem:[#allocation2 + $0x148] sm:$0xff]  ;;  %v1947_v53 = vld [vmem:[#allocation2 + $0x1d0] sm:$0xff] }
 0x2df   : > { %1625 = vst.msk [vmem:[#allocation2 + $0x140] sm:$0xff] %vm1456_vm2, %v1602_v52  ;;  %v1948_v52 = vld [vmem:[#allocation2 + $0x1d8] sm:$0xff] }
 0x2e0   : > { %2364 = vmatpush.msra.mxu2 %v1919_v55  ;;  %v1946_v55 = vld [vmem:[#allocation2 + $0x1c8] sm:$0xff] }
 0x2e2   : > { %2365 = vmatpush.msra.mxu2 %v1918_v57 }
 0x2e3   : > { %2000 = vperm.xlu0 %10441, %v1962_v56   ;;  %v1784_v56 = vld [vmem:[%s18774_s7 + $0x1b8] sm:$0xff] }
 0x2e4   : > { %2278 = vmatmul.f32.gmra.mxu1 %v1749_v35  ;;  %2366 = vmatpush.msra.mxu2 %v1917_v38  ;;  %v1646_v8 = vpop.permute.xlu1 %1645  ;;  %v1520_v51 = vpop.permute.xlu2 %1519  ;;  %v1945_v57 = vld [vmem:[#allocation2 + $0x1c0] sm:$0xff] }
 0x2e5   : > { %1663 = vst.msk [vmem:[#allocation2 + $0x1b0] sm:$0xff] %vm1456_vm2, %v1646_v8  ;;  %v1582_v60 = vpop.permute.xlu0 %1581  ;;  %v1735_v8 = vld [vmem:[%s18774_s7 + $0x30] sm:$0xff] }
 0x2e6   : > { %1536 = vst.msk [vmem:[#allocation2 + $0xb8] sm:$0xff] %vm1456_vm2, %v1520_v51  ;;  %2367 = vmatpush.msra.mxu2 %v1916_v61  ;;  %v1929_v48 = vld [vmem:[#allocation2 + $0x140] sm:$0xff] }
 0x2e7   : > { %1599 = vst.msk [vmem:[#allocation2 + $0x130] sm:$0xff] %vm1456_vm2, %v1582_v60 }
 0x2e8   : > { %2368 = vmatpush.msra.mxu2 %v1915_v0  ;;  %v1942_v0 = vld [vmem:[#allocation2 + $0x1a8] sm:$0xff] }
 0x2ea   : > { %2369 = vmatpush.msra.mxu2 %v1914_v63  ;;  %v1941_v63 = vld [vmem:[#allocation2 + $0x1a0] sm:$0xff] }
 0x2eb   : > { %2005 = vperm.xlu0 %10441, %v1963_v1   ;;  %v1789_v1 = vld [vmem:[%s18774_s7 + $0x1e0] sm:$0xff] }
 0x2ec   : > { %2281 = vmatmul.f32.gmra.mxu1 %v1754_v2  ;;  %2370 = vmatpush.msra.mxu2 %v1913_v4  ;;  %v1572_v5 = vpop.permute.xlu1 %1571  ;;  %v1712_v7 = vpop.permute.xlu2 %1711  ;;  %v1943_v61 = vld [vmem:[#allocation2 + $0x1b0] sm:$0xff]  ;;  %v1740_v4 = vld [vmem:[%s18774_s7 + $0x58] sm:$0xff] }
 0x2ed   : > { %1594 = vst.msk [vmem:[#allocation2 + $0x108] sm:$0xff] %vm1456_vm2, %v1572_v5  ;;  %v1580_v59 = vpop.permute.xlu0 %1579  ;;  %v1912_v23 = vld [vmem:[#allocation2 + $0xb8] sm:$0xff] }
 0x2ee   : > { %1728 = vst.msk [vmem:[#allocation2 + $0x238] sm:$0xff] %vm1456_vm2, %v1712_v7  ;;  %2371 = vmatpush.msra.mxu2 %v1912_v23  ;;  %v1973_v23 = vld [vmem:[%s18775_s8 + $0x60] sm:$0xff] }
 0x2ef   : > { %1598 = vst.msk [vmem:[#allocation2 + $0x128] sm:$0xff] %vm1456_vm2, %v1580_v59  ;;  %2055 = vperm.xlu2 %10440, %v1973_v23   ;;  %v1834_v23 = vld [vmem:[%s18774_s7 + $0x348] sm:$0xff] }
 0x2f0   : > { %2372 = vmatpush.msra.mxu2 %v1911_v6  ;;  %v1957_v6 = vld [vmem:[#allocation2 + $0x220] sm:$0xff] }
 0x2f2   : > { %2373 = vmatpush.msra.mxu2 %v1910_v54  ;;  %v1794_v54 = vld [vmem:[%s18774_s7 + $0x208] sm:$0xff] }
 0x2f3   : > { %2010 = vperm.xlu0 %10441, %v1964_v3  }
 0x2f4   : > { %2284 = vmatmul.f32.gmra.mxu1 %v1759_v11  ;;  %2374 = vmatpush.msra.mxu2 %v1909_v12  ;;  %v1570_v25 = vpop.permute.xlu1 %1569  ;;  %v1636_v27 = vpop.permute.xlu2 %1635  ;;  %v1745_v11 = vld [vmem:[%s18774_s7 + $0x80] sm:$0xff] }
 0x2f5   : > { %1593 = vst.msk [vmem:[#allocation2 + $0x100] sm:$0xff] %vm1456_vm2, %v1570_v25  ;;  %v1578_v29 = vpop.permute.xlu0 %1577  ;;  %v1960_v9 = vld [vmem:[#allocation2 + $0x238] sm:$0xff] }
 0x2f6   : > { %1658 = vst.msk [vmem:[#allocation2 + $0x188] sm:$0xff] %vm1456_vm2, %v1636_v27  ;;  %2375 = vmatpush.msra.mxu2 %v1908_v24  ;;  %2710 = vmatpush.msrb.mxu1 %v1960_v9  ;;  %v1977_v27 = vld [vmem:[%s18775_s8 + $0x80] sm:$0xff]  ;;  %v1926_v24 = vld [vmem:[#allocation2 + $0x128] sm:$0xff]  ;;  %v1799_v9 = vld [vmem:[%s18774_s7 + $0x230] sm:$0xff] }
 0x2f7   : > { %1597 = vst.msk [vmem:[#allocation2 + $0x120] sm:$0xff] %vm1456_vm2, %v1578_v29  ;;  %2075 = vperm.xlu1 %10439, %v1977_v27   ;;  %v1927_v29 = vld [vmem:[#allocation2 + $0x130] sm:$0xff]  ;;  %v1790_v27 = vld [vmem:[%s18774_s7 + $0x1e8] sm:$0xff] }
 0x2f8   : > { %2376 = vmatpush.msra.mxu2 %v1907_v58 }
 0x2fa   : > { %2377 = vmatpush.msra.mxu2 %v1906_v30 }
 0x2fb   : > { %2015 = vperm.xlu0 %10441, %v1965_v15   ;;  %v1750_v15 = vld [vmem:[%s18774_s7 + $0xa8] sm:$0xff] }
 0x2fc   : > { %2287 = vmatmul.f32.gmra.mxu1 %v1764_v31  ;;  %v1616_v32 = vpop.permute.xlu1 %1615  ;;  %v1700_v33 = vpop.permute.xlu2 %1699 }
 0x2fd   : > { %1632 = vst.msk [vmem:[#allocation2 + $0x178] sm:$0xff] %vm1456_vm2, %v1616_v32  ;;  %v1576_v16 = vpop.permute.xlu0 %1575 }
 0x2fe   : > { %1722 = vst.msk [vmem:[#allocation2 + $0x208] sm:$0xff] %vm1456_vm2, %v1700_v33  ;;  %v1925_v58 = vld [vmem:[#allocation2 + $0x120] sm:$0xff]  ;;  %v1978_v33 = vld [vmem:[%s18775_s8 + $0x88] sm:$0xff] }
 0x2ff   : > { %1596 = vst.msk [vmem:[#allocation2 + $0x118] sm:$0xff] %vm1456_vm2, %v1576_v16  ;;  %v1975_v16 = vld [vmem:[%s18775_s8 + $0x70] sm:$0xff]  ;;  %2080 = vperm.xlu1 %10439, %v1978_v33  }
 0x300   : > { %2065 = vperm.xlu2 %10440, %v1975_v16   ;;  %v1849_v16 = vld [vmem:[%s18774_s7 + $0x3c0] sm:$0xff] }
 0x303   : > { %2020 = vperm.xlu0 %10441, %v1966_v34  }
 0x304   : > { %2290 = vmatmul.f32.gmra.mxu1 %v1769_v36  ;;  %v1680_v37 = vpop.permute.xlu1 %1679  ;;  %v1936_v39 = vld [vmem:[#allocation2 + $0x178] sm:$0xff]  ;;  %v1938_v36 = vld [vmem:[#allocation2 + $0x188] sm:$0xff] }
 0x305   : > { %1696 = vst.msk [vmem:[#allocation2 + $0x1f8] sm:$0xff] %vm1456_vm2, %v1680_v37  ;;  %v1574_v10 = vpop.permute.xlu0 %1573  ;;  %2476 = vmatpush.msra.mxu3 %v1936_v39  ;;  %v1732_v37 = vld [vmem:[%s18774_s7 + $0x18] sm:$0xff]  ;;  %v1922_v39 = vld [vmem:[#allocation2 + $0x108] sm:$0xff] }
 0x306   : > { %1595 = vst.msk [vmem:[#allocation2 + $0x110] sm:$0xff] %vm1456_vm2, %v1574_v10  ;;  %v1924_v31 = vld [vmem:[#allocation2 + $0x118] sm:$0xff] }
 0x307   : > { %2477 = vmatpush.msra.mxu3 %v1935_v13  ;;  %v1804_v13 = vld [vmem:[%s18774_s7 + $0x258] sm:$0xff] }
 0x309   : > { %2478 = vmatpush.msra.mxu3 %v1934_v19  ;;  %v1731_v19 = vld [vmem:[%s18774_s7 + $0x10] sm:$0xff] }
 0x30b   : > { %2025 = vperm.xlu0 %10441, %v1967_v40   ;;  %2479 = vmatpush.msra.mxu3 %v1933_v41  ;;  %v1921_v40 = vld [vmem:[#allocation2 + $0x100] sm:$0xff] }
 0x30c   : > { %2293 = vmatmul.f32.gmra.mxu1 %v1774_v21  ;;  %v1640_v42 = vpop.permute.xlu1 %1639  ;;  %v1952_v26 = vld [vmem:[#allocation2 + $0x1f8] sm:$0xff]  ;;  %v1755_v21 = vld [vmem:[%s18774_s7 + $0xd0] sm:$0xff] }
 0x30d   : > { %1660 = vst.msk [vmem:[#allocation2 + $0x198] sm:$0xff] %vm1456_vm2, %v1640_v42  ;;  %v1506_v14 = vpop.permute.xlu0 %1505  ;;  %2480 = vmatpush.msra.mxu3 %v1932_v17  ;;  %2589 = vmatpush.msrb.mxu0 %v1952_v26  ;;  %v1923_v34 = vld [vmem:[#allocation2 + $0x110] sm:$0xff]  ;;  %v1954_v26 = vld [vmem:[#allocation2 + $0x208] sm:$0xff] }
 0x30e   : > { %1529 = vst.msk [vmem:[#allocation2 + $0x80] sm:$0xff] %vm1456_vm2, %v1506_v14  ;;  %v1979_v17 = vld [vmem:[%s18775_s8 + $0x90] sm:$0xff]  ;;  %v1737_v14 = vld [vmem:[%s18774_s7 + $0x40] sm:$0xff] }
 0x30f   : > { %2481 = vmatpush.msra.mxu3 %v1931_v62  ;;  %2590 = vmatpush.msrb.mxu0 %v1951_v43  ;;  %v1809_v43 = vld [vmem:[%s18774_s7 + $0x280] sm:$0xff] }
 0x310   : > { %2085 = vperm.xlu1 %10439, %v1979_v17   ;;  %v1986_v17 = vld [vmem:[%s18775_s8 + $0xc8] sm:$0xff] }
 0x311   : > { %2482 = vmatpush.msra.mxu3 %v1930_v46  ;;  %2591 = vmatpush.msrb.mxu0 %v1950_v47  ;;  %v1760_v46 = vld [vmem:[%s18774_s7 + $0xf8] sm:$0xff] }
 0x313   : > { %2030 = vperm.xlu0 %10441, %v1968_v44   ;;  %2483 = vmatpush.msra.mxu3 %v1929_v48  ;;  %v1980_v44 = vld [vmem:[%s18775_s8 + $0x98] sm:$0xff] }
 0x314   : > { %2296 = vmatmul.f32.gmra.mxu1 %v1779_v28  ;;  %2592 = vmatpush.msrb.mxu0 %v1949_v49  ;;  %v1648_v50 = vpop.permute.xlu1 %1647  ;;  %v1940_v7 = vld [vmem:[#allocation2 + $0x198] sm:$0xff]  ;;  %v1742_v28 = vld [vmem:[%s18774_s7 + $0x68] sm:$0xff] }
 0x315   : > { %1664 = vst.msk [vmem:[#allocation2 + $0x1b8] sm:$0xff] %vm1456_vm2, %v1648_v50  ;;  %v1710_v22 = vpop.permute.xlu0 %1709  ;;  %v1905_v18 = vld [vmem:[#allocation2 + $0x80] sm:$0xff]  ;;  %v1814_v49 = vld [vmem:[%s18774_s7 + $0x2a8] sm:$0xff] }
 0x316   : > { %1727 = vst.msk [vmem:[#allocation2 + $0x230] sm:$0xff] %vm1456_vm2, %v1710_v22  ;;  %2378 = vmatpush.msra.mxu2 %v1905_v18  ;;  %2593 = vmatpush.msrb.mxu0 %v1948_v52  ;;  %v1741_v50 = vld [vmem:[%s18774_s7 + $0x60] sm:$0xff]  ;;  %v1747_v18 = vld [vmem:[%s18774_s7 + $0x90] sm:$0xff] }
 0x317   : > { %2379 = vmatmul.f32.vlgmr.msra.gmra.mxu2 %v1730_v20  ;;  %v1765_v20 = vld [vmem:[%s18774_s7 + $0x120] sm:$0xff] }
 0x318   : > { %2594 = vmatpush.msrb.mxu0 %v1947_v53  ;;  %2090 = vperm.xlu1 %10439, %v1980_v44   ;;  %v1981_v22 = vld [vmem:[%s18775_s8 + $0xa0] sm:$0xff]  ;;  %v1819_v53 = vld [vmem:[%s18774_s7 + $0x2d0] sm:$0xff] }
 0x319   : > { %v1987_v44 = vld [vmem:[%s18775_s8 + $0xd0] sm:$0xff] }
 0x31a   : > { %2595 = vmatpush.msrb.mxu0 %v1946_v55  ;;  %v1746_v55 = vld [vmem:[%s18774_s7 + $0x88] sm:$0xff] }
 0x31c   : > { %2299 = vmatmul.f32.gmra.mxu1 %v1784_v56  ;;  %2596 = vmatpush.msrb.mxu0 %v1945_v57  ;;  %v1704_v35 = vpop.permute.xlu1 %1703  ;;  %v1944_v38 = vld [vmem:[#allocation2 + $0x1b8] sm:$0xff]  ;;  %v1770_v56 = vld [vmem:[%s18774_s7 + $0x148] sm:$0xff] }
 0x31d   : > { %1724 = vst.msk [vmem:[#allocation2 + $0x218] sm:$0xff] %vm1456_vm2, %v1704_v35  ;;  %v1708_v51 = vpop.permute.xlu0 %1707  ;;  %v1959_v60 = vld [vmem:[#allocation2 + $0x230] sm:$0xff]  ;;  %v1982_v57 = vld [vmem:[%s18775_s8 + $0xa8] sm:$0xff]  ;;  %v1752_v35 = vld [vmem:[%s18774_s7 + $0xb8] sm:$0xff] }
 0x31e   : > { %1726 = vst.msk [vmem:[#allocation2 + $0x228] sm:$0xff] %vm1456_vm2, %v1708_v51  ;;  %2597 = vmatpush.msrb.mxu0 %v1944_v38  ;;  %2711 = vmatpush.msrb.mxu1 %v1959_v60  ;;  %v1751_v51 = vld [vmem:[%s18774_s7 + $0xb0] sm:$0xff] }
 0x31f   : > { %2382 = vmatmul.f32.gmra.mxu2 %v1735_v8  ;;  %v1824_v8 = vld [vmem:[%s18774_s7 + $0x2f8] sm:$0xff]  ;;  %v1775_v60 = vld [vmem:[%s18774_s7 + $0x170] sm:$0xff] }
 0x320   : > { %2598 = vmatpush.msrb.mxu0 %v1943_v61  ;;  %2095 = vperm.xlu1 %10439, %v1981_v22   ;;  %v1983_v61 = vld [vmem:[%s18775_s8 + $0xb0] sm:$0xff]  ;;  %v1864_v22 = vld [vmem:[%s18774_s7 + $0x438] sm:$0xff] }
 0x322   : > { %2599 = vmatpush.msrb.mxu0 %v1942_v0  ;;  %v1757_v0 = vld [vmem:[%s18774_s7 + $0xe0] sm:$0xff] }
 0x324   : > { %2302 = vmatmul.f32.gmra.mxu1 %v1789_v1  ;;  %2600 = vmatpush.msrb.mxu0 %v1941_v63  ;;  %v1634_v2 = vpop.permute.xlu1 %1633  ;;  %v1956_v3 = vld [vmem:[#allocation2 + $0x218] sm:$0xff]  ;;  %v1829_v63 = vld [vmem:[%s18774_s7 + $0x320] sm:$0xff] }
 0x325   : > { %1657 = vst.msk [vmem:[#allocation2 + $0x180] sm:$0xff] %vm1456_vm2, %v1634_v2  ;;  %v1584_v5 = vpop.permute.xlu0 %1583  ;;  %v1958_v59 = vld [vmem:[#allocation2 + $0x228] sm:$0xff]  ;;  %v1756_v2 = vld [vmem:[%s18774_s7 + $0xd8] sm:$0xff] }
 0x326   : > { %1600 = vst.msk [vmem:[#allocation2 + $0x138] sm:$0xff] %vm1456_vm2, %v1584_v5  ;;  %2601 = vmatpush.msrb.mxu0 %v1940_v7  ;;  %2712 = vmatpush.msrb.mxu1 %v1958_v59  ;;  %v1984_v5 = vld [vmem:[%s18775_s8 + $0xb8] sm:$0xff]  ;;  %v1762_v7 = vld [vmem:[%s18774_s7 + $0x108] sm:$0xff] }
 0x327   : > { %2385 = vmatmul.f32.gmra.mxu2 %v1740_v4  ;;  %v1780_v4 = vld [vmem:[%s18774_s7 + $0x198] sm:$0xff]  ;;  %2110 = vperm.xlu0 %10441, %v1984_v5   ;;  %v1802_v5 = vld [vmem:[%s18774_s7 + $0x248] sm:$0xff] }
 0x328   : > { %2713 = vmatpush.msrb.mxu1 %v1957_v6  ;;  %2100 = vperm.xlu1 %10439, %v1982_v57   ;;  %v1761_v6 = vld [vmem:[%s18774_s7 + $0x100] sm:$0xff]  ;;  %v1988_v57 = vld [vmem:[%s18775_s8 + $0xd8] sm:$0xff] }
 0x32a   : > { %2714 = vmatpush.msrb.mxu1 %v1956_v3  ;;  %v1785_v3 = vld [vmem:[%s18774_s7 + $0x1c0] sm:$0xff] }
 0x32c   : > { %2305 = vmatmul.f32.gmra.mxu1 %v1794_v54  ;;  %v1937_v10 = vld [vmem:[#allocation2 + $0x180] sm:$0xff]  ;;  %v1767_v54 = vld [vmem:[%s18774_s7 + $0x130] sm:$0xff] }
 0x32d   : > { %v1638_v12 = vpop.permute.xlu0 %1637  ;;  %v1928_v25 = vld [vmem:[#allocation2 + $0x138] sm:$0xff] }
 0x32e   : > { %1659 = vst.msk [vmem:[#allocation2 + $0x190] sm:$0xff] %vm1456_vm2, %v1638_v12  ;;  %2484 = vmatpush.msra.mxu3 %v1928_v25  ;;  %v1839_v12 = vld [vmem:[%s18774_s7 + $0x370] sm:$0xff]  ;;  %v1766_v25 = vld [vmem:[%s18774_s7 + $0x128] sm:$0xff] }
 0x32f   : > { %2388 = vmatmul.f32.gmra.mxu2 %v1745_v11 }
 0x330   : > { %2485 = vmatpush.msra.mxu3 %v1927_v29  ;;  %2105 = vperm.xlu1 %10439, %v1983_v61   ;;  %v12379_v29 = vpop.permute.xlu1 %2035 }
 0x332   : > { %2486 = vmatpush.msra.mxu3 %v1926_v24  ;;  %v1772_v24 = vld [vmem:[%s18774_s7 + $0x158] sm:$0xff] }
 0x334   : > { %2308 = vmatmul.f32.gmra.mxu1 %v1799_v9  ;;  %2487 = vmatpush.msra.mxu3 %v1925_v58  ;;  %v1844_v58 = vld [vmem:[%s18774_s7 + $0x398] sm:$0xff] }
 0x335   : > { %v1702_v30 = vpop.permute.xlu0 %1701  ;;  %v1939_v32 = vld [vmem:[#allocation2 + $0x190] sm:$0xff] }
 0x336   : > { %1723 = vst.msk [vmem:[#allocation2 + $0x210] sm:$0xff] %vm1456_vm2, %v1702_v30  ;;  %2488 = vmatpush.msra.mxu3 %v1924_v31  ;;  %2602 = vmatpush.msrb.mxu0 %v1939_v32  ;;  %v1795_v30 = vld [vmem:[%s18774_s7 + $0x210] sm:$0xff]  ;;  %v1777_v32 = vld [vmem:[%s18774_s7 + $0x180] sm:$0xff] }
 0x337   : > { %2391 = vmatmul.f32.gmra.mxu2 %v1750_v15  ;;  %v1771_v15 = vld [vmem:[%s18774_s7 + $0x150] sm:$0xff] }
 0x338   : > { %2489 = vmatpush.msra.mxu3 %v1923_v34  ;;  %2603 = vmatpush.msrb.mxu0 %v1938_v36  ;;  %v12405_v34 = vpop.permute.xlu1 %2050  ;;  %v1776_v36 = vld [vmem:[%s18774_s7 + $0x178] sm:$0xff] }
 0x33a   : > { %2490 = vmatpush.msra.mxu3 %v1922_v39  ;;  %2604 = vmatpush.msrb.mxu0 %v1937_v10  ;;  %v1985_v39 = vld [vmem:[%s18775_s8 + $0xc0] sm:$0xff] }
 0x33b   : > { %2605 = vmatmul.f32.vlgmr.msrb.gmra.mxu0 %v1732_v37  ;;  %v1800_v37 = vld [vmem:[%s18774_s7 + $0x238] sm:$0xff]  ;;  %2115 = vperm.xlu2 %10440, %v1985_v39  }
 0x33c   : > { %2311 = vmatmul.f32.gmra.mxu1 %v1804_v13  ;;  %2491 = vmatpush.msra.mxu3 %v1921_v40  ;;  %v1782_v13 = vld [vmem:[%s18774_s7 + $0x1a8] sm:$0xff] }
 0x33d   : > { %2492 = vmatmul.f32.vlgmr.msra.gmra.mxu3 %v1731_v19  ;;  %v1698_v41 = vpop.permute.xlu0 %1697  ;;  %v1955_v42 = vld [vmem:[#allocation2 + $0x210] sm:$0xff]  ;;  %v1854_v40 = vld [vmem:[%s18774_s7 + $0x3e8] sm:$0xff] }
 0x33e   : > { %1721 = vst.msk [vmem:[#allocation2 + $0x200] sm:$0xff] %vm1456_vm2, %v1698_v41  ;;  %2715 = vmatpush.msrb.mxu1 %v1955_v42  ;;  %v1805_v42 = vld [vmem:[%s18774_s7 + $0x260] sm:$0xff] }
 0x33f   : > { %2394 = vmatmul.f32.gmra.mxu2 %v1755_v21  ;;  %v1781_v21 = vld [vmem:[%s18774_s7 + $0x1a0] sm:$0xff] }
 0x340   : > { %2716 = vmatpush.msrb.mxu1 %v1954_v26  ;;  %v12429_v41 = vpop.permute.xlu1 %2060  ;;  %v1787_v26 = vld [vmem:[%s18774_s7 + $0x1d0] sm:$0xff] }
 0x341   : > { %v12269_v62 = vpop.f32.mrf.mxu1 }
 0x343   : > { %2608 = vmatmul.f32.gmra.mxu0 %v1737_v14  ;;  %2120 = vperm.xlu2 %10440, %v1986_v17  }
 0x344   : > { %2314 = vmatmul.f32.gmra.mxu1 %v1809_v43  ;;  %v1859_v43 = vld [vmem:[%s18774_s7 + $0x410] sm:$0xff] }
 0x345   : > { %2495 = vmatmul.f32.gmra.mxu3 %v1736_v45  ;;  %v1953_v47 = vld [vmem:[#allocation2 + $0x200] sm:$0xff]  ;;  %v12395_v31 = vpop.permute.xlu0 %2045 }
 0x346   : > { %2717 = vmatpush.msrb.mxu1 %v1953_v47  ;;  %v1810_v47 = vld [vmem:[%s18774_s7 + $0x288] sm:$0xff] }
 0x347   : > { %2397 = vmatmul.f32.gmra.mxu2 %v1760_v46  ;;  %v1786_v46 = vld [vmem:[%s18774_s7 + $0x1c8] sm:$0xff] }
 0x349   : > { %v12286_v48 = vpop.f32.mrf.mxu1 }
 0x34b   : > { %2611 = vmatmul.f32.gmra.mxu0 %v1742_v28  ;;  %v1996_v28 = vpop.permute.xlu1 %1995  ;;  %2125 = vperm.xlu2 %10440, %v1987_v44  }
 0x34c   : > { %2317 = vmatmul.f32.gmra.mxu1 %v1814_v49  ;;  %v1792_v49 = vld [vmem:[%s18774_s7 + $0x1f8] sm:$0xff] }
 0x34d   : > { %2498 = vmatmul.f32.gmra.mxu3 %v1741_v50  ;;  %v12416_v10 = vpop.permute.xlu0 %2070  ;;  %v2268_v50 = vadd.f32 %v12269_v62, %v1996_v28  ;;  %v1815_v62 = vld [vmem:[%s18774_s7 + $0x2b0] sm:$0xff]  ;;  %v1817_v28 = vld [vmem:[%s18774_s7 + $0x2c0] sm:$0xff] }
 0x34f   : > { %2400 = vmatmul.f32.gmra.mxu2 %v1765_v20 }
 0x351   : > { %v12303_v52 = vpop.f32.mrf.mxu1 }
 0x353   : > { %2614 = vmatmul.f32.gmra.mxu0 %v1747_v18  ;;  %2130 = vperm.xlu2 %10440, %v1988_v57  }
 0x354   : > { %2320 = vmatmul.f32.gmra.mxu1 %v1819_v53  ;;  %v1791_v53 = vld [vmem:[%s18774_s7 + $0x1f0] sm:$0xff] }
 0x355   : > { %2501 = vmatmul.f32.gmra.mxu3 %v1746_v55  ;;  %v2001_v45 = vpop.permute.xlu0 %2000 }
 0x357   : > { %2403 = vmatmul.f32.gmra.mxu2 %v1770_v56 }
 0x359   : > { %v12320_v38 = vpop.f32.mrf.mxu1 }
 0x35b   : > { %2617 = vmatmul.f32.gmra.mxu0 %v1752_v35  ;;  %v1797_v35 = vld [vmem:[%s18774_s7 + $0x220] sm:$0xff] }
 0x35c   : > { %2323 = vmatmul.f32.gmra.mxu1 %v1824_v8  ;;  %v2271_v8 = vadd.f32 %v12286_v48, %v2001_v45  ;;  %v1989_v48 = vld [vmem:[%s18775_s8 + $0xe0] sm:$0xff] }
 0x35d   : > { %2504 = vmatmul.f32.gmra.mxu3 %v1751_v51  ;;  %v2006_v56 = vpop.permute.xlu0 %2005  ;;  %2135 = vperm.xlu2 %10440, %v1989_v48   ;;  %v1738_v48 = vld [vmem:[%s18774_s7 + $0x48] sm:$0xff] }
 0x35f   : > { %2406 = vmatmul.f32.gmra.mxu2 %v1775_v60  ;;  %v1869_v60 = vld [vmem:[%s18774_s7 + $0x460] sm:$0xff] }
 0x361   : > { %v12337_v1 = vpop.f32.mrf.mxu1 }
 0x363   : > { %2620 = vmatmul.f32.gmra.mxu0 %v1757_v0  ;;  %v1796_v0 = vld [vmem:[%s18774_s7 + $0x218] sm:$0xff] }
 0x364   : > { %2326 = vmatmul.f32.gmra.mxu1 %v1829_v63 }
 0x365   : > { %2507 = vmatmul.f32.gmra.mxu3 %v1756_v2  ;;  %v1820_v2 = vld [vmem:[%s18774_s7 + $0x2d8] sm:$0xff] }
 0x367   : > { %2409 = vmatmul.f32.gmra.mxu2 %v1780_v4  ;;  %v2011_v4 = vpop.permute.xlu0 %2010 }
 0x369   : > { %v12354_v59 = vpop.f32.mrf.mxu1 }
 0x36b   : > { %2623 = vmatmul.f32.gmra.mxu0 %v1762_v7  ;;  %v2274_v7 = vadd.f32 %v12303_v52, %v2006_v56  ;;  %v1990_v52 = vld [vmem:[%s18775_s8 + $0xe8] sm:$0xff]  ;;  %v1816_v56 = vld [vmem:[%s18774_s7 + $0x2b8] sm:$0xff] }
 0x36c   : > { %2329 = vmatmul.f32.gmra.mxu1 %v1834_v23  ;;  %2140 = vperm.xlu2 %10440, %v1990_v52  }
 0x36d   : > { %2510 = vmatmul.f32.gmra.mxu3 %v1761_v6  ;;  %v1874_v6 = vld [vmem:[%s18774_s7 + $0x488] sm:$0xff] }
 0x36f   : > { %2412 = vmatmul.f32.gmra.mxu2 %v1785_v3 }
 0x371   : > { %v12368_v11 = vpop.f32.mrf.mxu1 }
 0x373   : > { %2626 = vmatmul.f32.gmra.mxu0 %v1767_v54  ;;  %v1801_v54 = vld [vmem:[%s18774_s7 + $0x240] sm:$0xff] }
 0x374   : > { %2332 = vmatmul.f32.gmra.mxu1 %v1839_v12 }
 0x375   : > { %2513 = vmatmul.f32.gmra.mxu3 %v1766_v25  ;;  %v1825_v25 = vld [vmem:[%s18774_s7 + $0x300] sm:$0xff] }
 0x377   : > { %2415 = vmatmul.f32.gmra.mxu2 %v1790_v27  ;;  %v2016_v27 = vpop.permute.xlu0 %2015 }
 0x379   : > { %v12384_v9 = vpop.f32.mrf.mxu1 }
 0x37b   : > { %2629 = vmatmul.f32.gmra.mxu0 %v1772_v24  ;;  %v1807_v24 = vld [vmem:[%s18774_s7 + $0x270] sm:$0xff] }
 0x37c   : > { %2335 = vmatmul.f32.gmra.mxu1 %v1844_v58  ;;  %v2277_v58 = vadd.f32 %v12320_v38, %v2011_v4  ;;  %v1991_v38 = vld [vmem:[%s18775_s8 + $0xf0] sm:$0xff] }
 0x37d   : > { %2516 = vmatmul.f32.gmra.mxu3 %v1771_v15  ;;  %2145 = vperm.xlu2 %10440, %v1991_v38   ;;  %v1832_v38 = vld [vmem:[%s18774_s7 + $0x338] sm:$0xff] }
 0x37f   : > { %2418 = vmatmul.f32.gmra.mxu2 %v1795_v30  ;;  %v1879_v30 = vld [vmem:[%s18774_s7 + $0x4b0] sm:$0xff]  ;;  %v2021_v17 = vpop.permute.xlu0 %2020 }
 0x381   : > { %v12400_v33 = vpop.f32.mrf.mxu1 }
 0x383   : > { %2632 = vmatmul.f32.gmra.mxu0 %v1777_v32 }
 0x384   : > { %2338 = vmatmul.f32.gmra.mxu1 %v1849_v16  ;;  %v1806_v16 = vld [vmem:[%s18774_s7 + $0x268] sm:$0xff] }
 0x385   : > { %2519 = vmatmul.f32.gmra.mxu3 %v1776_v36 }
 0x387   : > { %2421 = vmatmul.f32.gmra.mxu2 %v1800_v37  ;;  %v1830_v37 = vld [vmem:[%s18774_s7 + $0x328] sm:$0xff] }
 0x389   : > { %v12421_v19 = vpop.f32.mrf.mxu1 }
 0x38b   : > { %2635 = vmatmul.f32.gmra.mxu0 %v1782_v13  ;;  %v1812_v13 = vld [vmem:[%s18774_s7 + $0x298] sm:$0xff] }
 0x38c   : > { %2341 = vmatmul.f32.gmra.mxu1 %v1854_v40  ;;  %v2280_v40 = vadd.f32 %v12337_v1, %v2016_v27  ;;  %v1835_v1 = vld [vmem:[%s18774_s7 + $0x350] sm:$0xff] }
 0x38d   : > { %2522 = vmatmul.f32.gmra.mxu3 %v1781_v21 }
 0x38f   : > { %2424 = vmatmul.f32.gmra.mxu2 %v1805_v42  ;;  %v1884_v42 = vld [vmem:[%s18774_s7 + $0x4d8] sm:$0xff] }
 0x391   : > { %v12440_v14 = vpop.f32.mrf.mxu1 }
 0x393   : > { %2638 = vmatmul.f32.gmra.mxu0 %v1787_v26 }
 0x394   : > { %2344 = vmatmul.f32.gmra.mxu1 %v1859_v43  ;;  %v1811_v43 = vld [vmem:[%s18774_s7 + $0x290] sm:$0xff] }
 0x395   : > { %2525 = vmatmul.f32.gmra.mxu3 %v1786_v46  ;;  %v1992_v46 = vld [vmem:[%s18775_s8 + $0xf8] sm:$0xff] }
 0x396   : > { %2150 = vperm.xlu2 %10440, %v1992_v46  }
 0x397   : > { %2427 = vmatmul.f32.gmra.mxu2 %v1810_v47 }
 0x399   : > { %v12458_v20 = vpop.f32.mrf.mxu1 }
 0x39a   : > { %v2380_v18 = vpop.f32.mrf.mxu2 }
 0x39b   : > { %v12466_v55 = vadd.f32 %v2380_v18, %v2268_v50  ;;  %2641 = vmatmul.f32.gmra.mxu0 %v1792_v49  ;;  %v2283_v49 = vadd.f32 %v12354_v59, %v2021_v17  ;;  %v1733_v18 = vld [vmem:[%s18774_s7 + $0x20] sm:$0xff]  ;;  %v2026_v59 = vpop.permute.xlu0 %2025 }
 0x39c   : > { %2347 = vmatmul.f32.gmra.mxu1 %v1864_v22 }
 0x39d   : > { %2528 = vmatmul.f32.gmra.mxu3 %v1791_v53 }
 0x39f   : > { %2430 = vmatmul.f32.gmra.mxu2 %v1815_v62 }
 0x3a1   : > { %v12478_v51 = vpop.f32.mrf.mxu1 }
 0x3a2   : > { %v2383_v61 = vpop.f32.mrf.mxu2 }
 0x3a3   : > { %v12486_v63 = vadd.f32 %v2383_v61, %v2271_v8  ;;  %2644 = vmatmul.f32.gmra.mxu0 %v1797_v35  ;;  %v2286_v61 = vadd.f32 %v12368_v11, %v2026_v59  ;;  %v1845_v11 = vld [vmem:[%s18774_s7 + $0x3a0] sm:$0xff] }
 0x3a4   : > { %2350 = vmatmul.f32.gmra.mxu1 %v1869_v60  ;;  %v1822_v60 = vld [vmem:[%s18774_s7 + $0x2e8] sm:$0xff] }
 0x3a5   : > { %2531 = vmatmul.f32.gmra.mxu3 %v1796_v0 }
 0x3a7   : > { %2433 = vmatmul.f32.gmra.mxu2 %v1820_v2 }
 0x3a9   : > { %v12498_v23 = vpop.f32.mrf.mxu1 }
 0x3aa   : > { %v2386_v3 = vpop.f32.mrf.mxu2 }
 0x3ab   : > { %v12506_v12 = vadd.f32 %v2386_v3, %v2274_v7  ;;  %2647 = vmatmul.f32.gmra.mxu0 %v1802_v5  ;;  %v1821_v5 = vld [vmem:[%s18774_s7 + $0x2e0] sm:$0xff] }
 0x3ac   : > { %2353 = vmatmul.f32.gmra.mxu1 %v1874_v6 }
 0x3ad   : > { %2534 = vmatmul.f32.gmra.mxu3 %v1801_v54 }
 0x3af   : > { %2436 = vmatmul.f32.gmra.mxu2 %v1825_v25  ;;  %v1827_v25 = vld [vmem:[%s18774_s7 + $0x310] sm:$0xff] }
 0x3b1   : > { %v12518_v15 = vpop.f32.mrf.mxu1 }
 0x3b2   : > { %v2389_v32 = vpop.f32.mrf.mxu2 }
 0x3b3   : > { %v12526_v36 = vadd.f32 %v2389_v32, %v2277_v58  ;;  %2650 = vmatmul.f32.gmra.mxu0 %v1807_v24  ;;  %v1743_v58 = vld [vmem:[%s18774_s7 + $0x70] sm:$0xff]  ;;  %v1826_v32 = vld [vmem:[%s18774_s7 + $0x308] sm:$0xff] }
 0x3b4   : > { %2356 = vmatmul.f32.gmra.mxu1 %v1879_v30 }
 0x3b5   : > { %2537 = vmatmul.f32.gmra.mxu3 %v1806_v16 }
 0x3b7   : > { %2439 = vmatmul.f32.gmra.mxu2 %v1830_v37 }
 0x3b8   : > { %v2606_v39 = vpop.f32.mrf.mxu0 }
 0x3b9   : > { %v12538_v21 = vpop.f32.mrf.mxu1 }
 0x3ba   : > { %v2392_v26 = vpop.f32.mrf.mxu2 }
 0x3bb   : > { %v12546_v45 = vadd.f32 %v2392_v26, %v2280_v40  ;;  %2653 = vmatmul.f32.gmra.mxu0 %v1812_v13  ;;  %v1748_v40 = vld [vmem:[%s18774_s7 + $0x98] sm:$0xff] }
 0x3bc   : > { %2359 = vmatmul.f32.gmra.mxu1 %v1884_v42  ;;  %v1831_v42 = vld [vmem:[%s18774_s7 + $0x330] sm:$0xff] }
 0x3bd   : > { %2540 = vmatmul.f32.gmra.mxu3 %v1811_v43  ;;  %v1855_v43 = vld [vmem:[%s18774_s7 + $0x3f0] sm:$0xff] }
 0x3bf   : > { %2442 = vmatmul.f32.gmra.mxu2 %v1835_v1  ;;  %v1837_v1 = vld [vmem:[%s18774_s7 + $0x360] sm:$0xff] }
 0x3c0   : > { %v2493_v47 = vpop.f32.mrf.mxu3  ;;  %v2609_v44 = vpop.f32.mrf.mxu0 }
 0x3c1   : > { %v12558_v50 = vpop.f32.mrf.mxu1  ;;  %v2494_v22 = vadd.f32 %v2493_v47, %v12466_v55  ;;  %v1840_v55 = vld [vmem:[%s18774_s7 + $0x378] sm:$0xff] }
 0x3c2   : > { %v2395_v53 = vpop.f32.mrf.mxu2 }
 0x3c3   : > { %v12567_v62 = vadd.f32 %v2395_v53, %v2283_v49  ;;  %v12569_v57 = vadd.f32 %v2606_v39, %v2494_v22  ;;  %2656 = vmatmul.f32.gmra.mxu0 %v1817_v28  ;;  %v1836_v28 = vld [vmem:[%s18774_s7 + $0x358] sm:$0xff]  ;;  %v1842_v53 = vld [vmem:[%s18774_s7 + $0x388] sm:$0xff] }
 0x3c4   : > { %9171 = vmatmul.msk.f32.vlgmr.msrb.gmra.mxu1 %vm2153_vm3, %v1733_v18  ;;  %v1860_v22 = vld [vmem:[%s18774_s7 + $0x418] sm:$0xff] }
 0x3c5   : > { %2543 = vmatmul.f32.gmra.mxu3 %v1816_v56 }
 0x3c7   : > { %2445 = vmatmul.f32.gmra.mxu2 %v1840_v55  ;;  %v1758_v55 = vld [vmem:[%s18774_s7 + $0xe8] sm:$0xff] }
 0x3c8   : > { %v2496_v35 = vpop.f32.mrf.mxu3  ;;  %v2612_v8 = vpop.f32.mrf.mxu0 }
 0x3c9   : > { %v12579_v0 = vpop.f32.mrf.mxu1  ;;  %v2497_v2 = vadd.f32 %v2496_v35, %v12486_v63  ;;  %v2031_v63 = vpop.permute.xlu0 %2030  ;;  %v1841_v35 = vld [vmem:[%s18774_s7 + $0x380] sm:$0xff] }
 0x3ca   : > { %v2398_v4 = vpop.f32.mrf.mxu2  ;;  %v2289_v52 = vadd.f32 %v12384_v9, %v2031_v63  ;;  %v1850_v9 = vld [vmem:[%s18774_s7 + $0x3c8] sm:$0xff] }
 0x3cb   : > { %v12588_v7 = vadd.f32 %v2398_v4, %v2286_v61  ;;  %v12590_v6 = vadd.f32 %v2609_v44, %v2497_v2  ;;  %2659 = vmatmul.f32.gmra.mxu0 %v1822_v60  ;;  %v1753_v44 = vld [vmem:[%s18774_s7 + $0xc0] sm:$0xff]  ;;  %v1847_v2 = vld [vmem:[%s18774_s7 + $0x3b0] sm:$0xff] }
 0x3cc   : > { %9172 = vmatmul.msk.f32.gmra.mxu1 %vm2153_vm3, %v1738_v48  ;;  %v1865_v60 = vld [vmem:[%s18774_s7 + $0x440] sm:$0xff] }
 0x3cd   : > { %2546 = vmatmul.f32.gmra.mxu3 %v1821_v5  ;;  %v1763_v5 = vld [vmem:[%s18774_s7 + $0x110] sm:$0xff] }
 0x3cf   : > { %2448 = vmatmul.f32.gmra.mxu2 %v1845_v11  ;;  %v1846_v11 = vld [vmem:[%s18774_s7 + $0x3a8] sm:$0xff] }
 0x3d0   : > { %v2499_v3 = vpop.f32.mrf.mxu3  ;;  %v2615_v54 = vpop.f32.mrf.mxu0 }
 0x3d1   : > { %v12600_v27 = vpop.f32.mrf.mxu1  ;;  %v2500_v24 = vadd.f32 %v2499_v3, %v12506_v12  ;;  %v1870_v3 = vld [vmem:[%s18774_s7 + $0x468] sm:$0xff] }
 0x3d2   : > { %v2401_v30 = vpop.f32.mrf.mxu2 }
 0x3d3   : > { %v2402_v16 = vadd.f32 %v2401_v30, %v2289_v52  ;;  %v12609_v37 = vadd.f32 %v2612_v8, %v2500_v24  ;;  %2662 = vmatmul.f32.gmra.mxu0 %v1827_v25  ;;  %v1852_v25 = vld [vmem:[%s18774_s7 + $0x3d8] sm:$0xff]  ;;  %v1851_v30 = vld [vmem:[%s18774_s7 + $0x3d0] sm:$0xff] }
 0x3d4   : > { %9173 = vmatmul.msk.f32.gmra.mxu1 %vm2153_vm3, %v1743_v58  ;;  %v1768_v58 = vld [vmem:[%s18774_s7 + $0x138] sm:$0xff] }
 0x3d5   : > { %2549 = vmatmul.f32.gmra.mxu3 %v1826_v32 }
 0x3d7   : > { %2451 = vmatmul.f32.gmra.mxu2 %v1850_v9  ;;  %v1875_v9 = vld [vmem:[%s18774_s7 + $0x490] sm:$0xff] }
 0x3d8   : > { %v2502_v12 = vpop.f32.mrf.mxu3  ;;  %v2618_v17 = vpop.f32.mrf.mxu0 }
 0x3d9   : > { %v12618_v39 = vpop.f32.mrf.mxu1  ;;  %v2503_v13 = vadd.f32 %v2502_v12, %v12526_v36 }
 0x3db   : > { %v12627_v26 = vadd.f32 %v2615_v54, %v2503_v13  ;;  %2665 = vmatmul.f32.gmra.mxu0 %v1832_v38  ;;  %v1773_v38 = vld [vmem:[%s18774_s7 + $0x160] sm:$0xff]  ;;  %v1856_v13 = vld [vmem:[%s18774_s7 + $0x3f8] sm:$0xff] }
 0x3dc   : > { %9174 = vmatmul.msk.f32.gmra.mxu1 %vm2153_vm3, %v1748_v40  ;;  %v1880_v40 = vld [vmem:[%s18774_s7 + $0x4b8] sm:$0xff] }
 0x3dd   : > { %2552 = vmatmul.f32.gmra.mxu3 %v1831_v42  ;;  %v1862_v42 = vld [vmem:[%s18774_s7 + $0x428] sm:$0xff] }
 0x3df   : > { %2454 = vmatmul.f32.gmra.mxu2 %v1855_v43  ;;  %v1778_v43 = vld [vmem:[%s18774_s7 + $0x188] sm:$0xff] }
 0x3e0   : > { %v2505_v36 = vpop.f32.mrf.mxu3  ;;  %v2621_v18 = vpop.f32.mrf.mxu0 }
 0x3e1   : > { %v12636_v46 = vpop.f32.mrf.mxu1  ;;  %v2506_v47 = vadd.f32 %v2505_v36, %v12546_v45  ;;  %v1861_v36 = vld [vmem:[%s18774_s7 + $0x420] sm:$0xff] }
 0x3e3   : > { %v12645_v49 = vadd.f32 %v2618_v17, %v2506_v47  ;;  %2668 = vmatmul.f32.gmra.mxu0 %v1837_v1  ;;  %v1885_v1 = vld [vmem:[%s18774_s7 + $0x4e0] sm:$0xff]  ;;  %v1867_v47 = vld [vmem:[%s18774_s7 + $0x450] sm:$0xff] }
 0x3e4   : > { %9175 = vmatmul.msk.f32.gmra.mxu1 %vm2153_vm3, %v1753_v44 }
 0x3e5   : > { %2555 = vmatmul.f32.gmra.mxu3 %v1836_v28  ;;  %v1783_v28 = vld [vmem:[%s18774_s7 + $0x1b0] sm:$0xff] }
 0x3e7   : > { %2457 = vmatmul.f32.gmra.mxu2 %v1860_v22  ;;  %v1866_v22 = vld [vmem:[%s18774_s7 + $0x448] sm:$0xff] }
 0x3e8   : > { %v2508_v45 = vpop.f32.mrf.mxu3  ;;  %v2624_v61 = vpop.f32.mrf.mxu0 }
 0x3e9   : > { %v12654_v56 = vpop.f32.mrf.mxu1  ;;  %v2509_v59 = vadd.f32 %v2508_v45, %v12567_v62 }
 0x3eb   : > { %v12663_v8 = vadd.f32 %v2621_v18, %v2509_v59  ;;  %2671 = vmatmul.f32.gmra.mxu0 %v1842_v53  ;;  %v1872_v18 = vld [vmem:[%s18774_s7 + $0x478] sm:$0xff]  ;;  %v1871_v59 = vld [vmem:[%s18774_s7 + $0x470] sm:$0xff] }
 0x3ec   : > { %9176 = vmatmul.msk.f32.gmra.mxu1 %vm2153_vm3, %v1758_v55  ;;  %v1788_v53 = vld [vmem:[%s18774_s7 + $0x1d8] sm:$0xff]  ;;  %v1877_v55 = vld [vmem:[%s18774_s7 + $0x4a0] sm:$0xff] }
 0x3ed   : > { %2558 = vmatmul.f32.gmra.mxu3 %v1841_v35 }
 0x3ef   : > { %2460 = vmatmul.f32.gmra.mxu2 %v1865_v60  ;;  %v1793_v60 = vld [vmem:[%s18774_s7 + $0x200] sm:$0xff] }
 0x3f0   : > { %v2511_v62 = vpop.f32.mrf.mxu3  ;;  %v2627_v54 = vpop.f32.mrf.mxu0 }
 0x3f1   : > { %v12672_v48 = vpop.f32.mrf.mxu1  ;;  %v2512_v4 = vadd.f32 %v2511_v62, %v12588_v7  ;;  %v1882_v62 = vld [vmem:[%s18774_s7 + $0x4c8] sm:$0xff] }
 0x3f3   : > { %v12681_v63 = vadd.f32 %v2624_v61, %v2512_v4  ;;  %2674 = vmatmul.f32.gmra.mxu0 %v1847_v2  ;;  %v1876_v61 = vld [vmem:[%s18774_s7 + $0x498] sm:$0xff]  ;;  %v1798_v4 = vld [vmem:[%s18774_s7 + $0x228] sm:$0xff] }
 0x3f4   : > { %9177 = vmatmul.msk.f32.gmra.mxu1 %vm2153_vm3, %v1763_v5  ;;  %v1881_v5 = vld [vmem:[%s18774_s7 + $0x4c0] sm:$0xff] }
 0x3f5   : > { %2561 = vmatmul.f32.gmra.mxu3 %v1846_v11  ;;  %v2889_v11 = vld [vmem:[%s18776_s9 + $0x10] sm:$0x3f] }
 0x3f6   : > { %9215 = vmatpush.msk.msrb.mxu3 %vm2926_vm4, %v2889_v11  ;;  %v1828_v11 = vld [vmem:[%s18774_s7 + $0x318] sm:$0xff] }
 0x3f7   : > { %2463 = vmatmul.f32.gmra.mxu2 %v1870_v3  ;;  %v2888_v3 = vld [vmem:[%s18776_s9 + $0x8] sm:$0xff] }
 0x3f8   : > { %v2514_v7 = vpop.f32.mrf.mxu3  ;;  %3012 = vmatpush.msrb.mxu3 %v2888_v3 }
 0x3f9   : > { %v2515_v52 = vadd.f32 %v2514_v7, %v2402_v16  ;;  %v12690_v24 = vpop.f32.mrf.mxu1  ;;  %v1857_v16 = vld [vmem:[%s18774_s7 + $0x400] sm:$0xff]  ;;  %v1887_v7 = vld [vmem:[%s18774_s7 + $0x4f0] sm:$0xff] }
 0x3fb   : > { %v12698_v32 = vadd.f32 %v2627_v54, %v2515_v52  ;;  %2677 = vmatmul.f32.gmra.mxu0 %v1852_v25  ;;  %v2887_v54 = vld [vmem:[%s18776_s9] sm:$0xff]  ;;  %v1803_v52 = vld [vmem:[%s18774_s7 + $0x250] sm:$0xff] }
 0x3fc   : > { %9178 = vmatmul.msk.f32.gmra.mxu1 %vm2153_vm3, %v1768_v58  ;;  %v1886_v58 = vld [vmem:[%s18774_s7 + $0x4e8] sm:$0xff]  ;;  %3013 = vmatpush.msrb.mxu3 %v2887_v54 }
 0x3fd   : > { %2564 = vmatmul.f32.gmra.mxu3 %v1851_v30 }
 0x3ff   : > { %2466 = vmatmul.f32.gmra.mxu2 %v1875_v9  ;;  %v1808_v9 = vld [vmem:[%s18774_s7 + $0x278] sm:$0xff] }
 0x401   : > { %v12707_v12 = vpop.f32.mrf.mxu1 }
 0x403   : > { %2680 = vmatmul.f32.gmra.mxu0 %v1857_v16  ;;  %v12810_v16 = vpop.f32.mrf.mxu3 }
 0x404   : > { %9179 = vmatmul.msk.f32.gmra.mxu1 %vm2153_vm3, %v1773_v38 }
 0x405   : > { %2567 = vmatmul.f32.gmra.mxu3 %v1856_v13  ;;  %v1813_v13 = vld [vmem:[%s18774_s7 + $0x2a0] sm:$0xff] }
 0x407   : > { %2469 = vmatmul.f32.gmra.mxu2 %v1880_v40 }
 0x409   : > { %v12722_v17 = vpop.f32.mrf.mxu1 }
 0x40b   : > { %2683 = vmatmul.f32.gmra.mxu0 %v1862_v42 }
 0x40c   : > { %9180 = vmatmul.msk.f32.gmra.mxu1 %vm2153_vm3, %v1778_v43  ;;  %v12818_v43 = vpop.f32.mrf.mxu2 }
 0x40d   : > { %2570 = vmatmul.f32.gmra.mxu3 %v1861_v36 }
 0x40f   : > { %2472 = vmatmul.f32.gmra.mxu2 %v1885_v1  ;;  %v1818_v1 = vld [vmem:[%s18774_s7 + $0x2c8] sm:$0xff] }
 0x411   : > { %v12737_v44 = vpop.f32.mrf.mxu1 }
 0x413   : > { %2686 = vmatmul.f32.gmra.mxu0 %v1867_v47  ;;  %v12823_v47 = vpop.f32.mrf.mxu3 }
 0x414   : > { %9181 = vmatmul.msk.f32.gmra.mxu1 %vm2153_vm3, %v1783_v28 }
 0x415   : > { %2573 = vmatmul.f32.gmra.mxu3 %v1866_v22 }
 0x419   : > { %v12749_v45 = vpop.f32.mrf.mxu1 }
 0x41b   : > { %2689 = vmatmul.f32.gmra.mxu0 %v1872_v18  ;;  %v12829_v18 = vpop.f32.mrf.mxu0 }
 0x41c   : > { %9182 = vmatmul.msk.f32.gmra.mxu1 %vm2153_vm3, %v1788_v53 }
 0x41d   : > { %2576 = vmatmul.f32.gmra.mxu3 %v1871_v59  ;;  %v1823_v59 = vld [vmem:[%s18774_s7 + $0x2f0] sm:$0xff] }
 0x421   : > { %v12761_v35 = vpop.f32.mrf.mxu1 }
 0x423   : > { %2692 = vmatmul.f32.gmra.mxu0 %v1877_v55 }
 0x424   : > { %9183 = vmatmul.msk.f32.gmra.mxu1 %vm2153_vm3, %v1793_v60  ;;  %v12835_v60 = vpop.f32.mrf.mxu2 }
 0x425   : > { %2579 = vmatmul.f32.gmra.mxu3 %v1876_v61 }
 0x429   : > { %v12773_v2 = vpop.f32.mrf.mxu1 }
 0x42b   : > { %2695 = vmatmul.f32.gmra.mxu0 %v1882_v62 }
 0x42c   : > { %9184 = vmatmul.msk.f32.gmra.mxu1 %vm2153_vm3, %v1798_v4  ;;  %v12842_v4 = vpop.f32.mrf.mxu0 }
 0x42d   : > { %2582 = vmatmul.f32.gmra.mxu3 %v1881_v5 }
 0x431   : > { %v12795_v25 = vpop.f32.mrf.mxu1 }
 0x433   : > { %2698 = vmatmul.f32.gmra.mxu0 %v1887_v7  ;;  %v12849_v7 = vpop.f32.mrf.mxu2 }
 0x434   : > { %9185 = vmatmul.msk.f32.gmra.mxu1 %vm2153_vm3, %v1803_v52 }
 0x435   : > { %2585 = vmatmul.f32.gmra.mxu3 %v1886_v58 }
 0x439   : > { %v12804_v30 = vpop.f32.mrf.mxu1 }
 0x43c   : > { %9186 = vmatmul.msk.f32.gmra.mxu1 %vm2153_vm3, %v1808_v9  ;;  %v1833_v9 = vld [vmem:[%s18774_s7 + $0x340] sm:$0xff] }
 0x441   : > { %v2719_v38 = vpop.f32.mrf.mxu1 }
 0x442   : > { %v2720_v40 = vadd.f32 %v2719_v38, %v12569_v57 }
 0x444   : > { %v2815_v42 = vmax.f32 %v2720_v40, 0.0  ;;  %9187 = vmatmul.msk.f32.gmra.mxu1 %vm2153_vm3, %v1813_v13 }
 0x446   : > { %2847 = vst.msk [vmem:[#allocation4] sm:$0xff] %vm1456_vm2, %v2815_v42  ;;  %v12864_v42 = vpop.f32.mrf.mxu2 }
 0x449   : > { %v2722_v36 = vpop.f32.mrf.mxu1 }
 0x44a   : > { %v2723_v28 = vadd.f32 %v2722_v36, %v12590_v6  ;;  %v12837_v6 = vpop.f32.mrf.mxu3 }
 0x44c   : > { %v2816_v22 = vmax.f32 %v2723_v28, 0.0  ;;  %9188 = vmatmul.msk.f32.gmra.mxu1 %vm2153_vm3, %v1818_v1  ;;  %v1838_v28 = vld [vmem:[%s18774_s7 + $0x368] sm:$0xff] }
 0x44d   : > { %v2879_v57 = vld [vmem:[#allocation4] sm:$0xff] }
 0x44e   : > { %2848 = vst.msk [vmem:[#allocation4 + $0x8] sm:$0xff] %vm1456_vm2, %v2816_v22  ;;  %9216 = vmatmul.msk.f32.vlgmr.msrb.gmra.mxu3 %vm1456_vm2, %v2879_v57 }
 0x451   : > { %v2725_v53 = vpop.f32.mrf.mxu1 }
 0x452   : > { %v2726_v55 = vadd.f32 %v2725_v53, %v12609_v37  ;;  %v12851_v52 = vpop.f32.mrf.mxu3 }
 0x454   : > { %v2817_v61 = vmax.f32 %v2726_v55, 0.0  ;;  %9189 = vmatmul.msk.f32.gmra.mxu1 %vm2153_vm3, %v1823_v59  ;;  %v9205_v59 = vld [vmem:[%s18776_s9 + $0x28] sm:$0x3f]  ;;  %v9204_v55 = vld [vmem:[%s18776_s9 + $0x20] sm:$0xff] }
 0x455   : > { %v2880_v62 = vld [vmem:[#allocation4 + $0x8] sm:$0xff]  ;;  %9206 = vmatpush.msk.msrb.mxu2 %vm2926_vm4, %v9205_v59 }
 0x456   : > { %2849 = vst.msk [vmem:[#allocation4 + $0x10] sm:$0xff] %vm1456_vm2, %v2817_v61  ;;  %9217 = vmatmul.msk.f32.gmra.mxu3 %vm1456_vm2, %v2880_v62  ;;  %v12887_v61 = vpop.f32.mrf.mxu2 }
 0x457   : > { %2944 = vmatpush.msrb.mxu2 %v9204_v55 }
 0x459   : > { %v2728_v5 = vpop.f32.mrf.mxu1 }
 0x45a   : > { %v2729_v37 = vadd.f32 %v2728_v5, %v12627_v26  ;;  %v12859_v26 = vpop.f32.mrf.mxu0  ;;  %v12866_v36 = vpop.f32.mrf.mxu3  ;;  %v1843_v5 = vld [vmem:[%s18774_s7 + $0x390] sm:$0xff] }
 0x45c   : > { %v2818_v3 = vmax.f32 %v2729_v37, 0.0  ;;  %9190 = vmatmul.msk.f32.gmra.mxu1 %vm2153_vm3, %v1828_v11 }
 0x45d   : > { %v2881_v54 = vld [vmem:[#allocation4 + $0x10] sm:$0xff] }
 0x45e   : > { %2850 = vst.msk [vmem:[#allocation4 + $0x18] sm:$0xff] %vm1456_vm2, %v2818_v3  ;;  %9218 = vmatmul.msk.f32.gmra.mxu3 %vm1456_vm2, %v2881_v54 }
 0x461   : > { %v2731_v58 = vpop.f32.mrf.mxu1 }
 0x462   : > { %v2732_v38 = vadd.f32 %v2731_v58, %v12645_v49  ;;  %v12873_v57 = vpop.f32.mrf.mxu0  ;;  %v12892_v11 = vpop.f32.mrf.mxu3 }
 0x464   : > { %v2819_v13 = vmax.f32 %v2732_v38, 0.0  ;;  %9191 = vmatmul.msk.f32.gmra.mxu1 %vm2153_vm3, %v1833_v9  ;;  %v2292_v9 = vadd.f32 %v12400_v33, %v12379_v29 }
 0x465   : > { %v2882_v40 = vld [vmem:[#allocation4 + $0x18] sm:$0xff] }
 0x466   : > { %2851 = vst.msk [vmem:[#allocation4 + $0x20] sm:$0xff] %vm1456_vm2, %v2819_v13  ;;  %9219 = vmatmul.msk.f32.gmra.mxu3 %vm1456_vm2, %v2882_v40  ;;  %v1848_v13 = vld [vmem:[%s18774_s7 + $0x3b8] sm:$0xff] }
 0x469   : > { %v2734_v1 = vpop.f32.mrf.mxu1 }
 0x46a   : > { %v2735_v49 = vadd.f32 %v2734_v1, %v12663_v8  ;;  %v9203_v8 = vld [vmem:[%s18776_s9 + $0x18] sm:$0xff]  ;;  %v12898_v58 = vpop.f32.mrf.mxu0  ;;  %v12907_v1 = vpop.f32.mrf.mxu2 }
 0x46b   : > { %2945 = vmatpush.msrb.mxu2 %v9203_v8 }
 0x46c   : > { %v2820_v22 = vmax.f32 %v2735_v49, 0.0  ;;  %9192 = vmatmul.msk.f32.gmra.mxu1 %vm2153_vm3, %v1838_v28  ;;  %v12910_v49 = vpop.f32.mrf.mxu3 }
 0x46d   : > { %v2883_v53 = vld [vmem:[#allocation4 + $0x20] sm:$0xff] }
 0x46e   : > { %2852 = vst.msk [vmem:[#allocation4 + $0x28] sm:$0xff] %vm1456_vm2, %v2820_v22  ;;  %9220 = vmatmul.msk.f32.gmra.mxu3 %vm1456_vm2, %v2883_v53  ;;  %v2041_v53 = vpop.permute.xlu2 %2040 }
 0x46f   : > { %v2295_v33 = vadd.f32 %v12421_v19, %v2041_v53 }
 0x471   : > { %v2737_v62 = vpop.f32.mrf.mxu1  ;;  %v2408_v55 = vadd.f32 %v12835_v60, %v2295_v33 }
 0x472   : > { %v2738_v37 = vadd.f32 %v2737_v62, %v12681_v63  ;;  %v2405_v63 = vadd.f32 %v12818_v43, %v2292_v9 }
 0x473   : > { %v2521_v62 = vadd.f32 %v12823_v47, %v2408_v55  ;;  %v1858_v47 = vld [vmem:[%s18774_s7 + $0x408] sm:$0xff] }
 0x474   : > { %v2821_v3 = vmax.f32 %v2738_v37, 0.0  ;;  %9193 = vmatmul.msk.f32.gmra.mxu1 %vm2153_vm3, %v1843_v5  ;;  %v2518_v28 = vadd.f32 %v12810_v16, %v2405_v63  ;;  %v1853_v16 = vld [vmem:[%s18774_s7 + $0x3e0] sm:$0xff]  ;;  %v12925_v37 = vpop.f32.mrf.mxu2 }
 0x475   : > { %v2884_v54 = vld [vmem:[#allocation4 + $0x28] sm:$0xff]  ;;  %v2634_v60 = vadd.f32 %v12842_v4, %v2521_v62 }
 0x476   : > { %2853 = vst.msk [vmem:[#allocation4 + $0x30] sm:$0xff] %vm1456_vm2, %v2821_v3  ;;  %9221 = vmatmul.msk.f32.gmra.mxu3 %vm1456_vm2, %v2884_v54  ;;  %v2631_v43 = vadd.f32 %v12829_v18, %v2518_v28  ;;  %v12927_v3 = vpop.f32.mrf.mxu3  ;;  %v2298_v18 = vadd.f32 %v12440_v14, %v12395_v31  ;;  %v2301_v14 = vadd.f32 %v12458_v20, %v12405_v34 }
 0x478   : > { %v2411_v9 = vadd.f32 %v12849_v7, %v2298_v18  ;;  %v2307_v18 = vadd.f32 %v12498_v23, %v12429_v41 }
 0x479   : > { %v2740_v38 = vpop.f32.mrf.mxu1 }
 0x47a   : > { %v2741_v40 = vadd.f32 %v2740_v38, %v12698_v32  ;;  %v12917_v32 = vpop.f32.mrf.mxu0  ;;  %v2524_v63 = vadd.f32 %v12837_v6, %v2411_v9  ;;  %v1863_v6 = vld [vmem:[%s18774_s7 + $0x430] sm:$0xff] }
 0x47c   : > { %v2822_v22 = vmax.f32 %v2741_v40, 0.0  ;;  %9194 = vmatmul.msk.f32.gmra.mxu1 %vm2153_vm3, %v1848_v13  ;;  %v12944_v31 = vpop.f32.mrf.mxu2  ;;  %v2637_v4 = vadd.f32 %v12859_v26, %v2524_v63 }
 0x47d   : > { %v2885_v29 = vld [vmem:[#allocation4 + $0x30] sm:$0xff] }
 0x47e   : > { %2854 = vst.msk [vmem:[#allocation4 + $0x38] sm:$0xff] %vm1456_vm2, %v2822_v22  ;;  %9222 = vmatmul.msk.f32.gmra.mxu3 %vm1456_vm2, %v2885_v29  ;;  %v2414_v22 = vadd.f32 %v12864_v42, %v2301_v14  ;;  %v12967_v62 = vpop.f32.mrf.mxu3 }
 0x480   : > { %v2527_v29 = vadd.f32 %v12851_v52, %v2414_v22  ;;  %v1868_v52 = vld [vmem:[%s18774_s7 + $0x458] sm:$0xff] }
 0x481   : > { %v2743_v59 = vpop.f32.mrf.mxu1 }
 0x482   : > { %v2744_v8 = vadd.f32 %v2743_v59, %v2631_v43  ;;  %v12938_v13 = vpop.f32.mrf.mxu0  ;;  %v2056_v43 = vpop.permute.xlu2 %2055  ;;  %v2640_v20 = vadd.f32 %v12873_v57, %v2527_v29 }
 0x483   : > { %v2304_v34 = vadd.f32 %v12478_v51, %v2056_v43 }
 0x484   : > { %v2823_v5 = vmax.f32 %v2744_v8, 0.0  ;;  %9195 = vmatmul.msk.f32.gmra.mxu1 %vm2153_vm3, %v1853_v16  ;;  %v12961_v26 = vpop.f32.mrf.mxu2 }
 0x485   : > { %v2886_v19 = vld [vmem:[#allocation4 + $0x38] sm:$0xff]  ;;  %v2417_v55 = vadd.f32 %v12887_v61, %v2304_v34 }
 0x486   : > { %2855 = vst.msk [vmem:[#allocation4 + $0x40] sm:$0xff] %vm1456_vm2, %v2823_v5  ;;  %9223 = vmatmul.msk.f32.gmra.mxu3 %vm1456_vm2, %v2886_v19 }
 0x487   : > { %v2530_v5 = vadd.f32 %v12866_v36, %v2417_v55  ;;  %v1873_v36 = vld [vmem:[%s18774_s7 + $0x480] sm:$0xff] }
 0x489   : > { %v2746_v54 = vpop.f32.mrf.mxu1  ;;  %v2643_v61 = vadd.f32 %v12898_v58, %v2530_v5  ;;  %v2076_v58 = vpop.permute.xlu1 %2075 }
 0x48a   : > { %v2747_v38 = vadd.f32 %v2746_v54, %v2634_v60  ;;  %v12955_v59 = vpop.f32.mrf.mxu0  ;;  %v2420_v54 = vadd.f32 %v12907_v1, %v2307_v18 }
 0x48c   : > { %v2824_v40 = vmax.f32 %v2747_v38, 0.0  ;;  %9196 = vmatmul.msk.f32.gmra.mxu1 %vm2153_vm3, %v1858_v47  ;;  %v12982_v9 = vpop.f32.mrf.mxu2  ;;  %v2533_v38 = vadd.f32 %v12892_v11, %v2420_v54  ;;  %v1878_v11 = vld [vmem:[%s18774_s7 + $0x4a8] sm:$0xff] }
 0x48d   : > { %v2890_v28 = vld [vmem:[#allocation4 + $0x40] sm:$0xff] }
 0x48e   : > { %2856 = vst.msk [vmem:[#allocation4 + $0x48] sm:$0xff] %vm1456_vm2, %v2824_v40  ;;  %9207 = vmatmul.msk.f32.vlgmr.msrb.gmra.mxu2 %vm1456_vm2, %v2890_v28  ;;  %v2066_v40 = vpop.permute.xlu2 %2065  ;;  %v12986_v28 = vpop.f32.mrf.mxu3  ;;  %v2646_v1 = vadd.f32 %v12917_v32, %v2533_v38  ;;  %v9226_v32 = vld [vmem:[%s18776_s9 + $0x40] sm:$0x3f] }
 0x48f   : > { %v2310_v23 = vadd.f32 %v12518_v15, %v2066_v40  ;;  %9227 = vmatpush.msk.msra.mxu0 %vm2926_vm4, %v9226_v32 }
 0x491   : > { %v2749_v7 = vpop.f32.mrf.mxu1 }
 0x492   : > { %v2750_v53 = vadd.f32 %v2749_v7, %v2637_v4  ;;  %v12973_v57 = vpop.f32.mrf.mxu0  ;;  %v2423_v7 = vadd.f32 %v12925_v37, %v2310_v23  ;;  %v9225_v37 = vld [vmem:[%s18776_s9 + $0x38] sm:$0xff] }
 0x493   : > { %3092 = vmatpush.msra.mxu0 %v9225_v37 }
 0x494   : > { %v2825_v33 = vmax.f32 %v2750_v53, 0.0  ;;  %9197 = vmatmul.msk.f32.gmra.mxu1 %vm2153_vm3, %v1863_v6  ;;  %v2536_v22 = vadd.f32 %v12910_v49, %v2423_v7  ;;  %v2434_v29 = vpop.f32.mrf.mxu2  ;;  %v2313_v49 = vadd.f32 %v12538_v21, %v12416_v10 }
 0x495   : > { %v2891_v16 = vld [vmem:[#allocation4 + $0x48] sm:$0xff] }
 0x496   : > { %2857 = vst.msk [vmem:[#allocation4 + $0x50] sm:$0xff] %vm1456_vm2, %v2825_v33  ;;  %9208 = vmatmul.msk.f32.gmra.mxu2 %vm1456_vm2, %v2891_v16  ;;  %v2547_v33 = vpop.f32.mrf.mxu3  ;;  %v2649_v43 = vadd.f32 %v12938_v13, %v2536_v22  ;;  %v9224_v16 = vld [vmem:[%s18776_s9 + $0x30] sm:$0xff] }
 0x497   : > { %3093 = vmatpush.msra.mxu0 %v9224_v16 }
 0x499   : > { %v2752_v42 = vpop.f32.mrf.mxu1 }
 0x49a   : > { %v2753_v8 = vadd.f32 %v2752_v42, %v2640_v20  ;;  %v12992_v14 = vpop.f32.mrf.mxu0  ;;  %v1883_v20 = vld [vmem:[%s18774_s7 + $0x4d0] sm:$0xff]  ;;  %v2081_v42 = vpop.permute.xlu1 %2080 }
 0x49c   : > { %v2826_v19 = vmax.f32 %v2753_v8, 0.0  ;;  %9198 = vmatmul.msk.f32.gmra.mxu1 %vm2153_vm3, %v1868_v52  ;;  %v2426_v52 = vadd.f32 %v12944_v31, %v2313_v49  ;;  %v2437_v5 = vpop.f32.mrf.mxu2 }
 0x49d   : > { %v2892_v51 = vld [vmem:[#allocation4 + $0x50] sm:$0xff] }
 0x49e   : > { %2858 = vst.msk [vmem:[#allocation4 + $0x58] sm:$0xff] %vm1456_vm2, %v2826_v19  ;;  %9209 = vmatmul.msk.f32.gmra.mxu2 %vm1456_vm2, %v2892_v51  ;;  %v2539_v10 = vadd.f32 %v12927_v3, %v2426_v52  ;;  %v2316_v19 = vadd.f32 %v12558_v50, %v2076_v58  ;;  %v2550_v18 = vpop.f32.mrf.mxu3  ;;  %v2319_v50 = vadd.f32 %v12579_v0, %v2081_v42 }
 0x4a0   : > { %v2652_v51 = vadd.f32 %v12955_v59, %v2539_v10  ;;  %v2429_v3 = vadd.f32 %v12961_v26, %v2316_v19  ;;  %v2432_v26 = vadd.f32 %v12982_v9, %v2319_v50 }
 0x4a1   : > { %v2755_v60 = vpop.f32.mrf.mxu1 }
 0x4a2   : > { %v2756_v47 = vadd.f32 %v2755_v60, %v2643_v61  ;;  %v2660_v8 = vpop.f32.mrf.mxu0  ;;  %v1888_v61 = vld [vmem:[%s18774_s7 + $0x4f8] sm:$0xff]  ;;  %v2542_v54 = vadd.f32 %v12967_v62, %v2429_v3  ;;  %v2545_v62 = vadd.f32 %v12986_v28, %v2432_v26 }
 0x4a4   : > { %v2827_v63 = vmax.f32 %v2756_v47, 0.0  ;;  %9199 = vmatmul.msk.f32.gmra.mxu1 %vm2153_vm3, %v1873_v36  ;;  %v2086_v36 = vpop.permute.xlu1 %2085  ;;  %v2655_v59 = vadd.f32 %v12973_v57, %v2542_v54  ;;  %v2440_v40 = vpop.f32.mrf.mxu2  ;;  %v2658_v57 = vadd.f32 %v12992_v14, %v2545_v62 }
 0x4a5   : > { %v2893_v41 = vld [vmem:[#allocation4 + $0x58] sm:$0xff]  ;;  %v2322_v0 = vadd.f32 %v12600_v27, %v2086_v36 }
 0x4a6   : > { %2859 = vst.msk [vmem:[#allocation4 + $0x60] sm:$0xff] %vm1456_vm2, %v2827_v63  ;;  %9210 = vmatmul.msk.f32.gmra.mxu2 %vm1456_vm2, %v2893_v41  ;;  %v2553_v58 = vpop.f32.mrf.mxu3 }
 0x4a7   : > { %v2435_v22 = vadd.f32 %v2434_v29, %v2322_v0  ;;  %v2111_v0 = vpop.permute.xlu0 %2110 }
 0x4a9   : > { %v2758_v4 = vpop.f32.mrf.mxu1 }
 0x4aa   : > { %v2759_v6 = vadd.f32 %v2758_v4, %v2646_v1  ;;  %v2663_v38 = vpop.f32.mrf.mxu0 }
 0x4ac   : > { %v2828_v53 = vmax.f32 %v2759_v6, 0.0  ;;  %9200 = vmatmul.msk.f32.gmra.mxu1 %vm2153_vm3, %v1878_v11  ;;  %v2091_v11 = vpop.permute.xlu1 %2090  ;;  %v2443_v9 = vpop.f32.mrf.mxu2 }
 0x4ad   : > { %v2894_v15 = vld [vmem:[#allocation4 + $0x60] sm:$0xff]  ;;  %v2325_v49 = vadd.f32 %v12618_v39, %v2091_v11 }
 0x4ae   : > { %2860 = vst.msk [vmem:[#allocation4 + $0x68] sm:$0xff] %vm1456_vm2, %v2828_v53  ;;  %9211 = vmatmul.msk.f32.gmra.mxu2 %vm1456_vm2, %v2894_v15  ;;  %v2548_v15 = vadd.f32 %v2547_v33, %v2435_v22  ;;  %v2556_v37 = vpop.f32.mrf.mxu3 }
 0x4b0   : > { %v2661_v16 = vadd.f32 %v2660_v8, %v2548_v15  ;;  %v9236_v15 = vld [vmem:[%s18776_s9 + $0x48] sm:$0xff] }
 0x4b1   : > { %v2761_v34 = vpop.f32.mrf.mxu1 }
 0x4b2   : > { %v2762_v55 = vadd.f32 %v2761_v34, %v2649_v43  ;;  %v2666_v7 = vpop.f32.mrf.mxu0 }
 0x4b4   : > { %v2829_v21 = vmax.f32 %v2762_v55, 0.0  ;;  %9201 = vmatmul.msk.f32.gmra.mxu1 %vm2153_vm3, %v1883_v20  ;;  %v2096_v43 = vpop.permute.xlu1 %2095  ;;  %v2438_v20 = vadd.f32 %v2437_v5, %v2325_v49  ;;  %v2446_v52 = vpop.f32.mrf.mxu2 }
 0x4b5   : > { %v2895_v13 = vld [vmem:[#allocation4 + $0x68] sm:$0xff]  ;;  %v2328_v10 = vadd.f32 %v12636_v46, %v2096_v43 }
 0x4b6   : > { %2861 = vst.msk [vmem:[#allocation4 + $0x70] sm:$0xff] %vm1456_vm2, %v2829_v21  ;;  %9212 = vmatmul.msk.f32.gmra.mxu2 %vm1456_vm2, %v2895_v13  ;;  %v2551_v42 = vadd.f32 %v2550_v18, %v2438_v20  ;;  %v2559_v33 = vpop.f32.mrf.mxu3 }
 0x4b7   : > { %v2441_v39 = vadd.f32 %v2440_v40, %v2328_v10 }
 0x4b8   : > { %v2664_v21 = vadd.f32 %v2663_v38, %v2551_v42 }
 0x4b9   : > { %v2764_v31 = vpop.f32.mrf.mxu1 }
 0x4ba   : > { %v2765_v60 = vadd.f32 %v2764_v31, %v2652_v51  ;;  %v2669_v34 = vpop.f32.mrf.mxu0  ;;  %v2554_v31 = vadd.f32 %v2553_v58, %v2441_v39 }
 0x4bc   : > { %v2830_v47 = vmax.f32 %v2765_v60, 0.0  ;;  %9202 = vmatmul.msk.f32.gmra.mxu1 %vm2153_vm3, %v1888_v61  ;;  %v2101_v8 = vpop.permute.xlu1 %2100  ;;  %v2449_v18 = vpop.f32.mrf.mxu2  ;;  %v2667_v60 = vadd.f32 %v2666_v7, %v2554_v31 }
 0x4bd   : > { %v2896_v63 = vld [vmem:[#allocation4 + $0x70] sm:$0xff]  ;;  %v2331_v3 = vadd.f32 %v12654_v56, %v2101_v8 }
 0x4be   : > { %2862 = vst.msk [vmem:[#allocation4 + $0x78] sm:$0xff] %vm1456_vm2, %v2830_v47  ;;  %9213 = vmatmul.msk.f32.gmra.mxu2 %vm1456_vm2, %v2896_v63  ;;  %v2562_v36 = vpop.f32.mrf.mxu3 }
 0x4bf   : > { %v2444_v46 = vadd.f32 %v2443_v9, %v2331_v3 }
 0x4c1   : > { %v2767_v41 = vpop.f32.mrf.mxu1  ;;  %v2557_v38 = vadd.f32 %v2556_v37, %v2444_v46 }
 0x4c2   : > { %v2768_v23 = vadd.f32 %v2767_v41, %v2655_v59  ;;  %v2672_v51 = vpop.f32.mrf.mxu0  ;;  %v2116_v41 = vpop.permute.xlu2 %2115 }
 0x4c4   : > { %v2831_v1 = vmax.f32 %v2768_v23, 0.0  ;;  %v2106_v50 = vpop.permute.xlu1 %2105  ;;  %v2670_v23 = vadd.f32 %v2669_v34, %v2557_v38  ;;  %v2452_v58 = vpop.f32.mrf.mxu2 }
 0x4c5   : > { %v2897_v4 = vld [vmem:[#allocation4 + $0x78] sm:$0xff]  ;;  %v2334_v26 = vadd.f32 %v12672_v48, %v2106_v50  ;;  %v9237_v48 = vld [vmem:[%s18776_s9 + $0x50] sm:$0xff] }
 0x4c6   : > { %2863 = vst.msk [vmem:[#allocation4 + $0x80] sm:$0xff] %vm1456_vm2, %v2831_v1  ;;  %9214 = vmatmul.msk.f32.gmra.mxu2 %vm1456_vm2, %v2897_v4  ;;  %v2565_v4 = vpop.f32.mrf.mxu3 }
 0x4c7   : > { %v2447_v62 = vadd.f32 %v2446_v52, %v2334_v26 }
 0x4c9   : > { %v2770_v6 = vpop.f32.mrf.mxu1  ;;  %v2560_v11 = vadd.f32 %v2559_v33, %v2447_v62 }
 0x4ca   : > { %v2771_v53 = vadd.f32 %v2770_v6, %v2658_v57  ;;  %v2675_v59 = vpop.f32.mrf.mxu0  ;;  %v9238_v6 = vld [vmem:[%s18776_s9 + $0x58] sm:$0x3f] }
 0x4cb   : > { %9239 = vmatpush.msk.msra.mxu2 %vm2926_vm4, %v9238_v6  ;;  %v2673_v9 = vadd.f32 %v2672_v51, %v2560_v11 }
 0x4cc   : > { %v2832_v32 = vmax.f32 %v2771_v53, 0.0  ;;  %v2337_v53 = vadd.f32 %v12690_v24, %v2111_v0  ;;  %v2455_v43 = vpop.f32.mrf.mxu2  ;;  %v2340_v24 = vadd.f32 %v12707_v12, %v2116_v41 }
 0x4cd   : > { %v3039_v28 = vld [vmem:[#allocation4 + $0x80] sm:$0xff]  ;;  %3180 = vmatpush.msra.mxu2 %v9237_v48 }
 0x4ce   : > { %2864 = vst.msk [vmem:[#allocation4 + $0x88] sm:$0xff] %vm1456_vm2, %v2832_v32  ;;  %9228 = vmatmul.msk.f32.vlgmr.msra.gmra.mxu0 %vm1456_vm2, %v3039_v28  ;;  %v2121_v32 = vpop.permute.xlu2 %2120  ;;  %v2450_v28 = vadd.f32 %v2449_v18, %v2337_v53  ;;  %v2453_v52 = vadd.f32 %v2452_v58, %v2340_v24 }
 0x4cf   : > { %3181 = vmatpush.msra.mxu2 %v9236_v15  ;;  %v2343_v8 = vadd.f32 %v12722_v17, %v2121_v32 }
 0x4d0   : > { %v2566_v10 = vadd.f32 %v2565_v4, %v2453_v52 }
 0x4d1   : > { %v2773_v27 = vpop.f32.mrf.mxu1  ;;  %v2456_v12 = vadd.f32 %v2455_v43, %v2343_v8 }
 0x4d2   : > { %v2774_v14 = vadd.f32 %v2773_v27, %v2661_v16  ;;  %v2678_v22 = vpop.f32.mrf.mxu0  ;;  %v2563_v16 = vadd.f32 %v2562_v36, %v2450_v28  ;;  %v2568_v27 = vpop.f32.mrf.mxu3 }
 0x4d3   : > { %v2679_v51 = vadd.f32 %v2678_v22, %v2566_v10  ;;  %v2569_v18 = vadd.f32 %v2568_v27, %v2456_v12 }
 0x4d4   : > { %v2833_v29 = vmax.f32 %v2774_v14, 0.0  ;;  %v2676_v14 = vadd.f32 %v2675_v59, %v2563_v16 }
 0x4d5   : > { %v3040_v55 = vld [vmem:[#allocation4 + $0x88] sm:$0xff] }
 0x4d6   : > { %2865 = vst.msk [vmem:[#allocation4 + $0x90] sm:$0xff] %vm1456_vm2, %v2833_v29  ;;  %9229 = vmatmul.msk.f32.gmra.mxu0 %vm1456_vm2, %v3040_v55  ;;  %v2126_v33 = vpop.permute.xlu2 %2125 }
 0x4d7   : > { %v2346_v46 = vadd.f32 %v12737_v44, %v2126_v33 }
 0x4d9   : > { %v2776_v13 = vpop.f32.mrf.mxu1 }
 0x4da   : > { %v2777_v19 = vadd.f32 %v2776_v13, %v2664_v21  ;;  %v2681_v42 = vpop.f32.mrf.mxu0  ;;  %v2458_v13 = vpop.f32.mrf.mxu2 }
 0x4db   : > { %v2459_v17 = vadd.f32 %v2458_v13, %v2346_v46 }
 0x4dc   : > { %v2834_v5 = vmax.f32 %v2777_v19, 0.0  ;;  %v2571_v19 = vpop.f32.mrf.mxu3 }
 0x4dd   : > { %v3041_v61 = vld [vmem:[#allocation4 + $0x90] sm:$0xff]  ;;  %v2572_v59 = vadd.f32 %v2571_v19, %v2459_v17 }
 0x4de   : > { %2866 = vst.msk [vmem:[#allocation4 + $0x98] sm:$0xff] %vm1456_vm2, %v2834_v5  ;;  %9230 = vmatmul.msk.f32.gmra.mxu0 %vm1456_vm2, %v3041_v61 }
 0x4e1   : > { %v2779_v54 = vpop.f32.mrf.mxu1 }
 0x4e2   : > { %v2780_v47 = vadd.f32 %v2779_v54, %v2667_v60  ;;  %v2684_v61 = vpop.f32.mrf.mxu0  ;;  %v2131_v60 = vpop.permute.xlu2 %2130 }
 0x4e3   : > { %v2461_v54 = vpop.f32.mrf.mxu2  ;;  %v2349_v58 = vadd.f32 %v12749_v45, %v2131_v60 }
 0x4e4   : > { %v2835_v63 = vmax.f32 %v2780_v47, 0.0  ;;  %v2682_v47 = vadd.f32 %v2681_v42, %v2569_v18  ;;  %v2574_v38 = vpop.f32.mrf.mxu3 }
 0x4e5   : > { %v3042_v40 = vld [vmem:[#allocation4 + $0x98] sm:$0xff]  ;;  %v2462_v44 = vadd.f32 %v2461_v54, %v2349_v58 }
 0x4e6   : > { %2867 = vst.msk [vmem:[#allocation4 + $0xa0] sm:$0xff] %vm1456_vm2, %v2835_v63  ;;  %9231 = vmatmul.msk.f32.gmra.mxu0 %vm1456_vm2, %v3042_v40 }
 0x4e9   : > { %v2782_v56 = vpop.f32.mrf.mxu1 }
 0x4ea   : > { %v2783_v1 = vadd.f32 %v2782_v56, %v2670_v23  ;;  %v2687_v41 = vpop.f32.mrf.mxu0  ;;  %v2136_v23 = vpop.permute.xlu2 %2135  ;;  %v2685_v56 = vadd.f32 %v2684_v61, %v2572_v59 }
 0x4eb   : > { %v2464_v62 = vpop.f32.mrf.mxu2  ;;  %v2352_v48 = vadd.f32 %v12761_v35, %v2136_v23 }
 0x4ec   : > { %v2836_v7 = vmax.f32 %v2783_v1, 0.0  ;;  %v2577_v11 = vpop.f32.mrf.mxu3 }
 0x4ed   : > { %v3043_v57 = vld [vmem:[#allocation4 + $0xa0] sm:$0xff]  ;;  %v2465_v45 = vadd.f32 %v2464_v62, %v2352_v48 }
 0x4ee   : > { %2868 = vst.msk [vmem:[#allocation4 + $0xa8] sm:$0xff] %vm1456_vm2, %v2836_v7  ;;  %9232 = vmatmul.msk.f32.gmra.mxu0 %vm1456_vm2, %v3043_v57  ;;  %v2575_v7 = vadd.f32 %v2574_v38, %v2462_v44 }
 0x4f0   : > { %v2688_v22 = vadd.f32 %v2687_v41, %v2575_v7 }
 0x4f1   : > { %v2785_v37 = vpop.f32.mrf.mxu1 }
 0x4f2   : > { %v2786_v49 = vadd.f32 %v2785_v37, %v2673_v9  ;;  %v2690_v6 = vpop.f32.mrf.mxu0  ;;  %v2141_v53 = vpop.permute.xlu2 %2140  ;;  %v2578_v37 = vadd.f32 %v2577_v11, %v2465_v45 }
 0x4f3   : > { %v2467_v32 = vpop.f32.mrf.mxu2  ;;  %v2355_v16 = vadd.f32 %v12773_v2, %v2141_v53 }
 0x4f4   : > { %v2837_v34 = vmax.f32 %v2786_v49, 0.0  ;;  %v2580_v49 = vpop.f32.mrf.mxu3 }
 0x4f5   : > { %v3044_v20 = vld [vmem:[#allocation4 + $0xa8] sm:$0xff]  ;;  %v2468_v35 = vadd.f32 %v2467_v32, %v2355_v16 }
 0x4f6   : > { %2869 = vst.msk [vmem:[#allocation4 + $0xb0] sm:$0xff] %vm1456_vm2, %v2837_v34  ;;  %9233 = vmatmul.msk.f32.gmra.mxu0 %vm1456_vm2, %v3044_v20  ;;  %v2691_v34 = vadd.f32 %v2690_v6, %v2578_v37 }
 0x4f7   : > { %v2581_v42 = vadd.f32 %v2580_v49, %v2468_v35 }
 0x4f9   : > { %v2788_v29 = vpop.f32.mrf.mxu1 }
 0x4fa   : > { %v2789_v55 = vadd.f32 %v2788_v29, %v2676_v14  ;;  %v2693_v27 = vpop.f32.mrf.mxu0  ;;  %v2146_v14 = vpop.permute.xlu2 %2145 }
 0x4fb   : > { %v2470_v52 = vpop.f32.mrf.mxu2  ;;  %v2358_v10 = vadd.f32 %v12795_v25, %v2146_v14 }
 0x4fc   : > { %v2838_v21 = vmax.f32 %v2789_v55, 0.0  ;;  %v2583_v33 = vpop.f32.mrf.mxu3 }
 0x4fd   : > { %v3045_v39 = vld [vmem:[#allocation4 + $0xb0] sm:$0xff]  ;;  %v2471_v2 = vadd.f32 %v2470_v52, %v2358_v10 }
 0x4fe   : > { %2870 = vst.msk [vmem:[#allocation4 + $0xb8] sm:$0xff] %vm1456_vm2, %v2838_v21  ;;  %9234 = vmatmul.msk.f32.gmra.mxu0 %vm1456_vm2, %v3045_v39  ;;  %v2694_v21 = vadd.f32 %v2693_v27, %v2581_v42 }
 0x4ff   : > { %v2584_v8 = vadd.f32 %v2583_v33, %v2471_v2 }
 0x501   : > { %v2791_v31 = vpop.f32.mrf.mxu1 }
 0x502   : > { %v2792_v5 = vadd.f32 %v2791_v31, %v2679_v51  ;;  %v2696_v19 = vpop.f32.mrf.mxu0  ;;  %v2151_v31 = vpop.permute.xlu2 %2150 }
 0x503   : > { %v2361_v61 = vadd.f32 %v12804_v30, %v2151_v31  ;;  %v2697_v18 = vadd.f32 %v2696_v19, %v2584_v8 }
 0x504   : > { %v2839_v3 = vmax.f32 %v2792_v5, 0.0  ;;  %v2473_v5 = vpop.f32.mrf.mxu2 }
 0x505   : > { %v3046_v36 = vld [vmem:[#allocation4 + $0xb8] sm:$0xff]  ;;  %v2474_v25 = vadd.f32 %v2473_v5, %v2361_v61 }
 0x506   : > { %2871 = vst.msk [vmem:[#allocation4 + $0xc0] sm:$0xff] %vm1456_vm2, %v2839_v3  ;;  %9235 = vmatmul.msk.f32.gmra.mxu0 %vm1456_vm2, %v3046_v36  ;;  %v2586_v3 = vpop.f32.mrf.mxu3 }
 0x507   : > { %v2587_v54 = vadd.f32 %v2586_v3, %v2474_v25 }
 0x509   : > { %v2794_v63 = vpop.f32.mrf.mxu1 }
 0x50a   : > { %v2795_v50 = vadd.f32 %v2794_v63, %v2682_v47  ;;  %v2699_v47 = vpop.f32.mrf.mxu0 }
 0x50b   : > { %v2700_v63 = vadd.f32 %v2699_v47, %v2587_v54 }
 0x50c   : > { %v2840_v40 = vmax.f32 %v2795_v50, 0.0 }
 0x50d   : > { %v3127_v26 = vld [vmem:[#allocation4 + $0xc0] sm:$0xff] }
 0x50e   : > { %2872 = vst.msk [vmem:[#allocation4 + $0xc8] sm:$0xff] %vm1456_vm2, %v2840_v40  ;;  %9240 = vmatmul.msk.f32.vlgmr.msra.gmra.mxu2 %vm1456_vm2, %v3127_v26 }
 0x511   : > { %v2797_v1 = vpop.f32.mrf.mxu1  ;;  %v2947_v30 = vpop.f32.mrf.mxu2 }
 0x512   : > { %v2798_v4 = vadd.f32 %v2797_v1, %v2685_v56  ;;  %v3015_v1 = vpop.f32.mrf.mxu3 }
 0x514   : > { %v2841_v0 = vmax.f32 %v2798_v4, 0.0 }
 0x515   : > { %v3128_v57 = vld [vmem:[#allocation4 + $0xc8] sm:$0xff] }
 0x516   : > { %2873 = vst.msk [vmem:[#allocation4 + $0xd0] sm:$0xff] %vm1456_vm2, %v2841_v0  ;;  %9241 = vmatmul.msk.f32.gmra.mxu2 %vm1456_vm2, %v3128_v57  ;;  %v3016_v57 = vadd.f32 %v3015_v1, %v2947_v30 }
 0x519   : > { %v2800_v9 = vpop.f32.mrf.mxu1  ;;  %v2950_v26 = vpop.f32.mrf.mxu2 }
 0x51a   : > { %v2801_v15 = vadd.f32 %v2800_v9, %v2688_v22  ;;  %v3018_v11 = vpop.f32.mrf.mxu3 }
 0x51b   : > { %v3019_v45 = vadd.f32 %v3018_v11, %v2950_v26 }
 0x51c   : > { %v2842_v28 = vmax.f32 %v2801_v15, 0.0 }
 0x51d   : > { %v3129_v43 = vld [vmem:[#allocation4 + $0xd0] sm:$0xff] }
 0x51e   : > { %2874 = vst.msk [vmem:[#allocation4 + $0xd8] sm:$0xff] %vm1456_vm2, %v2842_v28  ;;  %9242 = vmatmul.msk.f32.gmra.mxu2 %vm1456_vm2, %v3129_v43 }
 0x521   : > { %v2803_v20 = vpop.f32.mrf.mxu1  ;;  %v2953_v23 = vpop.f32.mrf.mxu2 }
 0x522   : > { %v2804_v24 = vadd.f32 %v2803_v20, %v2691_v34  ;;  %v3021_v22 = vpop.f32.mrf.mxu3 }
 0x523   : > { %v3022_v43 = vadd.f32 %v3021_v22, %v2953_v23 }
 0x524   : > { %v2843_v29 = vmax.f32 %v2804_v24, 0.0 }
 0x525   : > { %v3130_v55 = vld [vmem:[#allocation4 + $0xd8] sm:$0xff] }
 0x526   : > { %2875 = vst.msk [vmem:[#allocation4 + $0xe0] sm:$0xff] %vm1456_vm2, %v2843_v29  ;;  %9243 = vmatmul.msk.f32.gmra.mxu2 %vm1456_vm2, %v3130_v55 }
 0x529   : > { %v2806_v13 = vpop.f32.mrf.mxu1  ;;  %v2956_v58 = vpop.f32.mrf.mxu2 }
 0x52a   : > { %v2807_v39 = vadd.f32 %v2806_v13, %v2694_v21  ;;  %v3024_v28 = vpop.f32.mrf.mxu3 }
 0x52b   : > { %v3025_v35 = vadd.f32 %v3024_v28, %v2956_v58 }
 0x52c   : > { %v2844_v51 = vmax.f32 %v2807_v39, 0.0 }
 0x52d   : > { %v3131_v12 = vld [vmem:[#allocation4 + $0xe0] sm:$0xff] }
 0x52e   : > { %2876 = vst.msk [vmem:[#allocation4 + $0xe8] sm:$0xff] %vm1456_vm2, %v2844_v51  ;;  %9244 = vmatmul.msk.f32.gmra.mxu2 %vm1456_vm2, %v3131_v12 }
 0x531   : > { %v2809_v60 = vpop.f32.mrf.mxu1  ;;  %v2959_v56 = vpop.f32.mrf.mxu2 }
 0x532   : > { %v2810_v36 = vadd.f32 %v2809_v60, %v2697_v18  ;;  %v3027_v20 = vpop.f32.mrf.mxu3 }
 0x533   : > { %v3028_v52 = vadd.f32 %v3027_v20, %v2959_v56 }
 0x534   : > { %v2845_v46 = vmax.f32 %v2810_v36, 0.0 }
 0x535   : > { %v3132_v38 = vld [vmem:[#allocation4 + $0xe8] sm:$0xff] }
 0x536   : > { %2877 = vst.msk [vmem:[#allocation4 + $0xf0] sm:$0xff] %vm1456_vm2, %v2845_v46  ;;  %9245 = vmatmul.msk.f32.gmra.mxu2 %vm1456_vm2, %v3132_v38 }
 0x539   : > { %v2812_v17 = vpop.f32.mrf.mxu1  ;;  %v2962_v62 = vpop.f32.mrf.mxu2 }
 0x53a   : > { %v2813_v50 = vadd.f32 %v2812_v17, %v2700_v63  ;;  %v3030_v55 = vpop.f32.mrf.mxu3 }
 0x53b   : > { %v3031_v2 = vadd.f32 %v3030_v55, %v2962_v62  ;;  %v3645_v55 = vld [vmem:[%s18778_s11 + $0x28] sm:$0xff] }
 0x53c   : > { %v2846_v59 = vmax.f32 %v2813_v50, 0.0 }
 0x53d   : > { %v3133_v40 = vld [vmem:[#allocation4 + $0xf0] sm:$0xff] }
 0x53e   : > { %2878 = vst.msk [vmem:[#allocation4 + $0xf8] sm:$0xff] %vm1456_vm2, %v2846_v59  ;;  %9246 = vmatmul.msk.f32.gmra.mxu2 %vm1456_vm2, %v3133_v40 }
 0x541   : > { %v2965_v44 = vpop.f32.mrf.mxu2 }
 0x542   : > { %v3033_v51 = vpop.f32.mrf.mxu3 }
 0x543   : > { %v3034_v12 = vadd.f32 %v3033_v51, %v2965_v44 }
 0x545   : > { %v3134_v41 = vld [vmem:[#allocation4 + $0xf8] sm:$0xff] }
 0x546   : > { %9247 = vmatmul.msk.f32.gmra.mxu2 %vm1456_vm2, %v3134_v41 }
 0x549   : > { %v2968_v7 = vpop.f32.mrf.mxu2 }
 0x54a   : > { %v3036_v3 = vpop.f32.mrf.mxu3 }
 0x54b   : > { %v3095_v4 = vpop.f32.mrf.mxu0  ;;  %v3037_v25 = vadd.f32 %v3036_v3, %v2968_v7 }
 0x54c   : > { %v3119_v6 = vadd.f32 %v3095_v4, %v3016_v57 }
 0x553   : > { %v3098_v0 = vpop.f32.mrf.mxu0 }
 0x554   : > { %v3120_v15 = vadd.f32 %v3098_v0, %v3019_v45 }
 0x55b   : > { %v3101_v9 = vpop.f32.mrf.mxu0 }
 0x55c   : > { %v3121_v16 = vadd.f32 %v3101_v9, %v3022_v43 }
 0x563   : > { %v3104_v49 = vpop.f32.mrf.mxu0 }
 0x564   : > { %v3122_v14 = vadd.f32 %v3104_v49, %v3025_v35 }
 0x56b   : > { %v3107_v24 = vpop.f32.mrf.mxu0 }
 0x56c   : > { %v3123_v33 = vadd.f32 %v3107_v24, %v3028_v52 }
 0x573   : > { %v3110_v10 = vpop.f32.mrf.mxu0 }
 0x574   : > { %v3124_v39 = vadd.f32 %v3110_v10, %v3031_v2 }
 0x57b   : > { %v3113_v31 = vpop.f32.mrf.mxu0 }
 0x57c   : > { %v3125_v5 = vadd.f32 %v3113_v31, %v3034_v12  ;;  %v3640_v31 = vld [vmem:[%s18778_s11] sm:$0xff] }
 0x57d   : > { %v3488_v12 = vld [vmem:[%s18777_s10] sm:$0xff] }
 0x583   : > { %v3116_v60 = vpop.f32.mrf.mxu0 }
 0x584   : > { %v3126_v36 = vadd.f32 %v3116_v60, %v3037_v25 }
 0x591   : > { %v3183_v48 = vpop.f32.mrf.mxu2 }
 0x592   : > { %v13095_v53 = vadd.f32 %v3183_v48, %v3119_v6 }
 0x594   : > { %3216 = vst.msk [vmem:[#allocation3] sm:$0xff] %vm3215_vm5, %v13095_v53 }
 0x599   : > { %v3186_v32 = vpop.f32.mrf.mxu2 }
 0x59a   : > { %v13099_v37 = vadd.f32 %v3186_v32, %v3120_v15 }
 0x59c   : > { %3234 = vrot.lane.b32.xlu0 %v13099_v37, %s10690_s27  ;;  %3217 = vst.msk [vmem:[#allocation3 + $0x8] sm:$0xff] %vm3215_vm5, %v13099_v37 }
 0x5a1   : > { %v3189_v34 = vpop.f32.mrf.mxu2 }
 0x5a2   : > { %v13105_v27 = vadd.f32 %v3189_v34, %v3121_v16 }
 0x5a4   : > { %3236 = vrot.lane.b32.xlu1 %v13105_v27, %s10690_s27  ;;  %3218 = vst.msk [vmem:[#allocation3 + $0x10] sm:$0xff] %vm3215_vm5, %v13105_v27 }
 0x5a9   : > { %v3192_v42 = vpop.f32.mrf.mxu2 }
 0x5aa   : > { %v13111_v29 = vadd.f32 %v3192_v42, %v3122_v14 }
 0x5ac   : > { %3238 = vrot.lane.b32.xlu2 %v13111_v29, %s10690_s27  ;;  %3219 = vst.msk [vmem:[#allocation3 + $0x18] sm:$0xff] %vm3215_vm5, %v13111_v29 }
 0x5b1   : > { %v3195_v21 = vpop.f32.mrf.mxu2 }
 0x5b2   : > { %v13117_v13 = vadd.f32 %v3195_v21, %v3123_v33 }
 0x5b4   : > { %3240 = vrot.lane.b32.xlu1 %v13117_v13, %s10690_s27  ;;  %3220 = vst.msk [vmem:[#allocation3 + $0x20] sm:$0xff] %vm3215_vm5, %v13117_v13 }
 0x5b9   : > { %v3198_v19 = vpop.f32.mrf.mxu2 }
 0x5ba   : > { %v13123_v8 = vadd.f32 %v3198_v19, %v3124_v39  ;;  %v3570_v19 = vld [vmem:[#allocation3 + $0x10] sm:$0xff] }
 0x5bb   : > { %v3572_v33 = vld [vmem:[#allocation3 + $0x20] sm:$0xff] }
 0x5bc   : > { %3242 = vrot.lane.b32.xlu0 %v13123_v8, %s10690_s27  ;;  %3221 = vst.msk [vmem:[#allocation3 + $0x28] sm:$0xff] %vm3215_vm5, %v13123_v8 }
 0x5c1   : > { %v3201_v61 = vpop.f32.mrf.mxu2 }
 0x5c2   : > { %v13129_v18 = vadd.f32 %v3201_v61, %v3125_v5  ;;  %v3568_v5 = vld [vmem:[#allocation3] sm:$0xff] }
 0x5c3   : > { %v3573_v52 = vld [vmem:[#allocation3 + $0x28] sm:$0xff] }
 0x5c4   : > { %3244 = vrot.lane.b32.xlu2 %v13129_v18, %s10690_s27  ;;  %3304 = vrot.lane.b32.xlu0 %v13117_v13, %s10699_s18  ;;  %3222 = vst.msk [vmem:[#allocation3 + $0x30] sm:$0xff] %vm3215_vm5, %v13129_v18 }
 0x5c9   : > { %v3204_v54 = vpop.f32.mrf.mxu2 }
 0x5ca   : > { %v13136_v46 = vadd.f32 %v3204_v54, %v3126_v36  ;;  %v3647_v36 = vld [vmem:[%s18778_s11 + $0x38] sm:$0xff] }
 0x5cb   : > { %v3574_v14 = vld [vmem:[#allocation3 + $0x30] sm:$0xff] }
 0x5cc   : > { %3308 = vrot.lane.b32.xlu2 %v13129_v18, %s10699_s18  ;;  %3246 = vrot.lane.b32.xlu1 %v13136_v46, %s10690_s27  ;;  %3223 = vst.msk [vmem:[#allocation3 + $0x38] sm:$0xff] %vm3215_vm5, %v13136_v46 }
 0x5cd   : > { %3310 = vrot.lane.b32.xlu0 %v13136_v46, %s10699_s18 }
 0x5d3   : > { %v3575_v20 = vld [vmem:[#allocation3 + $0x38] sm:$0xff] }
 0x5d4   : > { %3306 = vrot.lane.b32.xlu1 %v13123_v8, %s10699_s18  ;;  %3232 = vrot.lane.b32.xlu2 %v13095_v53, %s10690_s27 }
 0x5d5   : > { %3298 = vrot.lane.b32.xlu0 %v13099_v37, %s10699_s18 }
 0x5dc   : > { %3302 = vrot.lane.b32.xlu1 %v13111_v29, %s10699_s18  ;;  %3300 = vrot.lane.b32.xlu2 %v13105_v27, %s10699_s18 }
 0x5dd   : > { %3276 = vrot.lane.b32.xlu0 %v13129_v18, %s10693_s30 }
 0x5e4   : > { %3296 = vrot.lane.b32.xlu1 %v13095_v53, %s10699_s18  ;;  %3278 = vrot.lane.b32.xlu2 %v13136_v46, %s10693_s30  ;;  %s10710_s18 = smov 91  }
 0x5e5   : > { %3270 = vrot.lane.b32.xlu0 %v13111_v29, %s10693_s30 }
 0x5ec   : > { %3274 = vrot.lane.b32.xlu1 %v13123_v8, %s10693_s30  ;;  %3272 = vrot.lane.b32.xlu2 %v13117_v13, %s10693_s30 }
 0x5ed   : > { %3264 = vrot.lane.b32.xlu0 %v13095_v53, %s10693_s30 }
 0x5f4   : > { %3268 = vrot.lane.b32.xlu1 %v13105_v27, %s10693_s30  ;;  %3266 = vrot.lane.b32.xlu2 %v13099_v37, %s10693_s30 }
 0x5f5   : > { %3368 = vrot.lane.b32.xlu0 %v13117_v13, %s10695_s17 }
 0x5fc   : > { %3370 = vrot.lane.b32.xlu1 %v13123_v8, %s10695_s17  ;;  %3372 = vrot.lane.b32.xlu2 %v13129_v18, %s10695_s17 }
 0x5fd   : > { %3432 = vrot.lane.b32.xlu0 %v13117_v13, %s10700_s20 }
 0x604   : > { %3434 = vrot.lane.b32.xlu1 %v13123_v8, %s10700_s20  ;;  %3436 = vrot.lane.b32.xlu2 %v13129_v18, %s10700_s20 }
 0x605   : > { %3362 = vrot.lane.b32.xlu0 %v13099_v37, %s10695_s17 }
 0x606   : > { %v3239_v47 = vpop.permute.xlu2 %3238 }
 0x607   : > { %3259 = vst.msk [vmem:[#allocation3 + $0x58] sm:$0xff] %vm3215_vm5, %v3239_v47  ;;  %v3493_v47 = vld [vmem:[%s18777_s10 + $0x28] sm:$0xff] }
 0x60c   : > { %3364 = vrot.lane.b32.xlu1 %v13105_v27, %s10695_s17  ;;  %3366 = vrot.lane.b32.xlu2 %v13111_v29, %s10695_s17 }
 0x60d   : > { %3426 = vrot.lane.b32.xlu0 %v13099_v37, %s10700_s20 }
 0x60e   : > { %v3235_v38 = vpop.permute.xlu0 %3234  ;;  %v3579_v9 = vld [vmem:[#allocation3 + $0x58] sm:$0xff] }
 0x60f   : > { %3257 = vst.msk [vmem:[#allocation3 + $0x48] sm:$0xff] %vm3215_vm5, %v3235_v38 }
 0x614   : > { %3428 = vrot.lane.b32.xlu1 %v13105_v27, %s10700_s20  ;;  %3430 = vrot.lane.b32.xlu2 %v13111_v29, %s10700_s20 }
 0x615   : > { %3340 = vrot.lane.b32.xlu0 %v13129_v18, %s10701_s23 }
 0x616   : > { %v3237_v63 = vpop.permute.xlu1 %3236  ;;  %v3577_v49 = vld [vmem:[#allocation3 + $0x48] sm:$0xff] }
 0x617   : > { %3258 = vst.msk [vmem:[#allocation3 + $0x50] sm:$0xff] %vm3215_vm5, %v3237_v63 }
 0x61c   : > { %3336 = vrot.lane.b32.xlu1 %v13117_v13, %s10701_s23  ;;  %3360 = vrot.lane.b32.xlu2 %v13095_v53, %s10695_s17 }
 0x61d   : > { %3404 = vrot.lane.b32.xlu0 %v13129_v18, %s10702_s24 }
 0x61e   : > { %v3245_v17 = vpop.permute.xlu2 %3244  ;;  %v3578_v32 = vld [vmem:[#allocation3 + $0x50] sm:$0xff] }
 0x61f   : > { %3262 = vst.msk [vmem:[#allocation3 + $0x70] sm:$0xff] %vm3215_vm5, %v3245_v17 }
 0x624   : > { %3400 = vrot.lane.b32.xlu1 %v13117_v13, %s10702_s24  ;;  %3424 = vrot.lane.b32.xlu2 %v13095_v53, %s10700_s20 }
 0x625   : > { %3334 = vrot.lane.b32.xlu0 %v13111_v29, %s10701_s23 }
 0x626   : > { %v3309_v50 = vpop.permute.xlu2 %3308  ;;  %v3241_v59 = vpop.permute.xlu1 %3240  ;;  %v3582_v7 = vld [vmem:[#allocation3 + $0x70] sm:$0xff] }
 0x627   : > { %3326 = vst.msk [vmem:[#allocation3 + $0xf0] sm:$0xff] %vm3215_vm5, %v3309_v50 }
 0x628   : > { %3260 = vst.msk [vmem:[#allocation3 + $0x60] sm:$0xff] %vm3215_vm5, %v3241_v59 }
 0x62c   : > { %3374 = vrot.lane.b32.xlu1 %v13136_v46, %s10695_s17  ;;  %3338 = vrot.lane.b32.xlu2 %v13123_v8, %s10701_s23  ;;  %s10708_s17 = smov 109  }
 0x62d   : > { %3438 = vrot.lane.b32.xlu0 %v13136_v46, %s10700_s20 }
 0x62e   : > { %v3243_v40 = vpop.permute.xlu0 %3242  ;;  %v3233_v30 = vpop.permute.xlu2 %3232  ;;  %v3598_v0 = vld [vmem:[#allocation3 + $0xf0] sm:$0xff] }
 0x62f   : > { %3261 = vst.msk [vmem:[#allocation3 + $0x68] sm:$0xff] %vm3215_vm5, %v3243_v40  ;;  %v3580_v6 = vld [vmem:[#allocation3 + $0x60] sm:$0xff]  ;;  %v3641_v40 = vld [vmem:[%s18778_s11 + $0x8] sm:$0xff] }
 0x630   : > { %3256 = vst.msk [vmem:[#allocation3 + $0x40] sm:$0xff] %vm3215_vm5, %v3233_v30  ;;  %v3642_v30 = vld [vmem:[%s18778_s11 + $0x10] sm:$0xff] }
 0x634   : > { %3468 = vrot.lane.b32.xlu1 %v13129_v18, %s10703_s25  ;;  %3402 = vrot.lane.b32.xlu2 %v13123_v8, %s10702_s24 }
 0x635   : > { %3398 = vrot.lane.b32.xlu0 %v13111_v29, %s10702_s24 }
 0x636   : > { %v3305_v41 = vpop.permute.xlu0 %3304  ;;  %v3301_v26 = vpop.permute.xlu2 %3300  ;;  %v3581_v57 = vld [vmem:[#allocation3 + $0x68] sm:$0xff] }
 0x637   : > { %3324 = vst.msk [vmem:[#allocation3 + $0xe0] sm:$0xff] %vm3215_vm5, %v3305_v41  ;;  %v3576_v43 = vld [vmem:[#allocation3 + $0x40] sm:$0xff] }
 0x638   : > { %3322 = vst.msk [vmem:[#allocation3 + $0xd0] sm:$0xff] %vm3215_vm5, %v3301_v26  ;;  %v3650_v26 = vld [vmem:[%s18778_s11 + $0x50] sm:$0xff] }
 0x63c   : > { %3466 = vrot.lane.b32.xlu1 %v13123_v8, %s10703_s25  ;;  %3332 = vrot.lane.b32.xlu2 %v13105_v27, %s10701_s23 }
 0x63d   : > { %3396 = vrot.lane.b32.xlu0 %v13105_v27, %s10702_s24 }
 0x63e   : > { %v3247_v23 = vpop.permute.xlu1 %3246  ;;  %v3279_v58 = vpop.permute.xlu2 %3278  ;;  %v3596_v28 = vld [vmem:[#allocation3 + $0xe0] sm:$0xff] }
 0x63f   : > { %3263 = vst.msk [vmem:[#allocation3 + $0x78] sm:$0xff] %vm3215_vm5, %v3247_v23  ;;  %v3311_v56 = vpop.permute.xlu0 %3310  ;;  %v3594_v42 = vld [vmem:[#allocation3 + $0xd0] sm:$0xff]  ;;  %v3489_v23 = vld [vmem:[%s18777_s10 + $0x8] sm:$0xff] }
 0x640   : > { %3327 = vst.msk [vmem:[#allocation3 + $0xf8] sm:$0xff] %vm3215_vm5, %v3311_v56 }
 0x641   : > { %3295 = vst.msk [vmem:[#allocation3 + $0xb8] sm:$0xff] %vm3215_vm5, %v3279_v58  ;;  %v3498_v58 = vld [vmem:[%s18777_s10 + $0x50] sm:$0xff] }
 0x644   : > { %3342 = vrot.lane.b32.xlu1 %v13136_v46, %s10701_s23  ;;  %3330 = vrot.lane.b32.xlu2 %v13099_v37, %s10701_s23 }
 0x645   : > { %3394 = vrot.lane.b32.xlu0 %v13099_v37, %s10702_s24 }
 0x646   : > { %v3307_v62 = vpop.permute.xlu1 %3306  ;;  %v3273_v1 = vpop.permute.xlu2 %3272  ;;  %v3583_v44 = vld [vmem:[#allocation3 + $0x78] sm:$0xff] }
 0x647   : > { %3325 = vst.msk [vmem:[#allocation3 + $0xe8] sm:$0xff] %vm3215_vm5, %v3307_v62  ;;  %v3299_v4 = vpop.permute.xlu0 %3298  ;;  %3784 = vmatpush.msra.mxu3 %v3583_v44  ;;  %v3599_v11 = vld [vmem:[#allocation3 + $0xf8] sm:$0xff]  ;;  %v3648_v44 = vld [vmem:[%s18778_s11 + $0x40] sm:$0xff] }
 0x648   : > { %3321 = vst.msk [vmem:[#allocation3 + $0xc8] sm:$0xff] %vm3215_vm5, %v3299_v4  ;;  %3849 = vmatpush.msrb.mxu0 %v3599_v11  ;;  %v3591_v8 = vld [vmem:[#allocation3 + $0xb8] sm:$0xff]  ;;  %v3649_v4 = vld [vmem:[%s18778_s11 + $0x48] sm:$0xff] }
 0x649   : > { %3292 = vst.msk [vmem:[#allocation3 + $0xa0] sm:$0xff] %vm3215_vm5, %v3273_v1  ;;  %3785 = vmatpush.msra.mxu3 %v3582_v7  ;;  %v3653_v11 = vld [vmem:[%s18778_s11 + $0x68] sm:$0xff]  ;;  %v3494_v7 = vld [vmem:[%s18777_s10 + $0x30] sm:$0xff] }
 0x64a   : > { %3850 = vmatpush.msrb.mxu0 %v3598_v0  ;;  %v3503_v0 = vld [vmem:[%s18777_s10 + $0x78] sm:$0xff] }
 0x64b   : > { %3786 = vmatpush.msra.mxu3 %v3581_v57 }
 0x64c   : > { %3406 = vrot.lane.b32.xlu1 %v13136_v46, %s10702_s24  ;;  %3328 = vrot.lane.b32.xlu2 %v13095_v53, %s10701_s23  ;;  %s10706_s23 = smov 64  }
 0x64d   : > { %3464 = vrot.lane.b32.xlu0 %v13117_v13, %s10703_s25  ;;  %3787 = vmatpush.msra.mxu3 %v3580_v6  ;;  %v3571_v13 = vld [vmem:[#allocation3 + $0x18] sm:$0xff] }
 0x64e   : > { %v3303_v48 = vpop.permute.xlu1 %3302  ;;  %v3267_v22 = vpop.permute.xlu2 %3266  ;;  %v3597_v45 = vld [vmem:[#allocation3 + $0xe8] sm:$0xff] }
 0x64f   : > { %3323 = vst.msk [vmem:[#allocation3 + $0xd8] sm:$0xff] %vm3215_vm5, %v3303_v48  ;;  %v3277_v15 = vpop.permute.xlu0 %3276  ;;  %3788 = vmatpush.msra.mxu3 %v3579_v9  ;;  %3851 = vmatpush.msrb.mxu0 %v3597_v45  ;;  %v3652_v9 = vld [vmem:[%s18778_s11 + $0x60] sm:$0xff]  ;;  %v3499_v45 = vld [vmem:[%s18777_s10 + $0x58] sm:$0xff] }
 0x650   : > { %3294 = vst.msk [vmem:[#allocation3 + $0xb0] sm:$0xff] %vm3215_vm5, %v3277_v15  ;;  %v3588_v25 = vld [vmem:[#allocation3 + $0xa0] sm:$0xff] }
 0x651   : > { %3289 = vst.msk [vmem:[#allocation3 + $0x88] sm:$0xff] %vm3215_vm5, %v3267_v22  ;;  %3789 = vmatpush.msra.mxu3 %v3578_v32  ;;  %3852 = vmatpush.msrb.mxu0 %v3596_v28  ;;  %v3651_v22 = vld [vmem:[%s18778_s11 + $0x58] sm:$0xff]  ;;  %v3508_v15 = vld [vmem:[%s18777_s10 + $0xa0] sm:$0xff] }
 0x653   : > { %3790 = vmatpush.msra.mxu3 %v3577_v49 }
 0x654   : > { %3470 = vrot.lane.b32.xlu1 %v13136_v46, %s10703_s25  ;;  %3392 = vrot.lane.b32.xlu2 %v13095_v53, %s10702_s24  ;;  %v3643_v46 = vld [vmem:[%s18778_s11 + $0x18] sm:$0xff] }
 0x655   : > { %3458 = vrot.lane.b32.xlu0 %v13099_v37, %s10703_s25  ;;  %3791 = vmatpush.msra.mxu3 %v3576_v43  ;;  %v3593_v37 = vld [vmem:[#allocation3 + $0xc8] sm:$0xff]  ;;  %v3654_v43 = vld [vmem:[%s18778_s11 + $0x70] sm:$0xff] }
 0x656   : > { %v3297_v16 = vpop.permute.xlu1 %3296  ;;  %v3373_v34 = vpop.permute.xlu2 %3372  ;;  %v3595_v35 = vld [vmem:[#allocation3 + $0xd8] sm:$0xff] }
 0x657   : > { %v3271_v24 = vpop.permute.xlu0 %3270  ;;  %3320 = vst.msk [vmem:[#allocation3 + $0xc0] sm:$0xff] %vm3215_vm5, %v3297_v16  ;;  %3792 = vmatpush.msra.mxu3 %v3575_v20  ;;  %3853 = vmatpush.msrb.mxu0 %v3595_v35  ;;  %v3590_v51 = vld [vmem:[#allocation3 + $0xb0] sm:$0xff]  ;;  %v3655_v16 = vld [vmem:[%s18778_s11 + $0x78] sm:$0xff]  ;;  %v3513_v20 = vld [vmem:[%s18777_s10 + $0xc8] sm:$0xff] }
 0x658   : > { %3291 = vst.msk [vmem:[#allocation3 + $0x98] sm:$0xff] %vm3215_vm5, %v3271_v24  ;;  %v3585_v59 = vld [vmem:[#allocation3 + $0x88] sm:$0xff] }
 0x659   : > { %3390 = vst.msk [vmem:[#allocation3 + $0x170] sm:$0xff] %vm3215_vm5, %v3373_v34  ;;  %3793 = vmatpush.msra.mxu3 %v3574_v14  ;;  %3854 = vmatpush.msrb.mxu0 %v3594_v42  ;;  %v3504_v34 = vld [vmem:[%s18777_s10 + $0x80] sm:$0xff]  ;;  %v3509_v42 = vld [vmem:[%s18777_s10 + $0xa8] sm:$0xff] }
 0x65b   : > { %3794 = vmatpush.msra.mxu3 %v3573_v52  ;;  %3855 = vmatpush.msrb.mxu0 %v3593_v37  ;;  %v3518_v52 = vld [vmem:[%s18777_s10 + $0xf0] sm:$0xff] }
 0x65c   : > { %3462 = vrot.lane.b32.xlu1 %v13111_v29, %s10703_s25  ;;  %3460 = vrot.lane.b32.xlu2 %v13105_v27, %s10703_s25  ;;  %v3644_v27 = vld [vmem:[%s18778_s11 + $0x20] sm:$0xff]  ;;  %v3569_v29 = vld [vmem:[#allocation3 + $0x8] sm:$0xff] }
 0x65d   : > { %3683 = vperm.xlu0 %10441, %v3645_v55   ;;  %3795 = vmatpush.msra.mxu3 %v3572_v33 }
 0x65e   : > { %v3275_v10 = vpop.permute.xlu1 %3274  ;;  %v3437_v21 = vpop.permute.xlu2 %3436  ;;  %v3592_v2 = vld [vmem:[#allocation3 + $0xc0] sm:$0xff] }
 0x65f   : > { %v3265_v39 = vpop.permute.xlu0 %3264  ;;  %3293 = vst.msk [vmem:[#allocation3 + $0xa8] sm:$0xff] %vm3215_vm5, %v3275_v10  ;;  %3796 = vmatpush.msra.mxu3 %v3571_v13  ;;  %3856 = vmatpush.msrb.mxu0 %v3592_v2  ;;  %v3587_v54 = vld [vmem:[#allocation3 + $0x98] sm:$0xff]  ;;  %v3514_v10 = vld [vmem:[%s18777_s10 + $0xd0] sm:$0xff] }
 0x660   : > { %3288 = vst.msk [vmem:[#allocation3 + $0x80] sm:$0xff] %vm3215_vm5, %v3265_v39 }
 0x661   : > { %3454 = vst.msk [vmem:[#allocation3 + $0x1f0] sm:$0xff] %vm3215_vm5, %v3437_v21  ;;  %3797 = vmatpush.msra.mxu3 %v3570_v19  ;;  %3857 = vmatpush.msrb.mxu0 %v3591_v8  ;;  %v3523_v21 = vld [vmem:[%s18777_s10 + $0x118] sm:$0xff]  ;;  %v3528_v8 = vld [vmem:[%s18777_s10 + $0x140] sm:$0xff] }
 0x662   : > { %v3519_v19 = vld [vmem:[%s18777_s10 + $0xf8] sm:$0xff] }
 0x663   : > { %3798 = vmatpush.msra.mxu3 %v3569_v29  ;;  %3858 = vmatpush.msrb.mxu0 %v3590_v51 }
 0x664   : > { %3456 = vrot.lane.b32.xlu1 %v13095_v53, %s10703_s25  ;;  %3678 = vperm.xlu2 %10440, %v3644_v27   ;;  %v3646_v53 = vld [vmem:[%s18778_s11 + $0x30] sm:$0xff]  ;;  %s10707_s25 = smov 110  }
 0x665   : > { %3658 = vperm.xlu0 %10441, %v3640_v31   ;;  %3799 = vmatpush.msra.mxu3 %v3568_v5  ;;  %v3614_v5 = vld [vmem:[#allocation3 + $0x170] sm:$0xff] }
 0x666   : > { %v3269_v61 = vpop.permute.xlu1 %3268  ;;  %v3367_v18 = vpop.permute.xlu2 %3366  ;;  %3800 = vmatmul.f32.vlgmr.msra.gmra.mxu3 %v3488_v12  ;;  %v3589_v3 = vld [vmem:[#allocation3 + $0xa8] sm:$0xff] }
 0x667   : > { %v3369_v60 = vpop.permute.xlu0 %3368  ;;  %3290 = vst.msk [vmem:[#allocation3 + $0x90] sm:$0xff] %vm3215_vm5, %v3269_v61  ;;  %3859 = vmatpush.msrb.mxu0 %v3589_v3  ;;  %v3584_v41 = vld [vmem:[#allocation3 + $0x80] sm:$0xff] }
 0x668   : > { %3388 = vst.msk [vmem:[#allocation3 + $0x160] sm:$0xff] %vm3215_vm5, %v3369_v60  ;;  %v3630_v61 = vld [vmem:[#allocation3 + $0x1f0] sm:$0xff]  ;;  %v3524_v3 = vld [vmem:[%s18777_s10 + $0x120] sm:$0xff] }
 0x669   : > { %3387 = vst.msk [vmem:[#allocation3 + $0x158] sm:$0xff] %vm3215_vm5, %v3367_v18  ;;  %3860 = vmatpush.msrb.mxu0 %v3588_v25 }
 0x66b   : > { %3861 = vmatpush.msrb.mxu0 %v3587_v54 }
 0x66c   : > { %3688 = vperm.xlu1 %10439, %v3646_v53   ;;  %3693 = vperm.xlu2 %10440, %v3647_v36   ;;  %v3533_v53 = vld [vmem:[%s18777_s10 + $0x168] sm:$0xff] }
 0x66d   : > { %3673 = vperm.xlu0 %10441, %v3643_v46  }
 0x66e   : > { %v3371_v38 = vpop.permute.xlu1 %3370  ;;  %v3431_v63 = vpop.permute.xlu2 %3430  ;;  %3803 = vmatmul.f32.gmra.mxu3 %v3493_v47  ;;  %v3586_v17 = vld [vmem:[#allocation3 + $0x90] sm:$0xff] }
 0x66f   : > { %v3433_v50 = vpop.permute.xlu0 %3432  ;;  %3389 = vst.msk [vmem:[#allocation3 + $0x168] sm:$0xff] %vm3215_vm5, %v3371_v38  ;;  %3862 = vmatpush.msrb.mxu0 %v3586_v17  ;;  %v3612_v25 = vld [vmem:[#allocation3 + $0x160] sm:$0xff] }
 0x670   : > { %3452 = vst.msk [vmem:[#allocation3 + $0x1e0] sm:$0xff] %vm3215_vm5, %v3433_v50  ;;  %v3611_v47 = vld [vmem:[#allocation3 + $0x158] sm:$0xff] }
 0x671   : > { %3451 = vst.msk [vmem:[#allocation3 + $0x1d8] sm:$0xff] %vm3215_vm5, %v3431_v63  ;;  %3863 = vmatpush.msrb.mxu0 %v3585_v59 }
 0x673   : > { %3864 = vmatpush.msrb.mxu0 %v3584_v41 }
 0x674   : > { %3663 = vperm.xlu1 %10439, %v3641_v40   ;;  %3668 = vperm.xlu2 %10440, %v3642_v30   ;;  %v3529_v40 = vld [vmem:[%s18777_s10 + $0x148] sm:$0xff] }
 0x675   : > { %3708 = vperm.xlu0 %10441, %v3650_v26   ;;  %3865 = vmatmul.f32.vlgmr.msrb.gmra.mxu0 %v3489_v23  ;;  %v3538_v26 = vld [vmem:[%s18777_s10 + $0x190] sm:$0xff] }
 0x676   : > { %v3435_v56 = vpop.permute.xlu1 %3434  ;;  %v3361_v62 = vpop.permute.xlu2 %3360  ;;  %3806 = vmatmul.f32.gmra.mxu3 %v3498_v58  ;;  %v3613_v18 = vld [vmem:[#allocation3 + $0x168] sm:$0xff] }
 0x677   : > { %v3363_v1 = vpop.permute.xlu0 %3362  ;;  %3453 = vst.msk [vmem:[#allocation3 + $0x1e8] sm:$0xff] %vm3215_vm5, %v3435_v56  ;;  %v3628_v36 = vld [vmem:[#allocation3 + $0x1e0] sm:$0xff] }
 0x678   : > { %3385 = vst.msk [vmem:[#allocation3 + $0x148] sm:$0xff] %vm3215_vm5, %v3363_v1  ;;  %v3627_v63 = vld [vmem:[#allocation3 + $0x1d8] sm:$0xff]  ;;  %v3534_v1 = vld [vmem:[%s18777_s10 + $0x170] sm:$0xff] }
 0x679   : > { %3384 = vst.msk [vmem:[#allocation3 + $0x140] sm:$0xff] %vm3215_vm5, %v3361_v62 }
 0x67c   : > { %3698 = vperm.xlu1 %10439, %v3648_v44   ;;  %3703 = vperm.xlu2 %10440, %v3649_v4   ;;  %v3543_v44 = vld [vmem:[%s18777_s10 + $0x1b8] sm:$0xff] }
 0x67d   : > { %3723 = vperm.xlu0 %10441, %v3653_v11   ;;  %3868 = vmatmul.f32.gmra.mxu0 %v3494_v7 }
 0x67e   : > { %v3365_v57 = vpop.permute.xlu1 %3364  ;;  %v3425_v6 = vpop.permute.xlu2 %3424  ;;  %3809 = vmatmul.f32.gmra.mxu3 %v3503_v0  ;;  %v3629_v60 = vld [vmem:[#allocation3 + $0x1e8] sm:$0xff] }
 0x67f   : > { %v3427_v48 = vpop.permute.xlu0 %3426  ;;  %3386 = vst.msk [vmem:[#allocation3 + $0x150] sm:$0xff] %vm3215_vm5, %v3365_v57  ;;  %v3609_v59 = vld [vmem:[#allocation3 + $0x148] sm:$0xff] }
 0x680   : > { %3449 = vst.msk [vmem:[#allocation3 + $0x1c8] sm:$0xff] %vm3215_vm5, %v3427_v48  ;;  %v3608_v41 = vld [vmem:[#allocation3 + $0x140] sm:$0xff] }
 0x681   : > { %3448 = vst.msk [vmem:[#allocation3 + $0x1c0] sm:$0xff] %vm3215_vm5, %v3425_v6  ;;  %v3539_v6 = vld [vmem:[%s18777_s10 + $0x198] sm:$0xff] }
 0x684   : > { %3713 = vperm.xlu1 %10439, %v3651_v22   ;;  %3718 = vperm.xlu2 %10440, %v3652_v9   ;;  %v3548_v22 = vld [vmem:[%s18777_s10 + $0x1e0] sm:$0xff] }
 0x685   : > { %3871 = vmatmul.f32.gmra.mxu0 %v3499_v45 }
 0x686   : > { %v3429_v32 = vpop.permute.xlu1 %3428  ;;  %v3339_v28 = vpop.permute.xlu2 %3338  ;;  %3812 = vmatmul.f32.gmra.mxu3 %v3508_v15  ;;  %v3610_v17 = vld [vmem:[#allocation3 + $0x150] sm:$0xff] }
 0x687   : > { %v3341_v49 = vpop.permute.xlu0 %3340  ;;  %3450 = vst.msk [vmem:[#allocation3 + $0x1d0] sm:$0xff] %vm3215_vm5, %v3429_v32  ;;  %v3625_v30 = vld [vmem:[#allocation3 + $0x1c8] sm:$0xff] }
 0x688   : > { %3358 = vst.msk [vmem:[#allocation3 + $0x130] sm:$0xff] %vm3215_vm5, %v3341_v49  ;;  %v3624_v23 = vld [vmem:[#allocation3 + $0x1c0] sm:$0xff] }
 0x689   : > { %3357 = vst.msk [vmem:[#allocation3 + $0x128] sm:$0xff] %vm3215_vm5, %v3339_v28 }
 0x68c   : > { %3728 = vperm.xlu1 %10439, %v3654_v43   ;;  %3733 = vperm.xlu2 %10440, %v3655_v16   ;;  %v3544_v16 = vld [vmem:[%s18777_s10 + $0x1c0] sm:$0xff] }
 0x68d   : > { %3874 = vmatmul.f32.gmra.mxu0 %v3504_v34 }
 0x68e   : > { %v3337_v35 = vpop.permute.xlu1 %3336  ;;  %v3403_v24 = vpop.permute.xlu2 %3402  ;;  %3815 = vmatmul.f32.gmra.mxu3 %v3513_v20  ;;  %v3626_v50 = vld [vmem:[#allocation3 + $0x1d0] sm:$0xff] }
 0x68f   : > { %v3405_v14 = vpop.permute.xlu0 %3404  ;;  %3356 = vst.msk [vmem:[#allocation3 + $0x120] sm:$0xff] %vm3215_vm5, %v3337_v35  ;;  %v3606_v0 = vld [vmem:[#allocation3 + $0x130] sm:$0xff] }
 0x690   : > { %3422 = vst.msk [vmem:[#allocation3 + $0x1b0] sm:$0xff] %vm3215_vm5, %v3405_v14  ;;  %v3605_v57 = vld [vmem:[#allocation3 + $0x128] sm:$0xff]  ;;  %v3490_v20 = vld [vmem:[%s18777_s10 + $0x10] sm:$0xff] }
 0x691   : > { %3421 = vst.msk [vmem:[#allocation3 + $0x1a8] sm:$0xff] %vm3215_vm5, %v3403_v24  ;;  %v3553_v24 = vld [vmem:[%s18777_s10 + $0x208] sm:$0xff] }
 0x695   : > { %3877 = vmatmul.f32.gmra.mxu0 %v3509_v42 }
 0x696   : > { %v3401_v37 = vpop.permute.xlu1 %3400  ;;  %v3333_v55 = vpop.permute.xlu2 %3332  ;;  %3818 = vmatmul.f32.gmra.mxu3 %v3518_v52  ;;  %v3604_v48 = vld [vmem:[#allocation3 + $0x120] sm:$0xff] }
 0x697   : > { %v3335_v33 = vpop.permute.xlu0 %3334  ;;  %3420 = vst.msk [vmem:[#allocation3 + $0x1a0] sm:$0xff] %vm3215_vm5, %v3401_v37  ;;  %v3622_v49 = vld [vmem:[#allocation3 + $0x1b0] sm:$0xff] }
 0x698   : > { %3355 = vst.msk [vmem:[#allocation3 + $0x118] sm:$0xff] %vm3215_vm5, %v3335_v33  ;;  %v3621_v34 = vld [vmem:[#allocation3 + $0x1a8] sm:$0xff] }
 0x699   : > { %3354 = vst.msk [vmem:[#allocation3 + $0x110] sm:$0xff] %vm3215_vm5, %v3333_v55 }
 0x69d   : > { %3880 = vmatmul.f32.gmra.mxu0 %v3514_v10 }
 0x69e   : > { %v3375_v13 = vpop.permute.xlu1 %3374  ;;  %v3331_v2 = vpop.permute.xlu2 %3330  ;;  %3821 = vmatmul.f32.gmra.mxu3 %v3523_v21  ;;  %v3620_v14 = vld [vmem:[#allocation3 + $0x1a0] sm:$0xff]  ;;  %v3549_v21 = vld [vmem:[%s18777_s10 + $0x1e8] sm:$0xff] }
 0x69f   : > { %v3439_v39 = vpop.permute.xlu0 %3438  ;;  %3391 = vst.msk [vmem:[#allocation3 + $0x178] sm:$0xff] %vm3215_vm5, %v3375_v13  ;;  %v3603_v45 = vld [vmem:[#allocation3 + $0x118] sm:$0xff] }
 0x6a0   : > { %3455 = vst.msk [vmem:[#allocation3 + $0x1f8] sm:$0xff] %vm3215_vm5, %v3439_v39  ;;  %v3602_v28 = vld [vmem:[#allocation3 + $0x110] sm:$0xff] }
 0x6a1   : > { %3353 = vst.msk [vmem:[#allocation3 + $0x108] sm:$0xff] %vm3215_vm5, %v3331_v2  ;;  %v3495_v2 = vld [vmem:[%s18777_s10 + $0x38] sm:$0xff]  ;;  %v3558_v39 = vld [vmem:[%s18777_s10 + $0x230] sm:$0xff] }
 0x6a5   : > { %3883 = vmatmul.f32.gmra.mxu0 %v3519_v19 }
 0x6a6   : > { %v3469_v27 = vpop.permute.xlu1 %3468  ;;  %v3329_v29 = vpop.permute.xlu2 %3328  ;;  %3824 = vmatmul.f32.gmra.mxu3 %v3528_v8  ;;  %v3615_v51 = vld [vmem:[#allocation3 + $0x178] sm:$0xff] }
 0x6a7   : > { %v3399_v31 = vpop.permute.xlu0 %3398  ;;  %3486 = vst.msk [vmem:[#allocation3 + $0x230] sm:$0xff] %vm3215_vm5, %v3469_v27  ;;  %3914 = vmatpush.msrb.mxu2 %v3615_v51  ;;  %v3631_v12 = vld [vmem:[#allocation3 + $0x1f8] sm:$0xff] }
 0x6a8   : > { %3419 = vst.msk [vmem:[#allocation3 + $0x198] sm:$0xff] %vm3215_vm5, %v3399_v31  ;;  %3979 = vmatpush.msrb.mxu3 %v3631_v12  ;;  %v3601_v43 = vld [vmem:[#allocation3 + $0x108] sm:$0xff]  ;;  %v3554_v31 = vld [vmem:[%s18777_s10 + $0x210] sm:$0xff] }
 0x6a9   : > { %3352 = vst.msk [vmem:[#allocation3 + $0x100] sm:$0xff] %vm3215_vm5, %v3329_v29  ;;  %3915 = vmatpush.msrb.mxu2 %v3614_v5  ;;  %v3500_v5 = vld [vmem:[%s18777_s10 + $0x60] sm:$0xff] }
 0x6aa   : > { %3980 = vmatpush.msrb.mxu3 %v3630_v61  ;;  %v3563_v61 = vld [vmem:[%s18777_s10 + $0x258] sm:$0xff] }
 0x6ab   : > { %3916 = vmatpush.msrb.mxu2 %v3613_v18 }
 0x6ac   : > { %3981 = vmatpush.msrb.mxu3 %v3629_v60  ;;  %v3505_v60 = vld [vmem:[%s18777_s10 + $0x88] sm:$0xff] }
 0x6ad   : > { %3886 = vmatmul.f32.gmra.mxu0 %v3524_v3  ;;  %3917 = vmatpush.msrb.mxu2 %v3612_v25  ;;  %v3559_v3 = vld [vmem:[%s18777_s10 + $0x238] sm:$0xff] }
 0x6ae   : > { %3982 = vmatpush.msrb.mxu3 %v3628_v36  ;;  %v3467_v54 = vpop.permute.xlu1 %3466  ;;  %v3393_v46 = vpop.permute.xlu2 %3392  ;;  %v3638_v55 = vld [vmem:[#allocation3 + $0x230] sm:$0xff]  ;;  %v3491_v25 = vld [vmem:[%s18777_s10 + $0x18] sm:$0xff]  ;;  %v3564_v36 = vld [vmem:[%s18777_s10 + $0x260] sm:$0xff] }
 0x6af   : > { %v3397_v38 = vpop.permute.xlu0 %3396  ;;  %3485 = vst.msk [vmem:[#allocation3 + $0x228] sm:$0xff] %vm3215_vm5, %v3467_v54  ;;  %3827 = vmatmul.f32.gmra.mxu3 %v3533_v53  ;;  %3918 = vmatpush.msrb.mxu2 %v3611_v47  ;;  %v3619_v37 = vld [vmem:[#allocation3 + $0x198] sm:$0xff]  ;;  %v3510_v54 = vld [vmem:[%s18777_s10 + $0xb0] sm:$0xff] }
 0x6b0   : > { %3418 = vst.msk [vmem:[#allocation3 + $0x190] sm:$0xff] %vm3215_vm5, %v3397_v38  ;;  %3983 = vmatpush.msrb.mxu3 %v3627_v63  ;;  %v3600_v35 = vld [vmem:[#allocation3 + $0x100] sm:$0xff] }
 0x6b1   : > { %3416 = vst.msk [vmem:[#allocation3 + $0x180] sm:$0xff] %vm3215_vm5, %v3393_v46  ;;  %3919 = vmatpush.msrb.mxu2 %v3610_v17  ;;  %v3496_v46 = vld [vmem:[%s18777_s10 + $0x40] sm:$0xff]  ;;  %v3515_v17 = vld [vmem:[%s18777_s10 + $0xd8] sm:$0xff] }
 0x6b2   : > { %3984 = vmatpush.msrb.mxu3 %v3626_v50  ;;  %v3492_v63 = vld [vmem:[%s18777_s10 + $0x20] sm:$0xff]  ;;  %v3501_v50 = vld [vmem:[%s18777_s10 + $0x68] sm:$0xff] }
 0x6b3   : > { %3920 = vmatpush.msrb.mxu2 %v3609_v59 }
 0x6b4   : > { %3985 = vmatpush.msrb.mxu3 %v3625_v30  ;;  %v3497_v30 = vld [vmem:[%s18777_s10 + $0x48] sm:$0xff] }
 0x6b5   : > { %3889 = vmatmul.f32.gmra.mxu0 %v3529_v40  ;;  %3921 = vmatpush.msrb.mxu2 %v3608_v41  ;;  %v3520_v41 = vld [vmem:[%s18777_s10 + $0x100] sm:$0xff] }
 0x6b6   : > { %3986 = vmatpush.msrb.mxu3 %v3624_v23  ;;  %v3343_v58 = vpop.permute.xlu1 %3342  ;;  %v3461_v56 = vpop.permute.xlu2 %3460  ;;  %v3637_v10 = vld [vmem:[#allocation3 + $0x228] sm:$0xff] }
 0x6b7   : > { %v3395_v62 = vpop.permute.xlu0 %3394  ;;  %3359 = vst.msk [vmem:[#allocation3 + $0x138] sm:$0xff] %vm3215_vm5, %v3343_v58  ;;  %3830 = vmatmul.f32.gmra.mxu3 %v3538_v26  ;;  %v3618_v33 = vld [vmem:[#allocation3 + $0x190] sm:$0xff] }
 0x6b8   : > { %3417 = vst.msk [vmem:[#allocation3 + $0x188] sm:$0xff] %vm3215_vm5, %v3395_v62  ;;  %v3616_v19 = vld [vmem:[#allocation3 + $0x180] sm:$0xff]  ;;  %v3506_v26 = vld [vmem:[%s18777_s10 + $0x90] sm:$0xff]  ;;  %v3525_v62 = vld [vmem:[%s18777_s10 + $0x128] sm:$0xff] }
 0x6b9   : > { %3482 = vst.msk [vmem:[#allocation3 + $0x210] sm:$0xff] %vm3215_vm5, %v3461_v56  ;;  %v3502_v56 = vld [vmem:[%s18777_s10 + $0x70] sm:$0xff] }
 0x6bd   : > { %3892 = vmatmul.f32.gmra.mxu0 %v3534_v1  ;;  %v3511_v1 = vld [vmem:[%s18777_s10 + $0xb8] sm:$0xff] }
 0x6be   : > { %v3407_v4 = vpop.permute.xlu1 %3406  ;;  %v3607_v11 = vld [vmem:[#allocation3 + $0x138] sm:$0xff] }
 0x6bf   : > { %v3465_v7 = vpop.permute.xlu0 %3464  ;;  %3423 = vst.msk [vmem:[#allocation3 + $0x1b8] sm:$0xff] %vm3215_vm5, %v3407_v4  ;;  %3833 = vmatmul.f32.gmra.mxu3 %v3543_v44  ;;  %3922 = vmatpush.msrb.mxu2 %v3607_v11  ;;  %v3617_v13 = vld [vmem:[#allocation3 + $0x188] sm:$0xff]  ;;  %v3507_v11 = vld [vmem:[%s18777_s10 + $0x98] sm:$0xff] }
 0x6c0   : > { %3484 = vst.msk [vmem:[#allocation3 + $0x220] sm:$0xff] %vm3215_vm5, %v3465_v7  ;;  %v3634_v51 = vld [vmem:[#allocation3 + $0x210] sm:$0xff] }
 0x6c1   : > { %3923 = vmatpush.msrb.mxu2 %v3606_v0  ;;  %v3530_v7 = vld [vmem:[%s18777_s10 + $0x150] sm:$0xff]  ;;  %v3516_v0 = vld [vmem:[%s18777_s10 + $0xe0] sm:$0xff] }
 0x6c3   : > { %3924 = vmatpush.msrb.mxu2 %v3605_v57 }
 0x6c5   : > { %3895 = vmatmul.f32.gmra.mxu0 %v3539_v6  ;;  %3925 = vmatpush.msrb.mxu2 %v3604_v48  ;;  %v3512_v48 = vld [vmem:[%s18777_s10 + $0xc0] sm:$0xff] }
 0x6c6   : > { %v3471_v9 = vpop.permute.xlu1 %3470  ;;  %v3623_v15 = vld [vmem:[#allocation3 + $0x1b8] sm:$0xff] }
 0x6c7   : > { %v3459_v32 = vpop.permute.xlu0 %3458  ;;  %3487 = vst.msk [vmem:[#allocation3 + $0x238] sm:$0xff] %vm3215_vm5, %v3471_v9  ;;  %3836 = vmatmul.f32.gmra.mxu3 %v3548_v22  ;;  %3926 = vmatpush.msrb.mxu2 %v3603_v45  ;;  %v3636_v8 = vld [vmem:[#allocation3 + $0x220] sm:$0xff]  ;;  %v3535_v22 = vld [vmem:[%s18777_s10 + $0x178] sm:$0xff]  ;;  %v3521_v9 = vld [vmem:[%s18777_s10 + $0x108] sm:$0xff] }
 0x6c8   : > { %3481 = vst.msk [vmem:[#allocation3 + $0x208] sm:$0xff] %vm3215_vm5, %v3459_v32  ;;  %3987 = vmatpush.msrb.mxu3 %v3623_v15  ;;  %v3517_v32 = vld [vmem:[%s18777_s10 + $0xe8] sm:$0xff] }
 0x6c9   : > { %3927 = vmatpush.msrb.mxu2 %v3602_v28  ;;  %v3540_v28 = vld [vmem:[%s18777_s10 + $0x1a0] sm:$0xff] }
 0x6ca   : > { %3988 = vmatpush.msrb.mxu3 %v3622_v49  ;;  %v3526_v49 = vld [vmem:[%s18777_s10 + $0x130] sm:$0xff] }
 0x6cb   : > { %3928 = vmatpush.msrb.mxu2 %v3601_v43 }
 0x6cc   : > { %3989 = vmatpush.msrb.mxu3 %v3621_v34  ;;  %v3522_v34 = vld [vmem:[%s18777_s10 + $0x110] sm:$0xff] }
 0x6cd   : > { %3898 = vmatmul.f32.gmra.mxu0 %v3544_v16  ;;  %3929 = vmatpush.msrb.mxu2 %v3600_v35  ;;  %v3531_v35 = vld [vmem:[%s18777_s10 + $0x158] sm:$0xff] }
 0x6ce   : > { %3990 = vmatpush.msrb.mxu3 %v3620_v14  ;;  %v3463_v42 = vpop.permute.xlu1 %3462  ;;  %3930 = vmatmul.f32.vlgmr.msrb.gmra.mxu2 %v3490_v20  ;;  %v3639_v52 = vld [vmem:[#allocation3 + $0x238] sm:$0xff]  ;;  %v3545_v20 = vld [vmem:[%s18777_s10 + $0x1c8] sm:$0xff] }
 0x6cf   : > { %3483 = vst.msk [vmem:[#allocation3 + $0x218] sm:$0xff] %vm3215_vm5, %v3463_v42  ;;  %3839 = vmatmul.f32.gmra.mxu3 %v3553_v24  ;;  %4052 = vmatpush.msra.mxu0 %v3639_v52  ;;  %v3633_v12 = vld [vmem:[#allocation3 + $0x208] sm:$0xff]  ;;  %v3527_v42 = vld [vmem:[%s18777_s10 + $0x138] sm:$0xff]  ;;  %v3550_v52 = vld [vmem:[%s18777_s10 + $0x1f0] sm:$0xff] }
 0x6d0   : > { %3991 = vmatpush.msrb.mxu3 %v3619_v37  ;;  %v3536_v37 = vld [vmem:[%s18777_s10 + $0x180] sm:$0xff] }
 0x6d1   : > { %4053 = vmatpush.msra.mxu0 %v3638_v55 }
 0x6d2   : > { %3992 = vmatpush.msrb.mxu3 %v3618_v33 }
 0x6d3   : > { %4054 = vmatpush.msra.mxu0 %v3637_v10  ;;  %v3532_v10 = vld [vmem:[%s18777_s10 + $0x160] sm:$0xff] }
 0x6d4   : > { %3993 = vmatpush.msrb.mxu3 %v3617_v13  ;;  %v3541_v13 = vld [vmem:[%s18777_s10 + $0x1a8] sm:$0xff] }
 0x6d5   : > { %3901 = vmatmul.f32.gmra.mxu0 %v3549_v21  ;;  %v3555_v21 = vld [vmem:[%s18777_s10 + $0x218] sm:$0xff] }
 0x6d6   : > { %3994 = vmatpush.msrb.mxu3 %v3616_v19  ;;  %4055 = vmatpush.msra.mxu0 %v3636_v8  ;;  %v3457_v27 = vpop.permute.xlu1 %3456  ;;  %v3635_v29 = vld [vmem:[#allocation3 + $0x218] sm:$0xff]  ;;  %v3537_v19 = vld [vmem:[%s18777_s10 + $0x188] sm:$0xff]  ;;  %v3560_v8 = vld [vmem:[%s18777_s10 + $0x240] sm:$0xff] }
 0x6d7   : > { %3480 = vst.msk [vmem:[#allocation3 + $0x200] sm:$0xff] %vm3215_vm5, %v3457_v27  ;;  %3933 = vmatmul.f32.gmra.mxu2 %v3495_v2  ;;  %3842 = vmatmul.f32.gmra.mxu3 %v3558_v39  ;;  %v3546_v27 = vld [vmem:[%s18777_s10 + $0x1d0] sm:$0xff] }
 0x6d8   : > { %4056 = vmatpush.msra.mxu0 %v3635_v29 }
 0x6da   : > { %4057 = vmatpush.msra.mxu0 %v3634_v51 }
 0x6dc   : > { %4058 = vmatpush.msra.mxu0 %v3633_v12  ;;  %v3565_v12 = vld [vmem:[%s18777_s10 + $0x268] sm:$0xff] }
 0x6dd   : > { %3904 = vmatmul.f32.gmra.mxu0 %v3554_v31  ;;  %v3542_v31 = vld [vmem:[%s18777_s10 + $0x1b0] sm:$0xff] }
 0x6de   : > { %v3632_v18 = vld [vmem:[#allocation3 + $0x200] sm:$0xff] }
 0x6df   : > { %3936 = vmatmul.f32.gmra.mxu2 %v3500_v5  ;;  %3845 = vmatmul.f32.gmra.mxu3 %v3563_v61  ;;  %v3551_v5 = vld [vmem:[%s18777_s10 + $0x1f8] sm:$0xff] }
 0x6e0   : > { %4059 = vmatpush.msra.mxu0 %v3632_v18 }
 0x6e5   : > { %3907 = vmatmul.f32.gmra.mxu0 %v3559_v3  ;;  %v3547_v3 = vld [vmem:[%s18777_s10 + $0x1d8] sm:$0xff] }
 0x6e7   : > { %3939 = vmatmul.f32.gmra.mxu2 %v3505_v60  ;;  %3995 = vmatmul.f32.vlgmr.msrb.gmra.mxu3 %v3491_v25  ;;  %v3556_v60 = vld [vmem:[%s18777_s10 + $0x220] sm:$0xff]  ;;  %v9291_v25 = vld [vmem:[%s18779_s12 + $0x1c8] sm:$0x3f] }
 0x6e8   : > { %9294 = vmatpush.msk.msra.mxu1 %vm2926_vm4, %v9291_v25 }
 0x6e9   : > { %v13467_v53 = vpop.f32.mrf.mxu3 }
 0x6ed   : > { %3910 = vmatmul.f32.gmra.mxu0 %v3564_v36 }
 0x6ef   : > { %3942 = vmatmul.f32.gmra.mxu2 %v3510_v54  ;;  %3998 = vmatmul.f32.gmra.mxu3 %v3496_v46 }
 0x6f1   : > { %v13478_v47 = vpop.f32.mrf.mxu3 }
 0x6f2   : > { %v13480_v38 = vpop.f32.mrf.mxu0 }
 0x6f5   : > { %9248 = vmatmul.msk.f32.vlgmr.msra.gmra.mxu0 %vm2153_vm3, %v3492_v63  ;;  %v3552_v63 = vld [vmem:[%s18777_s10 + $0x200] sm:$0xff] }
 0x6f7   : > { %3945 = vmatmul.f32.gmra.mxu2 %v3515_v17  ;;  %4001 = vmatmul.f32.gmra.mxu3 %v3501_v50  ;;  %v3561_v17 = vld [vmem:[%s18777_s10 + $0x248] sm:$0xff] }
 0x6f9   : > { %v13492_v59 = vpop.f32.mrf.mxu3 }
 0x6fa   : > { %v13494_v40 = vpop.f32.mrf.mxu0 }
 0x6fd   : > { %9249 = vmatmul.msk.f32.gmra.mxu0 %vm2153_vm3, %v3497_v30 }
 0x6ff   : > { %3948 = vmatmul.f32.gmra.mxu2 %v3520_v41  ;;  %4004 = vmatmul.f32.gmra.mxu3 %v3506_v26  ;;  %v3557_v41 = vld [vmem:[%s18777_s10 + $0x228] sm:$0xff] }
 0x701   : > { %v13506_v23 = vpop.f32.mrf.mxu3 }
 0x702   : > { %v13508_v58 = vpop.f32.mrf.mxu0 }
 0x705   : > { %9250 = vmatmul.msk.f32.gmra.mxu0 %vm2153_vm3, %v3502_v56  ;;  %v3566_v56 = vld [vmem:[%s18777_s10 + $0x270] sm:$0xff] }
 0x707   : > { %3951 = vmatmul.f32.gmra.mxu2 %v3525_v62  ;;  %4007 = vmatmul.f32.gmra.mxu3 %v3511_v1  ;;  %v13669_v62 = vpop.permute.xlu0 %3683 }
 0x709   : > { %v13520_v44 = vpop.f32.mrf.mxu3 }
 0x70a   : > { %v13522_v4 = vpop.f32.mrf.mxu0 }
 0x70d   : > { %9251 = vmatmul.msk.f32.gmra.mxu0 %vm2153_vm3, %v3507_v11 }
 0x70f   : > { %3954 = vmatmul.f32.gmra.mxu2 %v3530_v7  ;;  %4010 = vmatmul.f32.gmra.mxu3 %v3516_v0  ;;  %v3562_v7 = vld [vmem:[%s18777_s10 + $0x250] sm:$0xff] }
 0x711   : > { %v13534_v57 = vpop.f32.mrf.mxu3 }
 0x712   : > { %v13536_v6 = vpop.f32.mrf.mxu0 }
 0x715   : > { %9252 = vmatmul.msk.f32.gmra.mxu0 %vm2153_vm3, %v3512_v48  ;;  %v13678_v48 = vpop.permute.xlu2 %3678 }
 0x717   : > { %3957 = vmatmul.f32.gmra.mxu2 %v3535_v22  ;;  %4013 = vmatmul.f32.gmra.mxu3 %v3521_v9  ;;  %v13681_v22 = vpop.permute.xlu1 %3688  ;;  %v3659_v9 = vpop.permute.xlu0 %3658 }
 0x719   : > { %v13548_v45 = vpop.f32.mrf.mxu3 }
 0x71a   : > { %v13550_v15 = vpop.f32.mrf.mxu0 }
 0x71d   : > { %9253 = vmatmul.msk.f32.gmra.mxu0 %vm2153_vm3, %v3517_v32 }
 0x71f   : > { %3960 = vmatmul.f32.gmra.mxu2 %v3540_v28  ;;  %4016 = vmatmul.f32.gmra.mxu3 %v3526_v49  ;;  %v3567_v49 = vld [vmem:[%s18777_s10 + $0x278] sm:$0xff] }
 0x721   : > { %v13562_v43 = vpop.f32.mrf.mxu3 }
 0x722   : > { %v13564_v16 = vpop.f32.mrf.mxu0 }
 0x725   : > { %9254 = vmatmul.msk.f32.gmra.mxu0 %vm2153_vm3, %v3522_v34  ;;  %v3802_v34 = vadd.f32 %v13467_v53, %v3659_v9  ;;  %v9289_v53 = vld [vmem:[%s18779_s12 + $0x1b8] sm:$0xff] }
 0x727   : > { %3963 = vmatmul.f32.gmra.mxu2 %v3545_v20  ;;  %4019 = vmatmul.f32.gmra.mxu3 %v3531_v35  ;;  %v3867_v35 = vadd.f32 %v13480_v38, %v3802_v34  ;;  %v9285_v38 = vld [vmem:[%s18779_s12 + $0x198] sm:$0xff] }
 0x728   : > { %v9273_v34 = vld [vmem:[%s18779_s12 + $0x138] sm:$0xff] }
 0x729   : > { %v13576_v24 = vpop.f32.mrf.mxu3 }
 0x72a   : > { %v13578_v14 = vpop.f32.mrf.mxu0 }
 0x72d   : > { %9255 = vmatmul.msk.f32.gmra.mxu0 %vm2153_vm3, %v3527_v42  ;;  %v13693_v42 = vpop.permute.xlu2 %3693 }
 0x72f   : > { %3966 = vmatmul.f32.gmra.mxu2 %v3550_v52  ;;  %4022 = vmatmul.f32.gmra.mxu3 %v3536_v37  ;;  %v9288_v37 = vld [vmem:[%s18779_s12 + $0x1b0] sm:$0xff] }
 0x730   : > { %4246 = vmatpush.msra.mxu1 %v9288_v37 }
 0x732   : > { %v13590_v55 = vpop.f32.mrf.mxu3  ;;  %v13592_v33 = vpop.f32.mrf.mxu0  ;;  %4247 = vmatpush.msra.mxu1 %v9285_v38  ;;  %v9271_v38 = vld [vmem:[%s18779_s12 + $0x128] sm:$0xff] }
 0x735   : > { %9256 = vmatmul.msk.f32.gmra.mxu0 %vm2153_vm3, %v3532_v10  ;;  %v9292_v10 = vld [vmem:[%s18779_s12 + $0x1d0] sm:$0x3f] }
 0x736   : > { %9299 = vmatpush.msk.msra.mxu2 %vm2926_vm4, %v9292_v10 }
 0x737   : > { %3969 = vmatmul.f32.gmra.mxu2 %v3555_v21  ;;  %4025 = vmatmul.f32.gmra.mxu3 %v3541_v13  ;;  %v3664_v21 = vpop.permute.xlu1 %3663 }
 0x738   : > { %4275 = vmatpush.msra.mxu2 %v9289_v53 }
 0x73a   : > { %v13604_v2 = vpop.f32.mrf.mxu3  ;;  %v13606_v39 = vpop.f32.mrf.mxu0 }
 0x73d   : > { %9257 = vmatmul.msk.f32.gmra.mxu0 %vm2153_vm3, %v3537_v19  ;;  %v9286_v19 = vld [vmem:[%s18779_s12 + $0x1a0] sm:$0xff] }
 0x73e   : > { %4276 = vmatpush.msra.mxu2 %v9286_v19  ;;  %v9264_v19 = vld [vmem:[%s18779_s12 + $0xf0] sm:$0xff] }
 0x73f   : > { %3972 = vmatmul.f32.gmra.mxu2 %v3560_v8  ;;  %4028 = vmatmul.f32.gmra.mxu3 %v3546_v27 }
 0x742   : > { %v13618_v29 = vpop.f32.mrf.mxu3  ;;  %v13620_v51 = vpop.f32.mrf.mxu0 }
 0x745   : > { %9258 = vmatmul.msk.f32.gmra.mxu0 %vm2153_vm3, %v3542_v31  ;;  %v3805_v31 = vadd.f32 %v13478_v47, %v3664_v21  ;;  %v9279_v47 = vld [vmem:[%s18779_s12 + $0x168] sm:$0xff]  ;;  %v3674_v21 = vpop.permute.xlu0 %3673 }
 0x747   : > { %3975 = vmatmul.f32.gmra.mxu2 %v3565_v12  ;;  %4031 = vmatmul.f32.gmra.mxu3 %v3551_v5  ;;  %v3870_v5 = vadd.f32 %v13494_v40, %v3805_v31  ;;  %v9280_v40 = vld [vmem:[%s18779_s12 + $0x170] sm:$0xff] }
 0x74a   : > { %v13632_v61 = vpop.f32.mrf.mxu3  ;;  %v13634_v18 = vpop.f32.mrf.mxu0 }
 0x74d   : > { %9259 = vmatmul.msk.f32.gmra.mxu0 %vm2153_vm3, %v3547_v3 }
 0x74f   : > { %4034 = vmatmul.f32.gmra.mxu3 %v3556_v60 }
 0x751   : > { %v3931_v36 = vpop.f32.mrf.mxu2 }
 0x752   : > { %v13647_v54 = vpop.f32.mrf.mxu3  ;;  %v13649_v46 = vpop.f32.mrf.mxu0  ;;  %v3932_v52 = vadd.f32 %v3931_v36, %v3867_v35  ;;  %v9282_v36 = vld [vmem:[%s18779_s12 + $0x180] sm:$0xff] }
 0x753   : > { %4248 = vmatpush.msra.mxu1 %v9282_v36  ;;  %v9274_v35 = vld [vmem:[%s18779_s12 + $0x140] sm:$0xff] }
 0x755   : > { %9260 = vmatmul.msk.f32.gmra.mxu0 %vm2153_vm3, %v3552_v63  ;;  %v9283_v63 = vld [vmem:[%s18779_s12 + $0x188] sm:$0xff]  ;;  %4249 = vmatpush.msra.mxu1 %v9279_v47 }
 0x756   : > { %4277 = vmatpush.msra.mxu2 %v9283_v63 }
 0x757   : > { %4037 = vmatmul.f32.gmra.mxu3 %v3561_v17  ;;  %v3669_v17 = vpop.permute.xlu2 %3668 }
 0x758   : > { %4278 = vmatpush.msra.mxu2 %v9280_v40 }
 0x75a   : > { %v13658_v50 = vpop.f32.mrf.mxu3  ;;  %v13660_v30 = vpop.f32.mrf.mxu0 }
 0x75b   : > { %v3934_v26 = vpop.f32.mrf.mxu2 }
 0x75c   : > { %v3935_v25 = vadd.f32 %v3934_v26, %v3870_v5  ;;  %v9276_v26 = vld [vmem:[%s18779_s12 + $0x150] sm:$0xff] }
 0x75d   : > { %9261 = vmatmul.msk.f32.gmra.mxu0 %vm2153_vm3, %v3557_v41  ;;  %4250 = vmatpush.msra.mxu1 %v9276_v26 }
 0x75f   : > { %4040 = vmatmul.f32.gmra.mxu3 %v3566_v56  ;;  %v9277_v56 = vld [vmem:[%s18779_s12 + $0x158] sm:$0xff]  ;;  %4251 = vmatpush.msra.mxu1 %v9273_v34  ;;  %v9287_v34 = vld [vmem:[%s18779_s12 + $0x1a8] sm:$0xff] }
 0x760   : > { %4279 = vmatpush.msra.mxu2 %v9277_v56 }
 0x762   : > { %v13671_v1 = vpop.f32.mrf.mxu3  ;;  %v13673_v11 = vpop.f32.mrf.mxu0  ;;  %4280 = vmatpush.msra.mxu2 %v9274_v35 }
 0x763   : > { %v3937_v0 = vpop.f32.mrf.mxu2 }
 0x764   : > { %4281 = vmatpush.msra.mxu2 %v9271_v38  ;;  %v3817_v38 = vadd.f32 %v13534_v57, %v13669_v62  ;;  %v9284_v57 = vld [vmem:[%s18779_s12 + $0x190] sm:$0xff] }
 0x765   : > { %9262 = vmatmul.msk.f32.gmra.mxu0 %vm2153_vm3, %v3562_v7  ;;  %v4171_v62 = vld [vmem:[%s18779_s12 + $0x90] sm:$0xff] }
 0x76a   : > { %v13683_v32 = vpop.f32.mrf.mxu0  ;;  %v3996_v28 = vpop.f32.mrf.mxu3 }
 0x76b   : > { %v13689_v20 = vpop.f32.mrf.mxu2  ;;  %v3997_v13 = vadd.f32 %v3996_v28, %v3932_v52  ;;  %v3808_v28 = vadd.f32 %v13492_v59, %v3669_v17  ;;  %v9270_v59 = vld [vmem:[%s18779_s12 + $0x120] sm:$0xff] }
 0x76c   : > { %4252 = vmatpush.msra.mxu1 %v9270_v59  ;;  %v9346_v59 = vld [vmem:[%s18779_s12 + $0x290] sm:$0xff] }
 0x76d   : > { %9263 = vmatmul.msk.f32.gmra.mxu0 %vm2153_vm3, %v3567_v49  ;;  %v3873_v52 = vadd.f32 %v13508_v58, %v3808_v28  ;;  %v9267_v58 = vld [vmem:[%s18779_s12 + $0x108] sm:$0xff]  ;;  %v9348_v28 = vld [vmem:[%s18779_s12 + $0x2a0] sm:$0xff] }
 0x76e   : > { %4253 = vmatpush.msra.mxu1 %v9267_v58 }
 0x76f   : > { %v3938_v10 = vadd.f32 %v3937_v0, %v3873_v52  ;;  %v9268_v0 = vld [vmem:[%s18779_s12 + $0x110] sm:$0xff] }
 0x770   : > { %4282 = vmatpush.msra.mxu2 %v9268_v0  ;;  %4254 = vmatpush.msra.mxu1 %v9264_v19 }
 0x772   : > { %v3999_v8 = vpop.f32.mrf.mxu3  ;;  %v4061_v27 = vpop.f32.mrf.mxu0 }
 0x773   : > { %v4062_v12 = vadd.f32 %v4061_v27, %v3997_v13  ;;  %v3943_v3 = vpop.f32.mrf.mxu2  ;;  %v4000_v41 = vadd.f32 %v3999_v8, %v3935_v25  ;;  %v9265_v8 = vld [vmem:[%s18779_s12 + $0xf8] sm:$0xff] }
 0x774   : > { %4283 = vmatpush.msra.mxu2 %v9265_v8  ;;  %v9342_v8 = vld [vmem:[%s18779_s12 + $0x270] sm:$0xff] }
 0x775   : > { %v4109_v60 = vmax.f32 %v4062_v12, 0.0  ;;  %v3811_v12 = vadd.f32 %v13506_v23, %v3674_v21  ;;  %v3882_v21 = vadd.f32 %v13550_v15, %v3817_v38  ;;  %v9343_v15 = vld [vmem:[%s18779_s12 + $0x278] sm:$0xff]  ;;  %v3823_v38 = vadd.f32 %v13562_v43, %v13693_v42 }
 0x777   : > { %4125 = vst.msk [vmem:[#allocation5] sm:$0xff] %vm3215_vm5, %v4109_v60  ;;  %v3876_v60 = vadd.f32 %v13522_v4, %v3811_v12  ;;  %v9293_v4 = vld [vmem:[%s18779_s12 + $0x1d8] sm:$0x3f] }
 0x778   : > { %9304 = vmatpush.msk.msrb.mxu1 %vm2926_vm4, %v9293_v4  ;;  %v9339_v12 = vld [vmem:[%s18779_s12 + $0x258] sm:$0xff] }
 0x779   : > { %v3941_v36 = vadd.f32 %v13689_v20, %v3876_v60  ;;  %v4180_v20 = vld [vmem:[%s18779_s12 + $0xd8] sm:$0x3f]  ;;  %v9278_v60 = vld [vmem:[%s18779_s12 + $0x160] sm:$0xff] }
 0x77a   : > { %v4002_v7 = vpop.f32.mrf.mxu3  ;;  %v4064_v9 = vpop.f32.mrf.mxu0  ;;  %9309 = vmatpush.msk.msrb.mxu2 %vm2926_vm4, %v4180_v20 }
 0x77b   : > { %v4065_v49 = vadd.f32 %v4064_v9, %v4000_v41  ;;  %v13740_v53 = vpop.f32.mrf.mxu2  ;;  %v4003_v13 = vadd.f32 %v4002_v7, %v3938_v10  ;;  %v3814_v41 = vadd.f32 %v13520_v44, %v13678_v48  ;;  %v9290_v9 = vld [vmem:[%s18779_s12 + $0x1c0] sm:$0xff]  ;;  %v9351_v44 = vld [vmem:[%s18779_s12 + $0x2b8] sm:$0x3f]  ;;  %v9345_v10 = vld [vmem:[%s18779_s12 + $0x288] sm:$0xff] }
 0x77c   : > { %v4177_v48 = vld [vmem:[%s18779_s12 + $0xc0] sm:$0xff]  ;;  %9354 = vmatpush.msk.msra.mxu3 %vm2926_vm4, %v9351_v44  ;;  %4304 = vmatpush.msrb.mxu1 %v9290_v9  ;;  %v3947_v19 = vadd.f32 %v13740_v53, %v3882_v21  ;;  %v9281_v53 = vld [vmem:[%s18779_s12 + $0x178] sm:$0xff] }
 0x77d   : > { %v4110_v37 = vmax.f32 %v4065_v49, 0.0  ;;  %v3879_v23 = vadd.f32 %v13536_v6, %v3814_v41  ;;  %v9352_v6 = vld [vmem:[%s18779_s12 + $0x2c0] sm:$0x3f]  ;;  %v9349_v49 = vld [vmem:[%s18779_s12 + $0x2a8] sm:$0xff]  ;;  %4354 = vmatpush.msrb.mxu2 %v4177_v48  ;;  %v3820_v41 = vadd.f32 %v13548_v45, %v13681_v22  ;;  %v9334_v22 = vld [vmem:[%s18779_s12 + $0x230] sm:$0xff] }
 0x77e   : > { %9359 = vmatpush.msk.msrb.mxu0 %vm2926_vm4, %v9352_v6  ;;  %4497 = vmatpush.msra.mxu3 %v9348_v28  ;;  %v9333_v45 = vld [vmem:[%s18779_s12 + $0x228] sm:$0xff]  ;;  %v4159_v6 = vld [vmem:[%s18779_s12 + $0x30] sm:$0xff]  ;;  %v9331_v48 = vld [vmem:[%s18779_s12 + $0x218] sm:$0xff] }
 0x77f   : > { %4126 = vst.msk [vmem:[#allocation5 + $0x8] sm:$0xff] %vm3215_vm5, %v4110_v37  ;;  %v3944_v7 = vadd.f32 %v3943_v3, %v3879_v23  ;;  %v4174_v37 = vld [vmem:[%s18779_s12 + $0xa8] sm:$0xff]  ;;  %4305 = vmatpush.msrb.mxu1 %v9287_v34  ;;  %v4156_v28 = vld [vmem:[%s18779_s12 + $0x18] sm:$0xff]  ;;  %v9324_v21 = vld [vmem:[%s18779_s12 + $0x1e0] sm:$0xff] }
 0x780   : > { %4526 = vmatpush.msrb.mxu0 %v9349_v49  ;;  %4355 = vmatpush.msrb.mxu2 %v4174_v37  ;;  %v9275_v23 = vld [vmem:[%s18779_s12 + $0x148] sm:$0xff]  ;;  %v9327_v34 = vld [vmem:[%s18779_s12 + $0x1f8] sm:$0xff] }
 0x781   : > { %4498 = vmatpush.msra.mxu3 %v9345_v10  ;;  %4306 = vmatpush.msrb.mxu1 %v9284_v57  ;;  %v9266_v10 = vld [vmem:[%s18779_s12 + $0x100] sm:$0xff] }
 0x782   : > { %v4005_v27 = vpop.f32.mrf.mxu3  ;;  %v4067_v31 = vpop.f32.mrf.mxu0  ;;  %4527 = vmatpush.msrb.mxu0 %v9346_v59  ;;  %4356 = vmatpush.msrb.mxu2 %v4171_v62  ;;  %v4153_v59 = vld [vmem:[%s18779_s12] sm:$0xff] }
 0x783   : > { %v4068_v5 = vadd.f32 %v4067_v31, %v4003_v13  ;;  %v13765_v63 = vpop.f32.mrf.mxu2  ;;  %v4006_v47 = vadd.f32 %v4005_v27, %v3941_v36  ;;  %v4168_v27 = vld [vmem:[%s18779_s12 + $0x78] sm:$0xff]  ;;  %4499 = vmatpush.msra.mxu3 %v9342_v8  ;;  %4307 = vmatpush.msrb.mxu1 %v9281_v53  ;;  %v3699_v8 = vpop.permute.xlu1 %3698 }
 0x784   : > { %4528 = vmatpush.msrb.mxu0 %v9343_v15  ;;  %4357 = vmatpush.msrb.mxu2 %v4168_v27  ;;  %v3826_v27 = vadd.f32 %v13576_v24, %v3699_v8  ;;  %v4182_v24 = vld [vmem:[%s18779_s12 + $0xe8] sm:$0x3f] }
 0x785   : > { %v4111_v25 = vmax.f32 %v4068_v5, 0.0  ;;  %v9340_v5 = vld [vmem:[%s18779_s12 + $0x260] sm:$0xff]  ;;  %4500 = vmatpush.msra.mxu3 %v9339_v12  ;;  %4308 = vmatpush.msrb.mxu1 %v9278_v60 }
 0x786   : > { %4529 = vmatpush.msrb.mxu0 %v9340_v5  ;;  %v3891_v12 = vadd.f32 %v13592_v33, %v3826_v27  ;;  %v4178_v33 = vld [vmem:[%s18779_s12 + $0xc8] sm:$0xff] }
 0x787   : > { %4127 = vst.msk [vmem:[#allocation5 + $0x10] sm:$0xff] %vm3215_vm5, %v4111_v25  ;;  %4309 = vmatpush.msrb.mxu1 %v9275_v23  ;;  %v9394_v23 = vld [vmem:[%s18779_s12 + $0x398] sm:$0xff] }
 0x78a   : > { %v4008_v40 = vpop.f32.mrf.mxu3  ;;  %v4070_v17 = vpop.f32.mrf.mxu0 }
 0x78b   : > { %v4071_v26 = vadd.f32 %v4070_v17, %v4006_v47  ;;  %v4009_v3 = vadd.f32 %v4008_v40, %v3944_v7  ;;  %v13813_v58 = vpop.f32.mrf.mxu2  ;;  %v4165_v47 = vld [vmem:[%s18779_s12 + $0x60] sm:$0xff]  ;;  %v9337_v17 = vld [vmem:[%s18779_s12 + $0x248] sm:$0xff]  ;;  %v3885_v7 = vadd.f32 %v13564_v16, %v3820_v41  ;;  %v9272_v16 = vld [vmem:[%s18779_s12 + $0x130] sm:$0xff] }
 0x78c   : > { %v9336_v40 = vld [vmem:[%s18779_s12 + $0x240] sm:$0xff]  ;;  %4358 = vmatpush.msrb.mxu2 %v4165_v47  ;;  %4530 = vmatpush.msrb.mxu0 %v9337_v17  ;;  %v9398_v47 = vld [vmem:[%s18779_s12 + $0x3b8] sm:$0x3f]  ;;  %v3704_v17 = vpop.permute.xlu2 %3703 }
 0x78d   : > { %v4112_v56 = vmax.f32 %v4071_v26, 0.0  ;;  %4501 = vmatpush.msra.mxu3 %v9336_v40  ;;  %v3950_v44 = vadd.f32 %v13765_v63, %v3885_v7  ;;  %v9330_v63 = vld [vmem:[%s18779_s12 + $0x210] sm:$0xff]  ;;  %4310 = vmatpush.msrb.mxu1 %v9272_v16  ;;  %v3829_v16 = vadd.f32 %v13590_v55, %v3704_v17  ;;  %v4172_v55 = vld [vmem:[%s18779_s12 + $0x98] sm:$0xff]  ;;  %v4158_v17 = vld [vmem:[%s18779_s12 + $0x28] sm:$0xff] }
 0x78e   : > { %4531 = vmatpush.msrb.mxu0 %v9334_v22  ;;  %v4179_v40 = vld [vmem:[%s18779_s12 + $0xd0] sm:$0xff]  ;;  %v9391_v22 = vld [vmem:[%s18779_s12 + $0x380] sm:$0xff] }
 0x78f   : > { %4128 = vst.msk [vmem:[#allocation5 + $0x18] sm:$0xff] %vm3215_vm5, %v4112_v56  ;;  %v4162_v56 = vld [vmem:[%s18779_s12 + $0x48] sm:$0xff]  ;;  %4502 = vmatpush.msra.mxu3 %v9333_v45  ;;  %v4175_v7 = vld [vmem:[%s18779_s12 + $0xb0] sm:$0xff]  ;;  %v4176_v45 = vld [vmem:[%s18779_s12 + $0xb8] sm:$0xff] }
 0x790   : > { %4359 = vmatpush.msrb.mxu2 %v4162_v56  ;;  %4532 = vmatpush.msrb.mxu0 %v9331_v48  ;;  %v9395_v56 = vld [vmem:[%s18779_s12 + $0x3a0] sm:$0xff] }
 0x791   : > { %4503 = vmatpush.msra.mxu3 %v9330_v63  ;;  %v3894_v63 = vadd.f32 %v13606_v39, %v3829_v16  ;;  %v4173_v39 = vld [vmem:[%s18779_s12 + $0xa0] sm:$0xff]  ;;  %v14080_v16 = vld [vmem:[#allocation5 + $0x8] sm:$0xff] }
 0x792   : > { %v4011_v35 = vpop.f32.mrf.mxu3  ;;  %v4073_v52 = vpop.f32.mrf.mxu0  ;;  %4360 = vmatpush.msrb.mxu2 %v4159_v6 }
 0x793   : > { %v4074_v0 = vadd.f32 %v4073_v52, %v4009_v3  ;;  %v4012_v31 = vadd.f32 %v4011_v35, %v3947_v19  ;;  %v3955_v4 = vpop.f32.mrf.mxu2  ;;  %v9269_v3 = vld [vmem:[%s18779_s12 + $0x118] sm:$0xff]  ;;  %v9328_v35 = vld [vmem:[%s18779_s12 + $0x200] sm:$0xff]  ;;  %4504 = vmatpush.msra.mxu3 %v9327_v34  ;;  %v3888_v19 = vadd.f32 %v13578_v14, %v3823_v38  ;;  %v9389_v34 = vld [vmem:[%s18779_s12 + $0x370] sm:$0xff] }
 0x794   : > { %4311 = vmatpush.msrb.mxu1 %v9269_v3  ;;  %4361 = vmatpush.msrb.mxu2 %v4156_v28  ;;  %v3956_v60 = vadd.f32 %v3955_v4, %v3891_v12  ;;  %v9386_v38 = vld [vmem:[%s18779_s12 + $0x358] sm:$0xff]  ;;  %v14028_v12 = vld [vmem:[#allocation5] sm:$0xff] }
 0x795   : > { %v4113_v13 = vmax.f32 %v4074_v0, 0.0  ;;  %4533 = vmatpush.msrb.mxu0 %v9328_v35  ;;  %4505 = vmatpush.msra.mxu3 %v9324_v21  ;;  %v3953_v43 = vadd.f32 %v13813_v58, %v3888_v19  ;;  %v4169_v35 = vld [vmem:[%s18779_s12 + $0x80] sm:$0xff]  ;;  %v4167_v19 = vld [vmem:[%s18779_s12 + $0x70] sm:$0xff] }
 0x796   : > { %4312 = vmatpush.msrb.mxu1 %v9266_v10  ;;  %4362 = vmatpush.msrb.mxu2 %v4153_v59  ;;  %v9385_v59 = vld [vmem:[%s18779_s12 + $0x350] sm:$0xff] }
 0x797   : > { %4129 = vst.msk [vmem:[#allocation5 + $0x20] sm:$0xff] %vm3215_vm5, %v4113_v13  ;;  %v9325_v13 = vld [vmem:[%s18779_s12 + $0x1e8] sm:$0xff] }
 0x798   : > { %4534 = vmatpush.msrb.mxu0 %v9325_v13 }
 0x79a   : > { %v4014_v25 = vpop.f32.mrf.mxu3  ;;  %v4076_v36 = vpop.f32.mrf.mxu0  ;;  %9409 = vmatpush.msk.msra.mxu0 %vm2926_vm4, %v9398_v47 }
 0x79b   : > { %v4077_v26 = vadd.f32 %v4076_v36, %v4012_v31  ;;  %v4015_v49 = vadd.f32 %v4014_v25, %v3950_v44  ;;  %v3958_v42 = vpop.f32.mrf.mxu2  ;;  %v4181_v25 = vld [vmem:[%s18779_s12 + $0xe0] sm:$0x3f]  ;;  %v9397_v36 = vld [vmem:[%s18779_s12 + $0x3b0] sm:$0x3f]  ;;  %v9392_v44 = vld [vmem:[%s18779_s12 + $0x388] sm:$0xff] }
 0x79c   : > { %9404 = vmatpush.msk.msrb.mxu3 %vm2926_vm4, %v9397_v36  ;;  %4710 = vmatpush.msra.mxu0 %v9395_v56  ;;  %v3959_v28 = vadd.f32 %v3958_v42, %v3894_v63  ;;  %v3714_v36 = vpop.permute.xlu1 %3713  ;;  %v9374_v56 = vld [vmem:[%s18779_s12 + $0x2f8] sm:$0xff] }
 0x79d   : > { %v4114_v20 = vmax.f32 %v4077_v26, 0.0  ;;  %v9370_v63 = vld [vmem:[%s18779_s12 + $0x2d8] sm:$0xff] }
 0x79e   : > { %v13869_v9 = vld [vmem:[#allocation5 + $0x20] sm:$0xff]  ;;  %4681 = vmatpush.msrb.mxu3 %v9394_v23  ;;  %4711 = vmatpush.msra.mxu0 %v9392_v44  ;;  %v9373_v23 = vld [vmem:[%s18779_s12 + $0x2f0] sm:$0xff] }
 0x79f   : > { %4130 = vst.msk [vmem:[#allocation5 + $0x28] sm:$0xff] %vm3215_vm5, %v4114_v20  ;;  %9295 = vmatmul.msk.f32.vlgmr.msra.gmra.mxu1 %vm3215_vm5, %v13869_v9  ;;  %9300 = vmatmul.msk.f32.vlgmr.msra.gmra.mxu2 %vm3215_vm5, %v13869_v9 }
 0x7a0   : > { %9314 = vmatpush.msk.msra.mxu1 %vm2926_vm4, %v4181_v25  ;;  %9319 = vmatpush.msk.msra.mxu2 %vm2926_vm4, %v4182_v24  ;;  %v4161_v24 = vld [vmem:[%s18779_s12 + $0x40] sm:$0xff] }
 0x7a1   : > { %4682 = vmatpush.msrb.mxu3 %v9391_v22  ;;  %4712 = vmatpush.msra.mxu0 %v9389_v34 }
 0x7a2   : > { %v4017_v52 = vpop.f32.mrf.mxu3  ;;  %v4079_v37 = vpop.f32.mrf.mxu0  ;;  %4383 = vmatpush.msra.mxu1 %v4178_v33  ;;  %4412 = vmatpush.msra.mxu2 %v4179_v40  ;;  %v9377_v33 = vld [vmem:[%s18779_s12 + $0x310] sm:$0xff]  ;;  %v4157_v40 = vld [vmem:[%s18779_s12 + $0x20] sm:$0xff] }
 0x7a3   : > { %v4080_v0 = vadd.f32 %v4079_v37, %v4015_v49  ;;  %v4018_v14 = vadd.f32 %v4017_v52, %v3953_v43  ;;  %v13953_v41 = vpop.f32.mrf.mxu2  ;;  %v9388_v49 = vld [vmem:[%s18779_s12 + $0x368] sm:$0xff]  ;;  %v3709_v37 = vpop.permute.xlu0 %3708  ;;  %v9383_v43 = vld [vmem:[%s18779_s12 + $0x340] sm:$0xff]  ;;  %4713 = vmatpush.msra.mxu0 %v9386_v38 }
 0x7a4   : > { %4384 = vmatpush.msra.mxu1 %v4175_v7  ;;  %4413 = vmatpush.msra.mxu2 %v4176_v45  ;;  %v4170_v52 = vld [vmem:[%s18779_s12 + $0x88] sm:$0xff]  ;;  %v3832_v42 = vadd.f32 %v13604_v2, %v3709_v37  ;;  %v3835_v7 = vadd.f32 %v13618_v29, %v3714_v36  ;;  %v4155_v45 = vld [vmem:[%s18779_s12 + $0x10] sm:$0xff] }
 0x7a5   : > { %v4115_v57 = vmax.f32 %v4080_v0, 0.0  ;;  %4683 = vmatpush.msrb.mxu3 %v9388_v49  ;;  %v4166_v0 = vld [vmem:[%s18779_s12 + $0x68] sm:$0xff]  ;;  %4714 = vmatpush.msra.mxu0 %v9383_v43  ;;  %v14101_v37 = vld [vmem:[#allocation5 + $0x10] sm:$0xff]  ;;  %v9347_v43 = vld [vmem:[%s18779_s12 + $0x298] sm:$0xff] }
 0x7a6   : > { %v13916_v62 = vld [vmem:[#allocation5 + $0x28] sm:$0xff]  ;;  %4385 = vmatpush.msra.mxu1 %v4172_v55  ;;  %4414 = vmatpush.msra.mxu2 %v4173_v39  ;;  %v3897_v27 = vadd.f32 %v13620_v51, %v3832_v42  ;;  %v4160_v51 = vld [vmem:[%s18779_s12 + $0x38] sm:$0xff]  ;;  %v3900_v22 = vadd.f32 %v13634_v18, %v3835_v7  ;;  %v3719_v18 = vpop.permute.xlu2 %3718  ;;  %v14181_v36 = vld [vmem:[%s18779_s12 + $0x330] sm:$0xff] }
 0x7a7   : > { %4131 = vst.msk [vmem:[#allocation5 + $0x30] sm:$0xff] %vm3215_vm5, %v4115_v57  ;;  %9296 = vmatmul.msk.f32.gmra.mxu1 %vm3215_vm5, %v13916_v62  ;;  %9301 = vmatmul.msk.f32.gmra.mxu2 %vm3215_vm5, %v13916_v62  ;;  %v9382_v57 = vld [vmem:[%s18779_s12 + $0x338] sm:$0xff]  ;;  %v3838_v34 = vadd.f32 %v13632_v61, %v3719_v18  ;;  %v9353_v61 = vld [vmem:[%s18779_s12 + $0x2c8] sm:$0x3f] }
 0x7a8   : > { %4386 = vmatpush.msra.mxu1 %v4169_v35  ;;  %4415 = vmatpush.msra.mxu2 %v4170_v52  ;;  %v3962_v25 = vadd.f32 %v13953_v41, %v3897_v27  ;;  %v14139_v42 = vld [vmem:[%s18779_s12 + $0x378] sm:$0xff] }
 0x7a9   : > { %4684 = vmatpush.msrb.mxu3 %v9385_v59  ;;  %v14144_v27 = vld [vmem:[#allocation5 + $0x18] sm:$0xff] }
 0x7aa   : > { %v4020_v15 = vpop.f32.mrf.mxu3  ;;  %v4082_v53 = vpop.f32.mrf.mxu0  ;;  %4387 = vmatpush.msra.mxu1 %v4166_v0  ;;  %4416 = vmatpush.msra.mxu2 %v4167_v19  ;;  %v14128_v0 = vld [vmem:[%s18779_s12 + $0x390] sm:$0xff] }
 0x7ab   : > { %v4083_v31 = vadd.f32 %v4082_v53, %v4018_v14  ;;  %v4021_v26 = vadd.f32 %v4020_v15, %v3956_v60  ;;  %v4163_v14 = vld [vmem:[%s18779_s12 + $0x50] sm:$0xff]  ;;  %v4164_v15 = vld [vmem:[%s18779_s12 + $0x58] sm:$0xff]  ;;  %v3964_v53 = vpop.f32.mrf.mxu2  ;;  %4685 = vmatpush.msrb.mxu3 %v9382_v57  ;;  %v9380_v60 = vld [vmem:[%s18779_s12 + $0x328] sm:$0xff] }
 0x7ac   : > { %4388 = vmatpush.msra.mxu1 %v4163_v14  ;;  %4417 = vmatpush.msra.mxu2 %v4164_v15 }
 0x7ad   : > { %v4116_v5 = vmax.f32 %v4083_v31, 0.0  ;;  %4715 = vmatpush.msra.mxu0 %v9380_v60 }
 0x7ae   : > { %v13926_v58 = vld [vmem:[#allocation5 + $0x30] sm:$0xff]  ;;  %4389 = vmatpush.msra.mxu1 %v4160_v51  ;;  %4418 = vmatpush.msra.mxu2 %v4161_v24  ;;  %v3729_v51 = vpop.permute.xlu1 %3728 }
 0x7af   : > { %4132 = vst.msk [vmem:[#allocation5 + $0x38] sm:$0xff] %vm3215_vm5, %v4116_v5  ;;  %9297 = vmatmul.msk.f32.gmra.mxu1 %vm3215_vm5, %v13926_v58  ;;  %9302 = vmatmul.msk.f32.gmra.mxu2 %vm3215_vm5, %v13926_v58  ;;  %v9379_v5 = vld [vmem:[%s18779_s12 + $0x320] sm:$0xff] }
 0x7b0   : > { %4686 = vmatpush.msrb.mxu3 %v9379_v5  ;;  %4716 = vmatpush.msra.mxu0 %v9377_v33  ;;  %v9344_v5 = vld [vmem:[%s18779_s12 + $0x280] sm:$0xff]  ;;  %v9338_v33 = vld [vmem:[%s18779_s12 + $0x250] sm:$0xff] }
 0x7b1   : > { %4390 = vmatpush.msra.mxu1 %v4157_v40  ;;  %4419 = vmatpush.msra.mxu2 %v4158_v17 }
 0x7b2   : > { %v4023_v4 = vpop.f32.mrf.mxu3  ;;  %v4085_v20 = vpop.f32.mrf.mxu0  ;;  %4717 = vmatpush.msra.mxu0 %v9374_v56  ;;  %v9335_v56 = vld [vmem:[%s18779_s12 + $0x238] sm:$0xff] }
 0x7b3   : > { %v4086_v6 = vadd.f32 %v4085_v20, %v4021_v26  ;;  %v4024_v10 = vadd.f32 %v4023_v4, %v3959_v28  ;;  %v4154_v20 = vld [vmem:[%s18779_s12 + $0x8] sm:$0xff]  ;;  %v3967_v29 = vpop.f32.mrf.mxu2  ;;  %4420 = vmatpush.msra.mxu2 %v4155_v45  ;;  %v3965_v28 = vadd.f32 %v3964_v53, %v3900_v22  ;;  %v3734_v45 = vpop.permute.xlu2 %3733 }
 0x7b4   : > { %4391 = vmatpush.msra.mxu1 %v4154_v20 }
 0x7b5   : > { %v4117_v48 = vmax.f32 %v4086_v6, 0.0 }
 0x7b6   : > { %v13977_v3 = vld [vmem:[#allocation5 + $0x38] sm:$0xff] }
 0x7b7   : > { %4133 = vst.msk [vmem:[#allocation5 + $0x40] sm:$0xff] %vm3215_vm5, %v4117_v48  ;;  %9298 = vmatmul.msk.f32.gmra.mxu1 %vm3215_vm5, %v13977_v3  ;;  %9303 = vmatmul.msk.f32.gmra.mxu2 %vm3215_vm5, %v13977_v3  ;;  %v9371_v48 = vld [vmem:[%s18779_s12 + $0x2e0] sm:$0xff] }
 0x7b8   : > { %4718 = vmatpush.msra.mxu0 %v9371_v48 }
 0x7ba   : > { %v4026_v21 = vpop.f32.mrf.mxu3  ;;  %v4088_v13 = vpop.f32.mrf.mxu0 }
 0x7bb   : > { %v4089_v8 = vadd.f32 %v4088_v13, %v4024_v10  ;;  %v4027_v47 = vadd.f32 %v4026_v21, %v3962_v25  ;;  %v3970_v38 = vpop.f32.mrf.mxu2  ;;  %v3724_v21 = vpop.permute.xlu0 %3723  ;;  %v14172_v25 = vld [vmem:[%s18779_s12 + $0x348] sm:$0xff] }
 0x7bd   : > { %v4118_v31 = vmax.f32 %v4089_v8, 0.0  ;;  %v3841_v8 = vadd.f32 %v13647_v54, %v3724_v21  ;;  %v14155_v54 = vld [vmem:[%s18779_s12 + $0x360] sm:$0xff] }
 0x7be   : > { %v14030_v2 = vld [vmem:[#allocation5 + $0x40] sm:$0xff] }
 0x7bf   : > { %4134 = vst.msk [vmem:[#allocation5 + $0x48] sm:$0xff] %vm3215_vm5, %v4118_v31  ;;  %9305 = vmatmul.msk.f32.vlgmr.msrb.gmra.mxu1 %vm3215_vm5, %v13869_v9  ;;  %9310 = vmatmul.msk.f32.vlgmr.msrb.gmra.mxu2 %vm3215_vm5, %v14028_v12  ;;  %v9376_v9 = vld [vmem:[%s18779_s12 + $0x308] sm:$0xff]  ;;  %v3906_v15 = vadd.f32 %v13660_v30, %v3841_v8 }
 0x7c0   : > { %9355 = vmatmul.msk.f32.vlgmr.msra.gmra.mxu3 %vm3215_vm5, %v14030_v2  ;;  %9360 = vmatmul.msk.f32.vlgmr.msrb.gmra.mxu0 %vm3215_vm5, %v14030_v2  ;;  %v9341_v30 = vld [vmem:[%s18779_s12 + $0x268] sm:$0xff] }
 0x7c1   : > { %4687 = vmatpush.msrb.mxu3 %v9376_v9  ;;  %9364 = vmatpush.msk.msrb.mxu1 %vm2926_vm4, %v9353_v61  ;;  %v3971_v60 = vadd.f32 %v3970_v38, %v3906_v15 }
 0x7c2   : > { %v4029_v41 = vpop.f32.mrf.mxu3  ;;  %v4091_v26 = vpop.f32.mrf.mxu0 }
 0x7c3   : > { %v4092_v4 = vadd.f32 %v4091_v26, %v4027_v47  ;;  %4688 = vmatpush.msrb.mxu3 %v9373_v23  ;;  %v4030_v55 = vadd.f32 %v4029_v41, %v3965_v28  ;;  %v3973_v24 = vpop.f32.mrf.mxu2  ;;  %v3844_v47 = vadd.f32 %v13658_v50, %v3729_v51  ;;  %v9378_v50 = vld [vmem:[%s18779_s12 + $0x318] sm:$0xff] }
 0x7c5   : > { %v4119_v44 = vmax.f32 %v4092_v4, 0.0  ;;  %4689 = vmatpush.msrb.mxu3 %v9370_v63  ;;  %v3909_v41 = vadd.f32 %v13673_v11, %v3844_v47  ;;  %v9332_v11 = vld [vmem:[%s18779_s12 + $0x220] sm:$0xff] }
 0x7c6   : > { %v14082_v6 = vld [vmem:[#allocation5 + $0x48] sm:$0xff]  ;;  %v9375_v4 = vld [vmem:[%s18779_s12 + $0x300] sm:$0xff] }
 0x7c7   : > { %4135 = vst.msk [vmem:[#allocation5 + $0x50] sm:$0xff] %vm3215_vm5, %v4119_v44  ;;  %9306 = vmatmul.msk.f32.gmra.mxu1 %vm3215_vm5, %v13916_v62  ;;  %9311 = vmatmul.msk.f32.gmra.mxu2 %vm3215_vm5, %v14080_v16  ;;  %v3903_v62 = vadd.f32 %v13649_v46, %v3838_v34  ;;  %v14116_v46 = vld [vmem:[%s18779_s12 + $0x3a8] sm:$0x3f]  ;;  %v3974_v7 = vadd.f32 %v3973_v24, %v3909_v41  ;;  %v9369_v34 = vld [vmem:[%s18779_s12 + $0x2d0] sm:$0xff] }
 0x7c8   : > { %9356 = vmatmul.msk.f32.gmra.mxu3 %vm3215_vm5, %v14082_v6  ;;  %9361 = vmatmul.msk.f32.gmra.mxu0 %vm3215_vm5, %v14082_v6  ;;  %v9372_v44 = vld [vmem:[%s18779_s12 + $0x2e8] sm:$0xff] }
 0x7c9   : > { %v3968_v59 = vadd.f32 %v3967_v29, %v3903_v62  ;;  %10399 = vmatpush.msk.msrb.mxu2 %vm2926_vm4, %v14116_v46  ;;  %v3847_v29 = vadd.f32 %v13671_v1, %v3734_v45 }
 0x7ca   : > { %v4032_v39 = vpop.f32.mrf.mxu3  ;;  %v4094_v49 = vpop.f32.mrf.mxu0 }
 0x7cb   : > { %v4095_v35 = vadd.f32 %v4094_v49, %v4030_v55  ;;  %v4033_v13 = vadd.f32 %v4032_v39, %v3968_v59  ;;  %10400 = vmatpush.msrb.mxu2 %v14128_v0  ;;  %v3976_v48 = vpop.f32.mrf.mxu2  ;;  %v3912_v28 = vadd.f32 %v13683_v32, %v3847_v29  ;;  %v9326_v49 = vld [vmem:[%s18779_s12 + $0x1f0] sm:$0xff] }
 0x7cd   : > { %v4120_v52 = vmax.f32 %v4095_v35, 0.0  ;;  %10401 = vmatpush.msrb.mxu2 %v14139_v42  ;;  %v3977_v1 = vadd.f32 %v3976_v48, %v3912_v28 }
 0x7ce   : > { %v14103_v10 = vld [vmem:[#allocation5 + $0x50] sm:$0xff] }
 0x7cf   : > { %4136 = vst.msk [vmem:[#allocation5 + $0x58] sm:$0xff] %vm3215_vm5, %v4120_v52  ;;  %9307 = vmatmul.msk.f32.gmra.mxu1 %vm3215_vm5, %v13926_v58  ;;  %9312 = vmatmul.msk.f32.gmra.mxu2 %vm3215_vm5, %v14101_v37  ;;  %v9350_v58 = vld [vmem:[%s18779_s12 + $0x2b0] sm:$0xff] }
 0x7d0   : > { %9357 = vmatmul.msk.f32.gmra.mxu3 %vm3215_vm5, %v14103_v10  ;;  %9362 = vmatmul.msk.f32.gmra.mxu0 %vm3215_vm5, %v14103_v10 }
 0x7d1   : > { %4555 = vmatpush.msrb.mxu1 %v9350_v58  ;;  %10402 = vmatpush.msrb.mxu2 %v14155_v54 }
 0x7d2   : > { %v4035_v19 = vpop.f32.mrf.mxu3  ;;  %v4097_v57 = vpop.f32.mrf.mxu0 }
 0x7d3   : > { %v4098_v14 = vadd.f32 %v4097_v57, %v4033_v13  ;;  %4556 = vmatpush.msrb.mxu1 %v9347_v43  ;;  %10403 = vmatpush.msrb.mxu2 %v14172_v25 }
 0x7d5   : > { %v4121_v53 = vmax.f32 %v4098_v14, 0.0  ;;  %4557 = vmatpush.msrb.mxu1 %v9344_v5  ;;  %10404 = vmatpush.msrb.mxu2 %v14181_v36 }
 0x7d6   : > { %v14147_v31 = vld [vmem:[#allocation5 + $0x58] sm:$0xff] }
 0x7d7   : > { %4137 = vst.msk [vmem:[#allocation5 + $0x60] sm:$0xff] %vm3215_vm5, %v4121_v53  ;;  %9308 = vmatmul.msk.f32.gmra.mxu1 %vm3215_vm5, %v13977_v3  ;;  %9313 = vmatmul.msk.f32.gmra.mxu2 %vm3215_vm5, %v14144_v27  ;;  %v4036_v3 = vadd.f32 %v4035_v19, %v3971_v60 }
 0x7d8   : > { %9358 = vmatmul.msk.f32.gmra.mxu3 %vm3215_vm5, %v14147_v31  ;;  %9363 = vmatmul.msk.f32.gmra.mxu0 %vm3215_vm5, %v14147_v31 }
 0x7d9   : > { %4558 = vmatpush.msrb.mxu1 %v9341_v30  ;;  %10405 = vmatpush.msrb.mxu2 %v9378_v50 }
 0x7da   : > { %v4100_v9 = vpop.f32.mrf.mxu0  ;;  %v4038_v17 = vpop.f32.mrf.mxu3 }
 0x7db   : > { %v4101_v40 = vadd.f32 %v4100_v9, %v4036_v3  ;;  %4559 = vmatpush.msrb.mxu1 %v9338_v33  ;;  %v4039_v20 = vadd.f32 %v4038_v17, %v3974_v7  ;;  %10406 = vmatpush.msrb.mxu2 %v9375_v4 }
 0x7dd   : > { %v4122_v26 = vmax.f32 %v4101_v40, 0.0  ;;  %4560 = vmatpush.msrb.mxu1 %v9335_v56  ;;  %10407 = vmatpush.msrb.mxu2 %v9372_v44 }
 0x7de   : > { %v14187_v23 = vld [vmem:[#allocation5 + $0x60] sm:$0xff] }
 0x7df   : > { %4138 = vst.msk [vmem:[#allocation5 + $0x68] sm:$0xff] %vm3215_vm5, %v4122_v26  ;;  %9315 = vmatmul.msk.f32.vlgmr.msra.gmra.mxu1 %vm3215_vm5, %v14028_v12  ;;  %9320 = vmatmul.msk.f32.vlgmr.msra.gmra.mxu2 %vm3215_vm5, %v14028_v12  ;;  %v9329_v12 = vld [vmem:[%s18779_s12 + $0x208] sm:$0xff] }
 0x7e0   : > { %9405 = vmatmul.msk.f32.vlgmr.msrb.gmra.mxu3 %vm3215_vm5, %v14187_v23  ;;  %9410 = vmatmul.msk.f32.vlgmr.msra.gmra.mxu0 %vm3215_vm5, %v14187_v23 }
 0x7e1   : > { %4561 = vmatpush.msrb.mxu1 %v9332_v11  ;;  %10408 = vmatpush.msrb.mxu2 %v9369_v34 }
 0x7e2   : > { %v4103_v22 = vpop.f32.mrf.mxu0  ;;  %v4041_v55 = vpop.f32.mrf.mxu3 }
 0x7e3   : > { %v4104_v63 = vadd.f32 %v4103_v22, %v4039_v20  ;;  %4562 = vmatpush.msrb.mxu1 %v9329_v12  ;;  %v4042_v32 = vadd.f32 %v4041_v55, %v3977_v1 }
 0x7e5   : > { %v4123_v18 = vmax.f32 %v4104_v63, 0.0  ;;  %4563 = vmatpush.msrb.mxu1 %v9326_v49 }
 0x7e6   : > { %v4590_v39 = vld [vmem:[#allocation5 + $0x68] sm:$0xff] }
 0x7e7   : > { %4139 = vst.msk [vmem:[#allocation5 + $0x70] sm:$0xff] %vm3215_vm5, %v4123_v18  ;;  %9316 = vmatmul.msk.f32.gmra.mxu1 %vm3215_vm5, %v14080_v16  ;;  %9321 = vmatmul.msk.f32.gmra.mxu2 %vm3215_vm5, %v14080_v16 }
 0x7e8   : > { %9406 = vmatmul.msk.f32.gmra.mxu3 %vm3215_vm5, %v4590_v39  ;;  %9411 = vmatmul.msk.f32.gmra.mxu0 %vm3215_vm5, %v4590_v39 }
 0x7e9   : > { %9399 = vmatpush.msk.msra.mxu1 %vm2926_vm4, %v14116_v46 }
 0x7ea   : > { %v4106_v35 = vpop.f32.mrf.mxu0 }
 0x7eb   : > { %v4107_v62 = vadd.f32 %v4106_v35, %v4042_v32  ;;  %4652 = vmatpush.msra.mxu1 %v14128_v0 }
 0x7ed   : > { %v4124_v52 = vmax.f32 %v4107_v62, 0.0  ;;  %4653 = vmatpush.msra.mxu1 %v14139_v42 }
 0x7ee   : > { %v4591_v59 = vld [vmem:[#allocation5 + $0x70] sm:$0xff] }
 0x7ef   : > { %4140 = vst.msk [vmem:[#allocation5 + $0x78] sm:$0xff] %vm3215_vm5, %v4124_v52  ;;  %9317 = vmatmul.msk.f32.gmra.mxu1 %vm3215_vm5, %v14101_v37  ;;  %9322 = vmatmul.msk.f32.gmra.mxu2 %vm3215_vm5, %v14101_v37 }
 0x7f0   : > { %9407 = vmatmul.msk.f32.gmra.mxu3 %vm3215_vm5, %v4591_v59  ;;  %9412 = vmatmul.msk.f32.gmra.mxu0 %vm3215_vm5, %v4591_v59 }
 0x7f1   : > { %4654 = vmatpush.msra.mxu1 %v14155_v54 }
 0x7f3   : > { %4655 = vmatpush.msra.mxu1 %v14172_v25 }
 0x7f5   : > { %4656 = vmatpush.msra.mxu1 %v14181_v36 }
 0x7f6   : > { %v4592_v16 = vld [vmem:[#allocation5 + $0x78] sm:$0xff] }
 0x7f7   : > { %9318 = vmatmul.msk.f32.gmra.mxu1 %vm3215_vm5, %v14144_v27  ;;  %9323 = vmatmul.msk.f32.gmra.mxu2 %vm3215_vm5, %v14144_v27  ;;  %v14283_v27 = vld [vmem:[%s18780_s13] sm:$0xff] }
 0x7f8   : > { %9408 = vmatmul.msk.f32.gmra.mxu3 %vm3215_vm5, %v4592_v16  ;;  %9413 = vmatmul.msk.f32.gmra.mxu0 %vm3215_vm5, %v4592_v16 }
 0x7f9   : > { %4657 = vmatpush.msra.mxu1 %v9378_v50  ;;  %4746 = vrot.lane.b32.xlu0 %v14283_v27, %s10704_s29 }
 0x7fa   : > { %5082 = vrot.lane.b32.xlu2 %v14283_v27, %s10705_s0 }
 0x7fb   : > { %4658 = vmatpush.msra.mxu1 %v9375_v4 }
 0x7fd   : > { %4659 = vmatpush.msra.mxu1 %v9372_v44 }
 0x7ff   : > { %9365 = vmatmul.msk.f32.vlgmr.msrb.gmra.mxu1 %vm3215_vm5, %v14030_v2  ;;  %9401 = vmatmul.msk.f32.vlgmr.msrb.gmra.mxu2 %vm3215_vm5, %v4590_v39 }
 0x800   : > { %4660 = vmatpush.msra.mxu1 %v9369_v34 }
 0x801   : > { %4954 = vrot.lane.b32.xlu0 %v14283_v27, %s10706_s23 }
 0x807   : > { %9366 = vmatmul.msk.f32.gmra.mxu1 %vm3215_vm5, %v14082_v6  ;;  %9402 = vmatmul.msk.f32.gmra.mxu2 %vm3215_vm5, %v4591_v59 }
 0x80f   : > { %9367 = vmatmul.msk.f32.gmra.mxu1 %vm3215_vm5, %v14103_v10  ;;  %9403 = vmatmul.msk.f32.gmra.mxu2 %vm3215_vm5, %v4592_v16 }
 0x817   : > { %9368 = vmatmul.msk.f32.gmra.mxu1 %vm3215_vm5, %v14147_v31  ;;  %v14292_v31 = vld [vmem:[%s18780_s13 + $0x18] sm:$0xf] }
 0x818   : > { %4748 = vrot.lane.b32.xlu1 %v14292_v31, %s10704_s29  ;;  %5084 = vrot.lane.b32.xlu2 %v14292_v31, %s10705_s0 }
 0x81c   : > { %v14262_v37 = vpop.f32.mrf.mxu1 }
 0x81f   : > { %9400 = vmatmul.msk.f32.vlgmr.msra.gmra.mxu1 %vm3215_vm5, %v14187_v23 }
 0x820   : > { %4956 = vrot.lane.b32.xlu1 %v14292_v31, %s10706_s23 }
 0x822   : > { %v4285_v2 = vpop.f32.mrf.mxu2 }
 0x824   : > { %v4259_v61 = vpop.f32.mrf.mxu1 }
 0x82a   : > { %v4288_v46 = vpop.f32.mrf.mxu2 }
 0x82c   : > { %v14266_v38 = vpop.f32.mrf.mxu1 }
 0x832   : > { %v14268_v6 = vpop.f32.mrf.mxu2 }
 0x834   : > { %v14270_v58 = vpop.f32.mrf.mxu1 }
 0x83a   : > { %v4294_v10 = vpop.f32.mrf.mxu2 }
 0x83c   : > { %v4314_v0 = vpop.f32.mrf.mxu1 }
 0x83d   : > { %v4536_v14 = vpop.f32.mrf.mxu0 }
 0x842   : > { %v14272_v21 = vpop.f32.mrf.mxu2 }
 0x843   : > { %v14274_v13 = vpop.f32.mrf.mxu3 }
 0x844   : > { %v4317_v19 = vpop.f32.mrf.mxu1 }
 0x845   : > { %v4539_v30 = vpop.f32.mrf.mxu0 }
 0x84a   : > { %v4367_v57 = vpop.f32.mrf.mxu2 }
 0x84b   : > { %v4510_v43 = vpop.f32.mrf.mxu3  ;;  %v4368_v11 = vadd.f32 %v4367_v57, %v4259_v61 }
 0x84c   : > { %v14276_v42 = vpop.f32.mrf.mxu1 }
 0x84d   : > { %v4542_v24 = vpop.f32.mrf.mxu0  ;;  %v4580_v28 = vadd.f32 %v4510_v43, %v4368_v11 }
 0x852   : > { %v4370_v8 = vpop.f32.mrf.mxu2 }
 0x853   : > { %v4513_v15 = vpop.f32.mrf.mxu3  ;;  %v4371_v62 = vadd.f32 %v4370_v8, %v14266_v38 }
 0x854   : > { %v14278_v53 = vpop.f32.mrf.mxu1 }
 0x855   : > { %v4545_v47 = vpop.f32.mrf.mxu0  ;;  %v4583_v61 = vadd.f32 %v4513_v15, %v4371_v62 }
 0x85a   : > { %v4373_v5 = vpop.f32.mrf.mxu2 }
 0x85b   : > { %v14296_v54 = vpop.f32.mrf.mxu3  ;;  %v4374_v43 = vadd.f32 %v4373_v5, %v14270_v58 }
 0x85c   : > { %v4393_v60 = vpop.f32.mrf.mxu1 }
 0x85d   : > { %v4394_v26 = vadd.f32 %v4393_v60, %v4285_v2  ;;  %v4720_v50 = vpop.f32.mrf.mxu0  ;;  %v4586_v60 = vadd.f32 %v14296_v54, %v4374_v43  ;;  %v4365_v54 = vadd.f32 %v14272_v21, %v14262_v37 }
 0x85f   : > { %v4578_v45 = vadd.f32 %v4536_v14, %v4394_v26 }
 0x862   : > { %v4422_v25 = vpop.f32.mrf.mxu2 }
 0x863   : > { %v4691_v51 = vpop.f32.mrf.mxu3  ;;  %v4423_v7 = vadd.f32 %v4422_v25, %v4314_v0 }
 0x864   : > { %v4396_v3 = vpop.f32.mrf.mxu1  ;;  %v14304_v29 = vadd.f32 %v4691_v51, %v4578_v45 }
 0x865   : > { %v4397_v22 = vadd.f32 %v4396_v3, %v4288_v46  ;;  %v4723_v2 = vpop.f32.mrf.mxu0 }
 0x867   : > { %v4581_v18 = vadd.f32 %v4539_v30, %v4397_v22 }
 0x86a   : > { %v4425_v9 = vpop.f32.mrf.mxu2 }
 0x86b   : > { %v4694_v33 = vpop.f32.mrf.mxu3  ;;  %v4426_v34 = vadd.f32 %v4425_v9, %v4317_v19  ;;  %v14451_v22 = vpop.permute.xlu0 %4746 }
 0x86c   : > { %v4399_v36 = vpop.f32.mrf.mxu1  ;;  %v14318_v1 = vadd.f32 %v4694_v33, %v4581_v18 }
 0x86d   : > { %v4400_v52 = vadd.f32 %v4399_v36, %v14268_v6 }
 0x86f   : > { %v4584_v46 = vadd.f32 %v4542_v24, %v4400_v52 }
 0x872   : > { %v4428_v40 = vpop.f32.mrf.mxu2 }
 0x873   : > { %v4697_v17 = vpop.f32.mrf.mxu3  ;;  %v4429_v19 = vadd.f32 %v4428_v40, %v14276_v42  ;;  %v4726_v42 = vpop.f32.mrf.mxu0 }
 0x874   : > { %v4402_v41 = vpop.f32.mrf.mxu1  ;;  %v14337_v57 = vadd.f32 %v4697_v17, %v4584_v46  ;;  %v14462_v18 = vpop.permute.xlu0 %4954 }
 0x875   : > { %v4403_v23 = vadd.f32 %v4402_v41, %v4294_v10 }
 0x877   : > { %v4587_v12 = vadd.f32 %v4545_v47, %v4403_v23  ;;  %v4577_v47 = vadd.f32 %v14274_v13, %v4365_v54 }
 0x87a   : > { %v4431_v56 = vpop.f32.mrf.mxu2 }
 0x87b   : > { %v4700_v4 = vpop.f32.mrf.mxu3  ;;  %v4432_v9 = vadd.f32 %v4431_v56, %v14278_v53  ;;  %v4729_v40 = vpop.f32.mrf.mxu0 }
 0x87c   : > { %v4565_v20 = vpop.f32.mrf.mxu1  ;;  %v14306_v63 = vadd.f32 %v4700_v4, %v4587_v12  ;;  %v14437_v4 = vld [vmem:[%s18780_s13 + $0x20] sm:$0xf] }
 0x87d   : > { %v4579_v44 = vadd.f32 %v4565_v20, %v4423_v7  ;;  %v14423_v7 = vpop.permute.xlu2 %5082 }
 0x87f   : > { %v14308_v48 = vadd.f32 %v4720_v50, %v4579_v44  ;;  %v14421_v50 = vld [vmem:[%s18780_s13 + $0x8] sm:$0xff] }
 0x881   : > { %v14312_v55 = vpack.i.bf16 %v14308_v48, %v14304_v29  ;;  %v14316_v39 = vpack.i.bf16 %v14308_v48, %v14306_v63 }
 0x882   : > { %v4665_v49 = vpop.f32.mrf.mxu2 }
 0x883   : > { %v14320_v32 = vadd.f32 %v4665_v49, %v4580_v28  ;;  %10448 = vrot.lane.b32.xlu0 %v14312_v55, %s10707_s25  ;;  %10443 = vrot.lane.b32.xlu2 %v14316_v39, %s10690_s27 }
 0x884   : > { %v4568_v35 = vpop.f32.mrf.mxu1 }
 0x885   : > { %v4582_v59 = vadd.f32 %v4568_v35, %v4426_v34  ;;  %v14330_v16 = vpack.i.bf16 %v14318_v1, %v14320_v32  ;;  %v14432_v11 = vpop.permute.xlu2 %5084 }
 0x887   : > { %10458 = vrot.lane.b32.xlu1 %v14330_v16, %s10693_s30  ;;  %v14334_v10 = vadd.f32 %v4723_v2, %v4582_v59 }
 0x889   : > { %v14347_v15 = vpack.i.bf16 %v14308_v48, %v14334_v10  ;;  %v14358_v58 = vpack.i.bf16 %v14334_v10, %v14318_v1 }
 0x88a   : > { %v4668_v0 = vpop.f32.mrf.mxu2  ;;  %v14455_v44 = vpop.permute.xlu1 %4748 }
 0x88b   : > { %v4738_v38 = vadd.f32 %v4668_v0, %v4583_v61  ;;  %10453 = vrot.lane.b32.xlu2 %v14330_v16, %s10690_s27 }
 0x88c   : > { %v4571_v6 = vpop.f32.mrf.mxu1 }
 0x88d   : > { %v4585_v8 = vadd.f32 %v4571_v6, %v4429_v19  ;;  %v14343_v14 = vpack.i.bf16 %v14337_v57, %v4738_v38 }
 0x88f   : > { %10478 = vrot.lane.b32.xlu0 %v14343_v14, %s10693_s30  ;;  %10468 = vrot.lane.b32.xlu1 %v14347_v15, %s10693_s30  ;;  %v14354_v30 = vadd.f32 %v4726_v42, %v4585_v8  ;;  %v4147_v8 = vld [vmem:[%s18781_s14] sm:$0xff] }
 0x891   : > { %v10482_v3 = vpack.i.bf16 %v14354_v30, %v14337_v57  ;;  %v10587_v20 = vpack.i.bf16 %v14354_v30, %v14318_v1 }
 0x892   : > { %v4671_v5 = vpop.f32.mrf.mxu2  ;;  %v14466_v49 = vpop.permute.xlu1 %4956 }
 0x893   : > { %v4741_v25 = vadd.f32 %v4671_v5, %v4586_v60  ;;  %10463 = vrot.lane.b32.xlu2 %v14358_v58, %s10707_s25  ;;  %v4148_v60 = vld [vmem:[%s18781_s14 + $0x8] sm:$0xf] }
 0x894   : > { %v4574_v51 = vpop.f32.mrf.mxu1 }
 0x895   : > { %4897 = vmatpush.msrb.mxu0 %v4741_v25  ;;  %v14364_v24 = vpack.i.bf16 %v4738_v38, %v4741_v25  ;;  %v4588_v33 = vadd.f32 %v4574_v51, %v4432_v9  ;;  %v10492_v36 = vpack.i.bf16 %v14306_v63, %v4741_v25  ;;  %v14379_v53 = vpack.i.bf16 %v4741_v25, %v14334_v10 }
 0x897   : > { %10483 = vrot.lane.b32.xlu0 %v10482_v3, %s10707_s25  ;;  %4898 = vmatpush.msrb.mxu0 %v4738_v38  ;;  %v14376_v37 = vadd.f32 %v4729_v40, %v4588_v33 }
 0x898   : > { %10473 = vrot.lane.b32.xlu1 %v14343_v14, %s10690_s27 }
 0x899   : > { %4899 = vmatpush.msrb.mxu0 %v14320_v32  ;;  %v10507_v13 = vpack.i.bf16 %v14376_v37, %v14306_v63  ;;  %v14391_v26 = vpack.i.bf16 %v14354_v30, %v14376_v37  ;;  %v10577_v56 = vpack.i.bf16 %v14320_v32, %v14376_v37 }
 0x89b   : > { %10493 = vrot.lane.b32.xlu2 %v10492_v36, %s10693_s30 }
 0x89c   : > { %v4662_v17 = vpop.f32.mrf.mxu1 }
 0x89d   : > { %v4732_v21 = vadd.f32 %v4662_v17, %v4577_v47 }
 0x89f   : > { %10498 = vrot.lane.b32.xlu0 %v14364_v24, %s10707_s25  ;;  %4900 = vmatpush.msrb.mxu0 %v4732_v21  ;;  %v10652_v41 = vpack.i.bf16 %v4732_v21, %v14320_v32  ;;  %v14399_v23 = vpack.i.bf16 %v14304_v29, %v4732_v21 }
 0x8a0   : > { %10488 = vrot.lane.b32.xlu1 %v14379_v53, %s10690_s27  ;;  %9420 = vmatmul.msk.f32.vlgmr.msrb.gmra.mxu0 %vm4807_vm6, %v14283_v27 }
 0x8a3   : > { %10508 = vrot.lane.b32.xlu2 %v10507_v13, %s10707_s25 }
 0x8a7   : > { %10503 = vrot.lane.b32.xlu0 %v14391_v26, %s10690_s27 }
 0x8a8   : > { %10513 = vrot.lane.b32.xlu1 %v14391_v26, %s10693_s30  ;;  %9421 = vmatmul.msk.f32.gmra.mxu0 %vm4807_vm6, %v14292_v31 }
 0x8ab   : > { %10533 = vrot.lane.b32.xlu2 %v14316_v39, %s10708_s17 }
 0x8af   : > { %10518 = vrot.lane.b32.xlu0 %v14399_v23, %s10690_s27 }
 0x8b0   : > { %10528 = vrot.lane.b32.xlu1 %v14379_v53, %s10708_s17 }
 0x8b3   : > { %10558 = vrot.lane.b32.xlu2 %v14399_v23, %s10693_s30 }
 0x8b7   : > { %10523 = vrot.lane.b32.xlu0 %v14391_v26, %s10708_s17 }
 0x8b8   : > { %10543 = vrot.lane.b32.xlu1 %v14330_v16, %s10708_s17 }
 0x8bb   : > { %10563 = vrot.lane.b32.xlu2 %v10492_v36, %s10702_s24 }
 0x8bf   : > { %10538 = vrot.lane.b32.xlu0 %v14343_v14, %s10708_s17 }
 0x8c0   : > { %10553 = vrot.lane.b32.xlu1 %v14343_v14, %s10709_s26 }
 0x8c3   : > { %10578 = vrot.lane.b32.xlu2 %v10577_v56, %s10702_s24 }
 0x8c7   : > { %10548 = vrot.lane.b32.xlu0 %v10492_v36, %s10709_s26 }
 0x8c8   : > { %10573 = vrot.lane.b32.xlu1 %v14343_v14, %s10702_s24 }
 0x8cb   : > { %5464 = vrot.lane.b32.xlu2 %v14421_v50, %s10706_s23 }
 0x8cf   : > { %10568 = vrot.lane.b32.xlu0 %v14330_v16, %s10709_s26 }
 0x8d0   : > { %10583 = vrot.lane.b32.xlu1 %v10652_v41, %s10707_s25 }
 0x8d3   : > { %5336 = vrot.lane.b32.xlu2 %v14421_v50, %s10704_s29 }
 0x8d7   : > { %5466 = vrot.lane.b32.xlu0 %v14437_v4, %s10706_s23 }
 0x8d8   : > { %10588 = vrot.lane.b32.xlu1 %v10587_v20, %s10702_s24 }
 0x8db   : > { %10603 = vrot.lane.b32.xlu2 %v14399_v23, %s10708_s17 }
 0x8dd   : > { %v14445_v45 = vpop.permute.xlu2 %10443 }
 0x8de   : > { %v10445_v19 = vunpack.i.l.bf16 %v14445_v45  ;;  %v10446_v20 = vunpack.i.h.bf16 %v14445_v45 }
 0x8df   : > { %5338 = vrot.lane.b32.xlu0 %v14437_v4, %s10704_s29 }
 0x8e0   : > { %10593 = vrot.lane.b32.xlu1 %v14347_v15, %s10702_s24 }
 0x8e3   : > { %10608 = vrot.lane.b32.xlu2 %v10482_v3, %s10710_s18 }
 0x8e5   : > { %v14453_v12 = vpop.permute.xlu2 %10453 }
 0x8e6   : > { %v10455_v42 = vunpack.i.l.bf16 %v14453_v12 }
 0x8e7   : > { %10623 = vrot.lane.b32.xlu0 %v14399_v23, %s10709_s26 }
 0x8e8   : > { %10598 = vrot.lane.b32.xlu1 %v10507_v13, %s10710_s18 }
 0x8eb   : > { %10618 = vrot.lane.b32.xlu2 %v14358_v58, %s10710_s18 }
 0x8ed   : > { %v14460_v28 = vpop.permute.xlu2 %10463 }
 0x8ef   : > { %10628 = vrot.lane.b32.xlu0 %v14399_v23, %s10702_s24  ;;  %s10711_s24 = smov 90  }
 0x8f0   : > { %10613 = vrot.lane.b32.xlu1 %v14391_v26, %s10709_s26 }
 0x8f3   : > { %5592 = vrot.lane.b32.xlu2 %v14421_v50, %s10705_s0 }
 0x8f5   : > { %v14474_v34 = vpop.permute.xlu2 %10493  ;;  %v14479_v32 = vpop.permute.xlu0 %10448 }
 0x8f6   : > { %v10496_v54 = vunpack.i.h.bf16 %v14474_v34  ;;  %v10495_v13 = vunpack.i.l.bf16 %v14474_v34 }
 0x8f7   : > { %10633 = vrot.lane.b32.xlu0 %v14312_v55, %s10710_s18 }
 0x8f8   : > { %10638 = vrot.lane.b32.xlu1 %v14347_v15, %s10709_s26  ;;  %v10456_v15 = vunpack.i.h.bf16 %v14453_v12  ;;  %v4989_v45 = vsel %vm4982_vm8, %v10495_v13, %v10496_v54 }
 0x8f9   : > { %v14481_v35 = vpop.permute.xlu1 %10458 }
 0x8fa   : > { %v4789_v25 = vsel %vm4786_vm7, %v10455_v42, %v10456_v15 }
 0x8fb   : > { %5594 = vrot.lane.b32.xlu2 %v14437_v4, %s10705_s0 }
 0x8fd   : > { %v14487_v62 = vpop.permute.xlu2 %10508 }
 0x8ff   : > { %10643 = vrot.lane.b32.xlu0 %v14364_v24, %s10710_s18 }
 0x900   : > { %10653 = vrot.lane.b32.xlu1 %v10652_v41, %s10710_s18  ;;  %s10398_s18 = sshll.u32 %s18787_s22, 5 }
 0x901   : > { %v14490_v52 = vpop.permute.xlu0 %10478  ;;  %v14492_v55 = vpop.permute.xlu1 %10468  ;;  %s18748_s0 = scalar_lea.vmem %s18783_s16, %s10398_s18 }
 0x902   : > { %v10481_v40 = vunpack.i.h.bf16 %v14490_v52  ;;  %v10470_v17 = vunpack.i.l.bf16 %v14492_v55 }
 0x903   : > { %10663 = vrot.lane.b32.xlu2 %v14316_v39, %s10711_s24 }
 0x905   : > { %v14495_v59 = vpop.permute.xlu2 %10533 }
 0x907   : > { %10648 = vrot.lane.b32.xlu0 %v14391_v26, %s10711_s24  ;;  %v10461_v26 = vunpack.i.h.bf16 %v14481_v35 }
 0x908   : > { %10658 = vrot.lane.b32.xlu1 %v14379_v53, %s10711_s24 }
 0x909   : > { %v14499_v2 = vpop.permute.xlu0 %10483 }
 0x90a   : > { %v10474_v61 = vpop.permute.xlu1 %10473 }
 0x90b   : > { %10678 = vrot.lane.b32.xlu2 %v14399_v23, %s10711_s24  ;;  %v10476_v38 = vunpack.i.h.bf16 %v10474_v61  ;;  %v10475_v6 = vunpack.i.l.bf16 %v10474_v61  ;;  %v10480_v61 = vunpack.i.l.bf16 %v14490_v52 }
 0x90d   : > { %v14502_v46 = vpop.permute.xlu2 %10558  ;;  %v4791_v58 = vsel %vm4786_vm7, %v10475_v6, %v10476_v38 }
 0x90e   : > { %v10561_v23 = vunpack.i.h.bf16 %v14502_v46 }
 0x90f   : > { %10668 = vrot.lane.b32.xlu0 %v14343_v14, %s10711_s24 }
 0x910   : > { %10673 = vrot.lane.b32.xlu1 %v14330_v16, %s10711_s24 }
 0x911   : > { %v14506_v0 = vpop.permute.xlu0 %10498 }
 0x912   : > { %v10489_v39 = vpop.permute.xlu1 %10488 }
 0x913   : > { %v10491_v43 = vunpack.i.h.bf16 %v10489_v39  ;;  %v10490_v36 = vunpack.i.l.bf16 %v10489_v39  ;;  %v10471_v39 = vunpack.i.h.bf16 %v14492_v55 }
 0x915   : > { %v4793_v14 = vsel %vm4786_vm7, %v10491_v43, %v10445_v19  ;;  %v14515_v16 = vpop.permute.xlu2 %10563  ;;  %v4790_v12 = vsel %vm4786_vm7, %v10456_v15, %v10490_v36  ;;  %v4984_v52 = vsel %vm4982_vm8, %v10561_v23, %v10471_v39 }
 0x916   : > { %4824 = vmatpush.msrb.mxu1 %v4793_v14  ;;  %v10460_v14 = vunpack.i.l.bf16 %v14481_v35  ;;  %v10510_v35 = vunpack.i.l.bf16 %v14487_v62 }
 0x917   : > { %5848 = vperm.xlu0 %10441, %v4147_v8   ;;  %v10511_v8 = vunpack.i.h.bf16 %v14487_v62 }
 0x918   : > { %4825 = vmatpush.msrb.mxu1 %v4791_v58  ;;  %5853 = vperm.xlu1 %10439, %v4148_v60   ;;  %v4987_v60 = vsel %vm4982_vm8, %v10480_v61, %v10481_v40 }
 0x919   : > { %v10504_v5 = vpop.permute.xlu0 %10503 }
 0x91a   : > { %v10506_v51 = vunpack.i.h.bf16 %v10504_v5  ;;  %v10505_v3 = vunpack.i.l.bf16 %v10504_v5  ;;  %v14522_v24 = vpop.permute.xlu1 %10513  ;;  %4826 = vmatpush.msrb.mxu1 %v4789_v25  ;;  %v10486_v5 = vunpack.i.h.bf16 %v14499_v2  ;;  %v10560_v25 = vunpack.i.l.bf16 %v14502_v46 }
 0x91b   : > { %v10516_v9 = vunpack.i.h.bf16 %v14522_v24  ;;  %v10515_v33 = vunpack.i.l.bf16 %v14522_v24  ;;  %v10566_v46 = vunpack.i.h.bf16 %v14515_v16  ;;  %v10535_v24 = vunpack.i.l.bf16 %v14495_v59 }
 0x91c   : > { %4870 = vmatpush.msra.mxu3 %v10505_v3  ;;  %v4794_v47 = vsel %vm4786_vm7, %v10445_v19, %v10505_v3  ;;  %v4792_v41 = vsel %vm4786_vm7, %v10476_v38, %v10506_v51  ;;  %v4986_v19 = vsel %vm4982_vm8, %v10461_v26, %v10470_v17  ;;  %v4985_v3 = vsel %vm4982_vm8, %v10460_v14, %v10461_v26 }
 0x91d   : > { %4847 = vmatpush.msra.mxu2 %v4794_v47  ;;  %v14530_v21 = vpop.permute.xlu2 %10578  ;;  %v4990_v53 = vsel %vm4982_vm8, %v10496_v54, %v10515_v33  ;;  %v4988_v56 = vsel %vm4982_vm8, %v10481_v40, %v10516_v9  ;;  %v5118_v47 = vsel %vm5110_vm9, %v10510_v35, %v10511_v8  ;;  %v10501_v40 = vunpack.i.h.bf16 %v14506_v0 }
 0x91e   : > { %5042 = vmatpush.msra.mxu0 %v4990_v53  ;;  %4871 = vmatpush.msra.mxu3 %v10506_v51  ;;  %v10466_v51 = vunpack.i.h.bf16 %v14460_v28 }
 0x91f   : > { %4848 = vmatpush.msra.mxu2 %v4792_v41 }
 0x920   : > { %5043 = vmatpush.msra.mxu0 %v4988_v56  ;;  %4872 = vmatpush.msra.mxu3 %v10490_v36  ;;  %v10565_v36 = vunpack.i.l.bf16 %v14515_v16 }
 0x921   : > { %4849 = vmatpush.msra.mxu2 %v4790_v12  ;;  %v10519_v34 = vpop.permute.xlu0 %10518 }
 0x922   : > { %v14549_v38 = vpop.permute.xlu1 %10528  ;;  %v10521_v6 = vunpack.i.h.bf16 %v10519_v34  ;;  %v10520_v43 = vunpack.i.l.bf16 %v10519_v34  ;;  %5044 = vmatpush.msra.mxu0 %v4986_v19  ;;  %4873 = vmatpush.msra.mxu3 %v10446_v20 }
 0x923   : > { %9418 = vmatmul.msk.f32.vlgmr.msra.gmra.mxu3 %vm4807_vm6, %v14451_v22  ;;  %v10530_v12 = vunpack.i.l.bf16 %v14549_v38 }
 0x924   : > { %5019 = vmatpush.msrb.mxu3 %v4989_v45  ;;  %5045 = vmatpush.msra.mxu0 %v4984_v52  ;;  %v4787_v15 = vsel %vm4786_vm7, %v10520_v43, %v10521_v6  ;;  %v4788_v42 = vsel %vm4786_vm7, %v10521_v6, %v10446_v20  ;;  %v10536_v43 = vunpack.i.h.bf16 %v14495_v59 }
 0x925   : > { %9428 = vmatmul.msk.f32.vlgmr.msra.gmra.mxu0 %vm4807_vm6, %v14462_v18  ;;  %v14564_v58 = vpop.permute.xlu2 %5464  ;;  %4827 = vmatpush.msrb.mxu1 %v4787_v15 }
 0x926   : > { %5193 = vmatpush.msrb.mxu0 %v10511_v8  ;;  %5020 = vmatpush.msrb.mxu3 %v4987_v60 }
 0x927   : > { %4850 = vmatpush.msra.mxu2 %v4788_v42  ;;  %9414 = vmatmul.msk.f32.vlgmr.msrb.gmra.mxu1 %vm4807_vm6, %v14451_v22 }
 0x928   : > { %9416 = vmatmul.msk.f32.vlgmr.msra.gmra.mxu2 %vm4807_vm6, %v14451_v22  ;;  %4920 = vmatpush.msra.mxu1 %v14306_v63  ;;  %v4983_v63 = vsel %vm4982_vm8, %v10560_v25, %v10561_v23  ;;  %v10485_v22 = vunpack.i.l.bf16 %v14499_v2  ;;  %v5371_v2 = vsel %vm5364_vm10, %v10565_v36, %v10566_v46  ;;  %v10531_v23 = vunpack.i.h.bf16 %v14549_v38 }
 0x929   : > { %4943 = vmatpush.msrb.mxu2 %v14376_v37  ;;  %5194 = vmatpush.msrb.mxu0 %v10486_v5  ;;  %v14577_v54 = vpop.permute.xlu0 %10523  ;;  %v10451_v37 = vunpack.i.h.bf16 %v14479_v32 }
 0x92a   : > { %5021 = vmatpush.msrb.mxu3 %v4985_v3  ;;  %4921 = vmatpush.msra.mxu1 %v14337_v57  ;;  %v14582_v62 = vpop.permute.xlu1 %10543  ;;  %v10500_v57 = vunpack.i.l.bf16 %v14506_v0  ;;  %v5116_v53 = vsel %vm5110_vm9, %v10485_v22, %v10486_v5  ;;  %v10525_v26 = vunpack.i.l.bf16 %v14577_v54  ;;  %v5241_v55 = vsel %vm5234_vm11, %v10531_v23, %v10535_v24 }
 0x92b   : > { %4944 = vmatpush.msrb.mxu2 %v14354_v30  ;;  %5195 = vmatpush.msrb.mxu0 %v10466_v51  ;;  %v10465_v30 = vunpack.i.l.bf16 %v14460_v28  ;;  %v10546_v61 = vunpack.i.h.bf16 %v14582_v62  ;;  %v10545_v34 = vunpack.i.l.bf16 %v14582_v62 }
 0x92c   : > { %5022 = vmatpush.msrb.mxu3 %v4983_v63  ;;  %4922 = vmatpush.msra.mxu1 %v14318_v1  ;;  %v5117_v0 = vsel %vm5110_vm9, %v10500_v57, %v10510_v35  ;;  %v10580_v63 = vunpack.i.l.bf16 %v14530_v21 }
 0x92d   : > { %4945 = vmatpush.msrb.mxu2 %v14334_v10  ;;  %5196 = vmatpush.msrb.mxu0 %v10451_v37  ;;  %v14600_v1 = vpop.permute.xlu2 %5336  ;;  %v10450_v10 = vunpack.i.l.bf16 %v14479_v32  ;;  %v5238_v16 = vsel %vm5234_vm11, %v10546_v61, %v10530_v12 }
 0x92e   : > { %5170 = vmatpush.msra.mxu3 %v5118_v47  ;;  %4923 = vmatpush.msra.mxu1 %v14304_v29  ;;  %v5114_v29 = vsel %vm5110_vm9, %v10465_v30, %v10466_v51  ;;  %v5242_v47 = vsel %vm5234_vm11, %v10535_v24, %v10525_v26  ;;  %v5372_v32 = vsel %vm5364_vm10, %v10566_v46, %v10580_v63 }
 0x92f   : > { %9419 = vmatmul.msk.f32.gmra.mxu3 %vm4807_vm6, %v14455_v44  ;;  %5401 = vmatpush.msra.mxu0 %v5371_v2  ;;  %v5112_v13 = vsel %vm5110_vm9, %v10450_v10, %v10451_v37  ;;  %v10581_v2 = vunpack.i.h.bf16 %v14530_v21 }
 0x930   : > { %4946 = vmatpush.msrb.mxu2 %v14308_v48  ;;  %9429 = vmatmul.msk.f32.gmra.mxu0 %vm4807_vm6, %v14466_v49 }
 0x931   : > { %5171 = vmatpush.msra.mxu3 %v5116_v53  ;;  %5065 = vmatpush.msrb.mxu1 %v10515_v33  ;;  %v14610_v41 = vpop.permute.xlu0 %10538  ;;  %v5115_v33 = vsel %vm5110_vm9, %v10501_v40, %v10485_v22 }
 0x932   : > { %5147 = vmatpush.msra.mxu2 %v5117_v0  ;;  %9415 = vmatmul.msk.f32.gmra.mxu1 %vm4807_vm6, %v14455_v44  ;;  %v14617_v48 = vpop.permute.xlu1 %10553  ;;  %v10540_v56 = vunpack.i.l.bf16 %v14610_v41 }
 0x933   : > { %9417 = vmatmul.msk.f32.gmra.mxu2 %vm4807_vm6, %v14455_v44  ;;  %5172 = vmatpush.msra.mxu3 %v5114_v29  ;;  %v10526_v44 = vunpack.i.h.bf16 %v14577_v54  ;;  %v10556_v51 = vunpack.i.h.bf16 %v14617_v48  ;;  %v10555_v3 = vunpack.i.l.bf16 %v14617_v48 }
 0x934   : > { %5066 = vmatpush.msrb.mxu1 %v10516_v9  ;;  %5148 = vmatpush.msra.mxu2 %v5115_v33  ;;  %v10541_v9 = vunpack.i.h.bf16 %v14610_v41 }
 0x935   : > { %5173 = vmatpush.msra.mxu3 %v5112_v13  ;;  %v5497_v57 = vsel %vm5492_vm12, %v10555_v3, %v10556_v51 }
 0x936   : > { %5067 = vmatpush.msrb.mxu1 %v10470_v17  ;;  %v14643_v17 = vpop.permute.xlu2 %10603  ;;  %v5239_v8 = vsel %vm5234_vm11, %v10540_v56, %v10541_v9 }
 0x937   : > { %9426 = vmatmul.msk.f32.vlgmr.msrb.gmra.mxu3 %vm4807_vm6, %v14462_v18  ;;  %v10606_v45 = vunpack.i.h.bf16 %v14643_v17  ;;  %v10605_v52 = vunpack.i.l.bf16 %v14643_v17 }
 0x938   : > { %5319 = vmatpush.msrb.mxu3 %v10525_v26  ;;  %5068 = vmatpush.msrb.mxu1 %v10471_v39 }
 0x939   : > { %9436 = vmatmul.msk.f32.vlgmr.msrb.gmra.mxu0 %vm4807_vm6, %v14423_v7  ;;  %v14647_v20 = vpop.permute.xlu0 %10548  ;;  %v5235_v59 = vsel %vm5234_vm11, %v10605_v52, %v10606_v45  ;;  %v5236_v54 = vsel %vm5234_vm11, %v10606_v45, %v10536_v43 }
 0x93a   : > { %5320 = vmatpush.msrb.mxu3 %v10526_v44  ;;  %9422 = vmatmul.msk.f32.vlgmr.msra.gmra.mxu1 %vm4807_vm6, %v14283_v27  ;;  %v10574_v39 = vpop.permute.xlu1 %10573  ;;  %v10551_v60 = vunpack.i.h.bf16 %v14647_v20  ;;  %v10550_v5 = vunpack.i.l.bf16 %v14647_v20 }
 0x93b   : > { %9424 = vmatmul.msk.f32.vlgmr.msrb.gmra.mxu2 %vm4807_vm6, %v14283_v27  ;;  %5273 = vmatpush.msra.mxu1 %v5241_v55  ;;  %v10576_v19 = vunpack.i.h.bf16 %v10574_v39  ;;  %v10575_v6 = vunpack.i.l.bf16 %v10574_v39  ;;  %v5237_v27 = vsel %vm5234_vm11, %v10545_v34, %v10546_v61 }
 0x93c   : > { %5321 = vmatpush.msrb.mxu3 %v10530_v12 }
 0x93d   : > { %5274 = vmatpush.msra.mxu1 %v5239_v8  ;;  %v5369_v15 = vsel %vm5364_vm10, %v10575_v6, %v10576_v19 }
 0x93e   : > { %5322 = vmatpush.msrb.mxu3 %v10536_v43  ;;  %5402 = vmatpush.msra.mxu0 %v5369_v15  ;;  %v14729_v46 = vpop.permute.xlu2 %10608 }
 0x93f   : > { %5275 = vmatpush.msra.mxu1 %v5237_v27  ;;  %9427 = vmatmul.msk.f32.gmra.mxu3 %vm4807_vm6, %v14466_v49  ;;  %v10610_v24 = vunpack.i.l.bf16 %v14729_v46 }
 0x941   : > { %9437 = vmatmul.msk.f32.gmra.mxu0 %vm4807_vm6, %v14432_v11  ;;  %5276 = vmatpush.msra.mxu1 %v5235_v59  ;;  %v14674_v42 = vpop.permute.xlu0 %10568 }
 0x942   : > { %9423 = vmatmul.msk.f32.gmra.mxu1 %vm4807_vm6, %v14292_v31  ;;  %v10584_v14 = vpop.permute.xlu1 %10583  ;;  %v10571_v37 = vunpack.i.h.bf16 %v14674_v42  ;;  %v10570_v22 = vunpack.i.l.bf16 %v14674_v42 }
 0x943   : > { %9425 = vmatmul.msk.f32.gmra.mxu2 %vm4807_vm6, %v14292_v31  ;;  %v10586_v25 = vunpack.i.h.bf16 %v10584_v14  ;;  %v10585_v35 = vunpack.i.l.bf16 %v10584_v14  ;;  %v5499_v31 = vsel %vm5492_vm12, %v10550_v5, %v10551_v60 }
 0x945   : > { %v5113_v36 = vsel %vm5110_vm9, %v10585_v35, %v10465_v30  ;;  %v5111_v28 = vsel %vm5110_vm9, %v10586_v25, %v10450_v10  ;;  %v5495_v10 = vsel %vm5492_vm12, %v10570_v22, %v10571_v37 }
 0x946   : > { %5149 = vmatpush.msra.mxu2 %v5113_v36  ;;  %v14743_v13 = vpop.permute.xlu2 %10618 }
 0x947   : > { %9434 = vmatmul.msk.f32.vlgmr.msra.gmra.mxu3 %vm4807_vm6, %v14423_v7  ;;  %v10621_v12 = vunpack.i.h.bf16 %v14743_v13  ;;  %v10620_v61 = vunpack.i.l.bf16 %v14743_v13 }
 0x948   : > { %5529 = vmatpush.msra.mxu3 %v5499_v31  ;;  %5150 = vmatpush.msra.mxu2 %v5111_v28 }
 0x949   : > { %v14704_v30 = vpop.permute.xlu0 %5466  ;;  %v5624_v39 = vsel %vm5620_vm13, %v10620_v61, %v10621_v12 }
 0x94a   : > { %5296 = vmatpush.msrb.mxu2 %v5242_v47  ;;  %5530 = vmatpush.msra.mxu3 %v5497_v57  ;;  %v10589_v40 = vpop.permute.xlu1 %10588 }
 0x94b   : > { %9430 = vmatmul.msk.f32.vlgmr.msrb.gmra.mxu1 %vm4807_vm6, %v14462_v18  ;;  %9432 = vmatmul.msk.f32.vlgmr.msra.gmra.mxu2 %vm4807_vm6, %v14423_v7  ;;  %v10591_v53 = vunpack.i.h.bf16 %v10589_v40  ;;  %v10590_v0 = vunpack.i.l.bf16 %v10589_v40  ;;  %v5240_v18 = vsel %vm5234_vm11, %v10541_v9, %v10526_v44  ;;  %v10611_v44 = vunpack.i.h.bf16 %v14729_v46 }
 0x94c   : > { %5424 = vmatpush.msrb.mxu1 %v5372_v32  ;;  %5531 = vmatpush.msra.mxu3 %v5495_v10 }
 0x94d   : > { %5297 = vmatpush.msrb.mxu2 %v5240_v18  ;;  %v5367_v21 = vsel %vm5364_vm10, %v10581_v2, %v10590_v0  ;;  %v5370_v7 = vsel %vm5364_vm10, %v10576_v19, %v10591_v53 }
 0x94e   : > { %5403 = vmatpush.msra.mxu0 %v5367_v21  ;;  %5425 = vmatpush.msrb.mxu1 %v5370_v7  ;;  %v14771_v45 = vpop.permute.xlu2 %5592 }
 0x94f   : > { %5298 = vmatpush.msrb.mxu2 %v5238_v16  ;;  %9435 = vmatmul.msk.f32.gmra.mxu3 %vm4807_vm6, %v14432_v11 }
 0x951   : > { %5299 = vmatpush.msrb.mxu2 %v5236_v54  ;;  %v14734_v38 = vpop.permute.xlu0 %5338 }
 0x952   : > { %v10594_v62 = vpop.permute.xlu1 %10593 }
 0x953   : > { %5447 = vmatpush.msra.mxu2 %v10580_v63  ;;  %9431 = vmatmul.msk.f32.gmra.mxu1 %vm4807_vm6, %v14466_v49  ;;  %v10595_v41 = vunpack.i.l.bf16 %v10594_v62  ;;  %v10596_v33 = vunpack.i.h.bf16 %v10594_v62 }
 0x954   : > { %9433 = vmatmul.msk.f32.gmra.mxu2 %vm4807_vm6, %v14432_v11 }
 0x955   : > { %5448 = vmatpush.msra.mxu2 %v10591_v53  ;;  %v5368_v29 = vsel %vm5364_vm10, %v10590_v0, %v10595_v41 }
 0x956   : > { %5426 = vmatpush.msrb.mxu1 %v5368_v29  ;;  %v14792_v36 = vpop.permute.xlu2 %5594 }
 0x957   : > { %5449 = vmatpush.msra.mxu2 %v10595_v41  ;;  %9442 = vmatmul.msk.f32.vlgmr.msrb.gmra.mxu3 %vm4807_vm6, %v14421_v50 }
 0x959   : > { %5450 = vmatpush.msra.mxu2 %v10596_v33  ;;  %v10624_v26 = vpop.permute.xlu0 %10623 }
 0x95a   : > { %v14747_v49 = vpop.permute.xlu1 %10598  ;;  %v10626_v11 = vunpack.i.h.bf16 %v10624_v26  ;;  %v10625_v23 = vunpack.i.l.bf16 %v10624_v26  ;;  %v4143_v26 = vld [vmem:[%s18780_s13 + $0x10] sm:$0xff] }
 0x95b   : > { %9438 = vmatmul.msk.f32.vlgmr.msra.gmra.mxu1 %vm4807_vm6, %v14421_v50  ;;  %v10601_v9 = vunpack.i.h.bf16 %v14747_v49  ;;  %v10600_v56 = vunpack.i.l.bf16 %v14747_v49 }
 0x95c   : > { %9440 = vmatmul.msk.f32.vlgmr.msrb.gmra.mxu2 %vm4807_vm6, %v14421_v50  ;;  %v5493_v17 = vsel %vm5492_vm12, %v10625_v23, %v10626_v11  ;;  %v5626_v50 = vsel %vm5620_vm13, %v10610_v24, %v10611_v44 }
 0x95d   : > { %5532 = vmatpush.msra.mxu3 %v5493_v17  ;;  %v5628_v34 = vsel %vm5620_vm13, %v10600_v56, %v10601_v9  ;;  %v4146_v17 = vld [vmem:[%s18780_s13 + $0x28] sm:$0xf] }
 0x95e   : > { %v10664_v28 = vpop.permute.xlu2 %10663 }
 0x95f   : > { %5680 = vmatpush.msrb.mxu3 %v5628_v34  ;;  %v10665_v40 = vunpack.i.l.bf16 %v10664_v28  ;;  %v10666_v54 = vunpack.i.h.bf16 %v10664_v28  ;;  %v14860_v34 = vpop.f32.mrf.mxu0  ;;  %v9644_v28 = vld [vmem:[%s18782_s15 + $0xe80] sm:$0xff] }
 0x960   : > { %9443 = vmatmul.msk.f32.gmra.mxu3 %vm4807_vm6, %v14437_v4 }
 0x961   : > { %5681 = vmatpush.msrb.mxu3 %v5626_v50  ;;  %v10629_v55 = vpop.permute.xlu0 %10628 }
 0x962   : > { %v10614_v19 = vpop.permute.xlu1 %10613  ;;  %v10631_v6 = vunpack.i.h.bf16 %v10629_v55  ;;  %v10630_v43 = vunpack.i.l.bf16 %v10629_v55 }
 0x963   : > { %9439 = vmatmul.msk.f32.gmra.mxu1 %vm4807_vm6, %v14437_v4  ;;  %5682 = vmatpush.msrb.mxu3 %v5624_v39  ;;  %v10615_v52 = vunpack.i.l.bf16 %v10614_v19  ;;  %v10616_v8 = vunpack.i.h.bf16 %v10614_v19 }
 0x964   : > { %9441 = vmatmul.msk.f32.gmra.mxu2 %vm4807_vm6, %v14437_v4  ;;  %v5365_v15 = vsel %vm5364_vm10, %v10630_v43, %v10631_v6  ;;  %v5366_v27 = vsel %vm5364_vm10, %v10631_v6, %v10596_v33 }
 0x965   : > { %5404 = vmatpush.msra.mxu0 %v5365_v15  ;;  %5427 = vmatpush.msrb.mxu1 %v5366_v27  ;;  %v5500_v59 = vsel %vm5492_vm12, %v10551_v60, %v10615_v52  ;;  %v5498_v4 = vsel %vm5492_vm12, %v10556_v51, %v10616_v8 }
 0x966   : > { %9444 = vmatmul.msk.f32.vlgmr.msra.gmra.mxu0 %vm4807_vm6, %v14600_v1 }
 0x967   : > { %5575 = vmatpush.msra.mxu1 %v10615_v52  ;;  %5552 = vmatpush.msrb.mxu0 %v5500_v59  ;;  %v14868_v19 = vpop.f32.mrf.mxu0  ;;  %v9716_v52 = vld [vmem:[%s18782_s15 + $0x10c0] sm:$0xff] }
 0x968   : > { %9450 = vmatmul.msk.f32.vlgmr.msra.gmra.mxu3 %vm4807_vm6, %v14564_v58 }
 0x969   : > { %5576 = vmatpush.msra.mxu1 %v10616_v8  ;;  %5553 = vmatpush.msrb.mxu0 %v5498_v4  ;;  %v10634_v14 = vpop.permute.xlu0 %10633  ;;  %v9708_v8 = vld [vmem:[%s18782_s15 + $0x1080] sm:$0xff] }
 0x96a   : > { %v10639_v20 = vpop.permute.xlu1 %10638  ;;  %v10636_v60 = vunpack.i.h.bf16 %v10634_v14  ;;  %v10635_v5 = vunpack.i.l.bf16 %v10634_v14  ;;  %v9700_v4 = vld [vmem:[%s18782_s15 + $0x1040] sm:$0xff] }
 0x96b   : > { %9446 = vmatmul.msk.f32.vlgmr.msrb.gmra.mxu1 %vm4807_vm6, %v14600_v1  ;;  %v10641_v25 = vunpack.i.h.bf16 %v10639_v20  ;;  %v10640_v35 = vunpack.i.l.bf16 %v10639_v20  ;;  %v9692_v20 = vld [vmem:[%s18782_s15 + $0x1000] sm:$0xff] }
 0x96c   : > { %9448 = vmatmul.msk.f32.vlgmr.msra.gmra.mxu2 %vm4807_vm6, %v14600_v1  ;;  %v5622_v3 = vsel %vm5620_vm13, %v10635_v5, %v10636_v60 }
 0x96d   : > { %5577 = vmatpush.msra.mxu1 %v10640_v35  ;;  %v5496_v48 = vsel %vm5492_vm12, %v10571_v37, %v10640_v35  ;;  %5683 = vmatpush.msrb.mxu3 %v5622_v3  ;;  %v5494_v1 = vsel %vm5492_vm12, %v10626_v11, %v10641_v25 }
 0x96e   : > { %5554 = vmatpush.msrb.mxu0 %v5496_v48 }
 0x96f   : > { %9445 = vmatmul.msk.f32.gmra.mxu0 %vm4807_vm6, %v14734_v38  ;;  %5578 = vmatpush.msra.mxu1 %v10641_v25 }
 0x970   : > { %9451 = vmatmul.msk.f32.gmra.mxu3 %vm4807_vm6, %v14704_v30  ;;  %5555 = vmatpush.msrb.mxu0 %v5494_v1  ;;  %v9660_v1 = vld [vmem:[%s18782_s15 + $0xf00] sm:$0xff] }
 0x971   : > { %v10644_v51 = vpop.permute.xlu0 %10643 }
 0x972   : > { %5703 = vmatpush.msra.mxu0 %v10601_v9  ;;  %v10654_v42 = vpop.permute.xlu1 %10653  ;;  %v10645_v63 = vunpack.i.l.bf16 %v10644_v51  ;;  %v10646_v37 = vunpack.i.h.bf16 %v10644_v51  ;;  %v9748_v51 = vld [vmem:[%s18782_s15 + $0x11c0] sm:$0x3f] }
 0x973   : > { %9447 = vmatmul.msk.f32.gmra.mxu1 %vm4807_vm6, %v14734_v38  ;;  %v10655_v31 = vunpack.i.l.bf16 %v10654_v42  ;;  %v10656_v47 = vunpack.i.h.bf16 %v10654_v42  ;;  %v9588_v42 = vld [vmem:[%s18782_s15 + $0xcc0] sm:$0xff] }
 0x974   : > { %9449 = vmatmul.msk.f32.gmra.mxu2 %vm4807_vm6, %v14734_v38  ;;  %5704 = vmatpush.msra.mxu0 %v10611_v44  ;;  %v5627_v22 = vsel %vm5620_vm13, %v10645_v63, %v10600_v56  ;;  %v5625_v57 = vsel %vm5620_vm13, %v10646_v37, %v10610_v24  ;;  %v10679_v38 = vpop.permute.xlu2 %10678  ;;  %v9652_v63 = vld [vmem:[%s18782_s15 + $0xec0] sm:$0xff]  ;;  %v9589_v37 = vld [vmem:[%s18782_s15 + $0xcc8] sm:$0xff] }
 0x975   : > { %5657 = vmatpush.msrb.mxu2 %v5627_v22  ;;  %v5623_v32 = vsel %vm5620_vm13, %v10655_v31, %v10620_v61  ;;  %v5621_v18 = vsel %vm5620_vm13, %v10656_v47, %v10635_v5  ;;  %v10681_v23 = vunpack.i.h.bf16 %v10679_v38  ;;  %v10680_v44 = vunpack.i.l.bf16 %v10679_v38  ;;  %v9676_v5 = vld [vmem:[%s18782_s15 + $0xf80] sm:$0xff]  ;;  %v9581_v47 = vld [vmem:[%s18782_s15 + $0xc88] sm:$0xff] }
 0x976   : > { %5705 = vmatpush.msra.mxu0 %v10621_v12  ;;  %v9740_v22 = vld [vmem:[%s18782_s15 + $0x1180] sm:$0xff] }
 0x977   : > { %9452 = vmatmul.msk.f32.vlgmr.msrb.gmra.mxu0 %vm4807_vm6, %v14564_v58  ;;  %5658 = vmatpush.msrb.mxu2 %v5625_v57  ;;  %v5745_v9 = vsel %vm5744_vm14, %v10680_v44, %v10681_v23  ;;  %v5746_v56 = vsel %vm5744_vm14, %v10681_v23, %v10666_v54  ;;  %v9580_v31 = vld [vmem:[%s18782_s15 + $0xc80] sm:$0xff] }
 0x978   : > { %9458 = vmatmul.msk.f32.vlgmr.msrb.gmra.mxu3 %vm4807_vm6, %v14771_v45  ;;  %5706 = vmatpush.msra.mxu0 %v10636_v60  ;;  %v9684_v60 = vld [vmem:[%s18782_s15 + $0xfc0] sm:$0xff] }
 0x979   : > { %v10649_v2 = vpop.permute.xlu0 %10648  ;;  %5659 = vmatpush.msrb.mxu2 %v5623_v32  ;;  %v9732_v32 = vld [vmem:[%s18782_s15 + $0x1140] sm:$0xff] }
 0x97a   : > { %v10659_v10 = vpop.permute.xlu1 %10658  ;;  %v10650_v53 = vunpack.i.l.bf16 %v10649_v2  ;;  %v10651_v7 = vunpack.i.h.bf16 %v10649_v2  ;;  %6474 = vmatpush.msrb.mxu0 %v9588_v42  ;;  %v9620_v38 = vld [vmem:[%s18782_s15 + $0xdc0] sm:$0xff] }
 0x97b   : > { %9454 = vmatmul.msk.f32.vlgmr.msra.gmra.mxu1 %vm4807_vm6, %v14564_v58  ;;  %v10661_v0 = vunpack.i.h.bf16 %v10659_v10  ;;  %5660 = vmatpush.msrb.mxu2 %v5621_v18  ;;  %v10660_v58 = vunpack.i.l.bf16 %v10659_v10  ;;  %v9636_v10 = vld [vmem:[%s18782_s15 + $0xe40] sm:$0xff] }
 0x97c   : > { %5829 = vmatpush.msra.mxu3 %v10650_v53  ;;  %v5752_v16 = vsel %vm5744_vm14, %v10665_v40, %v10650_v53  ;;  %9456 = vmatmul.msk.f32.vlgmr.msrb.gmra.mxu2 %vm4807_vm6, %v14771_v45  ;;  %v9724_v18 = vld [vmem:[%s18782_s15 + $0x1100] sm:$0xff] }
 0x97d   : > { %v5751_v21 = vsel %vm5744_vm14, %v10661_v0, %v10665_v40  ;;  %5806 = vmatpush.msra.mxu2 %v5752_v16  ;;  %6475 = vmatpush.msrb.mxu0 %v9580_v31  ;;  %v9572_v40 = vld [vmem:[%s18782_s15 + $0xc40] sm:$0xff]  ;;  %v9573_v0 = vld [vmem:[%s18782_s15 + $0xc48] sm:$0xff]  ;;  %v9702_v31 = vld [vmem:[%s18782_s15 + $0x1050] sm:$0xff] }
 0x97e   : > { %5783 = vmatpush.msrb.mxu1 %v5751_v21  ;;  %5830 = vmatpush.msra.mxu3 %v10651_v7  ;;  %v9564_v21 = vld [vmem:[%s18782_s15 + $0xc00] sm:$0xff] }
 0x97f   : > { %9453 = vmatmul.msk.f32.gmra.mxu0 %vm4807_vm6, %v14704_v30  ;;  %v9540_v23 = vld [vmem:[%s18782_s15 + $0xb40] sm:$0xff] }
 0x980   : > { %9459 = vmatmul.msk.f32.gmra.mxu3 %vm4807_vm6, %v14792_v36  ;;  %6476 = vmatpush.msrb.mxu0 %v9572_v40  ;;  %v9604_v44 = vld [vmem:[%s18782_s15 + $0xd40] sm:$0xff]  ;;  %v9694_v40 = vld [vmem:[%s18782_s15 + $0x1010] sm:$0xff] }
 0x981   : > { %v10669_v46 = vpop.permute.xlu0 %10668  ;;  %5831 = vmatpush.msra.mxu3 %v10660_v58  ;;  %v9516_v42 = vld [vmem:[%s18782_s15 + $0xa80] sm:$0xff] }
 0x982   : > { %v10674_v62 = vpop.permute.xlu1 %10673  ;;  %v10671_v41 = vunpack.i.h.bf16 %v10669_v46  ;;  %v10670_v29 = vunpack.i.l.bf16 %v10669_v46  ;;  %6477 = vmatpush.msrb.mxu0 %v9564_v21  ;;  %v9717_v46 = vld [vmem:[%s18782_s15 + $0x10c8] sm:$0xff] }
 0x983   : > { %9455 = vmatmul.msk.f32.gmra.mxu1 %vm4807_vm6, %v14704_v30  ;;  %v10676_v33 = vunpack.i.h.bf16 %v10674_v62  ;;  %v10675_v13 = vunpack.i.l.bf16 %v10674_v62  ;;  %5832 = vmatpush.msra.mxu3 %v10666_v54  ;;  %v9556_v54 = vld [vmem:[%s18782_s15 + $0xbc0] sm:$0xff]  ;;  %v9557_v62 = vld [vmem:[%s18782_s15 + $0xbc8] sm:$0xff] }
 0x984   : > { %v5749_v49 = vsel %vm5744_vm14, %v10670_v29, %v10671_v41  ;;  %v5750_v11 = vsel %vm5744_vm14, %v10671_v41, %v10651_v7  ;;  %9457 = vmatmul.msk.f32.gmra.mxu2 %vm4807_vm6, %v14792_v36  ;;  %v9628_v7 = vld [vmem:[%s18782_s15 + $0xe00] sm:$0xff]  ;;  %v9709_v41 = vld [vmem:[%s18782_s15 + $0x1088] sm:$0xff]  ;;  %6478 = vmatpush.msrb.mxu0 %v9556_v54 }
 0x985   : > { %5784 = vmatpush.msrb.mxu1 %v5749_v49  ;;  %5807 = vmatpush.msra.mxu2 %v5750_v11  ;;  %v5747_v30 = vsel %vm5744_vm14, %v10675_v13, %v10676_v33  ;;  %v5748_v24 = vsel %vm5744_vm14, %v10676_v33, %v10660_v58  ;;  %v9565_v58 = vld [vmem:[%s18782_s15 + $0xc08] sm:$0xff]  ;;  %v9548_v29 = vld [vmem:[%s18782_s15 + $0xb80] sm:$0xff] }
 0x986   : > { %6534 = vmatpush.msrb.mxu3 %v9589_v37  ;;  %v9612_v13 = vld [vmem:[%s18782_s15 + $0xd80] sm:$0xff]  ;;  %v9701_v49 = vld [vmem:[%s18782_s15 + $0x1048] sm:$0xff]  ;;  %6479 = vmatpush.msrb.mxu0 %v9548_v29 }
 0x987   : > { %9460 = vmatmul.msk.f32.vlgmr.msra.gmra.mxu0 %vm4807_vm6, %v14771_v45  ;;  %5785 = vmatpush.msrb.mxu1 %v5747_v30  ;;  %v9541_v30 = vld [vmem:[%s18782_s15 + $0xb48] sm:$0xff] }
 0x988   : > { %9466 = vmatmul.msk.f32.vlgmr.msra.gmra.mxu3 %vm4807_vm6, %v4143_v26  ;;  %5808 = vmatpush.msra.mxu2 %v5748_v24  ;;  %v9693_v24 = vld [vmem:[%s18782_s15 + $0x1008] sm:$0xff] }
 0x989   : > { %5786 = vmatpush.msrb.mxu1 %v5745_v9  ;;  %6535 = vmatpush.msrb.mxu3 %v9581_v47  ;;  %v9669_v37 = vld [vmem:[%s18782_s15 + $0xf48] sm:$0xff] }
 0x98a   : > { %5809 = vmatpush.msra.mxu2 %v5746_v56  ;;  %6480 = vmatpush.msrb.mxu0 %v9540_v23  ;;  %v9509_v47 = vld [vmem:[%s18782_s15 + $0xa48] sm:$0xff]  ;;  %v9670_v23 = vld [vmem:[%s18782_s15 + $0xf50] sm:$0xff] }
 0x98b   : > { %9462 = vmatmul.msk.f32.vlgmr.msrb.gmra.mxu1 %vm4807_vm6, %v4143_v26  ;;  %6536 = vmatpush.msrb.mxu3 %v9573_v0  ;;  %v9501_v21 = vld [vmem:[%s18782_s15 + $0xa08] sm:$0xff] }
 0x98c   : > { %9464 = vmatmul.msk.f32.vlgmr.msra.gmra.mxu2 %vm4807_vm6, %v4143_v26  ;;  %6494 = vmatpush.msra.mxu1 %v9716_v52  ;;  %v9549_v26 = vld [vmem:[%s18782_s15 + $0xb88] sm:$0xff]  ;;  %v9596_v52 = vld [vmem:[%s18782_s15 + $0xd00] sm:$0xff] }
 0x98d   : > { %9756 = vmatpush.msk.msrb.mxu2 %vm2926_vm4, %v9748_v51  ;;  %6537 = vmatpush.msrb.mxu3 %v9565_v58  ;;  %v9686_v58 = vld [vmem:[%s18782_s15 + $0xfd0] sm:$0xff]  ;;  %v9493_v54 = vld [vmem:[%s18782_s15 + $0x9c8] sm:$0xff] }
 0x98e   : > { %6495 = vmatpush.msra.mxu1 %v9708_v8  ;;  %v9533_v8 = vld [vmem:[%s18782_s15 + $0xb08] sm:$0xff] }
 0x98f   : > { %9461 = vmatmul.msk.f32.gmra.mxu0 %vm4807_vm6, %v14792_v36  ;;  %v9668_v36 = vld [vmem:[%s18782_s15 + $0xf40] sm:$0xff]  ;;  %6527 = vmatpush.msrb.mxu2 %v9740_v22 }
 0x990   : > { %9467 = vmatmul.msk.f32.gmra.mxu3 %vm4807_vm6, %v4146_v17  ;;  %6496 = vmatpush.msra.mxu1 %v9700_v4  ;;  %v9685_v4 = vld [vmem:[%s18782_s15 + $0xfc8] sm:$0xff] }
 0x991   : > { %6528 = vmatpush.msrb.mxu2 %v9732_v32  ;;  %6538 = vmatpush.msrb.mxu3 %v9557_v62  ;;  %v9661_v32 = vld [vmem:[%s18782_s15 + $0xf08] sm:$0xff]  ;;  %v9678_v62 = vld [vmem:[%s18782_s15 + $0xf90] sm:$0xff] }
 0x992   : > { %6497 = vmatpush.msra.mxu1 %v9692_v20  ;;  %v9718_v20 = vld [vmem:[%s18782_s15 + $0x10d0] sm:$0xff] }
 0x993   : > { %9463 = vmatmul.msk.f32.gmra.mxu1 %vm4807_vm6, %v4146_v17  ;;  %6529 = vmatpush.msrb.mxu2 %v9724_v18  ;;  %v9500_v18 = vld [vmem:[%s18782_s15 + $0xa00] sm:$0xff] }
 0x994   : > { %9465 = vmatmul.msk.f32.gmra.mxu2 %vm4807_vm6, %v4146_v17  ;;  %6498 = vmatpush.msra.mxu1 %v9684_v60  ;;  %v9532_v17 = vld [vmem:[%s18782_s15 + $0xb00] sm:$0xff] }
 0x995   : > { %6554 = vmatpush.msra.mxu2 %v9717_v46  ;;  %6539 = vmatpush.msrb.mxu3 %v9549_v26  ;;  %v9524_v60 = vld [vmem:[%s18782_s15 + $0xac0] sm:$0xff]  ;;  %v9637_v26 = vld [vmem:[%s18782_s15 + $0xe48] sm:$0xff] }
 0x996   : > { %6499 = vmatpush.msra.mxu1 %v9676_v5  ;;  %6481 = vmatpush.msrb.mxu0 %v9532_v17  ;;  %v9525_v5 = vld [vmem:[%s18782_s15 + $0xac8] sm:$0xff]  ;;  %v9492_v46 = vld [vmem:[%s18782_s15 + $0x9c0] sm:$0xff]  ;;  %v9662_v17 = vld [vmem:[%s18782_s15 + $0xf10] sm:$0xff] }
 0x997   : > { %6555 = vmatpush.msra.mxu2 %v9709_v41  ;;  %6540 = vmatpush.msrb.mxu3 %v9541_v30  ;;  %v9484_v41 = vld [vmem:[%s18782_s15 + $0x980] sm:$0xff]  ;;  %v9477_v30 = vld [vmem:[%s18782_s15 + $0x948] sm:$0xff] }
 0x998   : > { %6500 = vmatpush.msra.mxu1 %v9668_v36  ;;  %v9677_v36 = vld [vmem:[%s18782_s15 + $0xf88] sm:$0xff]  ;;  %6482 = vmatpush.msrb.mxu0 %v9524_v60 }
 0x999   : > { %6556 = vmatpush.msra.mxu2 %v9701_v49  ;;  %6541 = vmatpush.msrb.mxu3 %v9533_v8  ;;  %v9621_v60 = vld [vmem:[%s18782_s15 + $0xdc8] sm:$0xff] }
 0x99a   : > { %6501 = vmatpush.msra.mxu1 %v9660_v1  ;;  %v9710_v1 = vld [vmem:[%s18782_s15 + $0x1090] sm:$0xff]  ;;  %6483 = vmatpush.msrb.mxu0 %v9516_v42 }
 0x99b   : > { %6557 = vmatpush.msra.mxu2 %v9693_v24  ;;  %6542 = vmatpush.msrb.mxu3 %v9525_v5  ;;  %v9629_v24 = vld [vmem:[%s18782_s15 + $0xe08] sm:$0xff]  ;;  %v9750_v42 = vld [vmem:[%s18782_s15 + $0x11d0] sm:$0x3f] }
 0x99c   : > { %6502 = vmatpush.msra.mxu1 %v9652_v63  ;;  %v9517_v63 = vld [vmem:[%s18782_s15 + $0xa88] sm:$0xff] }
 0x99d   : > { %6558 = vmatpush.msra.mxu2 %v9685_v4  ;;  %6543 = vmatpush.msrb.mxu3 %v9517_v63  ;;  %v9468_v4 = vld [vmem:[%s18782_s15 + $0x900] sm:$0xff] }
 0x99e   : > { %6503 = vmatpush.msra.mxu1 %v9644_v28  ;;  %v9508_v28 = vld [vmem:[%s18782_s15 + $0xa40] sm:$0xff] }
 0x99f   : > { %6559 = vmatpush.msra.mxu2 %v9677_v36  ;;  %6484 = vmatpush.msrb.mxu0 %v9508_v28  ;;  %v9749_v36 = vld [vmem:[%s18782_s15 + $0x11c8] sm:$0x3f]  ;;  %v9646_v28 = vld [vmem:[%s18782_s15 + $0xe90] sm:$0xff] }
 0x9a0   : > { %6504 = vmatpush.msra.mxu1 %v9636_v10  ;;  %6544 = vmatpush.msrb.mxu3 %v9509_v47  ;;  %v9742_v47 = vld [vmem:[%s18782_s15 + $0x1190] sm:$0xff] }
 0x9a1   : > { %6560 = vmatpush.msra.mxu2 %v9669_v37  ;;  %6485 = vmatpush.msrb.mxu0 %v9500_v18  ;;  %v9613_v37 = vld [vmem:[%s18782_s15 + $0xd88] sm:$0xff]  ;;  %v9638_v18 = vld [vmem:[%s18782_s15 + $0xe50] sm:$0xff] }
 0x9a2   : > { %v14882_v15 = vpop.f32.mrf.mxu0  ;;  %6505 = vmatpush.msra.mxu1 %v9628_v7  ;;  %v9653_v7 = vld [vmem:[%s18782_s15 + $0xec8] sm:$0xff]  ;;  %6545 = vmatpush.msrb.mxu3 %v9501_v21  ;;  %v9734_v21 = vld [vmem:[%s18782_s15 + $0x1150] sm:$0xff] }
 0x9a3   : > { %6561 = vmatpush.msra.mxu2 %v9661_v32  ;;  %6486 = vmatpush.msrb.mxu0 %v9492_v46  ;;  %v9605_v32 = vld [vmem:[%s18782_s15 + $0xd48] sm:$0xff] }
 0x9a4   : > { %v14856_v12 = vpop.f32.mrf.mxu1  ;;  %6506 = vmatpush.msra.mxu1 %v9620_v38  ;;  %v9645_v38 = vld [vmem:[%s18782_s15 + $0xe88] sm:$0xff]  ;;  %6546 = vmatpush.msrb.mxu3 %v9493_v54  ;;  %v9630_v54 = vld [vmem:[%s18782_s15 + $0xe10] sm:$0xff] }
 0x9a5   : > { %6562 = vmatpush.msra.mxu2 %v9653_v7  ;;  %6487 = vmatpush.msrb.mxu0 %v9484_v41  ;;  %v9725_v46 = vld [vmem:[%s18782_s15 + $0x1108] sm:$0xff] }
 0x9a6   : > { %v14858_v61 = vpop.f32.mrf.mxu3  ;;  %6507 = vmatpush.msra.mxu1 %v9612_v13  ;;  %v9485_v13 = vld [vmem:[%s18782_s15 + $0x988] sm:$0xff] }
 0x9a7   : > { %6563 = vmatpush.msra.mxu2 %v9645_v38  ;;  %6547 = vmatpush.msrb.mxu3 %v9485_v13  ;;  %v9726_v38 = vld [vmem:[%s18782_s15 + $0x1110] sm:$0xff] }
 0x9a8   : > { %6508 = vmatpush.msra.mxu1 %v9604_v44  ;;  %v9476_v44 = vld [vmem:[%s18782_s15 + $0x940] sm:$0xff] }
 0x9a9   : > { %6564 = vmatpush.msra.mxu2 %v9637_v26  ;;  %6488 = vmatpush.msrb.mxu0 %v9476_v44  ;;  %v4903_v26 = vadd.f32 %v14860_v34, %v14856_v12  ;;  %v9622_v44 = vld [vmem:[%s18782_s15 + $0xdd0] sm:$0xff] }
 0x9aa   : > { %6509 = vmatpush.msra.mxu1 %v9596_v52  ;;  %6548 = vmatpush.msrb.mxu3 %v9477_v30  ;;  %v9606_v12 = vld [vmem:[%s18782_s15 + $0xd50] sm:$0xff] }
 0x9ab   : > { %v14862_v50 = vpop.f32.mrf.mxu2  ;;  %6565 = vmatpush.msra.mxu2 %v9629_v24  ;;  %6489 = vmatpush.msrb.mxu0 %v9468_v4  ;;  %v9614_v24 = vld [vmem:[%s18782_s15 + $0xd90] sm:$0xff] }
 0x9ac   : > { %6614 = vmatpush.msrb.mxu1 %v9718_v20  ;;  %v9469_v20 = vld [vmem:[%s18782_s15 + $0x908] sm:$0xff] }
 0x9ad   : > { %v14904_v35 = vpop.f32.mrf.mxu0  ;;  %6549 = vmatpush.msrb.mxu3 %v9469_v20  ;;  %6566 = vmatpush.msra.mxu2 %v9621_v60 }
 0x9ae   : > { %6615 = vmatpush.msrb.mxu1 %v9710_v1  ;;  %v9654_v1 = vld [vmem:[%s18782_s15 + $0xed0] sm:$0xff]  ;;  %9758 = vmatpush.msk.msra.mxu0 %vm2926_vm4, %v9749_v36 }
 0x9af   : > { %v14864_v55 = vpop.f32.mrf.mxu1  ;;  %9760 = vmatpush.msk.msra.mxu3 %vm2926_vm4, %v9750_v42  ;;  %6567 = vmatpush.msra.mxu2 %v9613_v37 }
 0x9b0   : > { %6616 = vmatpush.msrb.mxu1 %v9702_v31  ;;  %v9741_v31 = vld [vmem:[%s18782_s15 + $0x1188] sm:$0xff] }
 0x9b1   : > { %6587 = vmatpush.msra.mxu0 %v9741_v31  ;;  %6647 = vmatpush.msra.mxu3 %v9742_v47 }
 0x9b2   : > { %v14866_v39 = vpop.f32.mrf.mxu3  ;;  %6617 = vmatpush.msrb.mxu1 %v9694_v40  ;;  %v9733_v40 = vld [vmem:[%s18782_s15 + $0x1148] sm:$0xff]  ;;  %6568 = vmatpush.msra.mxu2 %v9605_v32 }
 0x9b3   : > { %6588 = vmatpush.msra.mxu0 %v9733_v40  ;;  %6648 = vmatpush.msra.mxu3 %v9734_v21  ;;  %v5849_v21 = vpop.permute.xlu0 %5848 }
 0x9b4   : > { %6618 = vmatpush.msrb.mxu1 %v9686_v58  ;;  %v9597_v58 = vld [vmem:[%s18782_s15 + $0xd08] sm:$0xff] }
 0x9b5   : > { %6569 = vmatpush.msra.mxu2 %v9597_v58  ;;  %6589 = vmatpush.msra.mxu0 %v9725_v46 }
 0x9b6   : > { %v14870_v6 = vpop.f32.mrf.mxu2  ;;  %v14954_v53 = vpop.f32.mrf.mxu0  ;;  %6619 = vmatpush.msrb.mxu1 %v9678_v62  ;;  %6649 = vmatpush.msra.mxu3 %v9726_v38 }
 0x9b7   : > { %v14872_v43 = vpop.f32.mrf.mxu1 }
 0x9b8   : > { %6620 = vmatpush.msrb.mxu1 %v9670_v23  ;;  %v4926_v20 = vadd.f32 %v14872_v43, %v14862_v50 }
 0x9ba   : > { %v14874_v45 = vpop.f32.mrf.mxu3  ;;  %6621 = vmatpush.msrb.mxu1 %v9662_v17  ;;  %v5077_v37 = vadd.f32 %v14882_v15, %v4926_v20  ;;  %v9695_v20 = vld [vmem:[%s18782_s15 + $0x1018] sm:$0xff] }
 0x9bb   : > { %v5076_v17 = vadd.f32 %v14874_v45, %v4903_v26 }
 0x9bc   : > { %6622 = vmatpush.msrb.mxu1 %v9654_v1 }
 0x9be   : > { %v14884_v27 = vpop.f32.mrf.mxu2  ;;  %v15018_v56 = vpop.f32.mrf.mxu0  ;;  %6623 = vmatpush.msrb.mxu1 %v9646_v28 }
 0x9bf   : > { %v14886_v59 = vpop.f32.mrf.mxu1  ;;  %v4949_v23 = vadd.f32 %v14884_v27, %v14858_v61  ;;  %v9598_v27 = vld [vmem:[%s18782_s15 + $0xd10] sm:$0xff] }
 0x9c0   : > { %6624 = vmatpush.msrb.mxu1 %v9638_v18 }
 0x9c2   : > { %v14891_v14 = vpop.f32.mrf.mxu3  ;;  %6625 = vmatpush.msrb.mxu1 %v9630_v54 }
 0x9c4   : > { %6626 = vmatpush.msrb.mxu1 %v9622_v44 }
 0x9c6   : > { %v14902_v25 = vpop.f32.mrf.mxu2  ;;  %6627 = vmatpush.msrb.mxu1 %v9614_v24  ;;  %v9574_v24 = vld [vmem:[%s18782_s15 + $0xc50] sm:$0xff] }
 0x9c8   : > { %v14906_v3 = vpop.f32.mrf.mxu1  ;;  %6628 = vmatpush.msrb.mxu1 %v9606_v12  ;;  %v9703_v12 = vld [vmem:[%s18782_s15 + $0x1058] sm:$0xff] }
 0x9c9   : > { %v5078_v4 = vadd.f32 %v14906_v3, %v4949_v23  ;;  %v9583_v23 = vld [vmem:[%s18782_s15 + $0xc98] sm:$0xff] }
 0x9ca   : > { %v14911_v48 = vpop.f32.mrf.mxu3  ;;  %6629 = vmatpush.msrb.mxu1 %v9598_v27  ;;  %v9567_v27 = vld [vmem:[%s18782_s15 + $0xc18] sm:$0xff] }
 0x9cb   : > { %v5206_v3 = vadd.f32 %v14954_v53, %v5078_v4  ;;  %v5205_v50 = vadd.f32 %v14911_v48, %v5077_v37  ;;  %v9679_v37 = vld [vmem:[%s18782_s15 + $0xf98] sm:$0xff] }
 0x9ce   : > { %v14941_v57 = vpop.f32.mrf.mxu2 }
 0x9cf   : > { %v5204_v61 = vadd.f32 %v14941_v57, %v5076_v17  ;;  %v9575_v17 = vld [vmem:[%s18782_s15 + $0xc58] sm:$0xff] }
 0x9d0   : > { %v14943_v2 = vpop.f32.mrf.mxu1 }
 0x9d2   : > { %v14962_v16 = vpop.f32.mrf.mxu3 }
 0x9d7   : > { %v14991_v33 = vpop.f32.mrf.mxu2 }
 0x9d8   : > { %v15002_v11 = vpop.f32.mrf.mxu1 }
 0x9d9   : > { %v5330_v45 = vadd.f32 %v15002_v11, %v5204_v61  ;;  %v9566_v61 = vld [vmem:[%s18782_s15 + $0xc10] sm:$0xff] }
 0x9da   : > { %v15016_v9 = vpop.f32.mrf.mxu3 }
 0x9db   : > { %v5332_v1 = vadd.f32 %v15016_v9, %v5206_v3  ;;  %v9558_v3 = vld [vmem:[%s18782_s15 + $0xbd0] sm:$0xff] }
 0x9df   : > { %v15047_v51 = vpop.f32.mrf.mxu2 }
 0x9e0   : > { %v15058_v22 = vpop.f32.mrf.mxu1  ;;  %v5331_v11 = vadd.f32 %v15047_v51, %v5205_v50  ;;  %v9590_v51 = vld [vmem:[%s18782_s15 + $0xcd0] sm:$0xff]  ;;  %v9584_v50 = vld [vmem:[%s18782_s15 + $0xca0] sm:$0xff] }
 0x9e3   : > { %v15075_v10 = vpop.f32.mrf.mxu3  ;;  %v15077_v0 = vpop.f32.mrf.mxu0 }
 0x9e4   : > { %v5458_v57 = vadd.f32 %v15077_v0, %v5330_v45 }
 0x9e7   : > { %v15106_v29 = vpop.f32.mrf.mxu2 }
 0x9e8   : > { %v15114_v49 = vpop.f32.mrf.mxu1 }
 0x9e9   : > { %v5459_v0 = vadd.f32 %v15114_v49, %v5331_v11  ;;  %v9591_v49 = vld [vmem:[%s18782_s15 + $0xcd8] sm:$0xff] }
 0x9ea   : > { %v9543_v11 = vld [vmem:[%s18782_s15 + $0xb58] sm:$0xff] }
 0x9eb   : > { %v15131_v52 = vpop.f32.mrf.mxu3 }
 0x9ec   : > { %v15133_v8 = vpop.f32.mrf.mxu0  ;;  %v5586_v43 = vadd.f32 %v15131_v52, %v5458_v57  ;;  %v9592_v57 = vld [vmem:[%s18782_s15 + $0xce0] sm:$0xff] }
 0x9ef   : > { %v15144_v5 = vpop.f32.mrf.mxu2 }
 0x9f0   : > { %v15155_v63 = vpop.f32.mrf.mxu1  ;;  %v5460_v31 = vadd.f32 %v15144_v5, %v5332_v1  ;;  %v9559_v1 = vld [vmem:[%s18782_s15 + $0xbd8] sm:$0xff] }
 0x9f3   : > { %v15183_v7 = vpop.f32.mrf.mxu3 }
 0x9f4   : > { %v5557_v62 = vpop.f32.mrf.mxu0 }
 0x9f5   : > { %v5587_v58 = vadd.f32 %v5557_v62, %v5459_v0  ;;  %v9719_v62 = vld [vmem:[%s18782_s15 + $0x10d8] sm:$0xff] }
 0x9f6   : > { %v9535_v0 = vld [vmem:[%s18782_s15 + $0xb18] sm:$0xff] }
 0x9f7   : > { %v15197_v13 = vpop.f32.mrf.mxu2 }
 0x9f8   : > { %v5580_v41 = vpop.f32.mrf.mxu1 }
 0x9f9   : > { %v5588_v53 = vadd.f32 %v5580_v41, %v5460_v31  ;;  %v9582_v41 = vld [vmem:[%s18782_s15 + $0xc90] sm:$0xff] }
 0x9fa   : > { %v9550_v31 = vld [vmem:[%s18782_s15 + $0xb90] sm:$0xff] }
 0x9fb   : > { %v5685_v30 = vpop.f32.mrf.mxu3 }
 0x9fc   : > { %v15214_v34 = vpop.f32.mrf.mxu0  ;;  %v5715_v54 = vadd.f32 %v5685_v30, %v5587_v58  ;;  %v9711_v30 = vld [vmem:[%s18782_s15 + $0x1098] sm:$0xff] }
 0x9fd   : > { %v9527_v58 = vld [vmem:[%s18782_s15 + $0xad8] sm:$0xff] }
 0x9ff   : > { %v5662_v36 = vpop.f32.mrf.mxu2 }
 0xa00   : > { %v15224_v60 = vpop.f32.mrf.mxu1  ;;  %v5714_v47 = vadd.f32 %v5662_v36, %v5586_v43  ;;  %v9687_v36 = vld [vmem:[%s18782_s15 + $0xfd8] sm:$0xff] }
 0xa01   : > { %v9671_v43 = vld [vmem:[%s18782_s15 + $0xf58] sm:$0xff] }
 0xa03   : > { %v15228_v42 = vpop.f32.mrf.mxu3 }
 0xa04   : > { %v5708_v28 = vpop.f32.mrf.mxu0 }
 0xa05   : > { %v5716_v32 = vadd.f32 %v5708_v28, %v5588_v53  ;;  %v9551_v28 = vld [vmem:[%s18782_s15 + $0xb98] sm:$0xff]  ;;  %v9542_v53 = vld [vmem:[%s18782_s15 + $0xb50] sm:$0xff] }
 0xa07   : > { %v15235_v40 = vpop.f32.mrf.mxu2 }
 0xa08   : > { %v5788_v9 = vpop.f32.mrf.mxu1 }
 0xa09   : > { %v5840_v18 = vadd.f32 %v5788_v9, %v5714_v47  ;;  %v9576_v47 = vld [vmem:[%s18782_s15 + $0xc60] sm:$0xff]  ;;  %v9534_v9 = vld [vmem:[%s18782_s15 + $0xb10] sm:$0xff] }
 0xa0b   : > { %v5834_v15 = vpop.f32.mrf.mxu3  ;;  %v15238_v46 = vadd.f32 %v5849_v21, %v5840_v18  ;;  %v9568_v18 = vld [vmem:[%s18782_s15 + $0xc20] sm:$0xff] }
 0xa0c   : > { %v5842_v5 = vadd.f32 %v5834_v15, %v5716_v32  ;;  %v9663_v32 = vld [vmem:[%s18782_s15 + $0xf18] sm:$0xff]  ;;  %v9526_v15 = vld [vmem:[%s18782_s15 + $0xad0] sm:$0xff] }
 0xa0d   : > { %v15243_v52 = vrot.slane %v15238_v46, 3 }
 0xa0e   : > { %v15240_v48 = vadd.f32 %v5849_v21, %v5842_v5  ;;  %v9560_v5 = vld [vmem:[%s18782_s15 + $0xbe0] sm:$0xff] }
 0xa0f   : > { %6490 = vmatmul.f32.vlgmr.msrb.gmra.mxu0 %v15243_v52  ;;  %6550 = vmatmul.f32.vlgmr.msrb.gmra.mxu3 %v15243_v52  ;;  %v5811_v26 = vpop.f32.mrf.mxu2 }
 0xa10   : > { %v15252_v38 = vrot.slane %v15240_v48, 3  ;;  %6594 = vmatpush.msrb.mxu0 %v9590_v51  ;;  %6654 = vmatpush.msrb.mxu3 %v9591_v49  ;;  %v5841_v44 = vadd.f32 %v5811_v26, %v5715_v54  ;;  %v9647_v51 = vld [vmem:[%s18782_s15 + $0xe98] sm:$0xff]  ;;  %v9518_v49 = vld [vmem:[%s18782_s15 + $0xa90] sm:$0xff] }
 0xa11   : > { %v9519_v54 = vld [vmem:[%s18782_s15 + $0xa98] sm:$0xff]  ;;  %v9510_v26 = vld [vmem:[%s18782_s15 + $0xa50] sm:$0xff] }
 0xa12   : > { %9757 = vmatmul.msk.f32.vlgmr.msrb.gmra.mxu2 %vm6447_vm15, %v15252_v38  ;;  %6595 = vmatpush.msrb.mxu0 %v9582_v41  ;;  %v15276_v4 = vadd.f32 %v5849_v21, %v5841_v44  ;;  %v9655_v21 = vld [vmem:[%s18782_s15 + $0xed8] sm:$0xff]  ;;  %v9544_v44 = vld [vmem:[%s18782_s15 + $0xb60] sm:$0xff] }
 0xa13   : > { %6674 = vmatpush.msrb.mxu2 %v9719_v62  ;;  %6655 = vmatpush.msrb.mxu3 %v9583_v23  ;;  %v9552_v62 = vld [vmem:[%s18782_s15 + $0xba0] sm:$0xff]  ;;  %v9639_v41 = vld [vmem:[%s18782_s15 + $0xe58] sm:$0xff] }
 0xa14   : > { %6596 = vmatpush.msrb.mxu0 %v9574_v24  ;;  %v15291_v45 = vrot.slane %v15276_v4, 3  ;;  %v9511_v23 = vld [vmem:[%s18782_s15 + $0xa58] sm:$0xff]  ;;  %v9502_v24 = vld [vmem:[%s18782_s15 + $0xa10] sm:$0xff] }
 0xa15   : > { %6675 = vmatpush.msrb.mxu2 %v9711_v30  ;;  %6656 = vmatpush.msrb.mxu3 %v9575_v17  ;;  %v9631_v30 = vld [vmem:[%s18782_s15 + $0xe18] sm:$0xff] }
 0xa16   : > { %6597 = vmatpush.msrb.mxu0 %v9566_v61  ;;  %6510 = vmatmul.f32.vlgmr.msra.gmra.mxu1 %v15291_v45  ;;  %v9503_v17 = vld [vmem:[%s18782_s15 + $0xa18] sm:$0xff] }
 0xa17   : > { %6676 = vmatpush.msrb.mxu2 %v9703_v12  ;;  %6657 = vmatpush.msrb.mxu3 %v9567_v27  ;;  %v9536_v12 = vld [vmem:[%s18782_s15 + $0xb20] sm:$0xff]  ;;  %v9623_v61 = vld [vmem:[%s18782_s15 + $0xdd8] sm:$0xff]  ;;  %v9494_v27 = vld [vmem:[%s18782_s15 + $0x9d0] sm:$0xff] }
 0xa18   : > { %9759 = vmatmul.msk.f32.vlgmr.msra.gmra.mxu0 %vm6447_vm15, %v15252_v38  ;;  %9761 = vmatmul.msk.f32.vlgmr.msra.gmra.mxu3 %vm6447_vm15, %v15252_v38 }
 0xa19   : > { %6677 = vmatpush.msrb.mxu2 %v9695_v20  ;;  %6598 = vmatpush.msrb.mxu0 %v9558_v3  ;;  %v9495_v20 = vld [vmem:[%s18782_s15 + $0x9d8] sm:$0xff]  ;;  %v9528_v3 = vld [vmem:[%s18782_s15 + $0xae0] sm:$0xff] }
 0xa1a   : > { %6570 = vmatmul.f32.vlgmr.msra.gmra.mxu2 %v15291_v45  ;;  %6658 = vmatpush.msrb.mxu3 %v9559_v1  ;;  %v9486_v1 = vld [vmem:[%s18782_s15 + $0x990] sm:$0xff] }
 0xa1b   : > { %6678 = vmatpush.msrb.mxu2 %v9687_v36  ;;  %6714 = vmatpush.msra.mxu1 %v9592_v57  ;;  %v9615_v36 = vld [vmem:[%s18782_s15 + $0xd98] sm:$0xff] }
 0xa1c   : > { %6599 = vmatpush.msrb.mxu0 %v9550_v31  ;;  %6659 = vmatpush.msrb.mxu3 %v9551_v28  ;;  %v9487_v57 = vld [vmem:[%s18782_s15 + $0x998] sm:$0xff]  ;;  %v9478_v28 = vld [vmem:[%s18782_s15 + $0x950] sm:$0xff] }
 0xa1d   : > { %6679 = vmatpush.msrb.mxu2 %v9679_v37  ;;  %6715 = vmatpush.msra.mxu1 %v9584_v50  ;;  %v9520_v37 = vld [vmem:[%s18782_s15 + $0xaa0] sm:$0xff]  ;;  %v9607_v31 = vld [vmem:[%s18782_s15 + $0xd58] sm:$0xff] }
 0xa1e   : > { %6600 = vmatpush.msrb.mxu0 %v9542_v53  ;;  %6660 = vmatpush.msrb.mxu3 %v9543_v11  ;;  %v9479_v50 = vld [vmem:[%s18782_s15 + $0x958] sm:$0xff]  ;;  %v9470_v11 = vld [vmem:[%s18782_s15 + $0x910] sm:$0xff] }
 0xa1f   : > { %6680 = vmatpush.msrb.mxu2 %v9671_v43  ;;  %6716 = vmatpush.msra.mxu1 %v9576_v47  ;;  %v9512_v43 = vld [vmem:[%s18782_s15 + $0xa60] sm:$0xff]  ;;  %v9599_v53 = vld [vmem:[%s18782_s15 + $0xd18] sm:$0xff] }
 0xa20   : > { %6601 = vmatpush.msrb.mxu0 %v9534_v9  ;;  %6661 = vmatpush.msrb.mxu3 %v9535_v0  ;;  %v9471_v47 = vld [vmem:[%s18782_s15 + $0x918] sm:$0xff]  ;;  %v9593_v9 = vld [vmem:[%s18782_s15 + $0xce8] sm:$0xff] }
 0xa21   : > { %6681 = vmatpush.msrb.mxu2 %v9663_v32  ;;  %6717 = vmatpush.msra.mxu1 %v9568_v18  ;;  %v9504_v32 = vld [vmem:[%s18782_s15 + $0xa20] sm:$0xff]  ;;  %v9751_v0 = vld [vmem:[%s18782_s15 + $0x11d8] sm:$0x3f] }
 0xa22   : > { %6602 = vmatpush.msrb.mxu0 %v9526_v15  ;;  %6630 = vmatmul.f32.vlgmr.msrb.gmra.mxu1 %v15291_v45  ;;  %v9752_v18 = vld [vmem:[%s18782_s15 + $0x11e0] sm:$0x3f]  ;;  %v9585_v15 = vld [vmem:[%s18782_s15 + $0xca8] sm:$0xff] }
 0xa23   : > { %6682 = vmatpush.msrb.mxu2 %v9655_v21  ;;  %6662 = vmatpush.msrb.mxu3 %v9527_v58  ;;  %v9496_v21 = vld [vmem:[%s18782_s15 + $0x9e0] sm:$0xff]  ;;  %v9743_v58 = vld [vmem:[%s18782_s15 + $0x1198] sm:$0xff] }
 0xa24   : > { %6718 = vmatpush.msra.mxu1 %v9560_v5  ;;  %6603 = vmatpush.msrb.mxu0 %v9518_v49  ;;  %v9744_v5 = vld [vmem:[%s18782_s15 + $0x11a0] sm:$0xff]  ;;  %v9577_v49 = vld [vmem:[%s18782_s15 + $0xc68] sm:$0xff] }
 0xa25   : > { %6683 = vmatpush.msrb.mxu2 %v9647_v51  ;;  %6663 = vmatpush.msrb.mxu3 %v9519_v54  ;;  %v9488_v51 = vld [vmem:[%s18782_s15 + $0x9a0] sm:$0xff]  ;;  %v9735_v54 = vld [vmem:[%s18782_s15 + $0x1158] sm:$0xff] }
 0xa26   : > { %6719 = vmatpush.msra.mxu1 %v9552_v62  ;;  %6604 = vmatpush.msrb.mxu0 %v9510_v26  ;;  %v9736_v62 = vld [vmem:[%s18782_s15 + $0x1160] sm:$0xff]  ;;  %v9569_v26 = vld [vmem:[%s18782_s15 + $0xc28] sm:$0xff] }
 0xa27   : > { %6684 = vmatpush.msrb.mxu2 %v9639_v41  ;;  %6664 = vmatpush.msrb.mxu3 %v9511_v23  ;;  %v9480_v41 = vld [vmem:[%s18782_s15 + $0x960] sm:$0xff]  ;;  %v9727_v23 = vld [vmem:[%s18782_s15 + $0x1118] sm:$0xff] }
 0xa28   : > { %6720 = vmatpush.msra.mxu1 %v9544_v44  ;;  %6605 = vmatpush.msrb.mxu0 %v9502_v24  ;;  %v9728_v44 = vld [vmem:[%s18782_s15 + $0x1120] sm:$0xff] }
 0xa29   : > { %6685 = vmatpush.msrb.mxu2 %v9631_v30  ;;  %6665 = vmatpush.msrb.mxu3 %v9503_v17  ;;  %v9472_v30 = vld [vmem:[%s18782_s15 + $0x920] sm:$0xff]  ;;  %v9561_v17 = vld [vmem:[%s18782_s15 + $0xbe8] sm:$0xff] }
 0xa2a   : > { %6721 = vmatpush.msra.mxu1 %v9536_v12  ;;  %6606 = vmatpush.msrb.mxu0 %v9494_v27  ;;  %v9720_v24 = vld [vmem:[%s18782_s15 + $0x10e0] sm:$0xff]  ;;  %v9721_v12 = vld [vmem:[%s18782_s15 + $0x10e8] sm:$0xff] }
 0xa2b   : > { %6686 = vmatpush.msrb.mxu2 %v9623_v61  ;;  %6666 = vmatpush.msrb.mxu3 %v9495_v20  ;;  %v9753_v61 = vld [vmem:[%s18782_s15 + $0x11e8] sm:$0x3f]  ;;  %v9712_v27 = vld [vmem:[%s18782_s15 + $0x10a0] sm:$0xff] }
 0xa2c   : > { %6722 = vmatpush.msra.mxu1 %v9528_v3  ;;  %6607 = vmatpush.msrb.mxu0 %v9486_v1  ;;  %v9553_v20 = vld [vmem:[%s18782_s15 + $0xba8] sm:$0xff]  ;;  %v9704_v1 = vld [vmem:[%s18782_s15 + $0x1060] sm:$0xff] }
 0xa2d   : > { %6687 = vmatpush.msrb.mxu2 %v9615_v36  ;;  %6667 = vmatpush.msrb.mxu3 %v9487_v57  ;;  %v9713_v3 = vld [vmem:[%s18782_s15 + $0x10a8] sm:$0xff] }
 0xa2e   : > { %6723 = vmatpush.msra.mxu1 %v9520_v37  ;;  %6608 = vmatpush.msrb.mxu0 %v9478_v28  ;;  %v9745_v36 = vld [vmem:[%s18782_s15 + $0x11a8] sm:$0xff]  ;;  %v9696_v28 = vld [vmem:[%s18782_s15 + $0x1020] sm:$0xff] }
 0xa2f   : > { %6688 = vmatpush.msrb.mxu2 %v9607_v31  ;;  %6668 = vmatpush.msrb.mxu3 %v9479_v50  ;;  %v9545_v57 = vld [vmem:[%s18782_s15 + $0xb68] sm:$0xff] }
 0xa30   : > { %6724 = vmatpush.msra.mxu1 %v9512_v43  ;;  %6609 = vmatpush.msrb.mxu0 %v9470_v11  ;;  %v9705_v37 = vld [vmem:[%s18782_s15 + $0x1068] sm:$0xff]  ;;  %v9688_v11 = vld [vmem:[%s18782_s15 + $0xfe0] sm:$0xff] }
 0xa31   : > { %6689 = vmatpush.msrb.mxu2 %v9599_v53  ;;  %6669 = vmatpush.msrb.mxu3 %v9471_v47  ;;  %v9737_v31 = vld [vmem:[%s18782_s15 + $0x1168] sm:$0xff] }
 0xa32   : > { %6690 = vmatmul.f32.vlgmr.msrb.gmra.mxu2 %v15291_v45  ;;  %6725 = vmatpush.msra.mxu1 %v9504_v32  ;;  %v9537_v50 = vld [vmem:[%s18782_s15 + $0xb28] sm:$0xff] }
 0xa33   : > { %6774 = vmatpush.msra.mxu2 %v9593_v9  ;;  %6610 = vmatmul.f32.vlgmr.msrb.gmra.mxu0 %v15243_v52  ;;  %v9697_v43 = vld [vmem:[%s18782_s15 + $0x1028] sm:$0xff]  ;;  %v9722_v9 = vld [vmem:[%s18782_s15 + $0x10f0] sm:$0xff] }
 0xa34   : > { %6670 = vmatmul.f32.vlgmr.msrb.gmra.mxu3 %v15243_v52  ;;  %9762 = vmatpush.msk.msra.mxu0 %vm2926_vm4, %v9751_v0  ;;  %v9729_v53 = vld [vmem:[%s18782_s15 + $0x1128] sm:$0xff]  ;;  %v9680_v0 = vld [vmem:[%s18782_s15 + $0xfa0] sm:$0xff] }
 0xa35   : > { %9764 = vmatpush.msk.msra.mxu3 %vm2926_vm4, %v9752_v18  ;;  %6726 = vmatpush.msra.mxu1 %v9496_v21  ;;  %v9529_v47 = vld [vmem:[%s18782_s15 + $0xae8] sm:$0xff] }
 0xa36   : > { %6775 = vmatpush.msra.mxu2 %v9585_v15  ;;  %6707 = vmatpush.msra.mxu0 %v9743_v58  ;;  %v9689_v32 = vld [vmem:[%s18782_s15 + $0xfe8] sm:$0xff]  ;;  %v9714_v15 = vld [vmem:[%s18782_s15 + $0x10b0] sm:$0xff]  ;;  %v9672_v58 = vld [vmem:[%s18782_s15 + $0xf60] sm:$0xff] }
 0xa37   : > { %6767 = vmatpush.msra.mxu3 %v9744_v5  ;;  %6727 = vmatpush.msra.mxu1 %v9488_v51  ;;  %v9521_v18 = vld [vmem:[%s18782_s15 + $0xaa8] sm:$0xff] }
 0xa38   : > { %6776 = vmatpush.msra.mxu2 %v9577_v49  ;;  %6708 = vmatpush.msra.mxu0 %v9735_v54  ;;  %v9681_v21 = vld [vmem:[%s18782_s15 + $0xfa8] sm:$0xff]  ;;  %v9706_v49 = vld [vmem:[%s18782_s15 + $0x1070] sm:$0xff]  ;;  %v9664_v54 = vld [vmem:[%s18782_s15 + $0xf20] sm:$0xff] }
 0xa39   : > { %6768 = vmatpush.msra.mxu3 %v9736_v62  ;;  %6728 = vmatpush.msra.mxu1 %v9480_v41  ;;  %v9513_v5 = vld [vmem:[%s18782_s15 + $0xa68] sm:$0xff] }
 0xa3a   : > { %6777 = vmatpush.msra.mxu2 %v9569_v26  ;;  %6709 = vmatpush.msra.mxu0 %v9727_v23  ;;  %v9673_v51 = vld [vmem:[%s18782_s15 + $0xf68] sm:$0xff]  ;;  %v9698_v26 = vld [vmem:[%s18782_s15 + $0x1030] sm:$0xff]  ;;  %v9656_v23 = vld [vmem:[%s18782_s15 + $0xee0] sm:$0xff] }
 0xa3b   : > { %6769 = vmatpush.msra.mxu3 %v9728_v44  ;;  %6729 = vmatpush.msra.mxu1 %v9472_v30  ;;  %v9505_v62 = vld [vmem:[%s18782_s15 + $0xa28] sm:$0xff] }
 0xa3c   : > { %6734 = vmatpush.msrb.mxu0 %v9720_v24  ;;  %6778 = vmatpush.msra.mxu2 %v9561_v17  ;;  %v9665_v41 = vld [vmem:[%s18782_s15 + $0xf28] sm:$0xff]  ;;  %v9690_v24 = vld [vmem:[%s18782_s15 + $0xff0] sm:$0xff]  ;;  %v9648_v17 = vld [vmem:[%s18782_s15 + $0xea0] sm:$0xff] }
 0xa3d   : > { %6794 = vmatpush.msrb.mxu3 %v9721_v12  ;;  %9763 = vmatmul.msk.f32.vlgmr.msra.gmra.mxu0 %vm6447_vm15, %v15252_v38  ;;  %v9497_v44 = vld [vmem:[%s18782_s15 + $0x9e8] sm:$0xff] }
 0xa3e   : > { %6730 = vmatmul.f32.vlgmr.msra.gmra.mxu1 %v15243_v52  ;;  %9765 = vmatmul.msk.f32.vlgmr.msra.gmra.mxu3 %vm6447_vm15, %v15252_v38  ;;  %v9657_v30 = vld [vmem:[%s18782_s15 + $0xee8] sm:$0xff] }
 0xa3f   : > { %9766 = vmatpush.msk.msrb.mxu1 %vm2926_vm4, %v9753_v61  ;;  %6735 = vmatpush.msrb.mxu0 %v9712_v27  ;;  %v9489_v12 = vld [vmem:[%s18782_s15 + $0x9a8] sm:$0xff]  ;;  %v9682_v27 = vld [vmem:[%s18782_s15 + $0xfb0] sm:$0xff] }
 0xa40   : > { %6779 = vmatpush.msra.mxu2 %v9553_v20  ;;  %6795 = vmatpush.msrb.mxu3 %v9713_v3  ;;  %v9649_v61 = vld [vmem:[%s18782_s15 + $0xea8] sm:$0xff]  ;;  %v9640_v20 = vld [vmem:[%s18782_s15 + $0xe60] sm:$0xff] }
 0xa41   : > { %6827 = vmatpush.msrb.mxu1 %v9745_v36  ;;  %6736 = vmatpush.msrb.mxu0 %v9704_v1  ;;  %v9481_v3 = vld [vmem:[%s18782_s15 + $0x968] sm:$0xff]  ;;  %v9674_v1 = vld [vmem:[%s18782_s15 + $0xf70] sm:$0xff] }
 0xa42   : > { %6780 = vmatpush.msra.mxu2 %v9545_v57  ;;  %6796 = vmatpush.msrb.mxu3 %v9705_v37  ;;  %v9641_v36 = vld [vmem:[%s18782_s15 + $0xe68] sm:$0xff]  ;;  %v9632_v57 = vld [vmem:[%s18782_s15 + $0xe20] sm:$0xff] }
 0xa43   : > { %6828 = vmatpush.msrb.mxu1 %v9737_v31  ;;  %6737 = vmatpush.msrb.mxu0 %v9696_v28  ;;  %v9473_v37 = vld [vmem:[%s18782_s15 + $0x928] sm:$0xff]  ;;  %v9666_v28 = vld [vmem:[%s18782_s15 + $0xf30] sm:$0xff] }
 0xa44   : > { %6781 = vmatpush.msra.mxu2 %v9537_v50  ;;  %6797 = vmatpush.msrb.mxu3 %v9697_v43  ;;  %v9633_v31 = vld [vmem:[%s18782_s15 + $0xe28] sm:$0xff]  ;;  %v9624_v50 = vld [vmem:[%s18782_s15 + $0xde0] sm:$0xff]  ;;  %v9754_v43 = vld [vmem:[%s18782_s15 + $0x11f0] sm:$0x3f] }
 0xa45   : > { %6829 = vmatpush.msrb.mxu1 %v9729_v53  ;;  %6738 = vmatpush.msrb.mxu0 %v9688_v11  ;;  %v9625_v53 = vld [vmem:[%s18782_s15 + $0xde8] sm:$0xff]  ;;  %v9658_v11 = vld [vmem:[%s18782_s15 + $0xef0] sm:$0xff] }
 0xa46   : > { %6782 = vmatpush.msra.mxu2 %v9529_v47  ;;  %6798 = vmatpush.msrb.mxu3 %v9689_v32  ;;  %v9616_v47 = vld [vmem:[%s18782_s15 + $0xda0] sm:$0xff]  ;;  %v9746_v32 = vld [vmem:[%s18782_s15 + $0x11b0] sm:$0xff] }
 0xa47   : > { %6854 = vmatpush.msra.mxu1 %v9722_v9  ;;  %6739 = vmatpush.msrb.mxu0 %v9680_v0  ;;  %v9617_v9 = vld [vmem:[%s18782_s15 + $0xda8] sm:$0xff]  ;;  %v9650_v0 = vld [vmem:[%s18782_s15 + $0xeb0] sm:$0xff] }
 0xa48   : > { %9767 = vmatmul.msk.f32.vlgmr.msrb.gmra.mxu1 %vm6447_vm15, %v15252_v38  ;;  %6783 = vmatpush.msra.mxu2 %v9521_v18  ;;  %v9608_v18 = vld [vmem:[%s18782_s15 + $0xd60] sm:$0xff] }
 0xa49   : > { %6799 = vmatpush.msrb.mxu3 %v9681_v21  ;;  %6855 = vmatpush.msra.mxu1 %v9714_v15  ;;  %v9738_v21 = vld [vmem:[%s18782_s15 + $0x1170] sm:$0xff]  ;;  %v9609_v15 = vld [vmem:[%s18782_s15 + $0xd68] sm:$0xff] }
 0xa4a   : > { %6740 = vmatpush.msrb.mxu0 %v9672_v58  ;;  %6784 = vmatpush.msra.mxu2 %v9513_v5  ;;  %v9642_v58 = vld [vmem:[%s18782_s15 + $0xe70] sm:$0xff]  ;;  %v9600_v5 = vld [vmem:[%s18782_s15 + $0xd20] sm:$0xff] }
 0xa4b   : > { %6800 = vmatpush.msrb.mxu3 %v9673_v51  ;;  %6856 = vmatpush.msra.mxu1 %v9706_v49  ;;  %v9730_v51 = vld [vmem:[%s18782_s15 + $0x1130] sm:$0xff]  ;;  %v9601_v49 = vld [vmem:[%s18782_s15 + $0xd28] sm:$0xff] }
 0xa4c   : > { %6741 = vmatpush.msrb.mxu0 %v9664_v54  ;;  %6785 = vmatpush.msra.mxu2 %v9505_v62  ;;  %v9634_v54 = vld [vmem:[%s18782_s15 + $0xe30] sm:$0xff]  ;;  %v9723_v62 = vld [vmem:[%s18782_s15 + $0x10f8] sm:$0xff] }
 0xa4d   : > { %6801 = vmatpush.msrb.mxu3 %v9665_v41  ;;  %6857 = vmatpush.msra.mxu1 %v9698_v26  ;;  %v9594_v41 = vld [vmem:[%s18782_s15 + $0xcf0] sm:$0xff]  ;;  %v9595_v26 = vld [vmem:[%s18782_s15 + $0xcf8] sm:$0xff] }
 0xa4e   : > { %6742 = vmatpush.msrb.mxu0 %v9656_v23  ;;  %6786 = vmatpush.msra.mxu2 %v9497_v44  ;;  %v9626_v23 = vld [vmem:[%s18782_s15 + $0xdf0] sm:$0xff]  ;;  %v9715_v44 = vld [vmem:[%s18782_s15 + $0x10b8] sm:$0xff] }
 0xa4f   : > { %6802 = vmatpush.msrb.mxu3 %v9657_v30  ;;  %6858 = vmatpush.msra.mxu1 %v9690_v24  ;;  %v9586_v30 = vld [vmem:[%s18782_s15 + $0xcb0] sm:$0xff]  ;;  %v9587_v24 = vld [vmem:[%s18782_s15 + $0xcb8] sm:$0xff] }
 0xa50   : > { %6743 = vmatpush.msrb.mxu0 %v9648_v17  ;;  %6787 = vmatpush.msra.mxu2 %v9489_v12  ;;  %v9618_v17 = vld [vmem:[%s18782_s15 + $0xdb0] sm:$0xff]  ;;  %v9707_v12 = vld [vmem:[%s18782_s15 + $0x1078] sm:$0xff] }
 0xa51   : > { %6803 = vmatpush.msrb.mxu3 %v9649_v61  ;;  %6859 = vmatpush.msra.mxu1 %v9682_v27  ;;  %v9578_v61 = vld [vmem:[%s18782_s15 + $0xc70] sm:$0xff]  ;;  %v9579_v27 = vld [vmem:[%s18782_s15 + $0xc78] sm:$0xff] }
 0xa52   : > { %6744 = vmatpush.msrb.mxu0 %v9640_v20  ;;  %6788 = vmatpush.msra.mxu2 %v9481_v3  ;;  %v9610_v20 = vld [vmem:[%s18782_s15 + $0xd70] sm:$0xff]  ;;  %v9699_v3 = vld [vmem:[%s18782_s15 + $0x1038] sm:$0xff] }
 0xa53   : > { %6804 = vmatpush.msrb.mxu3 %v9641_v36  ;;  %6860 = vmatpush.msra.mxu1 %v9674_v1  ;;  %v9570_v36 = vld [vmem:[%s18782_s15 + $0xc30] sm:$0xff]  ;;  %v9571_v1 = vld [vmem:[%s18782_s15 + $0xc38] sm:$0xff] }
 0xa54   : > { %6745 = vmatpush.msrb.mxu0 %v9632_v57  ;;  %6789 = vmatpush.msra.mxu2 %v9473_v37  ;;  %v9602_v57 = vld [vmem:[%s18782_s15 + $0xd30] sm:$0xff]  ;;  %v9691_v37 = vld [vmem:[%s18782_s15 + $0xff8] sm:$0xff] }
 0xa55   : > { %6805 = vmatpush.msrb.mxu3 %v9633_v31  ;;  %6861 = vmatpush.msra.mxu1 %v9666_v28  ;;  %v9562_v31 = vld [vmem:[%s18782_s15 + $0xbf0] sm:$0xff]  ;;  %v9563_v28 = vld [vmem:[%s18782_s15 + $0xbf8] sm:$0xff] }
 0xa56   : > { %6790 = vmatmul.f32.vlgmr.msra.gmra.mxu2 %v15243_v52  ;;  %6746 = vmatpush.msrb.mxu0 %v9624_v50  ;;  %v5982_v50 = vld [vmem:[%s18782_s15 + $0x3c0] sm:$0xff] }
 0xa57   : > { %9768 = vmatpush.msk.msrb.mxu2 %vm2926_vm4, %v9754_v43  ;;  %6806 = vmatpush.msrb.mxu3 %v9625_v53  ;;  %v9683_v43 = vld [vmem:[%s18782_s15 + $0xfb8] sm:$0xff]  ;;  %v9554_v53 = vld [vmem:[%s18782_s15 + $0xbb0] sm:$0xff] }
 0xa58   : > { %6862 = vmatpush.msra.mxu1 %v9658_v11  ;;  %6747 = vmatpush.msrb.mxu0 %v9616_v47  ;;  %v9555_v11 = vld [vmem:[%s18782_s15 + $0xbb8] sm:$0xff]  ;;  %v5974_v47 = vld [vmem:[%s18782_s15 + $0x380] sm:$0xff] }
 0xa59   : > { %6887 = vmatpush.msrb.mxu2 %v9746_v32  ;;  %6807 = vmatpush.msrb.mxu3 %v9617_v9  ;;  %v9675_v32 = vld [vmem:[%s18782_s15 + $0xf78] sm:$0xff]  ;;  %v9546_v9 = vld [vmem:[%s18782_s15 + $0xb70] sm:$0xff] }
 0xa5a   : > { %6863 = vmatpush.msra.mxu1 %v9650_v0  ;;  %6748 = vmatpush.msrb.mxu0 %v9608_v18  ;;  %v9547_v0 = vld [vmem:[%s18782_s15 + $0xb78] sm:$0xff]  ;;  %v5966_v18 = vld [vmem:[%s18782_s15 + $0x340] sm:$0xff] }
 0xa5b   : > { %6888 = vmatpush.msrb.mxu2 %v9738_v21  ;;  %6808 = vmatpush.msrb.mxu3 %v9609_v15  ;;  %v9667_v21 = vld [vmem:[%s18782_s15 + $0xf38] sm:$0xff]  ;;  %v9538_v15 = vld [vmem:[%s18782_s15 + $0xb30] sm:$0xff] }
 0xa5c   : > { %6864 = vmatpush.msra.mxu1 %v9642_v58  ;;  %6749 = vmatpush.msrb.mxu0 %v9600_v5  ;;  %v9539_v58 = vld [vmem:[%s18782_s15 + $0xb38] sm:$0xff]  ;;  %v5958_v5 = vld [vmem:[%s18782_s15 + $0x300] sm:$0xff] }
 0xa5d   : > { %6889 = vmatpush.msrb.mxu2 %v9730_v51  ;;  %6809 = vmatpush.msrb.mxu3 %v9601_v49  ;;  %v9659_v51 = vld [vmem:[%s18782_s15 + $0xef8] sm:$0xff]  ;;  %v9530_v49 = vld [vmem:[%s18782_s15 + $0xaf0] sm:$0xff] }
 0xa5e   : > { %6865 = vmatpush.msra.mxu1 %v9634_v54  ;;  %6750 = vmatmul.f32.vlgmr.msrb.gmra.mxu0 %v15291_v45  ;;  %v9531_v54 = vld [vmem:[%s18782_s15 + $0xaf8] sm:$0xff] }
 0xa5f   : > { %6914 = vmatpush.msra.mxu2 %v9723_v62  ;;  %6810 = vmatmul.f32.vlgmr.msrb.gmra.mxu3 %v15291_v45  ;;  %v5950_v62 = vld [vmem:[%s18782_s15 + $0x2c0] sm:$0xff] }
 0xa60   : > { %6834 = vmatpush.msra.mxu0 %v9594_v41  ;;  %9769 = vmatmul.msk.f32.vlgmr.msrb.gmra.mxu2 %vm6447_vm15, %v15252_v38  ;;  %v9651_v41 = vld [vmem:[%s18782_s15 + $0xeb8] sm:$0xff] }
 0xa61   : > { %6894 = vmatpush.msra.mxu3 %v9595_v26  ;;  %6866 = vmatpush.msra.mxu1 %v9626_v23  ;;  %v9522_v26 = vld [vmem:[%s18782_s15 + $0xab0] sm:$0xff]  ;;  %v9523_v23 = vld [vmem:[%s18782_s15 + $0xab8] sm:$0xff] }
 0xa62   : > { %6915 = vmatpush.msra.mxu2 %v9715_v44  ;;  %6835 = vmatpush.msra.mxu0 %v9586_v30  ;;  %v5942_v44 = vld [vmem:[%s18782_s15 + $0x280] sm:$0xff]  ;;  %v9643_v30 = vld [vmem:[%s18782_s15 + $0xe78] sm:$0xff] }
 0xa63   : > { %6895 = vmatpush.msra.mxu3 %v9587_v24  ;;  %6867 = vmatpush.msra.mxu1 %v9618_v17  ;;  %v9514_v24 = vld [vmem:[%s18782_s15 + $0xa70] sm:$0xff]  ;;  %v9515_v17 = vld [vmem:[%s18782_s15 + $0xa78] sm:$0xff] }
 0xa64   : > { %6916 = vmatpush.msra.mxu2 %v9707_v12  ;;  %6836 = vmatpush.msra.mxu0 %v9578_v61  ;;  %v5934_v12 = vld [vmem:[%s18782_s15 + $0x240] sm:$0xff]  ;;  %v9635_v61 = vld [vmem:[%s18782_s15 + $0xe38] sm:$0xff] }
 0xa65   : > { %6896 = vmatpush.msra.mxu3 %v9579_v27  ;;  %6868 = vmatpush.msra.mxu1 %v9610_v20  ;;  %v9506_v27 = vld [vmem:[%s18782_s15 + $0xa30] sm:$0xff]  ;;  %v9507_v20 = vld [vmem:[%s18782_s15 + $0xa38] sm:$0xff] }
 0xa66   : > { %6917 = vmatpush.msra.mxu2 %v9699_v3  ;;  %6837 = vmatpush.msra.mxu0 %v9570_v36  ;;  %v5926_v3 = vld [vmem:[%s18782_s15 + $0x200] sm:$0xff]  ;;  %v9627_v36 = vld [vmem:[%s18782_s15 + $0xdf8] sm:$0xff] }
 0xa67   : > { %6897 = vmatpush.msra.mxu3 %v9571_v1  ;;  %6869 = vmatpush.msra.mxu1 %v9602_v57  ;;  %v9498_v1 = vld [vmem:[%s18782_s15 + $0x9f0] sm:$0xff]  ;;  %v9499_v57 = vld [vmem:[%s18782_s15 + $0x9f8] sm:$0xff] }
 0xa68   : > { %6918 = vmatpush.msra.mxu2 %v9691_v37  ;;  %6838 = vmatpush.msra.mxu0 %v9562_v31  ;;  %v5918_v37 = vld [vmem:[%s18782_s15 + $0x1c0] sm:$0xff]  ;;  %v9619_v31 = vld [vmem:[%s18782_s15 + $0xdb8] sm:$0xff] }
 0xa69   : > { %6870 = vmatmul.f32.vlgmr.msra.gmra.mxu1 %v15291_v45  ;;  %6898 = vmatpush.msra.mxu3 %v9563_v28  ;;  %v9490_v28 = vld [vmem:[%s18782_s15 + $0x9b0] sm:$0xff] }
 0xa6a   : > { %6980 = vmatpush.msrb.mxu1 %v5982_v50  ;;  %6919 = vmatpush.msra.mxu2 %v9683_v43  ;;  %v9491_v50 = vld [vmem:[%s18782_s15 + $0x9b8] sm:$0xff]  ;;  %v5910_v43 = vld [vmem:[%s18782_s15 + $0x180] sm:$0xff] }
 0xa6b   : > { %6839 = vmatpush.msra.mxu0 %v9554_v53  ;;  %6899 = vmatpush.msra.mxu3 %v9555_v11  ;;  %v9611_v53 = vld [vmem:[%s18782_s15 + $0xd78] sm:$0xff]  ;;  %v9482_v11 = vld [vmem:[%s18782_s15 + $0x970] sm:$0xff] }
 0xa6c   : > { %6981 = vmatpush.msrb.mxu1 %v5974_v47  ;;  %6920 = vmatpush.msra.mxu2 %v9675_v32  ;;  %v9483_v47 = vld [vmem:[%s18782_s15 + $0x978] sm:$0xff]  ;;  %v5902_v32 = vld [vmem:[%s18782_s15 + $0x140] sm:$0xff] }
 0xa6d   : > { %6840 = vmatpush.msra.mxu0 %v9546_v9  ;;  %6900 = vmatpush.msra.mxu3 %v9547_v0  ;;  %v9603_v9 = vld [vmem:[%s18782_s15 + $0xd38] sm:$0xff]  ;;  %v9474_v0 = vld [vmem:[%s18782_s15 + $0x930] sm:$0xff] }
 0xa6e   : > { %6982 = vmatpush.msrb.mxu1 %v5966_v18  ;;  %6921 = vmatpush.msra.mxu2 %v9667_v21  ;;  %v9475_v18 = vld [vmem:[%s18782_s15 + $0x938] sm:$0xff]  ;;  %v5894_v21 = vld [vmem:[%s18782_s15 + $0x100] sm:$0xff] }
 0xa6f   : > { %6841 = vmatpush.msra.mxu0 %v9538_v15  ;;  %6901 = vmatpush.msra.mxu3 %v9539_v58  ;;  %v5983_v15 = vld [vmem:[%s18782_s15 + $0x3c8] sm:$0xff]  ;;  %v9755_v58 = vld [vmem:[%s18782_s15 + $0x11f8] sm:$0x3f] }
 0xa70   : > { %6983 = vmatpush.msrb.mxu1 %v5958_v5  ;;  %6922 = vmatpush.msra.mxu2 %v9659_v51  ;;  %v6142_v5 = vld [vmem:[%s18782_s15 + $0x8c0] sm:$0x3f] }
 0xa71   : > { %6842 = vmatpush.msra.mxu0 %v9530_v49  ;;  %6902 = vmatpush.msra.mxu3 %v9531_v54  ;;  %v5886_v51 = vld [vmem:[%s18782_s15 + $0xc0] sm:$0xff]  ;;  %v5975_v49 = vld [vmem:[%s18782_s15 + $0x388] sm:$0xff] }
 0xa72   : > { %6984 = vmatpush.msrb.mxu1 %v5950_v62  ;;  %6923 = vmatpush.msra.mxu2 %v9651_v41  ;;  %v6134_v54 = vld [vmem:[%s18782_s15 + $0x880] sm:$0xff]  ;;  %v5967_v41 = vld [vmem:[%s18782_s15 + $0x348] sm:$0xff] }
 0xa73   : > { %6843 = vmatpush.msra.mxu0 %v9522_v26  ;;  %6903 = vmatpush.msra.mxu3 %v9523_v23  ;;  %v5878_v62 = vld [vmem:[%s18782_s15 + $0x80] sm:$0xff] }
 0xa74   : > { %6985 = vmatpush.msrb.mxu1 %v5942_v44  ;;  %6924 = vmatpush.msra.mxu2 %v9643_v30  ;;  %v6126_v26 = vld [vmem:[%s18782_s15 + $0x840] sm:$0xff]  ;;  %v5959_v44 = vld [vmem:[%s18782_s15 + $0x308] sm:$0xff]  ;;  %v9731_v30 = vld [vmem:[%s18782_s15 + $0x1138] sm:$0xff] }
 0xa75   : > { %6844 = vmatpush.msra.mxu0 %v9514_v24  ;;  %6904 = vmatpush.msra.mxu3 %v9515_v17  ;;  %v5870_v23 = vld [vmem:[%s18782_s15 + $0x40] sm:$0xff] }
 0xa76   : > { %6986 = vmatpush.msrb.mxu1 %v5934_v12  ;;  %6925 = vmatpush.msra.mxu2 %v9635_v61  ;;  %v6118_v24 = vld [vmem:[%s18782_s15 + $0x800] sm:$0xff]  ;;  %v5951_v61 = vld [vmem:[%s18782_s15 + $0x2c8] sm:$0xff] }
 0xa77   : > { %6845 = vmatpush.msra.mxu0 %v9506_v27  ;;  %6905 = vmatpush.msra.mxu3 %v9507_v20  ;;  %v5862_v17 = vld [vmem:[%s18782_s15] sm:$0xff]  ;;  %v6111_v27 = vld [vmem:[%s18782_s15 + $0x7c8] sm:$0xff] }
 0xa78   : > { %6987 = vmatpush.msrb.mxu1 %v5926_v3  ;;  %6926 = vmatpush.msra.mxu2 %v9627_v36  ;;  %v6110_v12 = vld [vmem:[%s18782_s15 + $0x7c0] sm:$0xff]  ;;  %v6143_v20 = vld [vmem:[%s18782_s15 + $0x8c8] sm:$0x3f]  ;;  %v15964_v36 = vpop.f32.mrf.mxu0 }
 0xa79   : > { %6846 = vmatpush.msra.mxu0 %v9498_v1  ;;  %6906 = vmatpush.msra.mxu3 %v9499_v57  ;;  %v6102_v3 = vld [vmem:[%s18782_s15 + $0x780] sm:$0xff]  ;;  %v5943_v1 = vld [vmem:[%s18782_s15 + $0x288] sm:$0xff] }
 0xa7a   : > { %6988 = vmatpush.msrb.mxu1 %v5918_v37  ;;  %6927 = vmatpush.msra.mxu2 %v9619_v31  ;;  %v6103_v57 = vld [vmem:[%s18782_s15 + $0x788] sm:$0xff]  ;;  %v15974_v37 = vpop.f32.mrf.mxu1  ;;  %v15976_v31 = vpop.f32.mrf.mxu2 }
 0xa7b   : > { %6847 = vmatpush.msra.mxu0 %v9490_v28  ;;  %6907 = vmatpush.msra.mxu3 %v9491_v50  ;;  %v6094_v28 = vld [vmem:[%s18782_s15 + $0x740] sm:$0xff]  ;;  %v5935_v50 = vld [vmem:[%s18782_s15 + $0x248] sm:$0xff] }
 0xa7c   : > { %6989 = vmatpush.msrb.mxu1 %v5910_v43  ;;  %6928 = vmatpush.msra.mxu2 %v9611_v53  ;;  %v6095_v43 = vld [vmem:[%s18782_s15 + $0x748] sm:$0xff] }
 0xa7d   : > { %6848 = vmatpush.msra.mxu0 %v9482_v11  ;;  %6908 = vmatpush.msra.mxu3 %v9483_v47  ;;  %v6127_v53 = vld [vmem:[%s18782_s15 + $0x848] sm:$0xff]  ;;  %v6086_v11 = vld [vmem:[%s18782_s15 + $0x700] sm:$0xff] }
 0xa7e   : > { %6990 = vmatpush.msrb.mxu1 %v5902_v32  ;;  %6929 = vmatpush.msra.mxu2 %v9603_v9  ;;  %v5927_v47 = vld [vmem:[%s18782_s15 + $0x208] sm:$0xff] }
 0xa7f   : > { %6849 = vmatpush.msra.mxu0 %v9474_v0  ;;  %6909 = vmatpush.msra.mxu3 %v9475_v18  ;;  %v6087_v32 = vld [vmem:[%s18782_s15 + $0x708] sm:$0xff]  ;;  %v6078_v0 = vld [vmem:[%s18782_s15 + $0x6c0] sm:$0xff] }
 0xa80   : > { %6930 = vmatmul.f32.vlgmr.msra.gmra.mxu2 %v15291_v45  ;;  %6991 = vmatpush.msrb.mxu1 %v5894_v21  ;;  %v9747_v45 = vld [vmem:[%s18782_s15 + $0x11b8] sm:$0xff]  ;;  %v6119_v9 = vld [vmem:[%s18782_s15 + $0x808] sm:$0xff] }
 0xa81   : > { %7040 = vmatpush.msrb.mxu2 %v5983_v15  ;;  %6850 = vmatmul.f32.vlgmr.msra.gmra.mxu0 %v15243_v52  ;;  %v5919_v18 = vld [vmem:[%s18782_s15 + $0x1c8] sm:$0xff]  ;;  %v6112_v15 = vld [vmem:[%s18782_s15 + $0x7d0] sm:$0xff] }
 0xa82   : > { %6910 = vmatmul.f32.vlgmr.msra.gmra.mxu3 %v15243_v52  ;;  %9770 = vmatpush.msk.msrb.mxu0 %vm2926_vm4, %v9755_v58  ;;  %v9739_v52 = vld [vmem:[%s18782_s15 + $0x1178] sm:$0xff]  ;;  %v6079_v21 = vld [vmem:[%s18782_s15 + $0x6c8] sm:$0xff]  ;;  %v6070_v58 = vld [vmem:[%s18782_s15 + $0x680] sm:$0xff] }
 0xa83   : > { %9772 = vmatpush.msk.msrb.mxu3 %vm2926_vm4, %v6142_v5  ;;  %6992 = vmatpush.msrb.mxu1 %v5886_v51  ;;  %v16024_v5 = vpop.f32.mrf.mxu3  ;;  %v5911_v51 = vld [vmem:[%s18782_s15 + $0x188] sm:$0xff] }
 0xa84   : > { %7041 = vmatpush.msrb.mxu2 %v5975_v49  ;;  %6947 = vmatpush.msrb.mxu0 %v9747_v45  ;;  %v6071_v45 = vld [vmem:[%s18782_s15 + $0x688] sm:$0xff] }
 0xa85   : > { %7033 = vmatpush.msrb.mxu3 %v6134_v54  ;;  %6993 = vmatpush.msrb.mxu1 %v5878_v62  ;;  %v6104_v54 = vld [vmem:[%s18782_s15 + $0x790] sm:$0xff] }
 0xa86   : > { %7042 = vmatpush.msrb.mxu2 %v5967_v41  ;;  %6948 = vmatpush.msrb.mxu0 %v9739_v52  ;;  %v6062_v52 = vld [vmem:[%s18782_s15 + $0x640] sm:$0xff] }
 0xa87   : > { %7034 = vmatpush.msrb.mxu3 %v6126_v26  ;;  %6994 = vmatpush.msrb.mxu1 %v5870_v23  ;;  %v5903_v26 = vld [vmem:[%s18782_s15 + $0x148] sm:$0xff] }
 0xa88   : > { %7043 = vmatpush.msrb.mxu2 %v5959_v44  ;;  %6949 = vmatpush.msrb.mxu0 %v9731_v30  ;;  %v6063_v44 = vld [vmem:[%s18782_s15 + $0x648] sm:$0xff]  ;;  %v6096_v30 = vld [vmem:[%s18782_s15 + $0x750] sm:$0xff] }
 0xa89   : > { %7035 = vmatpush.msrb.mxu3 %v6118_v24  ;;  %6995 = vmatpush.msrb.mxu1 %v5862_v17  ;;  %v6054_v24 = vld [vmem:[%s18782_s15 + $0x600] sm:$0xff]  ;;  %v5895_v17 = vld [vmem:[%s18782_s15 + $0x108] sm:$0xff] }
 0xa8a   : > { %7000 = vmatpush.msra.mxu0 %v6110_v12  ;;  %7044 = vmatpush.msrb.mxu2 %v5951_v61  ;;  %v6055_v61 = vld [vmem:[%s18782_s15 + $0x608] sm:$0xff] }
 0xa8b   : > { %7060 = vmatpush.msra.mxu3 %v6111_v27  ;;  %9771 = vmatmul.msk.f32.vlgmr.msrb.gmra.mxu0 %vm6447_vm15, %v15252_v38  ;;  %v6135_v38 = vld [vmem:[%s18782_s15 + $0x888] sm:$0xff]  ;;  %v6088_v27 = vld [vmem:[%s18782_s15 + $0x710] sm:$0xff] }
 0xa8c   : > { %6996 = vmatmul.f32.vlgmr.msrb.gmra.mxu1 %v15238_v46  ;;  %9773 = vmatmul.msk.f32.vlgmr.msrb.gmra.mxu3 %vm6447_vm15, %v15240_v48  ;;  %v6491_v49 = vpop.f32.mrf.mxu0 }
 0xa8d   : > { %9774 = vmatpush.msk.msra.mxu1 %vm2926_vm4, %v6143_v20  ;;  %7001 = vmatpush.msra.mxu0 %v6102_v3  ;;  %v6046_v20 = vld [vmem:[%s18782_s15 + $0x5c0] sm:$0xff]  ;;  %v5887_v3 = vld [vmem:[%s18782_s15 + $0xc8] sm:$0xff] }
 0xa8e   : > { %7045 = vmatpush.msrb.mxu2 %v5943_v1  ;;  %7061 = vmatpush.msra.mxu3 %v6103_v57  ;;  %v6047_v1 = vld [vmem:[%s18782_s15 + $0x5c8] sm:$0xff]  ;;  %v6080_v57 = vld [vmem:[%s18782_s15 + $0x6d0] sm:$0xff] }
 0xa8f   : > { %7093 = vmatpush.msra.mxu1 %v6135_v38  ;;  %7002 = vmatpush.msra.mxu0 %v6094_v28  ;;  %v6038_v38 = vld [vmem:[%s18782_s15 + $0x580] sm:$0xff]  ;;  %v5879_v28 = vld [vmem:[%s18782_s15 + $0x88] sm:$0xff] }
 0xa90   : > { %7046 = vmatpush.msrb.mxu2 %v5935_v50  ;;  %7062 = vmatpush.msra.mxu3 %v6095_v43  ;;  %v6039_v50 = vld [vmem:[%s18782_s15 + $0x588] sm:$0xff]  ;;  %v6072_v43 = vld [vmem:[%s18782_s15 + $0x690] sm:$0xff] }
 0xa91   : > { %7094 = vmatpush.msra.mxu1 %v6127_v53  ;;  %7003 = vmatpush.msra.mxu0 %v6086_v11 }
 0xa92   : > { %7047 = vmatpush.msrb.mxu2 %v5927_v47  ;;  %7063 = vmatpush.msra.mxu3 %v6087_v32  ;;  %v6551_v53 = vpop.f32.mrf.mxu3  ;;  %v6030_v47 = vld [vmem:[%s18782_s15 + $0x540] sm:$0xff]  ;;  %v5871_v32 = vld [vmem:[%s18782_s15 + $0x48] sm:$0xff] }
 0xa93   : > { %7095 = vmatpush.msra.mxu1 %v6119_v9  ;;  %7004 = vmatpush.msra.mxu0 %v6078_v0  ;;  %v6511_v41 = vpop.f32.mrf.mxu1  ;;  %v6031_v0 = vld [vmem:[%s18782_s15 + $0x548] sm:$0xff] }
 0xa94   : > { %7048 = vmatpush.msrb.mxu2 %v5919_v18  ;;  %7064 = vmatpush.msra.mxu3 %v6079_v21  ;;  %v6512_v23 = vadd.f32 %v6511_v41, %v6491_v49  ;;  %v6064_v18 = vld [vmem:[%s18782_s15 + $0x650] sm:$0xff]  ;;  %v6022_v21 = vld [vmem:[%s18782_s15 + $0x500] sm:$0xff] }
 0xa95   : > { %v6531_v62 = vpop.f32.mrf.mxu2  ;;  %7120 = vmatpush.msrb.mxu1 %v6112_v15  ;;  %7005 = vmatpush.msra.mxu0 %v6070_v58  ;;  %v5863_v15 = vld [vmem:[%s18782_s15 + $0x8] sm:$0xff]  ;;  %v6014_v49 = vld [vmem:[%s18782_s15 + $0x4c0] sm:$0xff] }
 0xa96   : > { %9775 = vmatmul.msk.f32.vlgmr.msra.gmra.mxu1 %vm6447_vm15, %v15240_v48  ;;  %7049 = vmatpush.msrb.mxu2 %v5911_v51  ;;  %v16055_v12 = vadd.f32 %v6531_v62, %v6512_v23  ;;  %v6023_v58 = vld [vmem:[%s18782_s15 + $0x508] sm:$0xff]  ;;  %v6056_v51 = vld [vmem:[%s18782_s15 + $0x610] sm:$0xff] }
 0xa97   : > { %7065 = vmatpush.msra.mxu3 %v6071_v45  ;;  %7121 = vmatpush.msrb.mxu1 %v6104_v54  ;;  %v6591_v45 = vpop.f32.mrf.mxu0  ;;  %v6144_v54 = vld [vmem:[%s18782_s15 + $0x8d0] sm:$0x3f]  ;;  %v6015_v62 = vld [vmem:[%s18782_s15 + $0x4c8] sm:$0xff] }
 0xa98   : > { %7006 = vmatpush.msra.mxu0 %v6062_v52  ;;  %7050 = vmatpush.msrb.mxu2 %v5903_v26  ;;  %v6048_v52 = vld [vmem:[%s18782_s15 + $0x5d0] sm:$0xff]  ;;  %v6006_v26 = vld [vmem:[%s18782_s15 + $0x480] sm:$0xff] }
 0xa99   : > { %7066 = vmatpush.msra.mxu3 %v6063_v44  ;;  %7122 = vmatpush.msrb.mxu1 %v6096_v30  ;;  %v6136_v23 = vld [vmem:[%s18782_s15 + $0x890] sm:$0xff]  ;;  %v6007_v44 = vld [vmem:[%s18782_s15 + $0x488] sm:$0xff] }
 0xa9a   : > { %7007 = vmatpush.msra.mxu0 %v6054_v24  ;;  %7051 = vmatpush.msrb.mxu2 %v5895_v17  ;;  %v6040_v30 = vld [vmem:[%s18782_s15 + $0x590] sm:$0xff]  ;;  %v5998_v24 = vld [vmem:[%s18782_s15 + $0x440] sm:$0xff] }
 0xa9b   : > { %7067 = vmatpush.msra.mxu3 %v6055_v61  ;;  %7123 = vmatpush.msrb.mxu1 %v6088_v27  ;;  %v6128_v17 = vld [vmem:[%s18782_s15 + $0x850] sm:$0xff]  ;;  %v5999_v61 = vld [vmem:[%s18782_s15 + $0x448] sm:$0xff] }
 0xa9c   : > { %7008 = vmatpush.msra.mxu0 %v6046_v20  ;;  %7052 = vmatpush.msrb.mxu2 %v5887_v3  ;;  %v6032_v27 = vld [vmem:[%s18782_s15 + $0x550] sm:$0xff]  ;;  %v5990_v20 = vld [vmem:[%s18782_s15 + $0x400] sm:$0xff] }
 0xa9d   : > { %v6571_v11 = vpop.f32.mrf.mxu2  ;;  %7068 = vmatpush.msra.mxu3 %v6047_v1  ;;  %7124 = vmatpush.msrb.mxu1 %v6080_v57  ;;  %v6120_v3 = vld [vmem:[%s18782_s15 + $0x810] sm:$0xff]  ;;  %v5991_v1 = vld [vmem:[%s18782_s15 + $0x408] sm:$0xff] }
 0xa9e   : > { %v6572_v9 = vadd.f32 %v6571_v11, %v6551_v53  ;;  %7009 = vmatpush.msra.mxu0 %v6038_v38  ;;  %7053 = vmatpush.msrb.mxu2 %v5879_v28  ;;  %v6024_v57 = vld [vmem:[%s18782_s15 + $0x510] sm:$0xff]  ;;  %v6113_v38 = vld [vmem:[%s18782_s15 + $0x7d8] sm:$0xff] }
 0xa9f   : > { %7069 = vmatpush.msra.mxu3 %v6039_v50  ;;  %7125 = vmatpush.msrb.mxu1 %v6072_v43  ;;  %v5984_v28 = vld [vmem:[%s18782_s15 + $0x3d0] sm:$0xff]  ;;  %v5985_v50 = vld [vmem:[%s18782_s15 + $0x3d8] sm:$0xff] }
 0xaa0   : > { %7010 = vmatpush.msra.mxu0 %v6030_v47  ;;  %7054 = vmatpush.msrb.mxu2 %v5871_v32  ;;  %v16120_v41 = vadd.f32 %v6591_v45, %v6572_v9  ;;  %v6016_v43 = vld [vmem:[%s18782_s15 + $0x4d0] sm:$0xff]  ;;  %v6105_v53 = vld [vmem:[%s18782_s15 + $0x798] sm:$0xff]  ;;  %v6651_v9 = vpop.f32.mrf.mxu3 }
 0xaa1   : > { %7070 = vmatpush.msra.mxu3 %v6031_v0  ;;  %7126 = vmatpush.msrb.mxu1 %v6064_v18  ;;  %v5976_v11 = vld [vmem:[%s18782_s15 + $0x390] sm:$0xff]  ;;  %v5977_v47 = vld [vmem:[%s18782_s15 + $0x398] sm:$0xff] }
 0xaa2   : > { %7011 = vmatpush.msra.mxu0 %v6022_v21  ;;  %7055 = vmatpush.msrb.mxu2 %v5863_v15  ;;  %v6008_v32 = vld [vmem:[%s18782_s15 + $0x490] sm:$0xff]  ;;  %v6097_v0 = vld [vmem:[%s18782_s15 + $0x758] sm:$0xff]  ;;  %v6631_v21 = vpop.f32.mrf.mxu1 }
 0xaa3   : > { %7071 = vmatpush.msra.mxu3 %v6023_v58  ;;  %7127 = vmatpush.msrb.mxu1 %v6056_v51  ;;  %v5968_v18 = vld [vmem:[%s18782_s15 + $0x350] sm:$0xff]  ;;  %v5969_v15 = vld [vmem:[%s18782_s15 + $0x358] sm:$0xff] }
 0xaa4   : > { %7056 = vmatmul.f32.vlgmr.msrb.gmra.mxu2 %v15238_v46  ;;  %7012 = vmatpush.msra.mxu0 %v6014_v49  ;;  %v6000_v58 = vld [vmem:[%s18782_s15 + $0x450] sm:$0xff]  ;;  %v6089_v49 = vld [vmem:[%s18782_s15 + $0x718] sm:$0xff] }
 0xaa5   : > { %9776 = vmatpush.msk.msra.mxu2 %vm2926_vm4, %v6144_v54  ;;  %7072 = vmatpush.msra.mxu3 %v6015_v62  ;;  %v5960_v45 = vld [vmem:[%s18782_s15 + $0x310] sm:$0xff]  ;;  %v5961_v62 = vld [vmem:[%s18782_s15 + $0x318] sm:$0xff] }
 0xaa6   : > { %7128 = vmatpush.msrb.mxu1 %v6048_v52  ;;  %7013 = vmatpush.msra.mxu0 %v6006_v26  ;;  %v5992_v52 = vld [vmem:[%s18782_s15 + $0x410] sm:$0xff]  ;;  %v6081_v26 = vld [vmem:[%s18782_s15 + $0x6d8] sm:$0xff] }
 0xaa7   : > { %7153 = vmatpush.msra.mxu2 %v6136_v23  ;;  %7073 = vmatpush.msra.mxu3 %v6007_v44  ;;  %v5952_v23 = vld [vmem:[%s18782_s15 + $0x2d0] sm:$0xff]  ;;  %v5953_v44 = vld [vmem:[%s18782_s15 + $0x2d8] sm:$0xff] }
 0xaa8   : > { %7129 = vmatpush.msrb.mxu1 %v6040_v30  ;;  %7014 = vmatpush.msra.mxu0 %v5998_v24  ;;  %v5986_v30 = vld [vmem:[%s18782_s15 + $0x3e0] sm:$0xff]  ;;  %v6073_v24 = vld [vmem:[%s18782_s15 + $0x698] sm:$0xff] }
 0xaa9   : > { %7154 = vmatpush.msra.mxu2 %v6128_v17  ;;  %7074 = vmatpush.msra.mxu3 %v5999_v61  ;;  %v5944_v61 = vld [vmem:[%s18782_s15 + $0x290] sm:$0xff] }
 0xaaa   : > { %7130 = vmatpush.msrb.mxu1 %v6032_v27  ;;  %7015 = vmatpush.msra.mxu0 %v5990_v20  ;;  %v5945_v27 = vld [vmem:[%s18782_s15 + $0x298] sm:$0xff]  ;;  %v5978_v20 = vld [vmem:[%s18782_s15 + $0x3a0] sm:$0xff] }
 0xaab   : > { %7155 = vmatpush.msra.mxu2 %v6120_v3  ;;  %7075 = vmatpush.msra.mxu3 %v5991_v1  ;;  %v6065_v3 = vld [vmem:[%s18782_s15 + $0x658] sm:$0xff] }
 0xaac   : > { %7131 = vmatpush.msrb.mxu1 %v6024_v57  ;;  %7016 = vmatmul.f32.vlgmr.msra.gmra.mxu0 %v15276_v4 }
 0xaad   : > { %7180 = vmatpush.msrb.mxu2 %v6113_v38  ;;  %7076 = vmatmul.f32.vlgmr.msra.gmra.mxu3 %v15276_v4  ;;  %v5936_v38 = vld [vmem:[%s18782_s15 + $0x250] sm:$0xff] }
 0xaae   : > { %7100 = vmatpush.msrb.mxu0 %v5984_v28  ;;  %9777 = vmatmul.msk.f32.vlgmr.msra.gmra.mxu2 %vm6447_vm15, %v15240_v48  ;;  %v5937_v28 = vld [vmem:[%s18782_s15 + $0x258] sm:$0xff] }
 0xaaf   : > { %7160 = vmatpush.msrb.mxu3 %v5985_v50  ;;  %7132 = vmatpush.msrb.mxu1 %v6016_v43  ;;  %v5970_v43 = vld [vmem:[%s18782_s15 + $0x360] sm:$0xff] }
 0xab0   : > { %7181 = vmatpush.msrb.mxu2 %v6105_v53  ;;  %7101 = vmatpush.msrb.mxu0 %v5976_v11  ;;  %v6611_v51 = vpop.f32.mrf.mxu0  ;;  %v6057_v53 = vld [vmem:[%s18782_s15 + $0x618] sm:$0xff]  ;;  %v5928_v11 = vld [vmem:[%s18782_s15 + $0x210] sm:$0xff] }
 0xab1   : > { %7161 = vmatpush.msrb.mxu3 %v5977_v47  ;;  %7133 = vmatpush.msrb.mxu1 %v6008_v32  ;;  %v6632_v54 = vadd.f32 %v6631_v21, %v6611_v51  ;;  %v5929_v47 = vld [vmem:[%s18782_s15 + $0x218] sm:$0xff]  ;;  %v5920_v21 = vld [vmem:[%s18782_s15 + $0x1d0] sm:$0xff] }
 0xab2   : > { %7182 = vmatpush.msrb.mxu2 %v6097_v0  ;;  %7102 = vmatpush.msrb.mxu0 %v5968_v18  ;;  %v6049_v0 = vld [vmem:[%s18782_s15 + $0x5d8] sm:$0xff] }
 0xab3   : > { %7162 = vmatpush.msrb.mxu3 %v5969_v15  ;;  %7134 = vmatpush.msrb.mxu1 %v6000_v58  ;;  %v16243_v57 = vadd.f32 %v6651_v9, %v6632_v54  ;;  %v5962_v9 = vld [vmem:[%s18782_s15 + $0x320] sm:$0xff]  ;;  %v5921_v15 = vld [vmem:[%s18782_s15 + $0x1d8] sm:$0xff] }
 0xab4   : > { %7183 = vmatpush.msrb.mxu2 %v6089_v49  ;;  %7103 = vmatpush.msrb.mxu0 %v5960_v45  ;;  %v5954_v58 = vld [vmem:[%s18782_s15 + $0x2e0] sm:$0xff]  ;;  %v6041_v51 = vld [vmem:[%s18782_s15 + $0x598] sm:$0xff]  ;;  %v5912_v49 = vld [vmem:[%s18782_s15 + $0x190] sm:$0xff] }
 0xab5   : > { %7163 = vmatpush.msrb.mxu3 %v5961_v62  ;;  %7135 = vmatpush.msrb.mxu1 %v5992_v52  ;;  %v6691_v17 = vpop.f32.mrf.mxu2  ;;  %v5913_v45 = vld [vmem:[%s18782_s15 + $0x198] sm:$0xff]  ;;  %v5946_v54 = vld [vmem:[%s18782_s15 + $0x2a0] sm:$0xff]  ;;  %v5904_v52 = vld [vmem:[%s18782_s15 + $0x150] sm:$0xff] }
 0xab6   : > { %7184 = vmatpush.msrb.mxu2 %v6081_v26  ;;  %7104 = vmatpush.msrb.mxu0 %v5952_v23  ;;  %v6033_v62 = vld [vmem:[%s18782_s15 + $0x558] sm:$0xff]  ;;  %v5938_v23 = vld [vmem:[%s18782_s15 + $0x260] sm:$0xff] }
 0xab7   : > { %7136 = vmatmul.f32.vlgmr.msrb.gmra.mxu1 %v15276_v4  ;;  %7164 = vmatpush.msrb.mxu3 %v5953_v44  ;;  %v6671_v1 = vpop.f32.mrf.mxu3  ;;  %v5905_v26 = vld [vmem:[%s18782_s15 + $0x158] sm:$0xff] }
 0xab8   : > { %7220 = vmatpush.msra.mxu1 %v5986_v30  ;;  %7185 = vmatpush.msrb.mxu2 %v6073_v24  ;;  %v6692_v50 = vadd.f32 %v6691_v17, %v6671_v1  ;;  %v6025_v44 = vld [vmem:[%s18782_s15 + $0x518] sm:$0xff]  ;;  %v5896_v30 = vld [vmem:[%s18782_s15 + $0x110] sm:$0xff]  ;;  %v5930_v17 = vld [vmem:[%s18782_s15 + $0x220] sm:$0xff] }
 0xab9   : > { %7105 = vmatpush.msrb.mxu0 %v5944_v61  ;;  %7165 = vmatpush.msrb.mxu3 %v5945_v27  ;;  %v5897_v24 = vld [vmem:[%s18782_s15 + $0x118] sm:$0xff]  ;;  %v5888_v27 = vld [vmem:[%s18782_s15 + $0xd0] sm:$0xff] }
 0xaba   : > { %7221 = vmatpush.msra.mxu1 %v5978_v20  ;;  %7186 = vmatpush.msrb.mxu2 %v6065_v3  ;;  %v6711_v32 = vpop.f32.mrf.mxu0  ;;  %v6017_v61 = vld [vmem:[%s18782_s15 + $0x4d8] sm:$0xff]  ;;  %v5922_v3 = vld [vmem:[%s18782_s15 + $0x1e0] sm:$0xff] }
 0xabb   : > { %7106 = vmatpush.msrb.mxu0 %v5936_v38  ;;  %7166 = vmatpush.msrb.mxu3 %v5937_v28  ;;  %v16269_v18 = vadd.f32 %v6711_v32, %v6692_v50  ;;  %v5889_v20 = vld [vmem:[%s18782_s15 + $0xd8] sm:$0xff]  ;;  %v5880_v38 = vld [vmem:[%s18782_s15 + $0x90] sm:$0xff]  ;;  %v5914_v50 = vld [vmem:[%s18782_s15 + $0x1a0] sm:$0xff] }
 0xabc   : > { %7222 = vmatpush.msra.mxu1 %v5970_v43  ;;  %7187 = vmatpush.msrb.mxu2 %v6057_v53  ;;  %v6009_v1 = vld [vmem:[%s18782_s15 + $0x498] sm:$0xff]  ;;  %v5872_v53 = vld [vmem:[%s18782_s15 + $0x50] sm:$0xff] }
 0xabd   : > { %7107 = vmatpush.msrb.mxu0 %v5928_v11  ;;  %7167 = vmatpush.msrb.mxu3 %v5929_v47  ;;  %v5881_v28 = vld [vmem:[%s18782_s15 + $0x98] sm:$0xff]  ;;  %v5906_v47 = vld [vmem:[%s18782_s15 + $0x160] sm:$0xff] }
 0xabe   : > { %7223 = vmatpush.msra.mxu1 %v5962_v9  ;;  %7188 = vmatpush.msrb.mxu2 %v6049_v0  ;;  %v6001_v43 = vld [vmem:[%s18782_s15 + $0x458] sm:$0xff]  ;;  %v5864_v9 = vld [vmem:[%s18782_s15 + $0x10] sm:$0xff] }
 0xabf   : > { %7108 = vmatpush.msrb.mxu0 %v5920_v21  ;;  %7168 = vmatpush.msrb.mxu3 %v5921_v15  ;;  %v5873_v11 = vld [vmem:[%s18782_s15 + $0x58] sm:$0xff]  ;;  %v5898_v21 = vld [vmem:[%s18782_s15 + $0x120] sm:$0xff]  ;;  %v5987_v15 = vld [vmem:[%s18782_s15 + $0x3e8] sm:$0xff] }
 0xac0   : > { %7224 = vmatpush.msra.mxu1 %v5954_v58  ;;  %7189 = vmatpush.msrb.mxu2 %v6041_v51  ;;  %v5993_v32 = vld [vmem:[%s18782_s15 + $0x418] sm:$0xff]  ;;  %v6146_v51 = vld [vmem:[%s18782_s15 + $0x8e0] sm:$0x3f] }
 0xac1   : > { %7109 = vmatpush.msrb.mxu0 %v5912_v49  ;;  %7169 = vmatpush.msrb.mxu3 %v5913_v45  ;;  %v5865_v0 = vld [vmem:[%s18782_s15 + $0x18] sm:$0xff]  ;;  %v5890_v49 = vld [vmem:[%s18782_s15 + $0xe0] sm:$0xff]  ;;  %v5979_v45 = vld [vmem:[%s18782_s15 + $0x3a8] sm:$0xff] }
 0xac2   : > { %7225 = vmatpush.msra.mxu1 %v5946_v54  ;;  %7190 = vmatpush.msrb.mxu2 %v6033_v62  ;;  %v6145_v58 = vld [vmem:[%s18782_s15 + $0x8d8] sm:$0x3f]  ;;  %v6138_v62 = vld [vmem:[%s18782_s15 + $0x8a0] sm:$0xff] }
 0xac3   : > { %7110 = vmatpush.msrb.mxu0 %v5904_v52  ;;  %7170 = vmatpush.msrb.mxu3 %v5905_v26  ;;  %v6137_v54 = vld [vmem:[%s18782_s15 + $0x898] sm:$0xff]  ;;  %v5882_v52 = vld [vmem:[%s18782_s15 + $0xa0] sm:$0xff]  ;;  %v5971_v26 = vld [vmem:[%s18782_s15 + $0x368] sm:$0xff] }
 0xac4   : > { %7226 = vmatpush.msra.mxu1 %v5938_v23  ;;  %7191 = vmatpush.msrb.mxu2 %v6025_v44  ;;  %v6129_v23 = vld [vmem:[%s18782_s15 + $0x858] sm:$0xff]  ;;  %v6130_v44 = vld [vmem:[%s18782_s15 + $0x860] sm:$0xff] }
 0xac5   : > { %7111 = vmatpush.msrb.mxu0 %v5896_v30  ;;  %7171 = vmatpush.msrb.mxu3 %v5897_v24  ;;  %v5874_v30 = vld [vmem:[%s18782_s15 + $0x60] sm:$0xff]  ;;  %v5963_v24 = vld [vmem:[%s18782_s15 + $0x328] sm:$0xff] }
 0xac6   : > { %7227 = vmatpush.msra.mxu1 %v5930_v17  ;;  %7192 = vmatpush.msrb.mxu2 %v6017_v61  ;;  %v6121_v17 = vld [vmem:[%s18782_s15 + $0x818] sm:$0xff]  ;;  %v6122_v61 = vld [vmem:[%s18782_s15 + $0x820] sm:$0xff] }
 0xac7   : > { %7112 = vmatpush.msrb.mxu0 %v5888_v27  ;;  %7172 = vmatpush.msrb.mxu3 %v5889_v20  ;;  %v5866_v27 = vld [vmem:[%s18782_s15 + $0x20] sm:$0xff] }
 0xac8   : > { %7228 = vmatpush.msra.mxu1 %v5922_v3  ;;  %7193 = vmatpush.msrb.mxu2 %v6009_v1  ;;  %v6114_v20 = vld [vmem:[%s18782_s15 + $0x7e0] sm:$0xff]  ;;  %v5955_v3 = vld [vmem:[%s18782_s15 + $0x2e8] sm:$0xff] }
 0xac9   : > { %7113 = vmatpush.msrb.mxu0 %v5880_v38  ;;  %7173 = vmatpush.msrb.mxu3 %v5881_v28  ;;  %v6115_v1 = vld [vmem:[%s18782_s15 + $0x7e8] sm:$0xff]  ;;  %v6106_v28 = vld [vmem:[%s18782_s15 + $0x7a0] sm:$0xff] }
 0xaca   : > { %7229 = vmatpush.msra.mxu1 %v5914_v50  ;;  %7194 = vmatpush.msrb.mxu2 %v6001_v43  ;;  %v6147_v38 = vld [vmem:[%s18782_s15 + $0x8e8] sm:$0x3f] }
 0xacb   : > { %7114 = vmatpush.msrb.mxu0 %v5872_v53  ;;  %7174 = vmatpush.msrb.mxu3 %v5873_v11  ;;  %v5947_v50 = vld [vmem:[%s18782_s15 + $0x2a8] sm:$0xff]  ;;  %v6771_v53 = vpop.f32.mrf.mxu3 }
 0xacc   : > { %7230 = vmatpush.msra.mxu1 %v5906_v47  ;;  %7195 = vmatpush.msrb.mxu2 %v5993_v32  ;;  %v6107_v43 = vld [vmem:[%s18782_s15 + $0x7a8] sm:$0xff]  ;;  %v6098_v47 = vld [vmem:[%s18782_s15 + $0x760] sm:$0xff] }
 0xacd   : > { %7115 = vmatpush.msrb.mxu0 %v5864_v9  ;;  %7175 = vmatpush.msrb.mxu3 %v5865_v0  ;;  %v6139_v11 = vld [vmem:[%s18782_s15 + $0x8a8] sm:$0xff]  ;;  %v6731_v0 = vpop.f32.mrf.mxu1 }
 0xace   : > { %7196 = vmatmul.f32.vlgmr.msrb.gmra.mxu2 %v15276_v4  ;;  %7231 = vmatpush.msra.mxu1 %v5898_v21  ;;  %v5939_v32 = vld [vmem:[%s18782_s15 + $0x268] sm:$0xff] }
 0xacf   : > { %7280 = vmatpush.msra.mxu2 %v5987_v15  ;;  %7116 = vmatmul.f32.vlgmr.msrb.gmra.mxu0 %v15238_v46  ;;  %v6099_v9 = vld [vmem:[%s18782_s15 + $0x768] sm:$0xff]  ;;  %v6090_v15 = vld [vmem:[%s18782_s15 + $0x720] sm:$0xff] }
 0xad0   : > { %7176 = vmatmul.f32.vlgmr.msrb.gmra.mxu3 %v15238_v46  ;;  %9778 = vmatpush.msk.msra.mxu0 %vm2926_vm4, %v6145_v58  ;;  %v6131_v21 = vld [vmem:[%s18782_s15 + $0x868] sm:$0xff] }
 0xad1   : > { %9780 = vmatpush.msk.msra.mxu3 %vm2926_vm4, %v6146_v51  ;;  %7232 = vmatpush.msra.mxu1 %v5890_v49  ;;  %v5931_v51 = vld [vmem:[%s18782_s15 + $0x228] sm:$0xff] }
 0xad2   : > { %7281 = vmatpush.msra.mxu2 %v5979_v45  ;;  %7213 = vmatpush.msra.mxu0 %v6137_v54  ;;  %v6091_v49 = vld [vmem:[%s18782_s15 + $0x728] sm:$0xff] }
 0xad3   : > { %7273 = vmatpush.msra.mxu3 %v6138_v62  ;;  %7233 = vmatpush.msra.mxu1 %v5882_v52  ;;  %v6123_v54 = vld [vmem:[%s18782_s15 + $0x828] sm:$0xff]  ;;  %v6082_v62 = vld [vmem:[%s18782_s15 + $0x6e0] sm:$0xff] }
 0xad4   : > { %7282 = vmatpush.msra.mxu2 %v5971_v26  ;;  %7214 = vmatpush.msra.mxu0 %v6129_v23  ;;  %v5923_v52 = vld [vmem:[%s18782_s15 + $0x1e8] sm:$0xff] }
 0xad5   : > { %7274 = vmatpush.msra.mxu3 %v6130_v44  ;;  %7234 = vmatpush.msra.mxu1 %v5874_v30  ;;  %v6083_v26 = vld [vmem:[%s18782_s15 + $0x6e8] sm:$0xff]  ;;  %v6116_v44 = vld [vmem:[%s18782_s15 + $0x7f0] sm:$0xff]  ;;  %v6074_v30 = vld [vmem:[%s18782_s15 + $0x6a0] sm:$0xff] }
 0xad6   : > { %7283 = vmatpush.msra.mxu2 %v5963_v24  ;;  %7215 = vmatpush.msra.mxu0 %v6121_v17  ;;  %v5915_v24 = vld [vmem:[%s18782_s15 + $0x1a8] sm:$0xff] }
 0xad7   : > { %7275 = vmatpush.msra.mxu3 %v6122_v61  ;;  %7235 = vmatpush.msra.mxu1 %v5866_v27  ;;  %v6075_v17 = vld [vmem:[%s18782_s15 + $0x6a8] sm:$0xff]  ;;  %v6108_v61 = vld [vmem:[%s18782_s15 + $0x7b0] sm:$0xff] }
 0xad8   : > { %7240 = vmatpush.msrb.mxu0 %v6114_v20  ;;  %7284 = vmatpush.msra.mxu2 %v5955_v3  ;;  %v6066_v3 = vld [vmem:[%s18782_s15 + $0x660] sm:$0xff] }
 0xad9   : > { %7300 = vmatpush.msrb.mxu3 %v6115_v1  ;;  %9779 = vmatmul.msk.f32.vlgmr.msra.gmra.mxu0 %vm6447_vm15, %v15240_v48  ;;  %v6791_v27 = vpop.f32.mrf.mxu2  ;;  %v5907_v1 = vld [vmem:[%s18782_s15 + $0x168] sm:$0xff] }
 0xada   : > { %7236 = vmatmul.f32.vlgmr.msra.gmra.mxu1 %v15238_v46  ;;  %9781 = vmatmul.msk.f32.vlgmr.msra.gmra.mxu3 %vm6447_vm15, %v15240_v48 }
 0xadb   : > { %9782 = vmatpush.msk.msrb.mxu1 %vm2926_vm4, %v6147_v38  ;;  %7241 = vmatpush.msrb.mxu0 %v6106_v28  ;;  %v6751_v58 = vpop.f32.mrf.mxu0  ;;  %v6067_v28 = vld [vmem:[%s18782_s15 + $0x668] sm:$0xff] }
 0xadc   : > { %7285 = vmatpush.msra.mxu2 %v5947_v50  ;;  %7301 = vmatpush.msrb.mxu3 %v6107_v43  ;;  %v6752_v45 = vadd.f32 %v6751_v58, %v6731_v0  ;;  %v6100_v50 = vld [vmem:[%s18782_s15 + $0x770] sm:$0xff]  ;;  %v6058_v43 = vld [vmem:[%s18782_s15 + $0x620] sm:$0xff]  ;;  %v5891_v0 = vld [vmem:[%s18782_s15 + $0xe8] sm:$0xff] }
 0xadd   : > { %7333 = vmatpush.msrb.mxu1 %v6139_v11  ;;  %7242 = vmatpush.msrb.mxu0 %v6098_v47  ;;  %v6059_v11 = vld [vmem:[%s18782_s15 + $0x628] sm:$0xff]  ;;  %v6092_v47 = vld [vmem:[%s18782_s15 + $0x730] sm:$0xff] }
 0xade   : > { %7286 = vmatpush.msra.mxu2 %v5939_v32  ;;  %7302 = vmatpush.msrb.mxu3 %v6099_v9  ;;  %v16480_v23 = vadd.f32 %v6771_v53, %v6752_v45  ;;  %v5899_v53 = vld [vmem:[%s18782_s15 + $0x128] sm:$0xff]  ;;  %v6831_v32 = vpop.f32.mrf.mxu1  ;;  %v6050_v9 = vld [vmem:[%s18782_s15 + $0x5e0] sm:$0xff] }
 0xadf   : > { %7334 = vmatpush.msrb.mxu1 %v6131_v21  ;;  %7243 = vmatpush.msrb.mxu0 %v6090_v15  ;;  %v6051_v21 = vld [vmem:[%s18782_s15 + $0x5e8] sm:$0xff]  ;;  %v6084_v15 = vld [vmem:[%s18782_s15 + $0x6f0] sm:$0xff] }
 0xae0   : > { %7287 = vmatpush.msra.mxu2 %v5931_v51  ;;  %7303 = vmatpush.msrb.mxu3 %v6091_v49  ;;  %v6042_v51 = vld [vmem:[%s18782_s15 + $0x5a0] sm:$0xff]  ;;  %v5883_v49 = vld [vmem:[%s18782_s15 + $0xa8] sm:$0xff] }
 0xae1   : > { %7335 = vmatpush.msrb.mxu1 %v6123_v54  ;;  %7244 = vmatpush.msrb.mxu0 %v6082_v62  ;;  %v6043_v45 = vld [vmem:[%s18782_s15 + $0x5a8] sm:$0xff]  ;;  %v6076_v54 = vld [vmem:[%s18782_s15 + $0x6b0] sm:$0xff]  ;;  %v6034_v62 = vld [vmem:[%s18782_s15 + $0x560] sm:$0xff] }
 0xae2   : > { %7288 = vmatpush.msra.mxu2 %v5923_v52  ;;  %7304 = vmatpush.msrb.mxu3 %v6083_v26  ;;  %v6811_v20 = vpop.f32.mrf.mxu3  ;;  %v5875_v52 = vld [vmem:[%s18782_s15 + $0x68] sm:$0xff] }
 0xae3   : > { %7360 = vmatpush.msra.mxu1 %v6116_v44  ;;  %7245 = vmatpush.msrb.mxu0 %v6074_v30  ;;  %v6812_v38 = vadd.f32 %v6811_v20, %v6791_v27  ;;  %v6035_v26 = vld [vmem:[%s18782_s15 + $0x568] sm:$0xff]  ;;  %v6068_v44 = vld [vmem:[%s18782_s15 + $0x670] sm:$0xff]  ;;  %v6026_v30 = vld [vmem:[%s18782_s15 + $0x520] sm:$0xff] }
 0xae4   : > { %9783 = vmatmul.msk.f32.vlgmr.msrb.gmra.mxu1 %vm6447_vm15, %v15240_v48  ;;  %7289 = vmatpush.msra.mxu2 %v5915_v24  ;;  %v5867_v24 = vld [vmem:[%s18782_s15 + $0x28] sm:$0xff]  ;;  %v6018_v27 = vld [vmem:[%s18782_s15 + $0x4e0] sm:$0xff]  ;;  %v6148_v20 = vld [vmem:[%s18782_s15 + $0x8f0] sm:$0x3f] }
 0xae5   : > { %7305 = vmatpush.msrb.mxu3 %v6075_v17  ;;  %7361 = vmatpush.msra.mxu1 %v6108_v61  ;;  %v16535_v58 = vadd.f32 %v6831_v32, %v6812_v38  ;;  %v6027_v17 = vld [vmem:[%s18782_s15 + $0x528] sm:$0xff]  ;;  %v6060_v61 = vld [vmem:[%s18782_s15 + $0x630] sm:$0xff]  ;;  %v6010_v38 = vld [vmem:[%s18782_s15 + $0x4a0] sm:$0xff] }
 0xae6   : > { %7246 = vmatpush.msrb.mxu0 %v6066_v3  ;;  %7290 = vmatpush.msra.mxu2 %v5907_v1  ;;  %v6019_v3 = vld [vmem:[%s18782_s15 + $0x4e8] sm:$0xff]  ;;  %v6052_v1 = vld [vmem:[%s18782_s15 + $0x5f0] sm:$0xff] }
 0xae7   : > { %7306 = vmatpush.msrb.mxu3 %v6067_v28  ;;  %7362 = vmatpush.msra.mxu1 %v6100_v50  ;;  %v6140_v28 = vld [vmem:[%s18782_s15 + $0x8b0] sm:$0xff]  ;;  %v6011_v50 = vld [vmem:[%s18782_s15 + $0x4a8] sm:$0xff] }
 0xae8   : > { %7247 = vmatpush.msrb.mxu0 %v6058_v43  ;;  %7291 = vmatpush.msra.mxu2 %v5899_v53  ;;  %v6044_v43 = vld [vmem:[%s18782_s15 + $0x5b0] sm:$0xff]  ;;  %v6002_v53 = vld [vmem:[%s18782_s15 + $0x460] sm:$0xff] }
 0xae9   : > { %7307 = vmatpush.msrb.mxu3 %v6059_v11  ;;  %7363 = vmatpush.msra.mxu1 %v6092_v47  ;;  %v6132_v11 = vld [vmem:[%s18782_s15 + $0x870] sm:$0xff]  ;;  %v6003_v47 = vld [vmem:[%s18782_s15 + $0x468] sm:$0xff] }
 0xaea   : > { %7248 = vmatpush.msrb.mxu0 %v6050_v9  ;;  %7292 = vmatpush.msra.mxu2 %v5891_v0  ;;  %v6036_v32 = vld [vmem:[%s18782_s15 + $0x570] sm:$0xff]  ;;  %v5994_v9 = vld [vmem:[%s18782_s15 + $0x420] sm:$0xff] }
 0xaeb   : > { %7308 = vmatpush.msrb.mxu3 %v6051_v21  ;;  %7364 = vmatpush.msra.mxu1 %v6084_v15  ;;  %v6124_v0 = vld [vmem:[%s18782_s15 + $0x830] sm:$0xff]  ;;  %v5995_v21 = vld [vmem:[%s18782_s15 + $0x428] sm:$0xff] }
 0xaec   : > { %7249 = vmatpush.msrb.mxu0 %v6042_v51  ;;  %7293 = vmatpush.msra.mxu2 %v5883_v49  ;;  %v6028_v15 = vld [vmem:[%s18782_s15 + $0x530] sm:$0xff]  ;;  %v6117_v51 = vld [vmem:[%s18782_s15 + $0x7f8] sm:$0xff] }
 0xaed   : > { %7309 = vmatpush.msrb.mxu3 %v6043_v45  ;;  %7365 = vmatpush.msra.mxu1 %v6076_v54  ;;  %v5988_v49 = vld [vmem:[%s18782_s15 + $0x3f0] sm:$0xff]  ;;  %v5989_v45 = vld [vmem:[%s18782_s15 + $0x3f8] sm:$0xff] }
 0xaee   : > { %7250 = vmatpush.msrb.mxu0 %v6034_v62  ;;  %7294 = vmatpush.msra.mxu2 %v5875_v52  ;;  %v6020_v54 = vld [vmem:[%s18782_s15 + $0x4f0] sm:$0xff]  ;;  %v6891_v62 = vpop.f32.mrf.mxu2  ;;  %v6109_v52 = vld [vmem:[%s18782_s15 + $0x7b8] sm:$0xff] }
 0xaef   : > { %7310 = vmatpush.msrb.mxu3 %v6035_v26  ;;  %7366 = vmatpush.msra.mxu1 %v6068_v44  ;;  %v5980_v26 = vld [vmem:[%s18782_s15 + $0x3b0] sm:$0xff]  ;;  %v5981_v44 = vld [vmem:[%s18782_s15 + $0x3b8] sm:$0xff] }
 0xaf0   : > { %7251 = vmatpush.msrb.mxu0 %v6026_v30  ;;  %7295 = vmatpush.msra.mxu2 %v5867_v24  ;;  %v6012_v30 = vld [vmem:[%s18782_s15 + $0x4b0] sm:$0xff]  ;;  %v6101_v24 = vld [vmem:[%s18782_s15 + $0x778] sm:$0xff] }
 0xaf1   : > { %7311 = vmatpush.msrb.mxu3 %v6027_v17  ;;  %7367 = vmatpush.msra.mxu1 %v6060_v61  ;;  %v5972_v17 = vld [vmem:[%s18782_s15 + $0x370] sm:$0xff]  ;;  %v6871_v61 = vpop.f32.mrf.mxu1 }
 0xaf2   : > { %7296 = vmatmul.f32.vlgmr.msra.gmra.mxu2 %v15238_v46  ;;  %7252 = vmatpush.msrb.mxu0 %v6018_v27  ;;  %v5973_v27 = vld [vmem:[%s18782_s15 + $0x378] sm:$0xff] }
 0xaf3   : > { %9784 = vmatpush.msk.msrb.mxu2 %vm2926_vm4, %v6148_v20  ;;  %7312 = vmatpush.msrb.mxu3 %v6019_v3  ;;  %v6004_v20 = vld [vmem:[%s18782_s15 + $0x470] sm:$0xff] }
 0xaf4   : > { %7368 = vmatpush.msra.mxu1 %v6052_v1  ;;  %7253 = vmatpush.msrb.mxu0 %v6010_v38  ;;  %v6093_v1 = vld [vmem:[%s18782_s15 + $0x738] sm:$0xff]  ;;  %v5964_v38 = vld [vmem:[%s18782_s15 + $0x330] sm:$0xff] }
 0xaf5   : > { %7393 = vmatpush.msrb.mxu2 %v6140_v28  ;;  %7313 = vmatpush.msrb.mxu3 %v6011_v50  ;;  %v5965_v50 = vld [vmem:[%s18782_s15 + $0x338] sm:$0xff] }
 0xaf6   : > { %7369 = vmatpush.msra.mxu1 %v6044_v43  ;;  %7254 = vmatpush.msrb.mxu0 %v6002_v53  ;;  %v5996_v43 = vld [vmem:[%s18782_s15 + $0x430] sm:$0xff]  ;;  %v6085_v53 = vld [vmem:[%s18782_s15 + $0x6f8] sm:$0xff] }
 0xaf7   : > { %7394 = vmatpush.msrb.mxu2 %v6132_v11  ;;  %7314 = vmatpush.msrb.mxu3 %v6003_v47  ;;  %v5956_v11 = vld [vmem:[%s18782_s15 + $0x2f0] sm:$0xff]  ;;  %v5957_v47 = vld [vmem:[%s18782_s15 + $0x2f8] sm:$0xff] }
 0xaf8   : > { %7370 = vmatpush.msra.mxu1 %v6036_v32  ;;  %7255 = vmatpush.msrb.mxu0 %v5994_v9  ;;  %v9908_v32 = vld [vmem:[%s18782_s15 + $0x15c0] sm:$0xff]  ;;  %v6077_v9 = vld [vmem:[%s18782_s15 + $0x6b8] sm:$0xff] }
 0xaf9   : > { %7395 = vmatpush.msrb.mxu2 %v6124_v0  ;;  %7315 = vmatpush.msrb.mxu3 %v5995_v21  ;;  %v5948_v21 = vld [vmem:[%s18782_s15 + $0x2b0] sm:$0xff] }
 0xafa   : > { %7371 = vmatpush.msra.mxu1 %v6028_v15  ;;  %7256 = vmatmul.f32.vlgmr.msrb.gmra.mxu0 %v15276_v4  ;;  %v5949_v15 = vld [vmem:[%s18782_s15 + $0x2b8] sm:$0xff] }
 0xafb   : > { %7420 = vmatpush.msra.mxu2 %v6117_v51  ;;  %7316 = vmatmul.f32.vlgmr.msrb.gmra.mxu3 %v15276_v4  ;;  %v9900_v51 = vld [vmem:[%s18782_s15 + $0x1580] sm:$0xff] }
 0xafc   : > { %7340 = vmatpush.msra.mxu0 %v5988_v49  ;;  %9785 = vmatmul.msk.f32.vlgmr.msrb.gmra.mxu2 %vm6447_vm15, %v15240_v48  ;;  %v6069_v49 = vld [vmem:[%s18782_s15 + $0x678] sm:$0xff] }
 0xafd   : > { %7400 = vmatpush.msra.mxu3 %v5989_v45  ;;  %7372 = vmatpush.msra.mxu1 %v6020_v54 }
 0xafe   : > { %7421 = vmatpush.msra.mxu2 %v6109_v52  ;;  %7341 = vmatpush.msra.mxu0 %v5980_v26  ;;  %v6851_v3 = vpop.f32.mrf.mxu0  ;;  %v5940_v52 = vld [vmem:[%s18782_s15 + $0x270] sm:$0xff]  ;;  %v5941_v26 = vld [vmem:[%s18782_s15 + $0x278] sm:$0xff] }
 0xaff   : > { %7401 = vmatpush.msra.mxu3 %v5981_v44  ;;  %7373 = vmatpush.msra.mxu1 %v6012_v30  ;;  %v6872_v28 = vadd.f32 %v6871_v61, %v6851_v3  ;;  %v9892_v30 = vld [vmem:[%s18782_s15 + $0x1540] sm:$0xff]  ;;  %v6053_v3 = vld [vmem:[%s18782_s15 + $0x5f8] sm:$0xff] }
 0xb00   : > { %7422 = vmatpush.msra.mxu2 %v6101_v24  ;;  %7342 = vmatpush.msra.mxu0 %v5972_v17  ;;  %v5932_v24 = vld [vmem:[%s18782_s15 + $0x230] sm:$0xff]  ;;  %v5933_v17 = vld [vmem:[%s18782_s15 + $0x238] sm:$0xff] }
 0xb01   : > { %7402 = vmatpush.msra.mxu3 %v5973_v27  ;;  %7374 = vmatpush.msra.mxu1 %v6004_v20  ;;  %v16703_v54 = vadd.f32 %v6891_v62, %v6872_v28  ;;  %v6061_v62 = vld [vmem:[%s18782_s15 + $0x638] sm:$0xff]  ;;  %v4952_v27 = vadd.f32 %v14902_v25, %v14866_v39  ;;  %v9884_v20 = vld [vmem:[%s18782_s15 + $0x1500] sm:$0xff]  ;;  %v5924_v28 = vld [vmem:[%s18782_s15 + $0x1f0] sm:$0xff] }
 0xb02   : > { %7423 = vmatpush.msra.mxu2 %v6093_v1  ;;  %7343 = vmatpush.msra.mxu0 %v5964_v38  ;;  %v5925_v39 = vld [vmem:[%s18782_s15 + $0x1f8] sm:$0xff] }
 0xb03   : > { %7403 = vmatpush.msra.mxu3 %v5965_v50  ;;  %7375 = vmatpush.msra.mxu1 %v5996_v43  ;;  %v6931_v0 = vpop.f32.mrf.mxu2  ;;  %v4906_v50 = vadd.f32 %v14868_v19, %v14864_v55  ;;  %v5081_v43 = vadd.f32 %v14943_v2, %v4952_v27  ;;  %v5917_v55 = vld [vmem:[%s18782_s15 + $0x1b8] sm:$0xff]  ;;  %v9868_v2 = vld [vmem:[%s18782_s15 + $0x1480] sm:$0xff]  ;;  %v5876_v27 = vld [vmem:[%s18782_s15 + $0x70] sm:$0xff] }
 0xb04   : > { %7424 = vmatpush.msra.mxu2 %v6085_v53  ;;  %7344 = vmatpush.msra.mxu0 %v5956_v11  ;;  %v9876_v53 = vld [vmem:[%s18782_s15 + $0x14c0] sm:$0xff]  ;;  %v6045_v11 = vld [vmem:[%s18782_s15 + $0x5b8] sm:$0xff] }
 0xb05   : > { %7376 = vmatmul.f32.vlgmr.msra.gmra.mxu1 %v15276_v4  ;;  %7404 = vmatpush.msra.mxu3 %v5957_v47  ;;  %v6911_v45 = vpop.f32.mrf.mxu3  ;;  %v5079_v19 = vadd.f32 %v14891_v14, %v4906_v50  ;;  %v6037_v47 = vld [vmem:[%s18782_s15 + $0x578] sm:$0xff]  ;;  %v9820_v50 = vld [vmem:[%s18782_s15 + $0x1300] sm:$0xff] }
 0xb06   : > { %7790 = vmatpush.msrb.mxu1 %v9908_v32  ;;  %7425 = vmatpush.msra.mxu2 %v6077_v9  ;;  %v6932_v44 = vadd.f32 %v6931_v0, %v6911_v45  ;;  %v5908_v32 = vld [vmem:[%s18782_s15 + $0x170] sm:$0xff]  ;;  %v5909_v14 = vld [vmem:[%s18782_s15 + $0x178] sm:$0xff]  ;;  %v5209_v0 = vadd.f32 %v15018_v56, %v5081_v43  ;;  %v9852_v45 = vld [vmem:[%s18782_s15 + $0x1400] sm:$0xff] }
 0xb07   : > { %7345 = vmatpush.msra.mxu0 %v5948_v21  ;;  %7405 = vmatpush.msra.mxu3 %v5949_v15  ;;  %v5207_v9 = vadd.f32 %v14991_v33, %v5079_v19  ;;  %v9860_v21 = vld [vmem:[%s18782_s15 + $0x1440] sm:$0xff]  ;;  %v6029_v15 = vld [vmem:[%s18782_s15 + $0x538] sm:$0xff]  ;;  %v9909_v43 = vld [vmem:[%s18782_s15 + $0x15c8] sm:$0xff]  ;;  %v16865_v19 = vpop.permute.xlu1 %5853 }
 0xb08   : > { %7791 = vmatpush.msrb.mxu1 %v9900_v51  ;;  %7426 = vmatpush.msra.mxu2 %v6069_v49  ;;  %v6951_v61 = vpop.f32.mrf.mxu0  ;;  %v5900_v51 = vld [vmem:[%s18782_s15 + $0x130] sm:$0xff]  ;;  %v5901_v33 = vld [vmem:[%s18782_s15 + $0x138] sm:$0xff]  ;;  %v5335_v49 = vadd.f32 %v15075_v10, %v5209_v0 }
 0xb09   : > { %7346 = vmatpush.msra.mxu0 %v5940_v52  ;;  %7406 = vmatpush.msra.mxu3 %v5941_v26  ;;  %v16731_v1 = vadd.f32 %v6951_v61, %v6932_v44  ;;  %v6997_v38 = vpop.f32.mrf.mxu1  ;;  %v5333_v56 = vadd.f32 %v15058_v22, %v5207_v9  ;;  %v6021_v52 = vld [vmem:[%s18782_s15 + $0x4f8] sm:$0xff]  ;;  %v5892_v26 = vld [vmem:[%s18782_s15 + $0xf0] sm:$0xff]  ;;  %v9893_v9 = vld [vmem:[%s18782_s15 + $0x1548] sm:$0xff] }
 0xb0a   : > { %7792 = vmatpush.msrb.mxu1 %v9892_v30  ;;  %7427 = vmatpush.msra.mxu2 %v6061_v62  ;;  %v16740_v25 = vadd.f32 %v6997_v38, %v16055_v12  ;;  %v5916_v12 = vld [vmem:[%s18782_s15 + $0x1b0] sm:$0xff]  ;;  %v5893_v22 = vld [vmem:[%s18782_s15 + $0xf8] sm:$0xff]  ;;  %v5463_v44 = vadd.f32 %v15197_v13, %v5335_v49  ;;  %v9844_v30 = vld [vmem:[%s18782_s15 + $0x13c0] sm:$0xff] }
 0xb0b   : > { %7347 = vmatpush.msra.mxu0 %v5932_v24  ;;  %7407 = vmatpush.msra.mxu3 %v5933_v17  ;;  %v5461_v10 = vadd.f32 %v15133_v8, %v5333_v56  ;;  %v6013_v62 = vld [vmem:[%s18782_s15 + $0x4b8] sm:$0xff]  ;;  %v5884_v24 = vld [vmem:[%s18782_s15 + $0xb0] sm:$0xff]  ;;  %v9836_v17 = vld [vmem:[%s18782_s15 + $0x1380] sm:$0xff] }
 0xb0c   : > { %7793 = vmatpush.msrb.mxu1 %v9884_v20  ;;  %7428 = vmatpush.msra.mxu2 %v6053_v3  ;;  %v5885_v8 = vld [vmem:[%s18782_s15 + $0xb8] sm:$0xff]  ;;  %v5591_v13 = vadd.f32 %v15224_v60, %v5463_v44  ;;  %v9828_v38 = vld [vmem:[%s18782_s15 + $0x1340] sm:$0xff]  ;;  %v7759_v44 = vrot.slane %v15240_v48, 6 }
 0xb0d   : > { %7348 = vmatpush.msra.mxu0 %v5924_v28  ;;  %7408 = vmatpush.msra.mxu3 %v5925_v39  ;;  %v6005_v61 = vld [vmem:[%s18782_s15 + $0x478] sm:$0xff]  ;;  %v5589_v20 = vadd.f32 %v15183_v7, %v5461_v10  ;;  %v5868_v39 = vld [vmem:[%s18782_s15 + $0x30] sm:$0xff]  ;;  %v10044_v56 = vld [vmem:[%s18782_s15 + $0x1a00] sm:$0xff] }
 0xb0e   : > { %7794 = vmatpush.msrb.mxu1 %v9876_v53  ;;  %7429 = vmatpush.msra.mxu2 %v6045_v11  ;;  %v5877_v60 = vld [vmem:[%s18782_s15 + $0x78] sm:$0xff]  ;;  %v5719_v3 = vadd.f32 %v15964_v36, %v5591_v13  ;;  %v9788_v49 = vld [vmem:[%s18782_s15 + $0x1200] sm:$0xff]  ;;  %v10037_v10 = vld [vmem:[%s18782_s15 + $0x19c8] sm:$0xff] }
 0xb0f   : > { %7349 = vmatpush.msra.mxu0 %v5916_v12  ;;  %7409 = vmatpush.msra.mxu3 %v5917_v55  ;;  %v5997_v28 = vld [vmem:[%s18782_s15 + $0x438] sm:$0xff]  ;;  %v5717_v36 = vadd.f32 %v15235_v40, %v5589_v20  ;;  %v10068_v12 = vld [vmem:[%s18782_s15 + $0x1ac0] sm:$0x3f] }
 0xb10   : > { %7795 = vmatpush.msrb.mxu1 %v9868_v2  ;;  %7430 = vmatpush.msra.mxu2 %v6037_v47  ;;  %v5869_v7 = vld [vmem:[%s18782_s15 + $0x38] sm:$0xff]  ;;  %v5845_v53 = vadd.f32 %v16024_v5, %v5719_v3  ;;  %v9812_v55 = vld [vmem:[%s18782_s15 + $0x12c0] sm:$0xff]  ;;  %v9861_v3 = vld [vmem:[%s18782_s15 + $0x1448] sm:$0xff] }
 0xb11   : > { %7350 = vmatpush.msra.mxu0 %v5908_v32  ;;  %7410 = vmatpush.msra.mxu3 %v5909_v14  ;;  %v5843_v11 = vadd.f32 %v15974_v37, %v5717_v36  ;;  %v6149_v40 = vld [vmem:[%s18782_s15 + $0x8f8] sm:$0x3f]  ;;  %v9901_v37 = vld [vmem:[%s18782_s15 + $0x1588] sm:$0xff]  ;;  %v10060_v2 = vld [vmem:[%s18782_s15 + $0x1a80] sm:$0xff] }
 0xb12   : > { %7796 = vmatpush.msrb.mxu1 %v9860_v21  ;;  %7431 = vmatpush.msra.mxu2 %v6029_v15  ;;  %v6141_v5 = vld [vmem:[%s18782_s15 + $0x8b8] sm:$0xff]  ;;  %v9804_v47 = vld [vmem:[%s18782_s15 + $0x1280] sm:$0xff]  ;;  %v16876_v32 = vadd.f32 %v16865_v19, %v5845_v53  ;;  %v9853_v36 = vld [vmem:[%s18782_s15 + $0x1408] sm:$0xff] }
 0xb13   : > { %7351 = vmatpush.msra.mxu0 %v5900_v51  ;;  %7411 = vmatpush.msra.mxu3 %v5901_v33  ;;  %v16879_v14 = vadd.f32 %v16865_v19, %v5843_v11  ;;  %v6133_v0 = vld [vmem:[%s18782_s15 + $0x878] sm:$0xff]  ;;  %v10052_v21 = vld [vmem:[%s18782_s15 + $0x1a40] sm:$0xff]  ;;  %v9885_v51 = vld [vmem:[%s18782_s15 + $0x1508] sm:$0xff] }
 0xb14   : > { %7797 = vmatpush.msrb.mxu1 %v9852_v45  ;;  %7432 = vmatpush.msra.mxu2 %v6021_v52  ;;  %v9796_v15 = vld [vmem:[%s18782_s15 + $0x1240] sm:$0xff]  ;;  %v6125_v33 = vld [vmem:[%s18782_s15 + $0x838] sm:$0xff]  ;;  %v7760_v45 = vrot.slane %v16876_v32, 6  ;;  %v9845_v53 = vld [vmem:[%s18782_s15 + $0x13c8] sm:$0xff] }
 0xb15   : > { %7352 = vmatpush.msra.mxu0 %v5892_v26  ;;  %7412 = vmatpush.msra.mxu3 %v5893_v22  ;;  %v7754_v52 = vrot.slane %v16879_v14, 6  ;;  %v10036_v26 = vld [vmem:[%s18782_s15 + $0x19c0] sm:$0xff]  ;;  %v9877_v22 = vld [vmem:[%s18782_s15 + $0x14c8] sm:$0xff] }
 0xb16   : > { %7798 = vmatpush.msrb.mxu1 %v9844_v30  ;;  %7433 = vmatpush.msra.mxu2 %v6013_v62  ;;  %v7753_v30 = vrot.slane %v15238_v46, 6  ;;  %v10069_v62 = vld [vmem:[%s18782_s15 + $0x1ac8] sm:$0x3f] }
 0xb17   : > { %7353 = vmatpush.msra.mxu0 %v5884_v24  ;;  %7413 = vmatpush.msra.mxu3 %v5885_v8  ;;  %v10028_v24 = vld [vmem:[%s18782_s15 + $0x1980] sm:$0xff]  ;;  %v16926_v8 = vsel %vm7752_vm1, %v7759_v44, %v7760_v45  ;;  %v9973_v44 = vld [vmem:[%s18782_s15 + $0x17c8] sm:$0xff] }
 0xb18   : > { %7799 = vmatpush.msrb.mxu1 %v9836_v17  ;;  %7434 = vmatpush.msra.mxu2 %v6005_v61  ;;  %v16929_v13 = vsel %vm7752_vm1, %v7753_v30, %v7754_v52  ;;  %v10029_v17 = vld [vmem:[%s18782_s15 + $0x1988] sm:$0xff]  ;;  %v10006_v30 = vld [vmem:[%s18782_s15 + $0x18d0] sm:$0xff] }
 0xb19   : > { %7354 = vmatpush.msra.mxu0 %v5876_v27  ;;  %7414 = vmatpush.msra.mxu3 %v5877_v60  ;;  %v7037_v27 = vpop.f32.mrf.mxu3  ;;  %v10061_v60 = vld [vmem:[%s18782_s15 + $0x1a88] sm:$0xff] }
 0xb1a   : > { %7800 = vmatpush.msrb.mxu1 %v9828_v38  ;;  %7435 = vmatpush.msra.mxu2 %v5997_v28  ;;  %v10021_v38 = vld [vmem:[%s18782_s15 + $0x1948] sm:$0xff]  ;;  %v4929_v28 = vadd.f32 %v14886_v59, %v14870_v6 }
 0xb1b   : > { %7355 = vmatpush.msra.mxu0 %v5868_v39  ;;  %7415 = vmatpush.msra.mxu3 %v5869_v7  ;;  %v10012_v39 = vld [vmem:[%s18782_s15 + $0x1900] sm:$0xff]  ;;  %v10013_v6 = vld [vmem:[%s18782_s15 + $0x1908] sm:$0xff] }
 0xb1c   : > { %7436 = vmatmul.f32.vlgmr.msra.gmra.mxu2 %v15276_v4  ;;  %7801 = vmatpush.msrb.mxu1 %v9820_v50  ;;  %v10045_v50 = vld [vmem:[%s18782_s15 + $0x1a08] sm:$0xff] }
 0xb1d   : > { %7850 = vmatpush.msrb.mxu2 %v9909_v43  ;;  %7356 = vmatmul.f32.vlgmr.msra.gmra.mxu0 %v15238_v46  ;;  %v10004_v43 = vld [vmem:[%s18782_s15 + $0x18c0] sm:$0xff]  ;;  %v9981_v52 = vld [vmem:[%s18782_s15 + $0x1808] sm:$0xff] }
 0xb1e   : > { %7416 = vmatmul.f32.vlgmr.msra.gmra.mxu3 %v15238_v46  ;;  %9786 = vmatpush.msk.msrb.mxu0 %vm2926_vm4, %v6149_v40  ;;  %v9869_v46 = vld [vmem:[%s18782_s15 + $0x1488] sm:$0xff]  ;;  %v5080_v40 = vadd.f32 %v14904_v35, %v4929_v28  ;;  %v9982_v28 = vld [vmem:[%s18782_s15 + $0x1810] sm:$0xff] }
 0xb1f   : > { %10076 = vmatpush.msk.msrb.mxu3 %vm2926_vm4, %v10068_v12  ;;  %7802 = vmatpush.msrb.mxu1 %v9812_v55  ;;  %v10038_v12 = vld [vmem:[%s18782_s15 + $0x19d0] sm:$0xff]  ;;  %v9996_v55 = vld [vmem:[%s18782_s15 + $0x1880] sm:$0xff]  ;;  %v9997_v35 = vld [vmem:[%s18782_s15 + $0x1888] sm:$0xff] }
 0xb20   : > { %7851 = vmatpush.msrb.mxu2 %v9901_v37  ;;  %7453 = vmatpush.msrb.mxu0 %v6141_v5  ;;  %v9837_v37 = vld [vmem:[%s18782_s15 + $0x1388] sm:$0xff]  ;;  %v5208_v5 = vadd.f32 %v14962_v16, %v5080_v40  ;;  %v9958_v40 = vld [vmem:[%s18782_s15 + $0x1750] sm:$0xff] }
 0xb21   : > { %7843 = vmatpush.msrb.mxu3 %v10060_v2  ;;  %7803 = vmatpush.msrb.mxu1 %v9804_v47  ;;  %v10030_v2 = vld [vmem:[%s18782_s15 + $0x1990] sm:$0xff]  ;;  %v9829_v16 = vld [vmem:[%s18782_s15 + $0x1348] sm:$0xff] }
 0xb22   : > { %7852 = vmatpush.msrb.mxu2 %v9893_v9  ;;  %7454 = vmatpush.msrb.mxu0 %v6133_v0  ;;  %v9988_v9 = vld [vmem:[%s18782_s15 + $0x1840] sm:$0xff] }
 0xb23   : > { %7844 = vmatpush.msrb.mxu3 %v10052_v21  ;;  %7804 = vmatpush.msrb.mxu1 %v9796_v15  ;;  %v5334_v21 = vadd.f32 %v15106_v29, %v5208_v5  ;;  %v7097_v15 = vpop.f32.mrf.mxu1  ;;  %v9821_v29 = vld [vmem:[%s18782_s15 + $0x1308] sm:$0xff] }
 0xb24   : > { %7853 = vmatpush.msrb.mxu2 %v9885_v51  ;;  %7455 = vmatpush.msrb.mxu0 %v6125_v33  ;;  %v9989_v51 = vld [vmem:[%s18782_s15 + $0x1848] sm:$0xff]  ;;  %v10022_v33 = vld [vmem:[%s18782_s15 + $0x1950] sm:$0xff] }
 0xb25   : > { %7845 = vmatpush.msrb.mxu3 %v10044_v56  ;;  %7805 = vmatpush.msrb.mxu1 %v9788_v49  ;;  %v9980_v56 = vld [vmem:[%s18782_s15 + $0x1800] sm:$0xff]  ;;  %v5462_v45 = vadd.f32 %v15155_v63, %v5334_v21  ;;  %v9813_v63 = vld [vmem:[%s18782_s15 + $0x12c8] sm:$0xff]  ;;  %v10031_v21 = vld [vmem:[%s18782_s15 + $0x1998] sm:$0xff] }
 0xb26   : > { %7810 = vmatpush.msra.mxu0 %v10036_v26  ;;  %7854 = vmatpush.msrb.mxu2 %v9877_v22  ;;  %v10014_v26 = vld [vmem:[%s18782_s15 + $0x1910] sm:$0xff]  ;;  %v9972_v22 = vld [vmem:[%s18782_s15 + $0x17c0] sm:$0xff]  ;;  %v9917_v5 = vld [vmem:[%s18782_s15 + $0x1608] sm:$0xff] }
 0xb27   : > { %7870 = vmatpush.msra.mxu3 %v10037_v10  ;;  %9787 = vmatmul.msk.f32.vlgmr.msrb.gmra.mxu0 %vm6447_vm15, %v15240_v48  ;;  %v7057_v61 = vpop.f32.mrf.mxu2  ;;  %v10020_v48 = vld [vmem:[%s18782_s15 + $0x1940] sm:$0xff]  ;;  %v5590_v10 = vadd.f32 %v15214_v34, %v5462_v45  ;;  %v9805_v34 = vld [vmem:[%s18782_s15 + $0x1288] sm:$0xff]  ;;  %v9895_v45 = vld [vmem:[%s18782_s15 + $0x1558] sm:$0xff] }
 0xb28   : > { %7806 = vmatmul.f32.vlgmr.msrb.gmra.mxu1 %v16929_v13  ;;  %10077 = vmatmul.msk.f32.vlgmr.msrb.gmra.mxu3 %vm6447_vm15, %v16926_v8  ;;  %v7058_v20 = vadd.f32 %v7057_v61, %v16120_v41  ;;  %v10053_v41 = vld [vmem:[%s18782_s15 + $0x1a48] sm:$0xff] }
 0xb29   : > { %10078 = vmatpush.msk.msra.mxu1 %vm2926_vm4, %v10069_v62  ;;  %7811 = vmatpush.msra.mxu0 %v10028_v24  ;;  %v7017_v7 = vpop.f32.mrf.mxu0  ;;  %v9964_v62 = vld [vmem:[%s18782_s15 + $0x1780] sm:$0xff]  ;;  %v9965_v24 = vld [vmem:[%s18782_s15 + $0x1788] sm:$0xff] }
 0xb2a   : > { %7855 = vmatpush.msrb.mxu2 %v9869_v46  ;;  %7871 = vmatpush.msra.mxu3 %v10029_v17  ;;  %v7018_v59 = vadd.f32 %v7017_v7, %v16740_v25  ;;  %v10005_v25 = vld [vmem:[%s18782_s15 + $0x18c8] sm:$0xff]  ;;  %v9998_v46 = vld [vmem:[%s18782_s15 + $0x1890] sm:$0xff]  ;;  %v9956_v17 = vld [vmem:[%s18782_s15 + $0x1740] sm:$0xff] }
 0xb2b   : > { %7903 = vmatpush.msra.mxu1 %v10061_v60  ;;  %7812 = vmatpush.msra.mxu0 %v10020_v48  ;;  %v9797_v61 = vld [vmem:[%s18782_s15 + $0x1248] sm:$0xff]  ;;  %v9990_v48 = vld [vmem:[%s18782_s15 + $0x1850] sm:$0xff] }
 0xb2c   : > { %7856 = vmatpush.msrb.mxu2 %v9861_v3  ;;  %7872 = vmatpush.msra.mxu3 %v10021_v38  ;;  %v16983_v11 = vadd.f32 %v7037_v27, %v7018_v59  ;;  %v5718_v27 = vadd.f32 %v15228_v42, %v5590_v10  ;;  %v9957_v60 = vld [vmem:[%s18782_s15 + $0x1748] sm:$0xff]  ;;  %v9974_v7 = vld [vmem:[%s18782_s15 + $0x17d0] sm:$0xff] }
 0xb2d   : > { %7904 = vmatpush.msra.mxu1 %v10053_v41  ;;  %7813 = vmatpush.msra.mxu0 %v10012_v39  ;;  %v9789_v42 = vld [vmem:[%s18782_s15 + $0x1208] sm:$0xff]  ;;  %v9940_v41 = vld [vmem:[%s18782_s15 + $0x16c0] sm:$0xff]  ;;  %v10062_v59 = vld [vmem:[%s18782_s15 + $0x1a90] sm:$0xff] }
 0xb2e   : > { %7857 = vmatpush.msrb.mxu2 %v9853_v36  ;;  %7873 = vmatpush.msra.mxu3 %v10013_v6  ;;  %v5844_v3 = vadd.f32 %v15976_v31, %v5718_v27  ;;  %v9949_v38 = vld [vmem:[%s18782_s15 + $0x1708] sm:$0xff]  ;;  %v10070_v31 = vld [vmem:[%s18782_s15 + $0x1ad0] sm:$0x3f]  ;;  %v9932_v36 = vld [vmem:[%s18782_s15 + $0x1680] sm:$0xff] }
 0xb2f   : > { %7905 = vmatpush.msra.mxu1 %v10045_v50  ;;  %7814 = vmatpush.msra.mxu0 %v10004_v43  ;;  %v9941_v39 = vld [vmem:[%s18782_s15 + $0x16c8] sm:$0xff]  ;;  %v9966_v43 = vld [vmem:[%s18782_s15 + $0x1790] sm:$0xff]  ;;  %v9999_v27 = vld [vmem:[%s18782_s15 + $0x1898] sm:$0xff] }
 0xb30   : > { %7858 = vmatpush.msrb.mxu2 %v9845_v53  ;;  %7874 = vmatpush.msra.mxu3 %v10005_v25  ;;  %v7077_v47 = vpop.f32.mrf.mxu3  ;;  %v17099_v6 = vadd.f32 %v16865_v19, %v5844_v3  ;;  %v9933_v50 = vld [vmem:[%s18782_s15 + $0x1688] sm:$0xff]  ;;  %v9924_v19 = vld [vmem:[%s18782_s15 + $0x1640] sm:$0xff]  ;;  %v10054_v53 = vld [vmem:[%s18782_s15 + $0x1a50] sm:$0xff] }
 0xb31   : > { %7930 = vmatpush.msrb.mxu1 %v10038_v12  ;;  %7815 = vmatpush.msra.mxu0 %v9996_v55  ;;  %v7078_v0 = vadd.f32 %v7077_v47, %v7058_v20  ;;  %v9948_v20 = vld [vmem:[%s18782_s15 + $0x1700] sm:$0xff]  ;;  %v9925_v25 = vld [vmem:[%s18782_s15 + $0x1648] sm:$0xff]  ;;  %v7756_v47 = vrot.slane %v15276_v4, 6  ;;  %v9942_v4 = vld [vmem:[%s18782_s15 + $0x16d0] sm:$0xff] }
 0xb32   : > { %10079 = vmatmul.msk.f32.vlgmr.msra.gmra.mxu1 %vm6447_vm15, %v16926_v8  ;;  %7859 = vmatpush.msrb.mxu2 %v9837_v37  ;;  %v9916_v12 = vld [vmem:[%s18782_s15 + $0x1600] sm:$0xff]  ;;  %v7757_v55 = vrot.slane %v17099_v6, 6  ;;  %v10046_v37 = vld [vmem:[%s18782_s15 + $0x1a10] sm:$0xff]  ;;  %v9991_v3 = vld [vmem:[%s18782_s15 + $0x1858] sm:$0xff] }
 0xb33   : > { %7875 = vmatpush.msra.mxu3 %v9997_v35  ;;  %7931 = vmatpush.msrb.mxu1 %v10030_v2  ;;  %v17023_v49 = vadd.f32 %v7097_v15, %v7078_v0  ;;  %v9950_v35 = vld [vmem:[%s18782_s15 + $0x1710] sm:$0xff]  ;;  %v10039_v2 = vld [vmem:[%s18782_s15 + $0x19d8] sm:$0xff] }
 0xb34   : > { %7816 = vmatpush.msra.mxu0 %v9988_v9  ;;  %7860 = vmatpush.msrb.mxu2 %v9829_v16  ;;  %v9910_v9 = vld [vmem:[%s18782_s15 + $0x15d0] sm:$0xff]  ;;  %v17145_v16 = vsel %vm7752_vm1, %v7756_v47, %v7757_v55  ;;  %v9911_v0 = vld [vmem:[%s18782_s15 + $0x15d8] sm:$0xff]  ;;  %v9872_v47 = vld [vmem:[%s18782_s15 + $0x14a0] sm:$0xff] }
 0xb35   : > { %7876 = vmatpush.msra.mxu3 %v9989_v51  ;;  %7932 = vmatpush.msrb.mxu1 %v10022_v33  ;;  %v9902_v15 = vld [vmem:[%s18782_s15 + $0x1590] sm:$0xff]  ;;  %v9903_v51 = vld [vmem:[%s18782_s15 + $0x1598] sm:$0xff] }
 0xb36   : > { %7817 = vmatpush.msra.mxu0 %v9980_v56  ;;  %7861 = vmatpush.msrb.mxu2 %v9821_v29  ;;  %v9934_v33 = vld [vmem:[%s18782_s15 + $0x1690] sm:$0xff]  ;;  %v10023_v56 = vld [vmem:[%s18782_s15 + $0x1958] sm:$0xff] }
 0xb37   : > { %7877 = vmatpush.msra.mxu3 %v9981_v52  ;;  %7933 = vmatpush.msrb.mxu1 %v10014_v26  ;;  %v9894_v29 = vld [vmem:[%s18782_s15 + $0x1550] sm:$0xff] }
 0xb38   : > { %7818 = vmatpush.msra.mxu0 %v9972_v22  ;;  %7862 = vmatpush.msrb.mxu2 %v9813_v63  ;;  %v9926_v52 = vld [vmem:[%s18782_s15 + $0x1650] sm:$0xff]  ;;  %v7157_v22 = vpop.f32.mrf.mxu2  ;;  %v10015_v63 = vld [vmem:[%s18782_s15 + $0x1918] sm:$0xff] }
 0xb39   : > { %7878 = vmatpush.msra.mxu3 %v9973_v44  ;;  %7934 = vmatpush.msrb.mxu1 %v10006_v30  ;;  %v9886_v10 = vld [vmem:[%s18782_s15 + $0x1510] sm:$0xff]  ;;  %v7137_v30 = vpop.f32.mrf.mxu1 }
 0xb3a   : > { %7819 = vmatpush.msra.mxu0 %v9964_v62  ;;  %7863 = vmatpush.msrb.mxu2 %v9805_v34  ;;  %v9887_v62 = vld [vmem:[%s18782_s15 + $0x1518] sm:$0xff]  ;;  %v9918_v34 = vld [vmem:[%s18782_s15 + $0x1610] sm:$0xff] }
 0xb3b   : > { %7879 = vmatpush.msra.mxu3 %v9965_v24  ;;  %7935 = vmatpush.msrb.mxu1 %v9998_v46  ;;  %v10007_v24 = vld [vmem:[%s18782_s15 + $0x18d8] sm:$0xff] }
 0xb3c   : > { %7820 = vmatpush.msra.mxu0 %v9956_v17  ;;  %7864 = vmatpush.msrb.mxu2 %v9797_v61  ;;  %v9879_v17 = vld [vmem:[%s18782_s15 + $0x14d8] sm:$0xff]  ;;  %v9912_v61 = vld [vmem:[%s18782_s15 + $0x15e0] sm:$0xff] }
 0xb3d   : > { %7880 = vmatpush.msra.mxu3 %v9957_v60  ;;  %7936 = vmatpush.msrb.mxu1 %v9990_v48  ;;  %v9870_v48 = vld [vmem:[%s18782_s15 + $0x1490] sm:$0xff] }
 0xb3e   : > { %7821 = vmatpush.msra.mxu0 %v9948_v20  ;;  %7865 = vmatpush.msrb.mxu2 %v9789_v42  ;;  %v9871_v20 = vld [vmem:[%s18782_s15 + $0x1498] sm:$0xff]  ;;  %v9904_v42 = vld [vmem:[%s18782_s15 + $0x15a0] sm:$0xff] }
 0xb3f   : > { %7881 = vmatpush.msra.mxu3 %v9949_v38  ;;  %7937 = vmatpush.msrb.mxu1 %v9982_v28  ;;  %v9862_v28 = vld [vmem:[%s18782_s15 + $0x1450] sm:$0xff] }
 0xb40   : > { %7866 = vmatmul.f32.vlgmr.msrb.gmra.mxu2 %v16929_v13  ;;  %7822 = vmatpush.msra.mxu0 %v9940_v41  ;;  %v9863_v41 = vld [vmem:[%s18782_s15 + $0x1458] sm:$0xff] }
 0xb41   : > { %10080 = vmatpush.msk.msra.mxu2 %vm2926_vm4, %v10070_v31  ;;  %7882 = vmatpush.msra.mxu3 %v9941_v39  ;;  %v9896_v39 = vld [vmem:[%s18782_s15 + $0x1560] sm:$0xff] }
 0xb42   : > { %7938 = vmatpush.msrb.mxu1 %v9974_v7  ;;  %7823 = vmatpush.msra.mxu0 %v9932_v36  ;;  %v9983_v7 = vld [vmem:[%s18782_s15 + $0x1818] sm:$0xff] }
 0xb43   : > { %7963 = vmatpush.msra.mxu2 %v10062_v59  ;;  %7883 = vmatpush.msra.mxu3 %v9933_v50  ;;  %v9854_v59 = vld [vmem:[%s18782_s15 + $0x1410] sm:$0xff] }
 0xb44   : > { %7939 = vmatpush.msrb.mxu1 %v9966_v43  ;;  %7824 = vmatpush.msra.mxu0 %v9924_v19  ;;  %v9888_v43 = vld [vmem:[%s18782_s15 + $0x1520] sm:$0xff]  ;;  %v9975_v19 = vld [vmem:[%s18782_s15 + $0x17d8] sm:$0xff] }
 0xb45   : > { %7964 = vmatpush.msra.mxu2 %v10054_v53  ;;  %7884 = vmatpush.msra.mxu3 %v9925_v25 }
 0xb46   : > { %7940 = vmatpush.msrb.mxu1 %v9958_v40  ;;  %7825 = vmatpush.msra.mxu0 %v9916_v12  ;;  %v9846_v40 = vld [vmem:[%s18782_s15 + $0x13d0] sm:$0xff]  ;;  %v9847_v12 = vld [vmem:[%s18782_s15 + $0x13d8] sm:$0xff] }
 0xb47   : > { %7965 = vmatpush.msra.mxu2 %v10046_v37  ;;  %7885 = vmatpush.msra.mxu3 %v9917_v5  ;;  %v9880_v5 = vld [vmem:[%s18782_s15 + $0x14e0] sm:$0xff] }
 0xb48   : > { %7941 = vmatpush.msrb.mxu1 %v9950_v35  ;;  %7826 = vmatmul.f32.vlgmr.msra.gmra.mxu0 %v17145_v16  ;;  %v9967_v35 = vld [vmem:[%s18782_s15 + $0x1798] sm:$0xff] }
 0xb49   : > { %7990 = vmatpush.msrb.mxu2 %v10039_v2  ;;  %7886 = vmatmul.f32.vlgmr.msra.gmra.mxu3 %v17145_v16  ;;  %v9838_v2 = vld [vmem:[%s18782_s15 + $0x1390] sm:$0xff] }
 0xb4a   : > { %7910 = vmatpush.msrb.mxu0 %v9910_v9  ;;  %10081 = vmatmul.msk.f32.vlgmr.msra.gmra.mxu2 %vm6447_vm15, %v16926_v8  ;;  %v9959_v9 = vld [vmem:[%s18782_s15 + $0x1758] sm:$0xff] }
 0xb4b   : > { %7970 = vmatpush.msrb.mxu3 %v9911_v0  ;;  %7942 = vmatpush.msrb.mxu1 %v9942_v4  ;;  %v9830_v0 = vld [vmem:[%s18782_s15 + $0x1350] sm:$0xff]  ;;  %v9831_v4 = vld [vmem:[%s18782_s15 + $0x1358] sm:$0xff] }
 0xb4c   : > { %7991 = vmatpush.msrb.mxu2 %v10031_v21  ;;  %7911 = vmatpush.msrb.mxu0 %v9902_v15  ;;  %v7117_v26 = vpop.f32.mrf.mxu0  ;;  %v9864_v21 = vld [vmem:[%s18782_s15 + $0x1460] sm:$0xff]  ;;  %v9951_v15 = vld [vmem:[%s18782_s15 + $0x1718] sm:$0xff] }
 0xb4d   : > { %7971 = vmatpush.msrb.mxu3 %v9903_v51  ;;  %7943 = vmatpush.msrb.mxu1 %v9934_v33  ;;  %v7118_v44 = vadd.f32 %v7117_v26, %v16243_v57  ;;  %v9878_v57 = vld [vmem:[%s18782_s15 + $0x14d0] sm:$0xff]  ;;  %v9823_v33 = vld [vmem:[%s18782_s15 + $0x1318] sm:$0xff]  ;;  %v9848_v26 = vld [vmem:[%s18782_s15 + $0x13e0] sm:$0xff] }
 0xb4e   : > { %7992 = vmatpush.msrb.mxu2 %v10023_v56  ;;  %7912 = vmatpush.msrb.mxu0 %v9894_v29  ;;  %v9822_v51 = vld [vmem:[%s18782_s15 + $0x1310] sm:$0xff]  ;;  %v9856_v56 = vld [vmem:[%s18782_s15 + $0x1420] sm:$0xff]  ;;  %v9943_v29 = vld [vmem:[%s18782_s15 + $0x16d8] sm:$0xff] }
 0xb4f   : > { %7972 = vmatpush.msrb.mxu3 %v9895_v45  ;;  %7944 = vmatpush.msrb.mxu1 %v9926_v52  ;;  %v7138_v46 = vadd.f32 %v7137_v30, %v7118_v44  ;;  %v9814_v45 = vld [vmem:[%s18782_s15 + $0x12d0] sm:$0xff]  ;;  %v9815_v52 = vld [vmem:[%s18782_s15 + $0x12d8] sm:$0xff]  ;;  %v9840_v44 = vld [vmem:[%s18782_s15 + $0x13a0] sm:$0xff] }
 0xb50   : > { %7993 = vmatpush.msrb.mxu2 %v10015_v63  ;;  %7913 = vmatpush.msrb.mxu0 %v9886_v10  ;;  %v9806_v63 = vld [vmem:[%s18782_s15 + $0x1290] sm:$0xff]  ;;  %v9807_v10 = vld [vmem:[%s18782_s15 + $0x1298] sm:$0xff] }
 0xb51   : > { %7973 = vmatpush.msrb.mxu3 %v9887_v62  ;;  %7945 = vmatpush.msrb.mxu1 %v9918_v34  ;;  %v17209_v60 = vadd.f32 %v7157_v22, %v7138_v46  ;;  %v7197_v36 = vpop.f32.mrf.mxu2  ;;  %v9935_v22 = vld [vmem:[%s18782_s15 + $0x1698] sm:$0xff]  ;;  %v9798_v62 = vld [vmem:[%s18782_s15 + $0x1250] sm:$0xff] }
 0xb52   : > { %7994 = vmatpush.msrb.mxu2 %v10007_v24  ;;  %7914 = vmatpush.msrb.mxu0 %v9878_v57  ;;  %v9927_v30 = vld [vmem:[%s18782_s15 + $0x1658] sm:$0xff]  ;;  %v9832_v24 = vld [vmem:[%s18782_s15 + $0x1360] sm:$0xff]  ;;  %v9790_v46 = vld [vmem:[%s18782_s15 + $0x1210] sm:$0xff] }
 0xb53   : > { %7946 = vmatmul.f32.vlgmr.msrb.gmra.mxu1 %v17145_v16  ;;  %7974 = vmatpush.msrb.mxu3 %v9879_v17  ;;  %v7177_v38 = vpop.f32.mrf.mxu3  ;;  %v9799_v34 = vld [vmem:[%s18782_s15 + $0x1258] sm:$0xff] }
 0xb54   : > { %8030 = vmatpush.msra.mxu1 %v9912_v61  ;;  %7995 = vmatpush.msrb.mxu2 %v9999_v27  ;;  %v7178_v31 = vadd.f32 %v7177_v38, %v16269_v18  ;;  %v9855_v18 = vld [vmem:[%s18782_s15 + $0x1418] sm:$0xff]  ;;  %v9824_v61 = vld [vmem:[%s18782_s15 + $0x1320] sm:$0xff]  ;;  %v9913_v27 = vld [vmem:[%s18782_s15 + $0x15e8] sm:$0xff] }
 0xb55   : > { %7915 = vmatpush.msrb.mxu0 %v9870_v48  ;;  %7975 = vmatpush.msrb.mxu3 %v9871_v20  ;;  %v9919_v57 = vld [vmem:[%s18782_s15 + $0x1618] sm:$0xff]  ;;  %v10072_v20 = vld [vmem:[%s18782_s15 + $0x1ae0] sm:$0x3f] }
 0xb56   : > { %8031 = vmatpush.msra.mxu1 %v9904_v42  ;;  %7996 = vmatpush.msrb.mxu2 %v9991_v3  ;;  %v7198_v50 = vadd.f32 %v7197_v36, %v7178_v31  ;;  %v7217_v53 = vpop.f32.mrf.mxu0  ;;  %v9791_v17 = vld [vmem:[%s18782_s15 + $0x1218] sm:$0xff]  ;;  %v9816_v42 = vld [vmem:[%s18782_s15 + $0x12e0] sm:$0xff]  ;;  %v9905_v3 = vld [vmem:[%s18782_s15 + $0x15a8] sm:$0xff] }
 0xb57   : > { %7916 = vmatpush.msrb.mxu0 %v9862_v28  ;;  %7976 = vmatpush.msrb.mxu3 %v9863_v41  ;;  %v7237_v25 = vpop.f32.mrf.mxu1  ;;  %v10071_v48 = vld [vmem:[%s18782_s15 + $0x1ad8] sm:$0x3f]  ;;  %v10064_v28 = vld [vmem:[%s18782_s15 + $0x1aa0] sm:$0xff]  ;;  %v9897_v31 = vld [vmem:[%s18782_s15 + $0x1568] sm:$0xff] }
 0xb58   : > { %8032 = vmatpush.msra.mxu1 %v9896_v39  ;;  %7997 = vmatpush.msrb.mxu2 %v9983_v7  ;;  %v17255_v55 = vadd.f32 %v7217_v53, %v7198_v50  ;;  %v17258_v37 = vadd.f32 %v7237_v25, %v16480_v23  ;;  %v9839_v23 = vld [vmem:[%s18782_s15 + $0x1398] sm:$0xff]  ;;  %v9808_v41 = vld [vmem:[%s18782_s15 + $0x12a0] sm:$0xff]  ;;  %v9881_v53 = vld [vmem:[%s18782_s15 + $0x14e8] sm:$0xff] }
 0xb59   : > { %7917 = vmatpush.msrb.mxu0 %v9854_v59  ;;  %7977 = vmatpush.msrb.mxu3 %v9855_v18  ;;  %v10063_v38 = vld [vmem:[%s18782_s15 + $0x1a98] sm:$0xff]  ;;  %v10056_v7 = vld [vmem:[%s18782_s15 + $0x1a60] sm:$0xff]  ;;  %v9889_v59 = vld [vmem:[%s18782_s15 + $0x1528] sm:$0xff] }
 0xb5a   : > { %8033 = vmatpush.msra.mxu1 %v9888_v43  ;;  %7998 = vmatpush.msrb.mxu2 %v9975_v19  ;;  %v10055_v39 = vld [vmem:[%s18782_s15 + $0x1a58] sm:$0xff]  ;;  %v9800_v36 = vld [vmem:[%s18782_s15 + $0x1260] sm:$0xff]  ;;  %v10041_v25 = vld [vmem:[%s18782_s15 + $0x19e8] sm:$0xff] }
 0xb5b   : > { %7918 = vmatpush.msrb.mxu0 %v9846_v40  ;;  %7978 = vmatpush.msrb.mxu3 %v9847_v12  ;;  %v10047_v18 = vld [vmem:[%s18782_s15 + $0x1a18] sm:$0xff]  ;;  %v10048_v50 = vld [vmem:[%s18782_s15 + $0x1a20] sm:$0xff]  ;;  %v10073_v40 = vld [vmem:[%s18782_s15 + $0x1ae8] sm:$0x3f] }
 0xb5c   : > { %8034 = vmatpush.msra.mxu1 %v9880_v5  ;;  %7999 = vmatpush.msrb.mxu2 %v9967_v35  ;;  %v9792_v43 = vld [vmem:[%s18782_s15 + $0x1220] sm:$0xff]  ;;  %v9873_v5 = vld [vmem:[%s18782_s15 + $0x14a8] sm:$0xff] }
 0xb5d   : > { %7919 = vmatpush.msrb.mxu0 %v9838_v2  ;;  %7979 = vmatpush.msrb.mxu3 %v9839_v23  ;;  %v10040_v19 = vld [vmem:[%s18782_s15 + $0x19e0] sm:$0xff]  ;;  %v10033_v35 = vld [vmem:[%s18782_s15 + $0x19a8] sm:$0xff]  ;;  %v7277_v23 = vpop.f32.mrf.mxu3 }
 0xb5e   : > { %8035 = vmatpush.msra.mxu1 %v9872_v47  ;;  %8000 = vmatpush.msrb.mxu2 %v9959_v9  ;;  %v10032_v12 = vld [vmem:[%s18782_s15 + $0x19a0] sm:$0xff]  ;;  %v10065_v47 = vld [vmem:[%s18782_s15 + $0x1aa8] sm:$0xff] }
 0xb5f   : > { %7920 = vmatpush.msrb.mxu0 %v9830_v0  ;;  %7980 = vmatpush.msrb.mxu3 %v9831_v4  ;;  %v10024_v9 = vld [vmem:[%s18782_s15 + $0x1960] sm:$0xff]  ;;  %v9865_v4 = vld [vmem:[%s18782_s15 + $0x1468] sm:$0xff] }
 0xb60   : > { %8036 = vmatpush.msra.mxu1 %v9864_v21  ;;  %8001 = vmatpush.msrb.mxu2 %v9951_v15  ;;  %v10025_v21 = vld [vmem:[%s18782_s15 + $0x1968] sm:$0xff] }
 0xb61   : > { %7921 = vmatpush.msrb.mxu0 %v9822_v51  ;;  %7981 = vmatpush.msrb.mxu3 %v9823_v33  ;;  %v10057_v15 = vld [vmem:[%s18782_s15 + $0x1a68] sm:$0xff] }
 0xb62   : > { %8037 = vmatpush.msra.mxu1 %v9856_v56  ;;  %8002 = vmatpush.msrb.mxu2 %v9943_v29  ;;  %v9857_v33 = vld [vmem:[%s18782_s15 + $0x1428] sm:$0xff] }
 0xb63   : > { %7922 = vmatpush.msrb.mxu0 %v9814_v45  ;;  %7982 = vmatpush.msrb.mxu3 %v9815_v52  ;;  %v10017_v56 = vld [vmem:[%s18782_s15 + $0x1928] sm:$0xff]  ;;  %v10008_v52 = vld [vmem:[%s18782_s15 + $0x18e0] sm:$0xff] }
 0xb64   : > { %8038 = vmatpush.msra.mxu1 %v9848_v26  ;;  %8003 = vmatpush.msrb.mxu2 %v9935_v22  ;;  %v10049_v45 = vld [vmem:[%s18782_s15 + $0x1a28] sm:$0xff] }
 0xb65   : > { %7923 = vmatpush.msrb.mxu0 %v9806_v63  ;;  %7983 = vmatpush.msrb.mxu3 %v9807_v10  ;;  %v9849_v26 = vld [vmem:[%s18782_s15 + $0x13e8] sm:$0xff]  ;;  %v10042_v63 = vld [vmem:[%s18782_s15 + $0x19f0] sm:$0xff]  ;;  %v10000_v10 = vld [vmem:[%s18782_s15 + $0x18a0] sm:$0xff] }
 0xb66   : > { %8039 = vmatpush.msra.mxu1 %v9840_v44  ;;  %8004 = vmatpush.msrb.mxu2 %v9927_v30  ;;  %v9841_v44 = vld [vmem:[%s18782_s15 + $0x13a8] sm:$0xff] }
 0xb67   : > { %7924 = vmatpush.msrb.mxu0 %v9798_v62  ;;  %7984 = vmatpush.msrb.mxu3 %v9799_v34  ;;  %v10001_v30 = vld [vmem:[%s18782_s15 + $0x18a8] sm:$0xff]  ;;  %v10034_v62 = vld [vmem:[%s18782_s15 + $0x19b0] sm:$0xff] }
 0xb68   : > { %8040 = vmatpush.msra.mxu1 %v9832_v24  ;;  %8005 = vmatpush.msrb.mxu2 %v9919_v57  ;;  %v9992_v24 = vld [vmem:[%s18782_s15 + $0x1860] sm:$0xff]  ;;  %v9833_v57 = vld [vmem:[%s18782_s15 + $0x1368] sm:$0xff] }
 0xb69   : > { %7925 = vmatpush.msrb.mxu0 %v9790_v46  ;;  %7985 = vmatpush.msrb.mxu3 %v9791_v17  ;;  %v7337_v17 = vpop.f32.mrf.mxu1 }
 0xb6a   : > { %8006 = vmatmul.f32.vlgmr.msrb.gmra.mxu2 %v17145_v16  ;;  %8041 = vmatpush.msra.mxu1 %v9824_v61  ;;  %v9993_v61 = vld [vmem:[%s18782_s15 + $0x1868] sm:$0xff] }
 0xb6b   : > { %8090 = vmatpush.msra.mxu2 %v9913_v27  ;;  %7926 = vmatmul.f32.vlgmr.msrb.gmra.mxu0 %v16929_v13  ;;  %v10026_v27 = vld [vmem:[%s18782_s15 + $0x1970] sm:$0xff] }
 0xb6c   : > { %7986 = vmatmul.f32.vlgmr.msrb.gmra.mxu3 %v16929_v13  ;;  %10082 = vmatpush.msk.msra.mxu0 %vm2926_vm4, %v10071_v48  ;;  %v9984_v48 = vld [vmem:[%s18782_s15 + $0x1820] sm:$0xff] }
 0xb6d   : > { %10084 = vmatpush.msk.msra.mxu3 %vm2926_vm4, %v10072_v20  ;;  %8042 = vmatpush.msra.mxu1 %v9816_v42  ;;  %v9825_v20 = vld [vmem:[%s18782_s15 + $0x1328] sm:$0xff] }
 0xb6e   : > { %8091 = vmatpush.msra.mxu2 %v9905_v3  ;;  %8023 = vmatpush.msra.mxu0 %v10063_v38  ;;  %v9985_v3 = vld [vmem:[%s18782_s15 + $0x1828] sm:$0xff]  ;;  %v10018_v38 = vld [vmem:[%s18782_s15 + $0x1930] sm:$0xff] }
 0xb6f   : > { %8083 = vmatpush.msra.mxu3 %v10064_v28  ;;  %8043 = vmatpush.msra.mxu1 %v9808_v41  ;;  %v9976_v28 = vld [vmem:[%s18782_s15 + $0x17e0] sm:$0xff]  ;;  %v9817_v41 = vld [vmem:[%s18782_s15 + $0x12e8] sm:$0xff] }
 0xb70   : > { %8092 = vmatpush.msra.mxu2 %v9897_v31  ;;  %8024 = vmatpush.msra.mxu0 %v10055_v39  ;;  %v9977_v31 = vld [vmem:[%s18782_s15 + $0x17e8] sm:$0xff]  ;;  %v10010_v39 = vld [vmem:[%s18782_s15 + $0x18f0] sm:$0xff] }
 0xb71   : > { %8084 = vmatpush.msra.mxu3 %v10056_v7  ;;  %8044 = vmatpush.msra.mxu1 %v9800_v36  ;;  %v9968_v7 = vld [vmem:[%s18782_s15 + $0x17a0] sm:$0xff]  ;;  %v9809_v36 = vld [vmem:[%s18782_s15 + $0x12a8] sm:$0xff] }
 0xb72   : > { %8093 = vmatpush.msra.mxu2 %v9889_v59  ;;  %8025 = vmatpush.msra.mxu0 %v10047_v18  ;;  %v9969_v59 = vld [vmem:[%s18782_s15 + $0x17a8] sm:$0xff]  ;;  %v10002_v18 = vld [vmem:[%s18782_s15 + $0x18b0] sm:$0xff] }
 0xb73   : > { %8085 = vmatpush.msra.mxu3 %v10048_v50  ;;  %8045 = vmatpush.msra.mxu1 %v9792_v43  ;;  %v9960_v50 = vld [vmem:[%s18782_s15 + $0x1760] sm:$0xff]  ;;  %v9801_v43 = vld [vmem:[%s18782_s15 + $0x1268] sm:$0xff] }
 0xb74   : > { %8050 = vmatpush.msrb.mxu0 %v10040_v19  ;;  %8094 = vmatpush.msra.mxu2 %v9881_v53  ;;  %v9961_v19 = vld [vmem:[%s18782_s15 + $0x1768] sm:$0xff]  ;;  %v9994_v53 = vld [vmem:[%s18782_s15 + $0x1870] sm:$0xff] }
 0xb75   : > { %8110 = vmatpush.msrb.mxu3 %v10041_v25  ;;  %10083 = vmatmul.msk.f32.vlgmr.msra.gmra.mxu0 %vm6447_vm15, %v16926_v8  ;;  %v7297_v2 = vpop.f32.mrf.mxu2  ;;  %v9952_v25 = vld [vmem:[%s18782_s15 + $0x1720] sm:$0xff] }
 0xb76   : > { %8046 = vmatmul.f32.vlgmr.msra.gmra.mxu1 %v16929_v13  ;;  %10085 = vmatmul.msk.f32.vlgmr.msra.gmra.mxu3 %vm6447_vm15, %v16926_v8  ;;  %v7298_v0 = vadd.f32 %v7297_v2, %v16535_v58  ;;  %v10016_v58 = vld [vmem:[%s18782_s15 + $0x1920] sm:$0xff]  ;;  %v10074_v2 = vld [vmem:[%s18782_s15 + $0x1af0] sm:$0x3f] }
 0xb77   : > { %10086 = vmatpush.msk.msrb.mxu1 %vm2926_vm4, %v10073_v40  ;;  %8051 = vmatpush.msrb.mxu0 %v10032_v12  ;;  %v7257_v51 = vpop.f32.mrf.mxu0  ;;  %v9793_v40 = vld [vmem:[%s18782_s15 + $0x1228] sm:$0xff] }
 0xb78   : > { %8095 = vmatpush.msra.mxu2 %v9873_v5  ;;  %8111 = vmatpush.msrb.mxu3 %v10033_v35  ;;  %v7258_v29 = vadd.f32 %v7257_v51, %v17258_v37  ;;  %v10009_v37 = vld [vmem:[%s18782_s15 + $0x18e8] sm:$0xff]  ;;  %v9986_v5 = vld [vmem:[%s18782_s15 + $0x1830] sm:$0xff]  ;;  %v9944_v35 = vld [vmem:[%s18782_s15 + $0x16e0] sm:$0xff] }
 0xb79   : > { %8143 = vmatpush.msrb.mxu1 %v10065_v47  ;;  %8052 = vmatpush.msrb.mxu0 %v10024_v9  ;;  %v9953_v12 = vld [vmem:[%s18782_s15 + $0x1728] sm:$0xff]  ;;  %v9978_v47 = vld [vmem:[%s18782_s15 + $0x17f0] sm:$0xff]  ;;  %v9936_v9 = vld [vmem:[%s18782_s15 + $0x16a0] sm:$0xff] }
 0xb7a   : > { %8096 = vmatpush.msra.mxu2 %v9865_v4  ;;  %8112 = vmatpush.msrb.mxu3 %v10025_v21  ;;  %v17465_v22 = vadd.f32 %v7277_v23, %v7258_v29  ;;  %v9945_v23 = vld [vmem:[%s18782_s15 + $0x16e8] sm:$0xff]  ;;  %v9970_v21 = vld [vmem:[%s18782_s15 + $0x17b0] sm:$0xff] }
 0xb7b   : > { %8144 = vmatpush.msrb.mxu1 %v10057_v15  ;;  %8053 = vmatpush.msrb.mxu0 %v10016_v58  ;;  %v9937_v4 = vld [vmem:[%s18782_s15 + $0x16a8] sm:$0xff]  ;;  %v9928_v15 = vld [vmem:[%s18782_s15 + $0x1660] sm:$0xff]  ;;  %v10058_v58 = vld [vmem:[%s18782_s15 + $0x1a70] sm:$0xff] }
 0xb7c   : > { %8097 = vmatpush.msra.mxu2 %v9857_v33  ;;  %8113 = vmatpush.msrb.mxu3 %v10017_v56  ;;  %v9929_v51 = vld [vmem:[%s18782_s15 + $0x1668] sm:$0xff]  ;;  %v9962_v33 = vld [vmem:[%s18782_s15 + $0x1770] sm:$0xff]  ;;  %v9920_v56 = vld [vmem:[%s18782_s15 + $0x1620] sm:$0xff] }
 0xb7d   : > { %8145 = vmatpush.msrb.mxu1 %v10049_v45  ;;  %8054 = vmatpush.msrb.mxu0 %v10008_v52  ;;  %v10050_v29 = vld [vmem:[%s18782_s15 + $0x1a30] sm:$0xff]  ;;  %v9921_v45 = vld [vmem:[%s18782_s15 + $0x1628] sm:$0xff] }
 0xb7e   : > { %8098 = vmatpush.msra.mxu2 %v9849_v26  ;;  %8114 = vmatpush.msrb.mxu3 %v10009_v37  ;;  %v7317_v34 = vpop.f32.mrf.mxu3  ;;  %v9954_v52 = vld [vmem:[%s18782_s15 + $0x1730] sm:$0xff]  ;;  %v10043_v26 = vld [vmem:[%s18782_s15 + $0x19f8] sm:$0xff] }
 0xb7f   : > { %8170 = vmatpush.msra.mxu1 %v10042_v63  ;;  %8055 = vmatpush.msrb.mxu0 %v10000_v10  ;;  %v7318_v46 = vadd.f32 %v7317_v34, %v7298_v0  ;;  %v10066_v0 = vld [vmem:[%s18782_s15 + $0x1ab0] sm:$0xff]  ;;  %v9915_v63 = vld [vmem:[%s18782_s15 + $0x15f8] sm:$0xff] }
 0xb80   : > { %10087 = vmatmul.msk.f32.vlgmr.msrb.gmra.mxu1 %vm6447_vm15, %v16926_v8  ;;  %8099 = vmatpush.msra.mxu2 %v9841_v44  ;;  %v9914_v37 = vld [vmem:[%s18782_s15 + $0x15f0] sm:$0xff]  ;;  %v10035_v44 = vld [vmem:[%s18782_s15 + $0x19b8] sm:$0xff] }
 0xb81   : > { %8115 = vmatpush.msrb.mxu3 %v10001_v30  ;;  %8171 = vmatpush.msra.mxu1 %v10034_v62  ;;  %v17502_v42 = vadd.f32 %v7337_v17, %v7318_v46  ;;  %v9946_v10 = vld [vmem:[%s18782_s15 + $0x16f0] sm:$0xff]  ;;  %v9907_v62 = vld [vmem:[%s18782_s15 + $0x15b8] sm:$0xff] }
 0xb82   : > { %8056 = vmatpush.msrb.mxu0 %v9992_v24  ;;  %8100 = vmatpush.msra.mxu2 %v9833_v57  ;;  %v9906_v30 = vld [vmem:[%s18782_s15 + $0x15b0] sm:$0xff]  ;;  %v10027_v24 = vld [vmem:[%s18782_s15 + $0x1978] sm:$0xff] }
 0xb83   : > { %8116 = vmatpush.msrb.mxu3 %v9993_v61  ;;  %8172 = vmatpush.msra.mxu1 %v10026_v27  ;;  %v9938_v34 = vld [vmem:[%s18782_s15 + $0x16b0] sm:$0xff]  ;;  %v9899_v46 = vld [vmem:[%s18782_s15 + $0x1578] sm:$0xff]  ;;  %v7397_v27 = vpop.f32.mrf.mxu2 }
 0xb84   : > { %8057 = vmatpush.msrb.mxu0 %v9984_v48  ;;  %8101 = vmatpush.msra.mxu2 %v9825_v20  ;;  %v9898_v57 = vld [vmem:[%s18782_s15 + $0x1570] sm:$0xff]  ;;  %v10019_v48 = vld [vmem:[%s18782_s15 + $0x1938] sm:$0xff] }
 0xb85   : > { %8117 = vmatpush.msrb.mxu3 %v9985_v3  ;;  %8173 = vmatpush.msra.mxu1 %v10018_v38  ;;  %v9930_v17 = vld [vmem:[%s18782_s15 + $0x1670] sm:$0xff]  ;;  %v7377_v38 = vpop.f32.mrf.mxu1 }
 0xb86   : > { %8058 = vmatpush.msrb.mxu0 %v9976_v28  ;;  %8102 = vmatpush.msra.mxu2 %v9817_v41  ;;  %v9890_v20 = vld [vmem:[%s18782_s15 + $0x1530] sm:$0xff]  ;;  %v9891_v28 = vld [vmem:[%s18782_s15 + $0x1538] sm:$0xff] }
 0xb87   : > { %8118 = vmatpush.msrb.mxu3 %v9977_v31  ;;  %8174 = vmatpush.msra.mxu1 %v10010_v39  ;;  %v9922_v41 = vld [vmem:[%s18782_s15 + $0x1630] sm:$0xff]  ;;  %v10011_v31 = vld [vmem:[%s18782_s15 + $0x18f8] sm:$0xff] }
 0xb88   : > { %8059 = vmatpush.msrb.mxu0 %v9968_v7  ;;  %8103 = vmatpush.msra.mxu2 %v9809_v36  ;;  %v9883_v7 = vld [vmem:[%s18782_s15 + $0x14f8] sm:$0xff]  ;;  %v10212_v36 = vld [vmem:[%s18782_s15 + $0x1ec0] sm:$0xff] }
 0xb89   : > { %8119 = vmatpush.msrb.mxu3 %v9969_v59  ;;  %8175 = vmatpush.msra.mxu1 %v10002_v18  ;;  %v10003_v59 = vld [vmem:[%s18782_s15 + $0x18b8] sm:$0xff] }
 0xb8a   : > { %8060 = vmatpush.msrb.mxu0 %v9960_v50  ;;  %8104 = vmatpush.msra.mxu2 %v9801_v43  ;;  %v9874_v50 = vld [vmem:[%s18782_s15 + $0x14b0] sm:$0xff]  ;;  %v9875_v43 = vld [vmem:[%s18782_s15 + $0x14b8] sm:$0xff] }
 0xb8b   : > { %8120 = vmatpush.msrb.mxu3 %v9961_v19  ;;  %8176 = vmatpush.msra.mxu1 %v9994_v53  ;;  %v10204_v19 = vld [vmem:[%s18782_s15 + $0x1e80] sm:$0xff]  ;;  %v9995_v53 = vld [vmem:[%s18782_s15 + $0x1878] sm:$0xff] }
 0xb8c   : > { %8061 = vmatpush.msrb.mxu0 %v9952_v25  ;;  %8105 = vmatpush.msra.mxu2 %v9793_v40  ;;  %v9866_v40 = vld [vmem:[%s18782_s15 + $0x1470] sm:$0xff] }
 0xb8d   : > { %8121 = vmatpush.msrb.mxu3 %v9953_v12  ;;  %8177 = vmatpush.msra.mxu1 %v9986_v5  ;;  %v9867_v12 = vld [vmem:[%s18782_s15 + $0x1478] sm:$0xff] }
 0xb8e   : > { %8106 = vmatmul.f32.vlgmr.msra.gmra.mxu2 %v16929_v13  ;;  %8062 = vmatpush.msrb.mxu0 %v9944_v35  ;;  %v10196_v35 = vld [vmem:[%s18782_s15 + $0x1e40] sm:$0xff] }
 0xb8f   : > { %10088 = vmatpush.msk.msrb.mxu2 %vm2926_vm4, %v10074_v2  ;;  %8122 = vmatpush.msrb.mxu3 %v9945_v23  ;;  %v9987_v2 = vld [vmem:[%s18782_s15 + $0x1838] sm:$0xff] }
 0xb90   : > { %8178 = vmatpush.msra.mxu1 %v9978_v47  ;;  %8063 = vmatpush.msrb.mxu0 %v9936_v9  ;;  %v9858_v47 = vld [vmem:[%s18782_s15 + $0x1430] sm:$0xff] }
 0xb91   : > { %8203 = vmatpush.msrb.mxu2 %v10066_v0  ;;  %8123 = vmatpush.msrb.mxu3 %v9937_v4  ;;  %v10188_v0 = vld [vmem:[%s18782_s15 + $0x1e00] sm:$0xff]  ;;  %v9979_v4 = vld [vmem:[%s18782_s15 + $0x17f8] sm:$0xff] }
 0xb92   : > { %8179 = vmatpush.msra.mxu1 %v9970_v21  ;;  %8064 = vmatpush.msrb.mxu0 %v9928_v15  ;;  %v9850_v15 = vld [vmem:[%s18782_s15 + $0x13f0] sm:$0xff] }
 0xb93   : > { %8204 = vmatpush.msrb.mxu2 %v10058_v58  ;;  %8124 = vmatpush.msrb.mxu3 %v9929_v51  ;;  %v9851_v58 = vld [vmem:[%s18782_s15 + $0x13f8] sm:$0xff] }
 0xb94   : > { %8180 = vmatpush.msra.mxu1 %v9962_v33  ;;  %8065 = vmatpush.msrb.mxu0 %v9920_v56  ;;  %v10180_v33 = vld [vmem:[%s18782_s15 + $0x1dc0] sm:$0xff]  ;;  %v9971_v56 = vld [vmem:[%s18782_s15 + $0x17b8] sm:$0xff] }
 0xb95   : > { %8205 = vmatpush.msrb.mxu2 %v10050_v29  ;;  %8125 = vmatpush.msrb.mxu3 %v9921_v45  ;;  %v9842_v29 = vld [vmem:[%s18782_s15 + $0x13b0] sm:$0xff]  ;;  %v9843_v45 = vld [vmem:[%s18782_s15 + $0x13b8] sm:$0xff] }
 0xb96   : > { %8181 = vmatpush.msra.mxu1 %v9954_v52  ;;  %8066 = vmatmul.f32.vlgmr.msrb.gmra.mxu0 %v17145_v16  ;;  %v10172_v52 = vld [vmem:[%s18782_s15 + $0x1d80] sm:$0xff] }
 0xb97   : > { %8230 = vmatpush.msra.mxu2 %v10043_v26  ;;  %8126 = vmatmul.f32.vlgmr.msrb.gmra.mxu3 %v17145_v16  ;;  %v9963_v26 = vld [vmem:[%s18782_s15 + $0x1778] sm:$0xff] }
 0xb98   : > { %8150 = vmatpush.msra.mxu0 %v9914_v37  ;;  %10089 = vmatmul.msk.f32.vlgmr.msrb.gmra.mxu2 %vm6447_vm15, %v16926_v8  ;;  %v9834_v37 = vld [vmem:[%s18782_s15 + $0x1370] sm:$0xff] }
 0xb99   : > { %8210 = vmatpush.msra.mxu3 %v9915_v63  ;;  %8182 = vmatpush.msra.mxu1 %v9946_v10  ;;  %v9835_v63 = vld [vmem:[%s18782_s15 + $0x1378] sm:$0xff]  ;;  %v10164_v10 = vld [vmem:[%s18782_s15 + $0x1d40] sm:$0xff] }
 0xb9a   : > { %8231 = vmatpush.msra.mxu2 %v10035_v44  ;;  %8151 = vmatpush.msra.mxu0 %v9906_v30  ;;  %v7357_v61 = vpop.f32.mrf.mxu0  ;;  %v9955_v44 = vld [vmem:[%s18782_s15 + $0x1738] sm:$0xff]  ;;  %v9826_v30 = vld [vmem:[%s18782_s15 + $0x1330] sm:$0xff] }
 0xb9b   : > { %8211 = vmatpush.msra.mxu3 %v9907_v62  ;;  %8183 = vmatpush.msra.mxu1 %v9938_v34  ;;  %v7358_v3 = vadd.f32 %v7357_v61, %v16703_v54  ;;  %v9882_v54 = vld [vmem:[%s18782_s15 + $0x14f0] sm:$0xff]  ;;  %v9827_v62 = vld [vmem:[%s18782_s15 + $0x1338] sm:$0xff]  ;;  %v10156_v34 = vld [vmem:[%s18782_s15 + $0x1d00] sm:$0xff] }
 0xb9c   : > { %8232 = vmatpush.msra.mxu2 %v10027_v24  ;;  %8152 = vmatpush.msra.mxu0 %v9898_v57  ;;  %v9947_v24 = vld [vmem:[%s18782_s15 + $0x16f8] sm:$0xff]  ;;  %v9818_v57 = vld [vmem:[%s18782_s15 + $0x12f0] sm:$0xff] }
 0xb9d   : > { %8212 = vmatpush.msra.mxu3 %v9899_v46  ;;  %8184 = vmatpush.msra.mxu1 %v9930_v17  ;;  %v7378_v39 = vadd.f32 %v7377_v38, %v7358_v3  ;;  %v9819_v46 = vld [vmem:[%s18782_s15 + $0x12f8] sm:$0xff]  ;;  %v10148_v17 = vld [vmem:[%s18782_s15 + $0x1cc0] sm:$0xff]  ;;  %v9802_v38 = vld [vmem:[%s18782_s15 + $0x1270] sm:$0xff] }
 0xb9e   : > { %8233 = vmatpush.msra.mxu2 %v10019_v48  ;;  %8153 = vmatpush.msra.mxu0 %v9890_v20  ;;  %v9939_v61 = vld [vmem:[%s18782_s15 + $0x16b8] sm:$0xff]  ;;  %v10140_v20 = vld [vmem:[%s18782_s15 + $0x1c80] sm:$0xff] }
 0xb9f   : > { %8213 = vmatpush.msra.mxu3 %v9891_v28  ;;  %8185 = vmatpush.msra.mxu1 %v9922_v41  ;;  %v17676_v18 = vadd.f32 %v7397_v27, %v7378_v39  ;;  %v7437_v23 = vpop.f32.mrf.mxu2  ;;  %v9810_v27 = vld [vmem:[%s18782_s15 + $0x12b0] sm:$0xff]  ;;  %v9811_v48 = vld [vmem:[%s18782_s15 + $0x12b8] sm:$0xff]  ;;  %v10132_v41 = vld [vmem:[%s18782_s15 + $0x1c40] sm:$0xff] }
 0xba0   : > { %8234 = vmatpush.msra.mxu2 %v10011_v31  ;;  %8154 = vmatpush.msra.mxu0 %v9882_v54  ;;  %v9931_v3 = vld [vmem:[%s18782_s15 + $0x1678] sm:$0xff]  ;;  %v9794_v54 = vld [vmem:[%s18782_s15 + $0x1230] sm:$0xff] }
 0xba1   : > { %8186 = vmatmul.f32.vlgmr.msra.gmra.mxu1 %v17145_v16  ;;  %8214 = vmatpush.msra.mxu3 %v9883_v7  ;;  %v7417_v25 = vpop.f32.mrf.mxu3  ;;  %v9803_v28 = vld [vmem:[%s18782_s15 + $0x1278] sm:$0xff]  ;;  %v10124_v7 = vld [vmem:[%s18782_s15 + $0x1c00] sm:$0xff] }
 0xba2   : > { %8598 = vmatpush.msrb.mxu1 %v10212_v36  ;;  %8235 = vmatpush.msra.mxu2 %v10003_v59  ;;  %v7418_v5 = vadd.f32 %v7417_v25, %v16731_v1  ;;  %v9859_v1 = vld [vmem:[%s18782_s15 + $0x1438] sm:$0xff]  ;;  %v10213_v36 = vld [vmem:[%s18782_s15 + $0x1ec8] sm:$0xff]  ;;  %v10108_v25 = vld [vmem:[%s18782_s15 + $0x1b80] sm:$0xff] }
 0xba3   : > { %8155 = vmatpush.msra.mxu0 %v9874_v50  ;;  %8215 = vmatpush.msra.mxu3 %v9875_v43  ;;  %v9923_v31 = vld [vmem:[%s18782_s15 + $0x1638] sm:$0xff]  ;;  %v10372_v50 = vld [vmem:[%s18782_s15 + $0x23c0] sm:$0x3f] }
 0xba4   : > { %8599 = vmatpush.msrb.mxu1 %v10204_v19  ;;  %8236 = vmatpush.msra.mxu2 %v9995_v53  ;;  %v7438_v9 = vadd.f32 %v7437_v23, %v7418_v5  ;;  %v7457_v21 = vpop.f32.mrf.mxu0  ;;  %v9795_v39 = vld [vmem:[%s18782_s15 + $0x1238] sm:$0xff]  ;;  %v10116_v43 = vld [vmem:[%s18782_s15 + $0x1bc0] sm:$0xff]  ;;  %v10205_v19 = vld [vmem:[%s18782_s15 + $0x1e88] sm:$0xff] }
 0xba5   : > { %8156 = vmatpush.msra.mxu0 %v9866_v40  ;;  %8216 = vmatpush.msra.mxu3 %v9867_v12  ;;  %v10075_v59 = vld [vmem:[%s18782_s15 + $0x1af8] sm:$0x3f]  ;;  %v10364_v53 = vld [vmem:[%s18782_s15 + $0x2380] sm:$0xff]  ;;  %v10197_v40 = vld [vmem:[%s18782_s15 + $0x1e48] sm:$0xff] }
 0xba6   : > { %8600 = vmatpush.msrb.mxu1 %v10196_v35  ;;  %8237 = vmatpush.msra.mxu2 %v9987_v2  ;;  %v17722_v51 = vadd.f32 %v7457_v21, %v7438_v9  ;;  %v10356_v12 = vld [vmem:[%s18782_s15 + $0x2340] sm:$0xff]  ;;  %v10189_v35 = vld [vmem:[%s18782_s15 + $0x1e08] sm:$0xff]  ;;  %v10051_v2 = vld [vmem:[%s18782_s15 + $0x1a38] sm:$0xff]  ;;  %v17877_v21 = vrot.slane %v16879_v14, 1 }
 0xba7   : > { %8157 = vmatpush.msra.mxu0 %v9858_v47  ;;  %8217 = vmatpush.msra.mxu3 %v9859_v1  ;;  %v10100_v5 = vld [vmem:[%s18782_s15 + $0x1b40] sm:$0xff]  ;;  %v10181_v9 = vld [vmem:[%s18782_s15 + $0x1dc8] sm:$0xff] }
 0xba8   : > { %8601 = vmatpush.msrb.mxu1 %v10188_v0  ;;  %8238 = vmatpush.msra.mxu2 %v9979_v4  ;;  %v10348_v23 = vld [vmem:[%s18782_s15 + $0x2300] sm:$0xff]  ;;  %v10341_v0 = vld [vmem:[%s18782_s15 + $0x22c8] sm:$0xff]  ;;  %v17874_v4 = vrot.slane %v16876_v32, 1 }
 0xba9   : > { %8158 = vmatpush.msra.mxu0 %v9850_v15  ;;  %8218 = vmatpush.msra.mxu3 %v9851_v58  ;;  %v10092_v47 = vld [vmem:[%s18782_s15 + $0x1b00] sm:$0xff]  ;;  %v10373_v15 = vld [vmem:[%s18782_s15 + $0x23c8] sm:$0x3f] }
 0xbaa   : > { %8602 = vmatpush.msrb.mxu1 %v10180_v33  ;;  %8239 = vmatpush.msra.mxu2 %v9971_v56  ;;  %v10340_v1 = vld [vmem:[%s18782_s15 + $0x22c0] sm:$0xff]  ;;  %v10173_v32 = vld [vmem:[%s18782_s15 + $0x1d88] sm:$0xff] }
 0xbab   : > { %8159 = vmatpush.msra.mxu0 %v9842_v29  ;;  %8219 = vmatpush.msra.mxu3 %v9843_v45  ;;  %v10332_v58 = vld [vmem:[%s18782_s15 + $0x2280] sm:$0xff]  ;;  %v10333_v14 = vld [vmem:[%s18782_s15 + $0x2288] sm:$0xff] }
 0xbac   : > { %8603 = vmatpush.msrb.mxu1 %v10172_v52  ;;  %8240 = vmatpush.msra.mxu2 %v9963_v26  ;;  %v10365_v33 = vld [vmem:[%s18782_s15 + $0x2388] sm:$0xff]  ;;  %v10316_v52 = vld [vmem:[%s18782_s15 + $0x2200] sm:$0xff] }
 0xbad   : > { %8160 = vmatpush.msra.mxu0 %v9834_v37  ;;  %8220 = vmatpush.msra.mxu3 %v9835_v63  ;;  %v10165_v56 = vld [vmem:[%s18782_s15 + $0x1d48] sm:$0xff] }
 0xbae   : > { %8604 = vmatpush.msrb.mxu1 %v10164_v10  ;;  %8241 = vmatpush.msra.mxu2 %v9955_v44  ;;  %v10325_v29 = vld [vmem:[%s18782_s15 + $0x2248] sm:$0xff]  ;;  %v10308_v10 = vld [vmem:[%s18782_s15 + $0x21c0] sm:$0xff] }
 0xbaf   : > { %8161 = vmatpush.msra.mxu0 %v9826_v30  ;;  %8221 = vmatpush.msra.mxu3 %v9827_v62  ;;  %v10357_v45 = vld [vmem:[%s18782_s15 + $0x2348] sm:$0xff]  ;;  %v10342_v62 = vld [vmem:[%s18782_s15 + $0x22d0] sm:$0xff] }
 0xbb0   : > { %8605 = vmatpush.msrb.mxu1 %v10156_v34  ;;  %8242 = vmatpush.msra.mxu2 %v9947_v24  ;;  %v10157_v26 = vld [vmem:[%s18782_s15 + $0x1d08] sm:$0xff]  ;;  %v10300_v34 = vld [vmem:[%s18782_s15 + $0x2180] sm:$0xff] }
 0xbb1   : > { %8162 = vmatpush.msra.mxu0 %v9818_v57  ;;  %8222 = vmatpush.msra.mxu3 %v9819_v46  ;;  %v10317_v37 = vld [vmem:[%s18782_s15 + $0x2208] sm:$0xff]  ;;  %v10334_v46 = vld [vmem:[%s18782_s15 + $0x2290] sm:$0xff] }
 0xbb2   : > { %8606 = vmatpush.msrb.mxu1 %v10148_v17  ;;  %8243 = vmatpush.msra.mxu2 %v9939_v61  ;;  %v10349_v63 = vld [vmem:[%s18782_s15 + $0x2308] sm:$0xff]  ;;  %v10292_v17 = vld [vmem:[%s18782_s15 + $0x2140] sm:$0xff] }
 0xbb3   : > { %8163 = vmatpush.msra.mxu0 %v9810_v27  ;;  %8223 = vmatpush.msra.mxu3 %v9811_v48  ;;  %v10149_v44 = vld [vmem:[%s18782_s15 + $0x1cc8] sm:$0xff]  ;;  %v10326_v48 = vld [vmem:[%s18782_s15 + $0x2250] sm:$0xff] }
 0xbb4   : > { %8607 = vmatpush.msrb.mxu1 %v10140_v20  ;;  %8244 = vmatpush.msra.mxu2 %v9931_v3  ;;  %v10309_v30 = vld [vmem:[%s18782_s15 + $0x21c8] sm:$0xff]  ;;  %v10284_v20 = vld [vmem:[%s18782_s15 + $0x2100] sm:$0xff] }
 0xbb5   : > { %8164 = vmatpush.msra.mxu0 %v9802_v38  ;;  %8224 = vmatpush.msra.mxu3 %v9803_v28  ;;  %v10141_v24 = vld [vmem:[%s18782_s15 + $0x1c88] sm:$0xff]  ;;  %v10318_v28 = vld [vmem:[%s18782_s15 + $0x2210] sm:$0xff] }
 0xbb6   : > { %8608 = vmatpush.msrb.mxu1 %v10132_v41  ;;  %8245 = vmatpush.msra.mxu2 %v9923_v31  ;;  %v10301_v57 = vld [vmem:[%s18782_s15 + $0x2188] sm:$0xff]  ;;  %v10276_v41 = vld [vmem:[%s18782_s15 + $0x20c0] sm:$0xff] }
 0xbb7   : > { %8165 = vmatpush.msra.mxu0 %v9794_v54  ;;  %8225 = vmatpush.msra.mxu3 %v9795_v39  ;;  %v10133_v61 = vld [vmem:[%s18782_s15 + $0x1c48] sm:$0xff]  ;;  %v10310_v39 = vld [vmem:[%s18782_s15 + $0x21d0] sm:$0xff] }
 0xbb8   : > { %8246 = vmatmul.f32.vlgmr.msra.gmra.mxu2 %v17145_v16  ;;  %8609 = vmatpush.msrb.mxu1 %v10124_v7  ;;  %v10067_v16 = vld [vmem:[%s18782_s15 + $0x1ab8] sm:$0xff]  ;;  %v10293_v27 = vld [vmem:[%s18782_s15 + $0x2148] sm:$0xff]  ;;  %v10268_v7 = vld [vmem:[%s18782_s15 + $0x2080] sm:$0xff] }
 0xbb9   : > { %8658 = vmatpush.msrb.mxu2 %v10213_v36  ;;  %8166 = vmatmul.f32.vlgmr.msra.gmra.mxu0 %v16929_v13  ;;  %v10125_v3 = vld [vmem:[%s18782_s15 + $0x1c08] sm:$0xff] }
 0xbba   : > { %8226 = vmatmul.f32.vlgmr.msra.gmra.mxu3 %v16929_v13  ;;  %10090 = vmatpush.msk.msrb.mxu0 %vm2926_vm4, %v10075_v59  ;;  %v10059_v13 = vld [vmem:[%s18782_s15 + $0x1a78] sm:$0xff]  ;;  %v10285_v38 = vld [vmem:[%s18782_s15 + $0x2108] sm:$0xff] }
 0xbbb   : > { %10380 = vmatpush.msk.msrb.mxu3 %vm2926_vm4, %v10372_v50  ;;  %8610 = vmatpush.msrb.mxu1 %v10116_v43  ;;  %v10117_v31 = vld [vmem:[%s18782_s15 + $0x1bc8] sm:$0xff]  ;;  %v10302_v50 = vld [vmem:[%s18782_s15 + $0x2190] sm:$0xff]  ;;  %v10260_v43 = vld [vmem:[%s18782_s15 + $0x2040] sm:$0xff] }
 0xbbc   : > { %8659 = vmatpush.msrb.mxu2 %v10205_v19  ;;  %8263 = vmatpush.msrb.mxu0 %v10067_v16  ;;  %v10277_v54 = vld [vmem:[%s18782_s15 + $0x20c8] sm:$0xff]  ;;  %v18004_v16 = vpop.f32.mrf.mxu1 }
 0xbbd   : > { %8651 = vmatpush.msrb.mxu3 %v10364_v53  ;;  %8611 = vmatpush.msrb.mxu1 %v10108_v25  ;;  %v10109_v36 = vld [vmem:[%s18782_s15 + $0x1b88] sm:$0xff]  ;;  %v10294_v25 = vld [vmem:[%s18782_s15 + $0x2150] sm:$0xff] }
 0xbbe   : > { %8660 = vmatpush.msrb.mxu2 %v10197_v40  ;;  %8264 = vmatpush.msrb.mxu0 %v10059_v13  ;;  %v10269_v59 = vld [vmem:[%s18782_s15 + $0x2088] sm:$0xff]  ;;  %v10252_v40 = vld [vmem:[%s18782_s15 + $0x2000] sm:$0xff] }
 0xbbf   : > { %8652 = vmatpush.msrb.mxu3 %v10356_v12  ;;  %8612 = vmatpush.msrb.mxu1 %v10100_v5  ;;  %v10101_v19 = vld [vmem:[%s18782_s15 + $0x1b48] sm:$0xff]  ;;  %v10286_v5 = vld [vmem:[%s18782_s15 + $0x2110] sm:$0xff] }
 0xbc0   : > { %8661 = vmatpush.msrb.mxu2 %v10189_v35  ;;  %8265 = vmatpush.msrb.mxu0 %v10051_v2  ;;  %v10261_v53 = vld [vmem:[%s18782_s15 + $0x2048] sm:$0xff]  ;;  %v10244_v35 = vld [vmem:[%s18782_s15 + $0x1fc0] sm:$0xff]  ;;  %v10374_v2 = vld [vmem:[%s18782_s15 + $0x23d0] sm:$0x3f] }
 0xbc1   : > { %8653 = vmatpush.msrb.mxu3 %v10348_v23  ;;  %8613 = vmatpush.msrb.mxu1 %v10092_v47  ;;  %v10093_v13 = vld [vmem:[%s18782_s15 + $0x1b08] sm:$0xff] }
 0xbc2   : > { %8618 = vmatpush.msra.mxu0 %v10340_v1  ;;  %8662 = vmatpush.msrb.mxu2 %v10181_v9  ;;  %v10253_v12 = vld [vmem:[%s18782_s15 + $0x2008] sm:$0xff]  ;;  %v10278_v1 = vld [vmem:[%s18782_s15 + $0x20d0] sm:$0xff]  ;;  %v10236_v9 = vld [vmem:[%s18782_s15 + $0x1f80] sm:$0xff] }
 0xbc3   : > { %8678 = vmatpush.msra.mxu3 %v10341_v0  ;;  %10091 = vmatmul.msk.f32.vlgmr.msrb.gmra.mxu0 %vm6447_vm15, %v16926_v8  ;;  %v10324_v8 = vld [vmem:[%s18782_s15 + $0x2240] sm:$0xff]  ;;  %v10245_v23 = vld [vmem:[%s18782_s15 + $0x1fc8] sm:$0xff]  ;;  %v18033_v47 = vpop.f32.mrf.mxu2  ;;  %v10366_v0 = vld [vmem:[%s18782_s15 + $0x2390] sm:$0xff] }
 0xbc4   : > { %8614 = vmatmul.f32.vlgmr.msrb.gmra.mxu1 %v17877_v21  ;;  %10381 = vmatmul.msk.f32.vlgmr.msrb.gmra.mxu3 %vm6447_vm15, %v17874_v4 }
 0xbc5   : > { %10382 = vmatpush.msk.msra.mxu1 %vm2926_vm4, %v10373_v15  ;;  %8619 = vmatpush.msra.mxu0 %v10332_v58  ;;  %v10237_v15 = vld [vmem:[%s18782_s15 + $0x1f88] sm:$0xff]  ;;  %v10270_v58 = vld [vmem:[%s18782_s15 + $0x2090] sm:$0xff] }
 0xbc6   : > { %8663 = vmatpush.msrb.mxu2 %v10173_v32  ;;  %8679 = vmatpush.msra.mxu3 %v10333_v14  ;;  %v10228_v32 = vld [vmem:[%s18782_s15 + $0x1f40] sm:$0xff]  ;;  %v10358_v14 = vld [vmem:[%s18782_s15 + $0x2350] sm:$0xff] }
 0xbc7   : > { %8711 = vmatpush.msra.mxu1 %v10365_v33  ;;  %8620 = vmatpush.msra.mxu0 %v10324_v8  ;;  %v10229_v33 = vld [vmem:[%s18782_s15 + $0x1f48] sm:$0xff]  ;;  %v18061_v8 = vpop.f32.mrf.mxu3 }
 0xbc8   : > { %8664 = vmatpush.msrb.mxu2 %v10165_v56  ;;  %8680 = vmatpush.msra.mxu3 %v10325_v29  ;;  %v10262_v56 = vld [vmem:[%s18782_s15 + $0x2050] sm:$0xff]  ;;  %v10220_v29 = vld [vmem:[%s18782_s15 + $0x1f00] sm:$0xff] }
 0xbc9   : > { %8712 = vmatpush.msra.mxu1 %v10357_v45  ;;  %8621 = vmatpush.msra.mxu0 %v10316_v52  ;;  %v18069_v45 = vpop.f32.mrf.mxu1  ;;  %v18071_v52 = vpop.f32.mrf.mxu0 }
 0xbca   : > { %8665 = vmatpush.msrb.mxu2 %v10157_v26  ;;  %8681 = vmatpush.msra.mxu3 %v10317_v37  ;;  %v10350_v26 = vld [vmem:[%s18782_s15 + $0x2310] sm:$0xff]  ;;  %v10221_v37 = vld [vmem:[%s18782_s15 + $0x1f08] sm:$0xff] }
 0xbcb   : > { %8713 = vmatpush.msra.mxu1 %v10349_v63  ;;  %8622 = vmatpush.msra.mxu0 %v10308_v10  ;;  %v10254_v63 = vld [vmem:[%s18782_s15 + $0x2010] sm:$0xff]  ;;  %v10343_v10 = vld [vmem:[%s18782_s15 + $0x22d8] sm:$0xff] }
 0xbcc   : > { %8666 = vmatpush.msrb.mxu2 %v10149_v44  ;;  %8682 = vmatpush.msra.mxu3 %v10309_v30  ;;  %v18086_v44 = vrot.slane %v17099_v6, 1  ;;  %v10214_v30 = vld [vmem:[%s18782_s15 + $0x1ed0] sm:$0xff]  ;;  %v10335_v6 = vld [vmem:[%s18782_s15 + $0x2298] sm:$0xff] }
 0xbcd   : > { %8738 = vmatpush.msrb.mxu1 %v10342_v62  ;;  %8623 = vmatpush.msra.mxu0 %v10300_v34  ;;  %v10215_v62 = vld [vmem:[%s18782_s15 + $0x1ed8] sm:$0xff]  ;;  %v10246_v34 = vld [vmem:[%s18782_s15 + $0x1fd0] sm:$0xff] }
 0xbce   : > { %10383 = vmatmul.msk.f32.vlgmr.msra.gmra.mxu1 %vm6447_vm15, %v17874_v4  ;;  %8667 = vmatpush.msrb.mxu2 %v10141_v24  ;;  %v7967_v24 = vpop.f32.mrf.mxu2 }
 0xbcf   : > { %8683 = vmatpush.msra.mxu3 %v10301_v57  ;;  %8739 = vmatpush.msrb.mxu1 %v10334_v46  ;;  %v10206_v57 = vld [vmem:[%s18782_s15 + $0x1e90] sm:$0xff]  ;;  %v10207_v46 = vld [vmem:[%s18782_s15 + $0x1e98] sm:$0xff] }
 0xbd0   : > { %8624 = vmatpush.msra.mxu0 %v10292_v17  ;;  %8668 = vmatpush.msrb.mxu2 %v10133_v61  ;;  %v10238_v17 = vld [vmem:[%s18782_s15 + $0x1f90] sm:$0xff]  ;;  %v18113_v61 = vpop.f32.mrf.mxu3 }
 0xbd1   : > { %8684 = vmatpush.msra.mxu3 %v10293_v27  ;;  %8740 = vmatpush.msrb.mxu1 %v10326_v48  ;;  %v10327_v27 = vld [vmem:[%s18782_s15 + $0x2258] sm:$0xff]  ;;  %v10198_v48 = vld [vmem:[%s18782_s15 + $0x1e50] sm:$0xff] }
 0xbd2   : > { %8625 = vmatpush.msra.mxu0 %v10284_v20  ;;  %8669 = vmatpush.msrb.mxu2 %v10125_v3  ;;  %v7947_v20 = vpop.f32.mrf.mxu1  ;;  %v10199_v3 = vld [vmem:[%s18782_s15 + $0x1e58] sm:$0xff] }
 0xbd3   : > { %8685 = vmatpush.msra.mxu3 %v10285_v38  ;;  %8741 = vmatpush.msrb.mxu1 %v10318_v28  ;;  %v10230_v38 = vld [vmem:[%s18782_s15 + $0x1f50] sm:$0xff] }
 0xbd4   : > { %8626 = vmatpush.msra.mxu0 %v10276_v41  ;;  %8670 = vmatpush.msrb.mxu2 %v10117_v31  ;;  %v10319_v41 = vld [vmem:[%s18782_s15 + $0x2218] sm:$0xff]  ;;  %v10190_v31 = vld [vmem:[%s18782_s15 + $0x1e10] sm:$0xff] }
 0xbd5   : > { %8686 = vmatpush.msra.mxu3 %v10277_v54  ;;  %8742 = vmatpush.msrb.mxu1 %v10310_v39  ;;  %v10191_v39 = vld [vmem:[%s18782_s15 + $0x1e18] sm:$0xff] }
 0xbd6   : > { %8627 = vmatpush.msra.mxu0 %v10268_v7  ;;  %8671 = vmatpush.msrb.mxu2 %v10109_v36  ;;  %v10222_v7 = vld [vmem:[%s18782_s15 + $0x1f10] sm:$0xff]  ;;  %v10311_v36 = vld [vmem:[%s18782_s15 + $0x21d8] sm:$0xff] }
 0xbd7   : > { %8687 = vmatpush.msra.mxu3 %v10269_v59  ;;  %8743 = vmatpush.msrb.mxu1 %v10302_v50  ;;  %v10182_v59 = vld [vmem:[%s18782_s15 + $0x1dd0] sm:$0xff] }
 0xbd8   : > { %8628 = vmatpush.msra.mxu0 %v10260_v43  ;;  %8672 = vmatpush.msrb.mxu2 %v10101_v19  ;;  %v10183_v43 = vld [vmem:[%s18782_s15 + $0x1dd8] sm:$0xff]  ;;  %v10216_v19 = vld [vmem:[%s18782_s15 + $0x1ee0] sm:$0xff] }
 0xbd9   : > { %8688 = vmatpush.msra.mxu3 %v10261_v53  ;;  %8744 = vmatpush.msrb.mxu1 %v10294_v25  ;;  %v10303_v53 = vld [vmem:[%s18782_s15 + $0x2198] sm:$0xff] }
 0xbda   : > { %8629 = vmatpush.msra.mxu0 %v10252_v40  ;;  %8673 = vmatpush.msrb.mxu2 %v10093_v13  ;;  %v10174_v13 = vld [vmem:[%s18782_s15 + $0x1d90] sm:$0xff] }
 0xbdb   : > { %8689 = vmatpush.msra.mxu3 %v10253_v12  ;;  %8745 = vmatpush.msrb.mxu1 %v10286_v5  ;;  %v10175_v12 = vld [vmem:[%s18782_s15 + $0x1d98] sm:$0xff]  ;;  %v10208_v5 = vld [vmem:[%s18782_s15 + $0x1ea0] sm:$0xff] }
 0xbdc   : > { %8674 = vmatmul.f32.vlgmr.msrb.gmra.mxu2 %v17877_v21  ;;  %8630 = vmatpush.msra.mxu0 %v10244_v35 }
 0xbdd   : > { %10384 = vmatpush.msk.msra.mxu2 %vm2926_vm4, %v10374_v2  ;;  %8690 = vmatpush.msra.mxu3 %v10245_v23  ;;  %v10166_v2 = vld [vmem:[%s18782_s15 + $0x1d50] sm:$0xff]  ;;  %v10167_v23 = vld [vmem:[%s18782_s15 + $0x1d58] sm:$0xff] }
 0xbde   : > { %8746 = vmatpush.msrb.mxu1 %v10278_v1  ;;  %8631 = vmatpush.msra.mxu0 %v10236_v9  ;;  %v10200_v9 = vld [vmem:[%s18782_s15 + $0x1e60] sm:$0xff] }
 0xbdf   : > { %8771 = vmatpush.msra.mxu2 %v10366_v0  ;;  %8691 = vmatpush.msra.mxu3 %v10237_v15  ;;  %v10287_v0 = vld [vmem:[%s18782_s15 + $0x2118] sm:$0xff]  ;;  %v10158_v15 = vld [vmem:[%s18782_s15 + $0x1d10] sm:$0xff] }
 0xbe0   : > { %8747 = vmatpush.msrb.mxu1 %v10270_v58  ;;  %8632 = vmatpush.msra.mxu0 %v10228_v32  ;;  %v10159_v58 = vld [vmem:[%s18782_s15 + $0x1d18] sm:$0xff] }
 0xbe1   : > { %8772 = vmatpush.msra.mxu2 %v10358_v14  ;;  %8692 = vmatpush.msra.mxu3 %v10229_v33  ;;  %v10192_v14 = vld [vmem:[%s18782_s15 + $0x1e20] sm:$0xff]  ;;  %v10279_v33 = vld [vmem:[%s18782_s15 + $0x20d8] sm:$0xff] }
 0xbe2   : > { %8748 = vmatpush.msrb.mxu1 %v10262_v56  ;;  %8633 = vmatpush.msra.mxu0 %v10220_v29  ;;  %v10150_v29 = vld [vmem:[%s18782_s15 + $0x1cd0] sm:$0xff] }
 0xbe3   : > { %8773 = vmatpush.msra.mxu2 %v10350_v26  ;;  %8693 = vmatpush.msra.mxu3 %v10221_v37  ;;  %v10151_v26 = vld [vmem:[%s18782_s15 + $0x1cd8] sm:$0xff]  ;;  %v10184_v37 = vld [vmem:[%s18782_s15 + $0x1de0] sm:$0xff] }
 0xbe4   : > { %8749 = vmatpush.msrb.mxu1 %v10254_v63  ;;  %8634 = vmatmul.f32.vlgmr.msra.gmra.mxu0 %v18086_v44  ;;  %v10271_v63 = vld [vmem:[%s18782_s15 + $0x2098] sm:$0xff] }
 0xbe5   : > { %8798 = vmatpush.msrb.mxu2 %v10343_v10  ;;  %8694 = vmatmul.f32.vlgmr.msra.gmra.mxu3 %v18086_v44 }
 0xbe6   : > { %8718 = vmatpush.msrb.mxu0 %v10214_v30  ;;  %10385 = vmatmul.msk.f32.vlgmr.msra.gmra.mxu2 %vm6447_vm15, %v17874_v4  ;;  %v10142_v30 = vld [vmem:[%s18782_s15 + $0x1c90] sm:$0xff] }
 0xbe7   : > { %8778 = vmatpush.msrb.mxu3 %v10215_v62  ;;  %8750 = vmatpush.msrb.mxu1 %v10246_v34  ;;  %v10143_v62 = vld [vmem:[%s18782_s15 + $0x1c98] sm:$0xff]  ;;  %v10176_v34 = vld [vmem:[%s18782_s15 + $0x1da0] sm:$0xff] }
 0xbe8   : > { %8799 = vmatpush.msrb.mxu2 %v10335_v6  ;;  %8719 = vmatpush.msrb.mxu0 %v10206_v57  ;;  %v7927_v28 = vpop.f32.mrf.mxu0  ;;  %v10135_v6 = vld [vmem:[%s18782_s15 + $0x1c58] sm:$0xff]  ;;  %v10168_v57 = vld [vmem:[%s18782_s15 + $0x1d60] sm:$0xff] }
 0xbe9   : > { %8779 = vmatpush.msrb.mxu3 %v10207_v46  ;;  %8751 = vmatpush.msrb.mxu1 %v10238_v17  ;;  %v7948_v54 = vadd.f32 %v7947_v20, %v7927_v28  ;;  %v10255_v46 = vld [vmem:[%s18782_s15 + $0x2018] sm:$0xff]  ;;  %v10126_v17 = vld [vmem:[%s18782_s15 + $0x1c10] sm:$0xff]  ;;  %v10152_v28 = vld [vmem:[%s18782_s15 + $0x1ce0] sm:$0xff] }
 0xbea   : > { %8800 = vmatpush.msrb.mxu2 %v10327_v27  ;;  %8720 = vmatpush.msrb.mxu0 %v10198_v48  ;;  %v10127_v27 = vld [vmem:[%s18782_s15 + $0x1c18] sm:$0xff]  ;;  %v10160_v48 = vld [vmem:[%s18782_s15 + $0x1d20] sm:$0xff] }
 0xbeb   : > { %8780 = vmatpush.msrb.mxu3 %v10199_v3  ;;  %8752 = vmatpush.msrb.mxu1 %v10230_v38  ;;  %v7968_v50 = vadd.f32 %v7967_v24, %v7948_v54  ;;  %v10134_v24 = vld [vmem:[%s18782_s15 + $0x1c50] sm:$0xff]  ;;  %v10247_v20 = vld [vmem:[%s18782_s15 + $0x1fd8] sm:$0xff] }
 0xbec   : > { %8801 = vmatpush.msrb.mxu2 %v10319_v41  ;;  %8721 = vmatpush.msrb.mxu0 %v10190_v31  ;;  %v10118_v3 = vld [vmem:[%s18782_s15 + $0x1bd0] sm:$0xff]  ;;  %v10119_v38 = vld [vmem:[%s18782_s15 + $0x1bd8] sm:$0xff] }
 0xbed   : > { %8781 = vmatpush.msrb.mxu3 %v10191_v39  ;;  %8753 = vmatpush.msrb.mxu1 %v10222_v7  ;;  %v18155_v25 = vadd.f32 %v7968_v50, %v17209_v60  ;;  %v8007_v40 = vpop.f32.mrf.mxu2  ;;  %v10295_v60 = vld [vmem:[%s18782_s15 + $0x2158] sm:$0xff]  ;;  %v10110_v31 = vld [vmem:[%s18782_s15 + $0x1b90] sm:$0xff]  ;;  %v10144_v39 = vld [vmem:[%s18782_s15 + $0x1ca0] sm:$0xff] }
 0xbee   : > { %8802 = vmatpush.msrb.mxu2 %v10311_v36  ;;  %8722 = vmatpush.msrb.mxu0 %v10182_v59  ;;  %v10239_v41 = vld [vmem:[%s18782_s15 + $0x1f98] sm:$0xff]  ;;  %v10102_v36 = vld [vmem:[%s18782_s15 + $0x1b50] sm:$0xff]  ;;  %v10136_v50 = vld [vmem:[%s18782_s15 + $0x1c60] sm:$0xff] }
 0xbef   : > { %8754 = vmatmul.f32.vlgmr.msrb.gmra.mxu1 %v18086_v44  ;;  %8782 = vmatpush.msrb.mxu3 %v10183_v43  ;;  %v7987_v35 = vpop.f32.mrf.mxu3  ;;  %v10111_v54 = vld [vmem:[%s18782_s15 + $0x1b98] sm:$0xff] }
 0xbf0   : > { %8838 = vmatpush.msra.mxu1 %v10216_v19  ;;  %8803 = vmatpush.msrb.mxu2 %v10303_v53  ;;  %v8008_v1 = vadd.f32 %v8007_v40, %v7987_v35  ;;  %v10231_v7 = vld [vmem:[%s18782_s15 + $0x1f58] sm:$0xff]  ;;  %v10094_v19 = vld [vmem:[%s18782_s15 + $0x1b10] sm:$0xff]  ;;  %v10128_v40 = vld [vmem:[%s18782_s15 + $0x1c20] sm:$0xff] }
 0xbf1   : > { %8723 = vmatpush.msrb.mxu0 %v10174_v13  ;;  %8783 = vmatpush.msrb.mxu3 %v10175_v12  ;;  %v10103_v59 = vld [vmem:[%s18782_s15 + $0x1b58] sm:$0xff]  ;;  %v10217_v13 = vld [vmem:[%s18782_s15 + $0x1ee8] sm:$0xff] }
 0xbf2   : > { %8839 = vmatpush.msra.mxu1 %v10208_v5  ;;  %8804 = vmatpush.msrb.mxu2 %v10295_v60  ;;  %v8027_v32 = vpop.f32.mrf.mxu0  ;;  %v10223_v43 = vld [vmem:[%s18782_s15 + $0x1f18] sm:$0xff]  ;;  %v10376_v5 = vld [vmem:[%s18782_s15 + $0x23e0] sm:$0x3f]  ;;  %v10209_v35 = vld [vmem:[%s18782_s15 + $0x1ea8] sm:$0xff] }
 0xbf3   : > { %8724 = vmatpush.msrb.mxu0 %v10166_v2  ;;  %8784 = vmatpush.msrb.mxu3 %v10167_v23  ;;  %v8028_v56 = vadd.f32 %v8027_v32, %v8008_v1  ;;  %v10095_v53 = vld [vmem:[%s18782_s15 + $0x1b18] sm:$0xff]  ;;  %v10120_v60 = vld [vmem:[%s18782_s15 + $0x1be0] sm:$0xff]  ;;  %v10193_v32 = vld [vmem:[%s18782_s15 + $0x1e28] sm:$0xff] }
 0xbf4   : > { %8840 = vmatpush.msra.mxu1 %v10200_v9  ;;  %8805 = vmatpush.msrb.mxu2 %v10287_v0  ;;  %v10375_v12 = vld [vmem:[%s18782_s15 + $0x23d8] sm:$0x3f]  ;;  %v10368_v23 = vld [vmem:[%s18782_s15 + $0x23a0] sm:$0xff]  ;;  %v10201_v9 = vld [vmem:[%s18782_s15 + $0x1e68] sm:$0xff] }
 0xbf5   : > { %8725 = vmatpush.msrb.mxu0 %v10158_v15  ;;  %8785 = vmatpush.msrb.mxu3 %v10159_v58  ;;  %v18207_v10 = vadd.f32 %v8028_v56, %v17255_v55  ;;  %v10263_v55 = vld [vmem:[%s18782_s15 + $0x2058] sm:$0xff]  ;;  %v10112_v1 = vld [vmem:[%s18782_s15 + $0x1ba0] sm:$0xff] }
 0xbf6   : > { %8841 = vmatpush.msra.mxu1 %v10192_v14  ;;  %8806 = vmatpush.msrb.mxu2 %v10279_v33  ;;  %v10367_v2 = vld [vmem:[%s18782_s15 + $0x2398] sm:$0xff]  ;;  %v10360_v15 = vld [vmem:[%s18782_s15 + $0x2360] sm:$0xff] }
 0xbf7   : > { %8726 = vmatpush.msrb.mxu0 %v10150_v29  ;;  %8786 = vmatpush.msrb.mxu3 %v10151_v26  ;;  %v10359_v0 = vld [vmem:[%s18782_s15 + $0x2358] sm:$0xff]  ;;  %v10104_v58 = vld [vmem:[%s18782_s15 + $0x1b60] sm:$0xff]  ;;  %v10185_v26 = vld [vmem:[%s18782_s15 + $0x1de8] sm:$0xff] }
 0xbf8   : > { %8842 = vmatpush.msra.mxu1 %v10184_v37  ;;  %8807 = vmatpush.msrb.mxu2 %v10271_v63  ;;  %v10351_v14 = vld [vmem:[%s18782_s15 + $0x2318] sm:$0xff]  ;;  %v10352_v33 = vld [vmem:[%s18782_s15 + $0x2320] sm:$0xff]  ;;  %v10345_v37 = vld [vmem:[%s18782_s15 + $0x22e8] sm:$0xff] }
 0xbf9   : > { %8727 = vmatpush.msrb.mxu0 %v10142_v30  ;;  %8787 = vmatpush.msrb.mxu3 %v10143_v62  ;;  %v10096_v56 = vld [vmem:[%s18782_s15 + $0x1b20] sm:$0xff]  ;;  %v10377_v63 = vld [vmem:[%s18782_s15 + $0x23e8] sm:$0x3f] }
 0xbfa   : > { %8843 = vmatpush.msra.mxu1 %v10176_v34  ;;  %8808 = vmatpush.msrb.mxu2 %v10263_v55  ;;  %v10344_v29 = vld [vmem:[%s18782_s15 + $0x22e0] sm:$0xff]  ;;  %v10177_v62 = vld [vmem:[%s18782_s15 + $0x1da8] sm:$0xff]  ;;  %v8047_v55 = vpop.f32.mrf.mxu1 }
 0xbfb   : > { %8728 = vmatpush.msrb.mxu0 %v10134_v24  ;;  %8788 = vmatpush.msrb.mxu3 %v10135_v6  ;;  %v10336_v30 = vld [vmem:[%s18782_s15 + $0x22a0] sm:$0xff]  ;;  %v10337_v34 = vld [vmem:[%s18782_s15 + $0x22a8] sm:$0xff]  ;;  %v8087_v24 = vpop.f32.mrf.mxu3 }
 0xbfc   : > { %8844 = vmatpush.msra.mxu1 %v10168_v57  ;;  %8809 = vmatpush.msrb.mxu2 %v10255_v46  ;;  %v10369_v6 = vld [vmem:[%s18782_s15 + $0x23a8] sm:$0xff]  ;;  %v10328_v57 = vld [vmem:[%s18782_s15 + $0x2260] sm:$0xff] }
 0xbfd   : > { %8729 = vmatpush.msrb.mxu0 %v10126_v17  ;;  %8789 = vmatpush.msrb.mxu3 %v10127_v27  ;;  %v10169_v46 = vld [vmem:[%s18782_s15 + $0x1d68] sm:$0xff] }
 0xbfe   : > { %8845 = vmatpush.msra.mxu1 %v10160_v48  ;;  %8810 = vmatpush.msrb.mxu2 %v10247_v20  ;;  %v10329_v17 = vld [vmem:[%s18782_s15 + $0x2268] sm:$0xff]  ;;  %v10320_v48 = vld [vmem:[%s18782_s15 + $0x2220] sm:$0xff] }
 0xbff   : > { %8730 = vmatpush.msrb.mxu0 %v10118_v3  ;;  %8790 = vmatpush.msrb.mxu3 %v10119_v38  ;;  %v10361_v27 = vld [vmem:[%s18782_s15 + $0x2368] sm:$0xff] }
 0xc00   : > { %8846 = vmatpush.msra.mxu1 %v10152_v28  ;;  %8811 = vmatpush.msrb.mxu2 %v10239_v41  ;;  %v10161_v3 = vld [vmem:[%s18782_s15 + $0x1d28] sm:$0xff] }
 0xc01   : > { %8731 = vmatpush.msrb.mxu0 %v10110_v31  ;;  %8791 = vmatpush.msrb.mxu3 %v10111_v54  ;;  %v10321_v38 = vld [vmem:[%s18782_s15 + $0x2228] sm:$0xff]  ;;  %v10312_v31 = vld [vmem:[%s18782_s15 + $0x21e0] sm:$0xff] }
 0xc02   : > { %8847 = vmatpush.msra.mxu1 %v10144_v39  ;;  %8812 = vmatpush.msrb.mxu2 %v10231_v7  ;;  %v10353_v41 = vld [vmem:[%s18782_s15 + $0x2328] sm:$0xff] }
 0xc03   : > { %8732 = vmatpush.msrb.mxu0 %v10102_v36  ;;  %8792 = vmatpush.msrb.mxu3 %v10103_v59  ;;  %v10153_v54 = vld [vmem:[%s18782_s15 + $0x1ce8] sm:$0xff]  ;;  %v10346_v36 = vld [vmem:[%s18782_s15 + $0x22f0] sm:$0xff]  ;;  %v10304_v59 = vld [vmem:[%s18782_s15 + $0x21a0] sm:$0xff] }
 0xc04   : > { %8848 = vmatpush.msra.mxu1 %v10136_v50  ;;  %8813 = vmatpush.msrb.mxu2 %v10223_v43  ;;  %v10313_v39 = vld [vmem:[%s18782_s15 + $0x21e8] sm:$0xff] }
 0xc05   : > { %8733 = vmatpush.msrb.mxu0 %v10094_v19  ;;  %8793 = vmatpush.msrb.mxu3 %v10095_v53  ;;  %v10145_v50 = vld [vmem:[%s18782_s15 + $0x1ca8] sm:$0xff]  ;;  %v10338_v53 = vld [vmem:[%s18782_s15 + $0x22b0] sm:$0xff] }
 0xc06   : > { %8814 = vmatmul.f32.vlgmr.msrb.gmra.mxu2 %v18086_v44  ;;  %8849 = vmatpush.msra.mxu1 %v10128_v40  ;;  %v10305_v19 = vld [vmem:[%s18782_s15 + $0x21a8] sm:$0xff] }
 0xc07   : > { %8898 = vmatpush.msra.mxu2 %v10217_v13  ;;  %8734 = vmatmul.f32.vlgmr.msrb.gmra.mxu0 %v17877_v21 }
 0xc08   : > { %8794 = vmatmul.f32.vlgmr.msrb.gmra.mxu3 %v17877_v21  ;;  %10386 = vmatpush.msk.msra.mxu0 %vm2926_vm4, %v10375_v12  ;;  %v10296_v12 = vld [vmem:[%s18782_s15 + $0x2160] sm:$0xff] }
 0xc09   : > { %10388 = vmatpush.msk.msra.mxu3 %vm2926_vm4, %v10376_v5  ;;  %8850 = vmatpush.msra.mxu1 %v10120_v60  ;;  %v8147_v60 = vpop.f32.mrf.mxu1 }
 0xc0a   : > { %8899 = vmatpush.msra.mxu2 %v10209_v35  ;;  %8831 = vmatpush.msra.mxu0 %v10367_v2  ;;  %v10297_v35 = vld [vmem:[%s18782_s15 + $0x2168] sm:$0xff]  ;;  %v10330_v2 = vld [vmem:[%s18782_s15 + $0x2270] sm:$0xff] }
 0xc0b   : > { %8891 = vmatpush.msra.mxu3 %v10368_v23  ;;  %8851 = vmatpush.msra.mxu1 %v10112_v1  ;;  %v10288_v23 = vld [vmem:[%s18782_s15 + $0x2120] sm:$0xff]  ;;  %v10129_v1 = vld [vmem:[%s18782_s15 + $0x1c28] sm:$0xff] }
 0xc0c   : > { %8900 = vmatpush.msra.mxu2 %v10201_v9  ;;  %8832 = vmatpush.msra.mxu0 %v10359_v0  ;;  %v10289_v0 = vld [vmem:[%s18782_s15 + $0x2128] sm:$0xff] }
 0xc0d   : > { %8892 = vmatpush.msra.mxu3 %v10360_v15  ;;  %8852 = vmatpush.msra.mxu1 %v10104_v58  ;;  %v10322_v15 = vld [vmem:[%s18782_s15 + $0x2230] sm:$0xff]  ;;  %v10280_v58 = vld [vmem:[%s18782_s15 + $0x20e0] sm:$0xff] }
 0xc0e   : > { %8901 = vmatpush.msra.mxu2 %v10193_v32  ;;  %8833 = vmatpush.msra.mxu0 %v10351_v14  ;;  %v10121_v32 = vld [vmem:[%s18782_s15 + $0x1be8] sm:$0xff] }
 0xc0f   : > { %8893 = vmatpush.msra.mxu3 %v10352_v33  ;;  %8853 = vmatpush.msra.mxu1 %v10096_v56  ;;  %v10281_v33 = vld [vmem:[%s18782_s15 + $0x20e8] sm:$0xff]  ;;  %v10314_v56 = vld [vmem:[%s18782_s15 + $0x21f0] sm:$0xff] }
 0xc10   : > { %8858 = vmatpush.msrb.mxu0 %v10344_v29  ;;  %8902 = vmatpush.msra.mxu2 %v10185_v26  ;;  %v10272_v29 = vld [vmem:[%s18782_s15 + $0x20a0] sm:$0xff]  ;;  %v10273_v26 = vld [vmem:[%s18782_s15 + $0x20a8] sm:$0xff] }
 0xc11   : > { %8918 = vmatpush.msrb.mxu3 %v10345_v37  ;;  %10387 = vmatmul.msk.f32.vlgmr.msra.gmra.mxu0 %vm6447_vm15, %v17874_v4  ;;  %v8107_v40 = vpop.f32.mrf.mxu2  ;;  %v10306_v37 = vld [vmem:[%s18782_s15 + $0x21b0] sm:$0xff] }
 0xc12   : > { %8854 = vmatmul.f32.vlgmr.msra.gmra.mxu1 %v17877_v21  ;;  %10389 = vmatmul.msk.f32.vlgmr.msra.gmra.mxu3 %vm6447_vm15, %v17874_v4 }
 0xc13   : > { %10390 = vmatpush.msk.msrb.mxu1 %vm2926_vm4, %v10377_v63  ;;  %8859 = vmatpush.msrb.mxu0 %v10336_v30  ;;  %v8067_v20 = vpop.f32.mrf.mxu0  ;;  %v10264_v63 = vld [vmem:[%s18782_s15 + $0x2060] sm:$0xff]  ;;  %v10105_v30 = vld [vmem:[%s18782_s15 + $0x1b68] sm:$0xff] }
 0xc14   : > { %8903 = vmatpush.msra.mxu2 %v10177_v62  ;;  %8919 = vmatpush.msrb.mxu3 %v10337_v34  ;;  %v8068_v28 = vadd.f32 %v8067_v20, %v8047_v55  ;;  %v10265_v62 = vld [vmem:[%s18782_s15 + $0x2068] sm:$0xff]  ;;  %v10298_v34 = vld [vmem:[%s18782_s15 + $0x2170] sm:$0xff]  ;;  %v10256_v55 = vld [vmem:[%s18782_s15 + $0x2020] sm:$0xff] }
 0xc15   : > { %8951 = vmatpush.msrb.mxu1 %v10369_v6  ;;  %8860 = vmatpush.msrb.mxu0 %v10328_v57  ;;  %v10257_v6 = vld [vmem:[%s18782_s15 + $0x2028] sm:$0xff]  ;;  %v10290_v57 = vld [vmem:[%s18782_s15 + $0x2130] sm:$0xff]  ;;  %v10240_v20 = vld [vmem:[%s18782_s15 + $0x1fa0] sm:$0xff] }
 0xc16   : > { %8904 = vmatpush.msra.mxu2 %v10169_v46  ;;  %8920 = vmatpush.msrb.mxu3 %v10329_v17  ;;  %v8088_v7 = vadd.f32 %v8087_v24, %v8068_v28  ;;  %v10097_v24 = vld [vmem:[%s18782_s15 + $0x1b28] sm:$0xff]  ;;  %v10248_v46 = vld [vmem:[%s18782_s15 + $0x1fe0] sm:$0xff]  ;;  %v10378_v17 = vld [vmem:[%s18782_s15 + $0x23f0] sm:$0x3f] }
 0xc17   : > { %8952 = vmatpush.msrb.mxu1 %v10361_v27  ;;  %8861 = vmatpush.msrb.mxu0 %v10320_v48  ;;  %v10249_v27 = vld [vmem:[%s18782_s15 + $0x1fe8] sm:$0xff]  ;;  %v10282_v48 = vld [vmem:[%s18782_s15 + $0x20f0] sm:$0xff] }
 0xc18   : > { %8905 = vmatpush.msra.mxu2 %v10161_v3  ;;  %8921 = vmatpush.msrb.mxu3 %v10321_v38  ;;  %v18416_v43 = vadd.f32 %v8088_v7, %v17465_v22  ;;  %v10137_v22 = vld [vmem:[%s18782_s15 + $0x1c68] sm:$0xff]  ;;  %v10370_v3 = vld [vmem:[%s18782_s15 + $0x23b0] sm:$0xff]  ;;  %v10224_v7 = vld [vmem:[%s18782_s15 + $0x1f20] sm:$0xff] }
 0xc19   : > { %8953 = vmatpush.msrb.mxu1 %v10353_v41  ;;  %8862 = vmatpush.msrb.mxu0 %v10312_v31  ;;  %v10241_v38 = vld [vmem:[%s18782_s15 + $0x1fa8] sm:$0xff]  ;;  %v10274_v28 = vld [vmem:[%s18782_s15 + $0x20b0] sm:$0xff]  ;;  %v10232_v41 = vld [vmem:[%s18782_s15 + $0x1f60] sm:$0xff] }
 0xc1a   : > { %8906 = vmatpush.msra.mxu2 %v10153_v54  ;;  %8922 = vmatpush.msrb.mxu3 %v10313_v39  ;;  %v8127_v13 = vpop.f32.mrf.mxu3  ;;  %v10362_v31 = vld [vmem:[%s18782_s15 + $0x2370] sm:$0xff]  ;;  %v10233_v54 = vld [vmem:[%s18782_s15 + $0x1f68] sm:$0xff] }
 0xc1b   : > { %8978 = vmatpush.msra.mxu1 %v10346_v36  ;;  %8863 = vmatpush.msrb.mxu0 %v10304_v59  ;;  %v8128_v5 = vadd.f32 %v8127_v13, %v8107_v40  ;;  %v10266_v39 = vld [vmem:[%s18782_s15 + $0x2070] sm:$0xff]  ;;  %v10225_v59 = vld [vmem:[%s18782_s15 + $0x1f28] sm:$0xff]  ;;  %v10219_v40 = vld [vmem:[%s18782_s15 + $0x1ef8] sm:$0xff] }
 0xc1c   : > { %10391 = vmatmul.msk.f32.vlgmr.msrb.gmra.mxu1 %vm6447_vm15, %v17874_v4  ;;  %8907 = vmatpush.msra.mxu2 %v10145_v50  ;;  %v10354_v36 = vld [vmem:[%s18782_s15 + $0x2330] sm:$0xff] }
 0xc1d   : > { %8923 = vmatpush.msrb.mxu3 %v10305_v19  ;;  %8979 = vmatpush.msra.mxu1 %v10338_v53  ;;  %v8148_v9 = vadd.f32 %v8147_v60, %v8128_v5  ;;  %v10258_v50 = vld [vmem:[%s18782_s15 + $0x2030] sm:$0xff]  ;;  %v10347_v19 = vld [vmem:[%s18782_s15 + $0x22f8] sm:$0xff] }
 0xc1e   : > { %8864 = vmatpush.msrb.mxu0 %v10296_v12  ;;  %8908 = vmatpush.msra.mxu2 %v10137_v22  ;;  %v10218_v53 = vld [vmem:[%s18782_s15 + $0x1ef0] sm:$0xff]  ;;  %v8207_v12 = vpop.f32.mrf.mxu2  ;;  %v10339_v22 = vld [vmem:[%s18782_s15 + $0x22b8] sm:$0xff] }
 0xc1f   : > { %8924 = vmatpush.msrb.mxu3 %v10297_v35  ;;  %8980 = vmatpush.msra.mxu1 %v10330_v2  ;;  %v18457_v14 = vadd.f32 %v8148_v9, %v17502_v42  ;;  %v10113_v42 = vld [vmem:[%s18782_s15 + $0x1ba8] sm:$0xff]  ;;  %v10250_v13 = vld [vmem:[%s18782_s15 + $0x1ff0] sm:$0xff]  ;;  %v10211_v60 = vld [vmem:[%s18782_s15 + $0x1eb8] sm:$0xff] }
 0xc20   : > { %8865 = vmatpush.msrb.mxu0 %v10288_v23  ;;  %8909 = vmatpush.msra.mxu2 %v10129_v1  ;;  %v10210_v5 = vld [vmem:[%s18782_s15 + $0x1eb0] sm:$0xff]  ;;  %v10331_v2 = vld [vmem:[%s18782_s15 + $0x2278] sm:$0xff]  ;;  %v8187_v1 = vpop.f32.mrf.mxu1 }
 0xc21   : > { %8925 = vmatpush.msrb.mxu3 %v10289_v0  ;;  %8981 = vmatpush.msra.mxu1 %v10322_v15  ;;  %v10242_v35 = vld [vmem:[%s18782_s15 + $0x1fb0] sm:$0xff]  ;;  %v10203_v9 = vld [vmem:[%s18782_s15 + $0x1e78] sm:$0xff] }
 0xc22   : > { %8866 = vmatpush.msrb.mxu0 %v10280_v58  ;;  %8910 = vmatpush.msra.mxu2 %v10121_v32  ;;  %v10202_v23 = vld [vmem:[%s18782_s15 + $0x1e70] sm:$0xff]  ;;  %v10323_v58 = vld [vmem:[%s18782_s15 + $0x2238] sm:$0xff] }
 0xc23   : > { %8926 = vmatpush.msrb.mxu3 %v10281_v33  ;;  %8982 = vmatpush.msra.mxu1 %v10314_v56  ;;  %v10234_v0 = vld [vmem:[%s18782_s15 + $0x1f70] sm:$0xff]  ;;  %v10195_v56 = vld [vmem:[%s18782_s15 + $0x1e38] sm:$0xff] }
 0xc24   : > { %8867 = vmatpush.msrb.mxu0 %v10272_v29  ;;  %8911 = vmatpush.msra.mxu2 %v10113_v42  ;;  %v10194_v32 = vld [vmem:[%s18782_s15 + $0x1e30] sm:$0xff]  ;;  %v10315_v42 = vld [vmem:[%s18782_s15 + $0x21f8] sm:$0xff] }
 0xc25   : > { %8927 = vmatpush.msrb.mxu3 %v10273_v26  ;;  %8983 = vmatpush.msra.mxu1 %v10306_v37  ;;  %v10226_v29 = vld [vmem:[%s18782_s15 + $0x1f30] sm:$0xff] }
 0xc26   : > { %8868 = vmatpush.msrb.mxu0 %v10264_v63  ;;  %8912 = vmatpush.msra.mxu2 %v10105_v30  ;;  %v10186_v26 = vld [vmem:[%s18782_s15 + $0x1df0] sm:$0xff]  ;;  %v10187_v63 = vld [vmem:[%s18782_s15 + $0x1df8] sm:$0xff] }
 0xc27   : > { %8928 = vmatpush.msrb.mxu3 %v10265_v62  ;;  %8984 = vmatpush.msra.mxu1 %v10298_v34  ;;  %v10307_v30 = vld [vmem:[%s18782_s15 + $0x21b8] sm:$0xff]  ;;  %v10178_v62 = vld [vmem:[%s18782_s15 + $0x1db0] sm:$0xff] }
 0xc28   : > { %8869 = vmatpush.msrb.mxu0 %v10256_v55  ;;  %8913 = vmatpush.msra.mxu2 %v10097_v24  ;;  %v10179_v24 = vld [vmem:[%s18782_s15 + $0x1db8] sm:$0xff] }
 0xc29   : > { %8929 = vmatpush.msrb.mxu3 %v10257_v6  ;;  %8985 = vmatpush.msra.mxu1 %v10290_v57  ;;  %v10299_v6 = vld [vmem:[%s18782_s15 + $0x2178] sm:$0xff]  ;;  %v10170_v57 = vld [vmem:[%s18782_s15 + $0x1d70] sm:$0xff] }
 0xc2a   : > { %8914 = vmatmul.f32.vlgmr.msra.gmra.mxu2 %v17877_v21  ;;  %8870 = vmatpush.msrb.mxu0 %v10248_v46  ;;  %v10171_v46 = vld [vmem:[%s18782_s15 + $0x1d78] sm:$0xff] }
 0xc2b   : > { %10392 = vmatpush.msk.msrb.mxu2 %vm2926_vm4, %v10378_v17  ;;  %8930 = vmatpush.msrb.mxu3 %v10249_v27  ;;  %v10291_v27 = vld [vmem:[%s18782_s15 + $0x2138] sm:$0xff] }
 0xc2c   : > { %8986 = vmatpush.msra.mxu1 %v10282_v48  ;;  %8871 = vmatpush.msrb.mxu0 %v10240_v20  ;;  %v10162_v48 = vld [vmem:[%s18782_s15 + $0x1d30] sm:$0xff]  ;;  %v10163_v20 = vld [vmem:[%s18782_s15 + $0x1d38] sm:$0xff] }
 0xc2d   : > { %9011 = vmatpush.msrb.mxu2 %v10370_v3  ;;  %8931 = vmatpush.msrb.mxu3 %v10241_v38  ;;  %v10283_v38 = vld [vmem:[%s18782_s15 + $0x20f8] sm:$0xff] }
 0xc2e   : > { %8987 = vmatpush.msra.mxu1 %v10274_v28  ;;  %8872 = vmatpush.msrb.mxu0 %v10232_v41  ;;  %v10154_v28 = vld [vmem:[%s18782_s15 + $0x1cf0] sm:$0xff] }
 0xc2f   : > { %9012 = vmatpush.msrb.mxu2 %v10362_v31  ;;  %8932 = vmatpush.msrb.mxu3 %v10233_v54  ;;  %v10155_v31 = vld [vmem:[%s18782_s15 + $0x1cf8] sm:$0xff] }
 0xc30   : > { %8988 = vmatpush.msra.mxu1 %v10266_v39  ;;  %8873 = vmatpush.msrb.mxu0 %v10224_v7  ;;  %v10275_v54 = vld [vmem:[%s18782_s15 + $0x20b8] sm:$0xff]  ;;  %v10146_v39 = vld [vmem:[%s18782_s15 + $0x1cb0] sm:$0xff] }
 0xc31   : > { %9013 = vmatpush.msrb.mxu2 %v10354_v36  ;;  %8933 = vmatpush.msrb.mxu3 %v10225_v59  ;;  %v10147_v36 = vld [vmem:[%s18782_s15 + $0x1cb8] sm:$0xff] }
 0xc32   : > { %8989 = vmatpush.msra.mxu1 %v10258_v50  ;;  %8874 = vmatmul.f32.vlgmr.msrb.gmra.mxu0 %v18086_v44  ;;  %v10267_v59 = vld [vmem:[%s18782_s15 + $0x2078] sm:$0xff]  ;;  %v10138_v50 = vld [vmem:[%s18782_s15 + $0x1c70] sm:$0xff] }
 0xc33   : > { %9038 = vmatpush.msra.mxu2 %v10347_v19  ;;  %8934 = vmatmul.f32.vlgmr.msrb.gmra.mxu3 %v18086_v44  ;;  %v10259_v19 = vld [vmem:[%s18782_s15 + $0x2038] sm:$0xff] }
 0xc34   : > { %8958 = vmatpush.msra.mxu0 %v10218_v53  ;;  %10393 = vmatmul.msk.f32.vlgmr.msrb.gmra.mxu2 %vm6447_vm15, %v17874_v4  ;;  %v10130_v53 = vld [vmem:[%s18782_s15 + $0x1c30] sm:$0xff] }
 0xc35   : > { %9018 = vmatpush.msra.mxu3 %v10219_v40  ;;  %8990 = vmatpush.msra.mxu1 %v10250_v13  ;;  %v10131_v40 = vld [vmem:[%s18782_s15 + $0x1c38] sm:$0xff] }
 0xc36   : > { %9039 = vmatpush.msra.mxu2 %v10339_v22  ;;  %8959 = vmatpush.msra.mxu0 %v10210_v5  ;;  %v8167_v15 = vpop.f32.mrf.mxu0  ;;  %v10251_v13 = vld [vmem:[%s18782_s15 + $0x1ff8] sm:$0xff] }
 0xc37   : > { %9019 = vmatpush.msra.mxu3 %v10211_v60  ;;  %8991 = vmatpush.msra.mxu1 %v10242_v35  ;;  %v8188_v33 = vadd.f32 %v8187_v1, %v8167_v15  ;;  %v10123_v22 = vld [vmem:[%s18782_s15 + $0x1bf8] sm:$0xff]  ;;  %v10114_v60 = vld [vmem:[%s18782_s15 + $0x1bb0] sm:$0xff] }
 0xc38   : > { %9040 = vmatpush.msra.mxu2 %v10331_v2  ;;  %8960 = vmatpush.msra.mxu0 %v10202_v23  ;;  %v10243_v5 = vld [vmem:[%s18782_s15 + $0x1fb8] sm:$0xff]  ;;  %v10106_v23 = vld [vmem:[%s18782_s15 + $0x1b70] sm:$0xff] }
 0xc39   : > { %9020 = vmatpush.msra.mxu3 %v10203_v9  ;;  %8992 = vmatpush.msra.mxu1 %v10234_v0  ;;  %v8208_v37 = vadd.f32 %v8207_v12, %v8188_v33  ;;  %v10122_v12 = vld [vmem:[%s18782_s15 + $0x1bf0] sm:$0xff]  ;;  %v10115_v35 = vld [vmem:[%s18782_s15 + $0x1bb8] sm:$0xff] }
 0xc3a   : > { %9041 = vmatpush.msra.mxu2 %v10323_v58  ;;  %8961 = vmatpush.msra.mxu0 %v10194_v32  ;;  %v10235_v2 = vld [vmem:[%s18782_s15 + $0x1f78] sm:$0xff]  ;;  %v10098_v0 = vld [vmem:[%s18782_s15 + $0x1b30] sm:$0xff] }
 0xc3b   : > { %9021 = vmatpush.msra.mxu3 %v10195_v56  ;;  %8993 = vmatpush.msra.mxu1 %v10226_v29  ;;  %v18619_v34 = vadd.f32 %v8208_v37, %v17676_v18  ;;  %v8247_v55 = vpop.f32.mrf.mxu2  ;;  %v10107_v1 = vld [vmem:[%s18782_s15 + $0x1b78] sm:$0xff]  ;;  %v7888_v29 = vadd.f32 %v18113_v61, %v18033_v47 }
 0xc3c   : > { %9042 = vmatpush.msra.mxu2 %v10315_v42  ;;  %8962 = vmatpush.msra.mxu0 %v10186_v26  ;;  %v10227_v9 = vld [vmem:[%s18782_s15 + $0x1f38] sm:$0xff]  ;;  %v7828_v26 = vadd.f32 %v18071_v52, %v18004_v16 }
 0xc3d   : > { %8994 = vmatmul.f32.vlgmr.msra.gmra.mxu1 %v18086_v44  ;;  %9022 = vmatpush.msra.mxu3 %v10187_v63  ;;  %v8227_v18 = vpop.f32.mrf.mxu3  ;;  %v10099_v15 = vld [vmem:[%s18782_s15 + $0x1b38] sm:$0xff]  ;;  %v7908_v37 = vadd.f32 %v18069_v45, %v7888_v29 }
 0xc3e   : > { %9043 = vmatpush.msra.mxu2 %v10307_v30  ;;  %8963 = vmatpush.msra.mxu0 %v10178_v62  ;;  %v8248_v17 = vadd.f32 %v8247_v55, %v8227_v18  ;;  %v10379_v58 = vld [vmem:[%s18782_s15 + $0x23f8] sm:$0x3f]  ;;  %v7848_v55 = vadd.f32 %v18061_v8, %v7828_v26 }
 0xc3f   : > { %9023 = vmatpush.msra.mxu3 %v10179_v24  ;;  %v10371_v32 = vld [vmem:[%s18782_s15 + $0x23b8] sm:$0xff] }
 0xc40   : > { %9044 = vmatpush.msra.mxu2 %v10299_v6  ;;  %8964 = vmatpush.msra.mxu0 %v10170_v57  ;;  %v8267_v3 = vpop.f32.mrf.mxu0  ;;  %v10363_v33 = vld [vmem:[%s18782_s15 + $0x2378] sm:$0xff]  ;;  %v8270_v47 = vadd.f32 %v7848_v55, %v16983_v11 }
 0xc41   : > { %9024 = vmatpush.msra.mxu3 %v10171_v46  ;;  %v8268_v41 = vadd.f32 %v8267_v3, %v8248_v17  ;;  %v10355_v56 = vld [vmem:[%s18782_s15 + $0x2338] sm:$0xff] }
 0xc42   : > { %9045 = vmatpush.msra.mxu2 %v10291_v27  ;;  %8965 = vmatpush.msra.mxu0 %v10162_v48 }
 0xc43   : > { %9025 = vmatpush.msra.mxu3 %v10163_v20  ;;  %v18659_v7 = vadd.f32 %v8268_v41, %v17722_v51  ;;  %v10139_v51 = vld [vmem:[%s18782_s15 + $0x1c78] sm:$0xff] }
 0xc44   : > { %9046 = vmatpush.msra.mxu2 %v10283_v38  ;;  %8966 = vmatpush.msra.mxu0 %v10154_v28 }
 0xc45   : > { %9026 = vmatpush.msra.mxu3 %v10155_v31 }
 0xc46   : > { %9047 = vmatpush.msra.mxu2 %v10275_v54  ;;  %8967 = vmatpush.msra.mxu0 %v10146_v39 }
 0xc47   : > { %9027 = vmatpush.msra.mxu3 %v10147_v36 }
 0xc48   : > { %9048 = vmatpush.msra.mxu2 %v10267_v59  ;;  %8968 = vmatpush.msra.mxu0 %v10138_v50 }
 0xc49   : > { %9028 = vmatpush.msra.mxu3 %v10139_v51 }
 0xc4a   : > { %9049 = vmatpush.msra.mxu2 %v10259_v19  ;;  %8969 = vmatpush.msra.mxu0 %v10130_v53 }
 0xc4b   : > { %9029 = vmatpush.msra.mxu3 %v10131_v40 }
 0xc4c   : > { %9050 = vmatpush.msra.mxu2 %v10251_v13  ;;  %8970 = vmatpush.msra.mxu0 %v10122_v12 }
 0xc4d   : > { %9030 = vmatpush.msra.mxu3 %v10123_v22 }
 0xc4e   : > { %9051 = vmatpush.msra.mxu2 %v10243_v5  ;;  %8971 = vmatpush.msra.mxu0 %v10114_v60 }
 0xc4f   : > { %9031 = vmatpush.msra.mxu3 %v10115_v35 }
 0xc50   : > { %9052 = vmatpush.msra.mxu2 %v10235_v2  ;;  %8972 = vmatpush.msra.mxu0 %v10106_v23 }
 0xc51   : > { %9032 = vmatpush.msra.mxu3 %v10107_v1 }
 0xc52   : > { %9053 = vmatpush.msra.mxu2 %v10227_v9  ;;  %8973 = vmatpush.msra.mxu0 %v10098_v0 }
 0xc53   : > { %9033 = vmatpush.msra.mxu3 %v10099_v15  ;;  %9054 = vmatmul.f32.vlgmr.msra.gmra.mxu2 %v18086_v44  ;;  %v8655_v44 = vpop.f32.mrf.mxu3 }
 0xc54   : > { %8974 = vmatmul.f32.vlgmr.msra.gmra.mxu0 %v17877_v21  ;;  %9034 = vmatmul.f32.vlgmr.msra.gmra.mxu3 %v17877_v21  ;;  %v8615_v21 = vpop.f32.mrf.mxu1 }
 0xc55   : > { %10394 = vmatpush.msk.msrb.mxu0 %vm2926_vm4, %v10379_v58 }
 0xc57   : > { %9071 = vmatpush.msrb.mxu0 %v10371_v32 }
 0xc59   : > { %9072 = vmatpush.msrb.mxu0 %v10363_v33 }
 0xc5b   : > { %9073 = vmatpush.msrb.mxu0 %v10355_v56 }
 0xc5c   : > { %10395 = vmatmul.msk.f32.vlgmr.msrb.gmra.mxu0 %vm6447_vm15, %v17874_v4  ;;  %v8715_v6 = vpop.f32.mrf.mxu1  ;;  %v8271_v4 = vadd.f32 %v7908_v37, %v17023_v49 }
 0xc5f   : > { %v8675_v30 = vpop.f32.mrf.mxu2 }
 0xc61   : > { %v8635_v42 = vpop.f32.mrf.mxu0 }
 0xc62   : > { %v8636_v63 = vadd.f32 %v8635_v42, %v8615_v21 }
 0xc64   : > { %v8656_v57 = vadd.f32 %v8655_v44, %v8636_v63 }
 0xc66   : > { %v9078_v16 = vadd.f32 %v8656_v57, %v8270_v47 }
 0xc68   : > { %v8695_v62 = vpop.f32.mrf.mxu3 }
 0xc69   : > { %v8696_v24 = vadd.f32 %v8695_v62, %v8675_v30  ;;  %v8775_v52 = vpop.f32.mrf.mxu2 }
 0xc6b   : > { %v8716_v18 = vadd.f32 %v8715_v6, %v8696_v24 }
 0xc6c   : > { %v8755_v17 = vpop.f32.mrf.mxu1 }
 0xc6d   : > { %v9079_v61 = vadd.f32 %v8716_v18, %v8271_v4 }
 0xc6f   : > { %v9094_v45 = vrot.slane %v9079_v61, 4 }
 0xc71   : > { %v9098_v8 = vsel %vm525_vm0, %v9078_v16, %v9094_v45 }
 0xc72   : > { %9106 = vst [vmem:[%s18748_s0] sm:$0x77] %v9098_v8 }
 0xc84   : > { %v8735_v49 = vpop.f32.mrf.mxu0 }
 0xc85   : > { %v8756_v27 = vadd.f32 %v8755_v17, %v8735_v49 }
 0xc87   : > { %v8776_v3 = vadd.f32 %v8775_v52, %v8756_v27 }
 0xc89   : > { %v8815_v46 = vpop.f32.mrf.mxu2  ;;  %v9080_v41 = vadd.f32 %v8776_v3, %v18155_v25 }
 0xc8b   : > { %v8795_v48 = vpop.f32.mrf.mxu3 }
 0xc8c   : > { %v8816_v11 = vadd.f32 %v8815_v46, %v8795_v48 }
 0xc8e   : > { %v8835_v20 = vpop.f32.mrf.mxu0 }
 0xc8f   : > { %v8836_v38 = vadd.f32 %v8835_v20, %v8816_v11  ;;  %v8855_v39 = vpop.f32.mrf.mxu1 }
 0xc91   : > { %v9081_v28 = vadd.f32 %v8836_v38, %v18207_v10 }
 0xc93   : > { %v9095_v31 = vrot.slane %v9081_v28, 4 }
 0xc95   : > { %v9099_v54 = vsel %vm525_vm0, %v9080_v41, %v9095_v31  ;;  %v8895_v36 = vpop.f32.mrf.mxu3 }
 0xc96   : > { %9107 = vst [vmem:[%s18748_s0 + $0x8] sm:$0x77] %v9099_v54 }
 0xc99   : > { %v8955_v40 = vpop.f32.mrf.mxu1 }
 0xcad   : > { %v8915_v51 = vpop.f32.mrf.mxu2 }
 0xcaf   : > { %v8875_v59 = vpop.f32.mrf.mxu0 }
 0xcb0   : > { %v8876_v50 = vadd.f32 %v8875_v59, %v8855_v39 }
 0xcb2   : > { %v8896_v13 = vadd.f32 %v8895_v36, %v8876_v50 }
 0xcb4   : > { %v9082_v10 = vadd.f32 %v8896_v13, %v18416_v43 }
 0xcb6   : > { %v8935_v19 = vpop.f32.mrf.mxu3 }
 0xcb7   : > { %v8936_v53 = vadd.f32 %v8935_v19, %v8915_v51  ;;  %v9015_v60 = vpop.f32.mrf.mxu2 }
 0xcb9   : > { %v8956_v12 = vadd.f32 %v8955_v40, %v8936_v53 }
 0xcba   : > { %v8995_v2 = vpop.f32.mrf.mxu1 }
 0xcbb   : > { %v9083_v22 = vadd.f32 %v8956_v12, %v18457_v14 }
 0xcbd   : > { %v9096_v25 = vrot.slane %v9083_v22, 4 }
 0xcbf   : > { %v9100_v5 = vsel %vm525_vm0, %v9082_v10, %v9096_v25 }
 0xcc0   : > { %9108 = vst [vmem:[%s18748_s0 + $0x10] sm:$0x77] %v9100_v5 }
 0xcd1   : > { %v8975_v35 = vpop.f32.mrf.mxu0 }
 0xcd2   : > { %v8996_v23 = vadd.f32 %v8995_v2, %v8975_v35 }
 0xcd4   : > { %v9016_v58 = vadd.f32 %v9015_v60, %v8996_v23 }
 0xcd6   : > { %v9055_v1 = vpop.f32.mrf.mxu2  ;;  %v9084_v14 = vadd.f32 %v9016_v58, %v18619_v34 }
 0xcd7   : > { %v9035_v9 = vpop.f32.mrf.mxu3 }
 0xcd8   : > { %v9056_v0 = vadd.f32 %v9055_v1, %v9035_v9 }
 0xcd9   : > { %v9075_v15 = vpop.f32.mrf.mxu0 }
 0xcda   : > { %v9076_v32 = vadd.f32 %v9075_v15, %v9056_v0 }
 0xcdc   : > { %v9085_v33 = vadd.f32 %v9076_v32, %v18659_v7 }
 0xcde   : > { %v9097_v43 = vrot.slane %v9085_v33, 4 }
 0xce0   : > { %v9101_v56 = vsel %vm525_vm0, %v9084_v14, %v9097_v43 }
 0xce1   : > { %9109 = vst [vmem:[%s18748_s0 + $0x18] sm:$0x77] %v9101_v56 }
 0xce2 PF: > { %s26_s21 = sadd.s32 1, %s10688_s21  }
 0xce3   : > { %p23_p4 = scmp.ge.s32.totalorder %s26_s21, 4  }
 0xce5   :  { %25 = sbr.rel (!%p23_p4) target bundleno = 2 (0x2), region = 123 }

</bundles_post_ra>
